<compile_context>
chip_gen: v7x
topology: tpu7x:2x2x1
jax: 0.10.0
libtpu: 0.0.40
codegen_flags: <defaults>
</compile_context>

<pallas_src>
import numpy as np
import jax
import jax.numpy as jnp
from jax import lax
from jax.experimental import pallas as pl
from jax.experimental.pallas import tpu as pltpu

C = 32            # channel width of every conv layer
H_IN = W_IN = 48  # input spatial size implied by reshape(-1, 32, 81)
NW = 36           # 6x6 pooled conv1 positions feeding the one used output neuron
KT = 36           # 6x6 input taps per pooled position (2x2 pool window of 5x5 convs)
K2 = NW * C       # conv2 im2col depth (6*6*32 = 1152)
EPS = 1e-5        # BatchNorm eps (torch default)
RF0 = 16          # receptive field of output position (4,4) is x[16:32, 16:32]


def _sigmoid(z):
    # Exact sigmoid: exp goes to the EUP; one true divide.  approx reciprocal was
    # dropped per review (kernel is overhead-bound, exactness is free).
    return 1.0 / (1.0 + jnp.exp(-z))


def _pool4_rows(y):
    # y: (4C, B) -- the four 2x2-maxpool candidates are sublane groups of C rows.
    a = jnp.maximum(y[0 * C:1 * C], y[1 * C:2 * C])
    b = jnp.maximum(y[2 * C:3 * C], y[3 * C:4 * C])
    return jnp.maximum(a, b)


def rf_cnn_kernel(xc_ref,
                  w1_ref, s1_ref, t1_ref,
                  w2_ref, s2_ref, t2_ref,
                  w3_ref, t3_ref,
                  w4_ref, t4_ref,
                  wl_ref, bl_ref,
                  out_ref, p2c_ref):
    """Batch-in-lanes forward for one grid step of B images.

    xc_ref : (NW, KT, B)   im2col'd 6x6 input windows (taps in sublanes, batch in lanes)
    w1_ref : (4C, KT)      conv1 weights, 4 pool candidates stacked along rows
    w2_ref : (4C, NW*C)    conv2 weights, im2col over the 6x6xC p1 window
    p2c_ref: (NW*C, B)     scratch: stage-1 activations stacked window-major
    """
    b = xc_ref.shape[-1]
    w1p = w1_ref[...]
    # Hoist lane-broadcasts out of the 36-window loop (broadcast_in_dim is not CSE'd).
    s1b = jnp.broadcast_to(s1_ref[...], (C, b))
    t1b = jnp.broadcast_to(t1_ref[...], (C, b))

    # ---- Stage 1: Conv2d(1->32,5x5)+bias + MaxPool2d(2) + BN + Sigmoid. ----
    # One pooled position per iteration as a (4C,KT)@(KT,B) MXU matmul; the pooled
    # (C,B) slab is stored at sublane offset k*C: aligned, unmasked, lane-dense.
    for k in range(NW):
        c1 = jnp.dot(w1p, xc_ref[k], preferred_element_type=jnp.float32)   # (4C, B)
        p2c_ref[k * C:(k + 1) * C, :] = _sigmoid(_pool4_rows(c1) * s1b + t1b)

    # ---- Stage 2: Conv2d(32->32,5x5)+bias + MaxPool2d(2) + BN + Sigmoid: one K=1152 matmul. ----
    c2 = jnp.dot(w2_ref[...], p2c_ref[...], preferred_element_type=jnp.float32)  # (4C, B)
    f = _sigmoid(_pool4_rows(c2) * jnp.broadcast_to(s2_ref[...], (C, b))
                 + jnp.broadcast_to(t2_ref[...], (C, b)))

    # ---- Stages 3/4: 1x1 convs (+BN+Sigmoid); BN scale is pre-folded into the weights. ----
    f = _sigmoid(jnp.dot(w3_ref[...], f, preferred_element_type=jnp.float32) + t3_ref[...])
    f = _sigmoid(jnp.dot(w4_ref[...], f, preferred_element_type=jnp.float32) + t4_ref[...])

    # ---- Linear(32 -> 1): lane-dense (1, B) store. ----
    out_ref[...] = jnp.dot(wl_ref[...], f, preferred_element_type=jnp.float32) + bl_ref[...]


# ---------------- host-side layout plumbing (no compute) ----------------

def _rep_spec(shape):
    nd = len(shape)
    return pl.BlockSpec(shape, lambda g, _nd=nd: (0,) * _nd)


# Static index tables for the input window gather: window k = py*6+px needs
# pixel (2*py+i, 2*px+j) of the 16x16 receptive-field patch at tap t = i*6+j.
_PY, _PX = np.meshgrid(np.arange(6), np.arange(6), indexing="ij")
_I, _J = np.meshgrid(np.arange(6), np.arange(6), indexing="ij")
_ROWS = 2 * _PY.reshape(-1, 1) + _I.reshape(1, -1)     # (36, 36)
_COLS = 2 * _PX.reshape(-1, 1) + _J.reshape(1, -1)     # (36, 36)


def _im2col_rf(x_nchw):
    """(N,1,48,48) -> (NW, KT, N): 6x6 input windows, taps in sublanes, batch in lanes."""
    patch = x_nchw[:, 0, RF0:RF0 + 16, RF0:RF0 + 16].astype(jnp.float32)   # (N,16,16)
    cols = patch[:, _ROWS, _COLS]                                          # (N,36,36)
    return jnp.transpose(cols, (1, 2, 0))                                  # (NW, KT, N)


def _pool_fused_w1_T(w1):
    """(5,5,C) conv1 weights -> (4C, KT): pool candidate (q,p) stacked along rows."""
    w = jnp.zeros((6, 6, 4 * C), jnp.float32)
    for q in range(2):
        for p in range(2):
            g = q * 2 + p
            w = w.at[q:q + 5, p:p + 5, g * C:(g + 1) * C].set(w1)
    return w.reshape(KT, 4 * C).T                                          # (4C, 36)


def _pool_fused_w2_T(w2):
    """(5,5,C,C) conv2 weights -> (4C, NW*C): im2col over the 6x6xC p1 window."""
    w = jnp.zeros((6, 6, C, 4 * C), jnp.float32)
    for q in range(2):
        for p in range(2):
            g = q * 2 + p
            w = w.at[q:q + 5, p:p + 5, :, g * C:(g + 1) * C].set(w2)
    return w.reshape(K2, 4 * C).T                                          # (4C, 1152)


def _bn_fold(gamma, beta, mean, var, bias):
    """Fold conv bias + BatchNorm (eval) into one per-channel affine (scale, shift)."""
    s = gamma / jnp.sqrt(var + EPS)
    t = beta - mean * s + bias * s
    return s.reshape(C, 1), t.reshape(C, 1)


@jax.jit
def rf_cnn_forward(x_nchw, params):
    (w1, b1, bn1, w2, b2, bn2, w3, b3, bn3, w4, b4, bn4, wl, bl) = params
    n = x_nchw.shape[0]
    # Per-step batch (lane dimension): 256 fills a v6e/v7x MXU tile; fall back to
    # 128 for small inputs.  Keeps per-step VMEM ~7 MB (< v5e's 16 MiB default).
    bstep = 128 if n <= 128 else 256
    g = -(-n // bstep)                  # grid steps (>=2 for large N -> both v7x TCs busy)
    npad = g * bstep

    xc = _im2col_rf(x_nchw)                                   # (NW, KT, n)
    if npad != n:
        xc = jnp.pad(xc, ((0, 0), (0, 0), (0, npad - n)))

    s1, t1 = _bn_fold(*bn1, b1)
    s2, t2 = _bn_fold(*bn2, b2)
    s3, t3 = _bn_fold(*bn3, b3)
    s4, t4 = _bn_fold(*bn4, b4)
    kparams = (
        _pool_fused_w1_T(w1), s1, t1,
        _pool_fused_w2_T(w2), s2, t2,
        s3 * w3.T, t3,                  # BN scale folded into the 1x1 conv weights
        s4 * w4.T, t4,
        wl.T, bl.reshape(1, 1),
    )

    in_specs = [pl.BlockSpec((NW, KT, bstep), lambda gi: (0, 0, gi))]
    in_specs += [_rep_spec(p.shape) for p in kparams]

    out = pl.pallas_call(
        rf_cnn_kernel,
        out_shape=jax.ShapeDtypeStruct((1, npad), jnp.float32),
        grid_spec=pltpu.PrefetchScalarGridSpec(
            num_scalar_prefetch=0,
            grid=(g,),
            in_specs=in_specs,
            out_specs=pl.BlockSpec((1, bstep), lambda gi: (0, gi)),
            scratch_shapes=[pltpu.VMEM((K2, bstep), jnp.float32)],
        ),
        compiler_params=pltpu.CompilerParams(
            dimension_semantics=("parallel",)),
    )(xc, *kparams)
    return out[0, :n].reshape(n, 1)                           # (N, 1)


# ---------------- deterministic init + plain-JAX reference ----------------

def init_params(key):
    """PyTorch-default-style uniform init; BN running stats made non-trivial."""
    ks = jax.random.split(key, 14)

    def u(k, shape, fan_in):
        bnd = 1.0 / float(fan_in) ** 0.5
        return jax.random.uniform(k, shape, jnp.float32, -bnd, bnd)

    def bn(k):
        kg, kb, km, kv = jax.random.split(k, 4)
        gamma = jax.random.uniform(kg, (C,), jnp.float32, 0.5, 1.5)
        beta = jax.random.uniform(kb, (C,), jnp.float32, -0.2, 0.2)
        mean = jax.random.uniform(km, (C,), jnp.float32, -0.2, 0.2)
        var = jax.random.uniform(kv, (C,), jnp.float32, 0.5, 1.5)
        return (gamma, beta, mean, var)

    w1 = u(ks[0], (5, 5, C), 25)           # conv1 weight [ky, kx, co]  (in_ch = 1)
    b1 = u(ks[1], (C,), 25)
    w2 = u(ks[2], (5, 5, C, C), 25 * C)    # conv2 weight [ky, kx, ci, co]
    b2 = u(ks[3], (C,), 25 * C)
    w3 = u(ks[4], (C, C), C)               # 1x1 conv  [ci, co]
    b3 = u(ks[5], (C,), C)
    w4 = u(ks[6], (C, C), C)
    b4 = u(ks[7], (C,), C)
    wl = u(ks[8], (C, 1), C)               # Linear (transpose of torch layout)
    bl = u(ks[9], (1,), C)
    return (w1, b1, bn(ks[10]), w2, b2, bn(ks[11]),
            w3, b3, bn(ks[12]), w4, b4, bn(ks[13]), wl, bl)


def ref_forward(x_nchw, params):
    """Plain-JAX reference of the FULL PyTorch forward (eval mode) for validation."""
    (w1, b1, bn1, w2, b2, bn2, w3, b3, bn3, w4, b4, bn4, wl, bl) = params
    dn = ("NHWC", "HWIO", "NHWC")

    def conv(x, w_hwio, b):
        y = lax.conv_general_dilated(x, w_hwio, (1, 1), "VALID", dimension_numbers=dn)
        return y + b.reshape(1, 1, 1, -1)

    def pool(x):
        return lax.reduce_window(x, -jnp.inf, lax.max, (1, 2, 2, 1), (1, 2, 2, 1), "VALID")

    def bnsig(x, bnp):
        gamma, beta, mean, var = bnp
        s = gamma / jnp.sqrt(var + EPS)
        return jax.nn.sigmoid(x * s.reshape(1, 1, 1, -1)
                              + (beta - mean * s).reshape(1, 1, 1, -1))

    x = jnp.transpose(x_nchw, (0, 2, 3, 1)).astype(jnp.float32)   # NHWC, 1 channel
    x = bnsig(pool(conv(x, w1.reshape(5, 5, 1, C), b1)), bn1)
    x = bnsig(pool(conv(x, w2, b2)), bn2)
    x = bnsig(conv(x, w3.reshape(1, 1, C, C), b3), bn3)
    x = bnsig(conv(x, w4.reshape(1, 1, C, C), b4), bn4)
    v = x[:, 4, 4, :]          # == reshape(-1, 32, 81)[:, :, 40] in NCHW
    return v @ wl + bl.reshape(1, 1)


if __name__ == "__main__":
    key = jax.random.PRNGKey(0)
    k_x, k_p = jax.random.split(key)
    params = init_params(k_p)

    # N=10 exercises batch padding (10 -> 128, g=1); N=300 exercises a multi-step
    # grid (bstep=256, g=2 -> both v7x TensorCores under "parallel").
    for N in (10, 300):
        x = jax.random.normal(jax.random.fold_in(k_x, N), (N, 1, H_IN, W_IN),
                              dtype=jnp.float32)
        y = jax.block_until_ready(rf_cnn_forward(x, params))
        assert y.shape == (N, 1) and y.dtype == jnp.float32

        y_ref = ref_forward(x, params)
        if not jnp.allclose(y, y_ref, atol=2e-3, rtol=2e-3):
            err = float(jnp.max(jnp.abs(y - y_ref)))
            raise AssertionError(f"kernel/reference mismatch (N={N}, max_err={err})")
    print("KERNEL_OK")
</pallas_src>

<mosaic_0001>
module attributes {stable_mosaic.version = 11 : i64} {
  func.func @rf_cnn_kernel(%arg0: i32, %arg1: memref<36x36x128xf32, #tpu.memory_space<vmem>>, %arg2: memref<128x36xf32, #tpu.memory_space<vmem>>, %arg3: memref<32x1xf32, #tpu.memory_space<vmem>>, %arg4: memref<32x1xf32, #tpu.memory_space<vmem>>, %arg5: memref<128x1152xf32, #tpu.memory_space<vmem>>, %arg6: memref<32x1xf32, #tpu.memory_space<vmem>>, %arg7: memref<32x1xf32, #tpu.memory_space<vmem>>, %arg8: memref<32x32xf32, #tpu.memory_space<vmem>>, %arg9: memref<32x1xf32, #tpu.memory_space<vmem>>, %arg10: memref<32x32xf32, #tpu.memory_space<vmem>>, %arg11: memref<32x1xf32, #tpu.memory_space<vmem>>, %arg12: memref<1x32xf32, #tpu.memory_space<vmem>>, %arg13: memref<1x1xf32, #tpu.memory_space<vmem>>, %arg14: memref<1x128xf32, #tpu.memory_space<vmem>>, %arg15: memref<1152x128xf32, #tpu.memory_space<vmem>>) attributes {dimension_semantics = [#tpu.dimension_semantics<parallel>], iteration_bounds = array<i64: 1>, scalar_prefetch = 0 : i64, scratch_operands = 1 : i64, tpu.core_type = #tpu.core_type<tc>, window_params = [{transform_indices = @transform_0, window_bounds = array<i64: 36, 36, 128>}, {pipeline_mode = #tpu.pipeline_mode<synchronous>, transform_indices = @transform_1, window_bounds = array<i64: 128, 36>}, {pipeline_mode = #tpu.pipeline_mode<synchronous>, transform_indices = @transform_2, window_bounds = array<i64: 32, 1>}, {pipeline_mode = #tpu.pipeline_mode<synchronous>, transform_indices = @transform_3, window_bounds = array<i64: 32, 1>}, {pipeline_mode = #tpu.pipeline_mode<synchronous>, transform_indices = @transform_4, window_bounds = array<i64: 128, 1152>}, {pipeline_mode = #tpu.pipeline_mode<synchronous>, transform_indices = @transform_5, window_bounds = array<i64: 32, 1>}, {pipeline_mode = #tpu.pipeline_mode<synchronous>, transform_indices = @transform_6, window_bounds = array<i64: 32, 1>}, {pipeline_mode = #tpu.pipeline_mode<synchronous>, transform_indices = @transform_7, window_bounds = array<i64: 32, 32>}, {pipeline_mode = #tpu.pipeline_mode<synchronous>, transform_indices = @transform_8, window_bounds = array<i64: 32, 1>}, {pipeline_mode = #tpu.pipeline_mode<synchronous>, transform_indices = @transform_9, window_bounds = array<i64: 32, 32>}, {pipeline_mode = #tpu.pipeline_mode<synchronous>, transform_indices = @transform_10, window_bounds = array<i64: 32, 1>}, {pipeline_mode = #tpu.pipeline_mode<synchronous>, transform_indices = @transform_11, window_bounds = array<i64: 1, 32>}, {pipeline_mode = #tpu.pipeline_mode<synchronous>, transform_indices = @transform_12, window_bounds = array<i64: 1, 1>}, {transform_indices = @transform_13, window_bounds = array<i64: 1, 128>}]} {
    %c0 = arith.constant 0 : index
    %c0_0 = arith.constant 0 : index
    %0 = vector.load %arg2[%c0, %c0_0] : memref<128x36xf32, #tpu.memory_space<vmem>>, vector<128x36xf32>
    %c0_1 = arith.constant 0 : index
    %c0_2 = arith.constant 0 : index
    %1 = vector.load %arg3[%c0_1, %c0_2] : memref<32x1xf32, #tpu.memory_space<vmem>>, vector<32x1xf32>
    %2 = vector.shape_cast %1 : vector<32x1xf32> to vector<32x1xf32>
    %3 = vector.broadcast %2 : vector<32x1xf32> to vector<32x128xf32>
    %c0_3 = arith.constant 0 : index
    %c0_4 = arith.constant 0 : index
    %4 = vector.load %arg4[%c0_3, %c0_4] : memref<32x1xf32, #tpu.memory_space<vmem>>, vector<32x1xf32>
    %5 = vector.shape_cast %4 : vector<32x1xf32> to vector<32x1xf32>
    %6 = vector.broadcast %5 : vector<32x1xf32> to vector<32x128xf32>
    %c0_5 = arith.constant 0 : index
    %c0_6 = arith.constant 0 : index
    %c0_7 = arith.constant 0 : index
    %7 = vector.load %arg1[%c0_5, %c0_6, %c0_7] : memref<36x36x128xf32, #tpu.memory_space<vmem>>, vector<1x36x128xf32>
    %8 = vector.shape_cast %7 : vector<1x36x128xf32> to vector<36x128xf32>
    %cst = arith.constant dense<0.000000e+00> : vector<128x128xf32>
    %9 = tpu.matmul %0, %8, %cst {dimension_numbers = #tpu.dot_dimension_numbers<[1], [0], [0], [1], [0, 0, 1, 1], [], []>} : vector<128x36xf32>, vector<36x128xf32>, vector<128x128xf32> -> vector<128x128xf32>
    %10 = vector.extract_strided_slice %9 {offsets = [0, 0], sizes = [32, 128], strides = [1, 1]} : vector<128x128xf32> to vector<32x128xf32>
    %11 = vector.extract_strided_slice %9 {offsets = [32, 0], sizes = [32, 128], strides = [1, 1]} : vector<128x128xf32> to vector<32x128xf32>
    %12 = arith.maximumf %10, %11 : vector<32x128xf32>
    %13 = vector.extract_strided_slice %9 {offsets = [64, 0], sizes = [32, 128], strides = [1, 1]} : vector<128x128xf32> to vector<32x128xf32>
    %14 = vector.extract_strided_slice %9 {offsets = [96, 0], sizes = [32, 128], strides = [1, 1]} : vector<128x128xf32> to vector<32x128xf32>
    %15 = arith.maximumf %13, %14 : vector<32x128xf32>
    %16 = arith.maximumf %12, %15 : vector<32x128xf32>
    %17 = arith.mulf %16, %3 : vector<32x128xf32>
    %18 = arith.addf %17, %6 : vector<32x128xf32>
    %cst_8 = arith.constant 0.000000e+00 : f32
    %19 = vector.broadcast %cst_8 : f32 to vector<32x128xf32>
    %20 = arith.subf %19, %18 : vector<32x128xf32>
    %21 = math.exp %20 : vector<32x128xf32>
    %cst_9 = arith.constant 1.000000e+00 : f32
    %22 = vector.broadcast %cst_9 : f32 to vector<32x128xf32>
    %23 = arith.addf %22, %21 : vector<32x128xf32>
    %cst_10 = arith.constant 1.000000e+00 : f32
    %24 = vector.broadcast %cst_10 : f32 to vector<32x128xf32>
    %25 = arith.divf %24, %23 : vector<32x128xf32>
    %c0_11 = arith.constant 0 : index
    %c0_12 = arith.constant 0 : index
    %26 = vector.load %arg15[%c0_11, %c0_12] : memref<1152x128xf32, #tpu.memory_space<vmem>>, vector<32x128xf32>
    tpu.vector_store %arg15[%c0_11, %c0_12], %25 {strides = array<i32>} : memref<1152x128xf32, #tpu.memory_space<vmem>>, vector<32x128xf32>,
    %c1 = arith.constant 1 : index
    %c0_13 = arith.constant 0 : index
    %c0_14 = arith.constant 0 : index
    %27 = vector.load %arg1[%c1, %c0_13, %c0_14] : memref<36x36x128xf32, #tpu.memory_space<vmem>>, vector<1x36x128xf32>
    %28 = vector.shape_cast %27 : vector<1x36x128xf32> to vector<36x128xf32>
    %cst_15 = arith.constant dense<0.000000e+00> : vector<128x128xf32>
    %29 = tpu.matmul %0, %28, %cst_15 {dimension_numbers = #tpu.dot_dimension_numbers<[1], [0], [0], [1], [0, 0, 1, 1], [], []>} : vector<128x36xf32>, vector<36x128xf32>, vector<128x128xf32> -> vector<128x128xf32>
    %30 = vector.extract_strided_slice %29 {offsets = [0, 0], sizes = [32, 128], strides = [1, 1]} : vector<128x128xf32> to vector<32x128xf32>
    %31 = vector.extract_strided_slice %29 {offsets = [32, 0], sizes = [32, 128], strides = [1, 1]} : vector<128x128xf32> to vector<32x128xf32>
    %32 = arith.maximumf %30, %31 : vector<32x128xf32>
    %33 = vector.extract_strided_slice %29 {offsets = [64, 0], sizes = [32, 128], strides = [1, 1]} : vector<128x128xf32> to vector<32x128xf32>
    %34 = vector.extract_strided_slice %29 {offsets = [96, 0], sizes = [32, 128], strides = [1, 1]} : vector<128x128xf32> to vector<32x128xf32>
    %35 = arith.maximumf %33, %34 : vector<32x128xf32>
    %36 = arith.maximumf %32, %35 : vector<32x128xf32>
    %37 = arith.mulf %36, %3 : vector<32x128xf32>
    %38 = arith.addf %37, %6 : vector<32x128xf32>
    %cst_16 = arith.constant 0.000000e+00 : f32
    %39 = vector.broadcast %cst_16 : f32 to vector<32x128xf32>
    %40 = arith.subf %39, %38 : vector<32x128xf32>
    %41 = math.exp %40 : vector<32x128xf32>
    %cst_17 = arith.constant 1.000000e+00 : f32
    %42 = vector.broadcast %cst_17 : f32 to vector<32x128xf32>
    %43 = arith.addf %42, %41 : vector<32x128xf32>
    %cst_18 = arith.constant 1.000000e+00 : f32
    %44 = vector.broadcast %cst_18 : f32 to vector<32x128xf32>
    %45 = arith.divf %44, %43 : vector<32x128xf32>
    %c32 = arith.constant 32 : index
    %c0_19 = arith.constant 0 : index
    %46 = vector.load %arg15[%c32, %c0_19] : memref<1152x128xf32, #tpu.memory_space<vmem>>, vector<32x128xf32>
    tpu.vector_store %arg15[%c32, %c0_19], %45 {strides = array<i32>} : memref<1152x128xf32, #tpu.memory_space<vmem>>, vector<32x128xf32>,
    %c2 = arith.constant 2 : index
    %c0_20 = arith.constant 0 : index
    %c0_21 = arith.constant 0 : index
    %47 = vector.load %arg1[%c2, %c0_20, %c0_21] : memref<36x36x128xf32, #tpu.memory_space<vmem>>, vector<1x36x128xf32>
    %48 = vector.shape_cast %47 : vector<1x36x128xf32> to vector<36x128xf32>
    %cst_22 = arith.constant dense<0.000000e+00> : vector<128x128xf32>
    %49 = tpu.matmul %0, %48, %cst_22 {dimension_numbers = #tpu.dot_dimension_numbers<[1], [0], [0], [1], [0, 0, 1, 1], [], []>} : vector<128x36xf32>, vector<36x128xf32>, vector<128x128xf32> -> vector<128x128xf32>
    %50 = vector.extract_strided_slice %49 {offsets = [0, 0], sizes = [32, 128], strides = [1, 1]} : vector<128x128xf32> to vector<32x128xf32>
    %51 = vector.extract_strided_slice %49 {offsets = [32, 0], sizes = [32, 128], strides = [1, 1]} : vector<128x128xf32> to vector<32x128xf32>
    %52 = arith.maximumf %50, %51 : vector<32x128xf32>
    %53 = vector.extract_strided_slice %49 {offsets = [64, 0], sizes = [32, 128], strides = [1, 1]} : vector<128x128xf32> to vector<32x128xf32>
    %54 = vector.extract_strided_slice %49 {offsets = [96, 0], sizes = [32, 128], strides = [1, 1]} : vector<128x128xf32> to vector<32x128xf32>
    %55 = arith.maximumf %53, %54 : vector<32x128xf32>
    %56 = arith.maximumf %52, %55 : vector<32x128xf32>
    %57 = arith.mulf %56, %3 : vector<32x128xf32>
    %58 = arith.addf %57, %6 : vector<32x128xf32>
    %cst_23 = arith.constant 0.000000e+00 : f32
    %59 = vector.broadcast %cst_23 : f32 to vector<32x128xf32>
    %60 = arith.subf %59, %58 : vector<32x128xf32>
    %61 = math.exp %60 : vector<32x128xf32>
    %cst_24 = arith.constant 1.000000e+00 : f32
    %62 = vector.broadcast %cst_24 : f32 to vector<32x128xf32>
    %63 = arith.addf %62, %61 : vector<32x128xf32>
    %cst_25 = arith.constant 1.000000e+00 : f32
    %64 = vector.broadcast %cst_25 : f32 to vector<32x128xf32>
    %65 = arith.divf %64, %63 : vector<32x128xf32>
    %c64 = arith.constant 64 : index
    %c0_26 = arith.constant 0 : index
    %66 = vector.load %arg15[%c64, %c0_26] : memref<1152x128xf32, #tpu.memory_space<vmem>>, vector<32x128xf32>
    tpu.vector_store %arg15[%c64, %c0_26], %65 {strides = array<i32>} : memref<1152x128xf32, #tpu.memory_space<vmem>>, vector<32x128xf32>,
    %c3 = arith.constant 3 : index
    %c0_27 = arith.constant 0 : index
    %c0_28 = arith.constant 0 : index
    %67 = vector.load %arg1[%c3, %c0_27, %c0_28] : memref<36x36x128xf32, #tpu.memory_space<vmem>>, vector<1x36x128xf32>
    %68 = vector.shape_cast %67 : vector<1x36x128xf32> to vector<36x128xf32>
    %cst_29 = arith.constant dense<0.000000e+00> : vector<128x128xf32>
    %69 = tpu.matmul %0, %68, %cst_29 {dimension_numbers = #tpu.dot_dimension_numbers<[1], [0], [0], [1], [0, 0, 1, 1], [], []>} : vector<128x36xf32>, vector<36x128xf32>, vector<128x128xf32> -> vector<128x128xf32>
    %70 = vector.extract_strided_slice %69 {offsets = [0, 0], sizes = [32, 128], strides = [1, 1]} : vector<128x128xf32> to vector<32x128xf32>
    %71 = vector.extract_strided_slice %69 {offsets = [32, 0], sizes = [32, 128], strides = [1, 1]} : vector<128x128xf32> to vector<32x128xf32>
    %72 = arith.maximumf %70, %71 : vector<32x128xf32>
    %73 = vector.extract_strided_slice %69 {offsets = [64, 0], sizes = [32, 128], strides = [1, 1]} : vector<128x128xf32> to vector<32x128xf32>
    %74 = vector.extract_strided_slice %69 {offsets = [96, 0], sizes = [32, 128], strides = [1, 1]} : vector<128x128xf32> to vector<32x128xf32>
    %75 = arith.maximumf %73, %74 : vector<32x128xf32>
    %76 = arith.maximumf %72, %75 : vector<32x128xf32>
    %77 = arith.mulf %76, %3 : vector<32x128xf32>
    %78 = arith.addf %77, %6 : vector<32x128xf32>
    %cst_30 = arith.constant 0.000000e+00 : f32
    %79 = vector.broadcast %cst_30 : f32 to vector<32x128xf32>
    %80 = arith.subf %79, %78 : vector<32x128xf32>
    %81 = math.exp %80 : vector<32x128xf32>
    %cst_31 = arith.constant 1.000000e+00 : f32
    %82 = vector.broadcast %cst_31 : f32 to vector<32x128xf32>
    %83 = arith.addf %82, %81 : vector<32x128xf32>
    %cst_32 = arith.constant 1.000000e+00 : f32
    %84 = vector.broadcast %cst_32 : f32 to vector<32x128xf32>
    %85 = arith.divf %84, %83 : vector<32x128xf32>
    %c96 = arith.constant 96 : index
    %c0_33 = arith.constant 0 : index
    %86 = vector.load %arg15[%c96, %c0_33] : memref<1152x128xf32, #tpu.memory_space<vmem>>, vector<32x128xf32>
    tpu.vector_store %arg15[%c96, %c0_33], %85 {strides = array<i32>} : memref<1152x128xf32, #tpu.memory_space<vmem>>, vector<32x128xf32>,
    %c4 = arith.constant 4 : index
    %c0_34 = arith.constant 0 : index
    %c0_35 = arith.constant 0 : index
    %87 = vector.load %arg1[%c4, %c0_34, %c0_35] : memref<36x36x128xf32, #tpu.memory_space<vmem>>, vector<1x36x128xf32>
    %88 = vector.shape_cast %87 : vector<1x36x128xf32> to vector<36x128xf32>
    %cst_36 = arith.constant dense<0.000000e+00> : vector<128x128xf32>
    %89 = tpu.matmul %0, %88, %cst_36 {dimension_numbers = #tpu.dot_dimension_numbers<[1], [0], [0], [1], [0, 0, 1, 1], [], []>} : vector<128x36xf32>, vector<36x128xf32>, vector<128x128xf32> -> vector<128x128xf32>
    %90 = vector.extract_strided_slice %89 {offsets = [0, 0], sizes = [32, 128], strides = [1, 1]} : vector<128x128xf32> to vector<32x128xf32>
    %91 = vector.extract_strided_slice %89 {offsets = [32, 0], sizes = [32, 128], strides = [1, 1]} : vector<128x128xf32> to vector<32x128xf32>
    %92 = arith.maximumf %90, %91 : vector<32x128xf32>
    %93 = vector.extract_strided_slice %89 {offsets = [64, 0], sizes = [32, 128], strides = [1, 1]} : vector<128x128xf32> to vector<32x128xf32>
    %94 = vector.extract_strided_slice %89 {offsets = [96, 0], sizes = [32, 128], strides = [1, 1]} : vector<128x128xf32> to vector<32x128xf32>
    %95 = arith.maximumf %93, %94 : vector<32x128xf32>
    %96 = arith.maximumf %92, %95 : vector<32x128xf32>
    %97 = arith.mulf %96, %3 : vector<32x128xf32>
    %98 = arith.addf %97, %6 : vector<32x128xf32>
    %cst_37 = arith.constant 0.000000e+00 : f32
    %99 = vector.broadcast %cst_37 : f32 to vector<32x128xf32>
    %100 = arith.subf %99, %98 : vector<32x128xf32>
    %101 = math.exp %100 : vector<32x128xf32>
    %cst_38 = arith.constant 1.000000e+00 : f32
    %102 = vector.broadcast %cst_38 : f32 to vector<32x128xf32>
    %103 = arith.addf %102, %101 : vector<32x128xf32>
    %cst_39 = arith.constant 1.000000e+00 : f32
    %104 = vector.broadcast %cst_39 : f32 to vector<32x128xf32>
    %105 = arith.divf %104, %103 : vector<32x128xf32>
    %c128 = arith.constant 128 : index
    %c0_40 = arith.constant 0 : index
    %106 = vector.load %arg15[%c128, %c0_40] : memref<1152x128xf32, #tpu.memory_space<vmem>>, vector<32x128xf32>
    tpu.vector_store %arg15[%c128, %c0_40], %105 {strides = array<i32>} : memref<1152x128xf32, #tpu.memory_space<vmem>>, vector<32x128xf32>,
    %c5 = arith.constant 5 : index
    %c0_41 = arith.constant 0 : index
    %c0_42 = arith.constant 0 : index
    %107 = vector.load %arg1[%c5, %c0_41, %c0_42] : memref<36x36x128xf32, #tpu.memory_space<vmem>>, vector<1x36x128xf32>
    %108 = vector.shape_cast %107 : vector<1x36x128xf32> to vector<36x128xf32>
    %cst_43 = arith.constant dense<0.000000e+00> : vector<128x128xf32>
    %109 = tpu.matmul %0, %108, %cst_43 {dimension_numbers = #tpu.dot_dimension_numbers<[1], [0], [0], [1], [0, 0, 1, 1], [], []>} : vector<128x36xf32>, vector<36x128xf32>, vector<128x128xf32> -> vector<128x128xf32>
    %110 = vector.extract_strided_slice %109 {offsets = [0, 0], sizes = [32, 128], strides = [1, 1]} : vector<128x128xf32> to vector<32x128xf32>
    %111 = vector.extract_strided_slice %109 {offsets = [32, 0], sizes = [32, 128], strides = [1, 1]} : vector<128x128xf32> to vector<32x128xf32>
    %112 = arith.maximumf %110, %111 : vector<32x128xf32>
    %113 = vector.extract_strided_slice %109 {offsets = [64, 0], sizes = [32, 128], strides = [1, 1]} : vector<128x128xf32> to vector<32x128xf32>
    %114 = vector.extract_strided_slice %109 {offsets = [96, 0], sizes = [32, 128], strides = [1, 1]} : vector<128x128xf32> to vector<32x128xf32>
    %115 = arith.maximumf %113, %114 : vector<32x128xf32>
    %116 = arith.maximumf %112, %115 : vector<32x128xf32>
    %117 = arith.mulf %116, %3 : vector<32x128xf32>
    %118 = arith.addf %117, %6 : vector<32x128xf32>
    %cst_44 = arith.constant 0.000000e+00 : f32
    %119 = vector.broadcast %cst_44 : f32 to vector<32x128xf32>
    %120 = arith.subf %119, %118 : vector<32x128xf32>
    %121 = math.exp %120 : vector<32x128xf32>
    %cst_45 = arith.constant 1.000000e+00 : f32
    %122 = vector.broadcast %cst_45 : f32 to vector<32x128xf32>
    %123 = arith.addf %122, %121 : vector<32x128xf32>
    %cst_46 = arith.constant 1.000000e+00 : f32
    %124 = vector.broadcast %cst_46 : f32 to vector<32x128xf32>
    %125 = arith.divf %124, %123 : vector<32x128xf32>
    %c160 = arith.constant 160 : index
    %c0_47 = arith.constant 0 : index
    %126 = vector.load %arg15[%c160, %c0_47] : memref<1152x128xf32, #tpu.memory_space<vmem>>, vector<32x128xf32>
    tpu.vector_store %arg15[%c160, %c0_47], %125 {strides = array<i32>} : memref<1152x128xf32, #tpu.memory_space<vmem>>, vector<32x128xf32>,
    %c6 = arith.constant 6 : index
    %c0_48 = arith.constant 0 : index
    %c0_49 = arith.constant 0 : index
    %127 = vector.load %arg1[%c6, %c0_48, %c0_49] : memref<36x36x128xf32, #tpu.memory_space<vmem>>, vector<1x36x128xf32>
    %128 = vector.shape_cast %127 : vector<1x36x128xf32> to vector<36x128xf32>
    %cst_50 = arith.constant dense<0.000000e+00> : vector<128x128xf32>
    %129 = tpu.matmul %0, %128, %cst_50 {dimension_numbers = #tpu.dot_dimension_numbers<[1], [0], [0], [1], [0, 0, 1, 1], [], []>} : vector<128x36xf32>, vector<36x128xf32>, vector<128x128xf32> -> vector<128x128xf32>
    %130 = vector.extract_strided_slice %129 {offsets = [0, 0], sizes = [32, 128], strides = [1, 1]} : vector<128x128xf32> to vector<32x128xf32>
    %131 = vector.extract_strided_slice %129 {offsets = [32, 0], sizes = [32, 128], strides = [1, 1]} : vector<128x128xf32> to vector<32x128xf32>
    %132 = arith.maximumf %130, %131 : vector<32x128xf32>
    %133 = vector.extract_strided_slice %129 {offsets = [64, 0], sizes = [32, 128], strides = [1, 1]} : vector<128x128xf32> to vector<32x128xf32>
    %134 = vector.extract_strided_slice %129 {offsets = [96, 0], sizes = [32, 128], strides = [1, 1]} : vector<128x128xf32> to vector<32x128xf32>
    %135 = arith.maximumf %133, %134 : vector<32x128xf32>
    %136 = arith.maximumf %132, %135 : vector<32x128xf32>
    %137 = arith.mulf %136, %3 : vector<32x128xf32>
    %138 = arith.addf %137, %6 : vector<32x128xf32>
    %cst_51 = arith.constant 0.000000e+00 : f32
    %139 = vector.broadcast %cst_51 : f32 to vector<32x128xf32>
    %140 = arith.subf %139, %138 : vector<32x128xf32>
    %141 = math.exp %140 : vector<32x128xf32>
    %cst_52 = arith.constant 1.000000e+00 : f32
    %142 = vector.broadcast %cst_52 : f32 to vector<32x128xf32>
    %143 = arith.addf %142, %141 : vector<32x128xf32>
    %cst_53 = arith.constant 1.000000e+00 : f32
    %144 = vector.broadcast %cst_53 : f32 to vector<32x128xf32>
    %145 = arith.divf %144, %143 : vector<32x128xf32>
    %c192 = arith.constant 192 : index
    %c0_54 = arith.constant 0 : index
    %146 = vector.load %arg15[%c192, %c0_54] : memref<1152x128xf32, #tpu.memory_space<vmem>>, vector<32x128xf32>
    tpu.vector_store %arg15[%c192, %c0_54], %145 {strides = array<i32>} : memref<1152x128xf32, #tpu.memory_space<vmem>>, vector<32x128xf32>,
    %c7 = arith.constant 7 : index
    %c0_55 = arith.constant 0 : index
    %c0_56 = arith.constant 0 : index
    %147 = vector.load %arg1[%c7, %c0_55, %c0_56] : memref<36x36x128xf32, #tpu.memory_space<vmem>>, vector<1x36x128xf32>
    %148 = vector.shape_cast %147 : vector<1x36x128xf32> to vector<36x128xf32>
    %cst_57 = arith.constant dense<0.000000e+00> : vector<128x128xf32>
    %149 = tpu.matmul %0, %148, %cst_57 {dimension_numbers = #tpu.dot_dimension_numbers<[1], [0], [0], [1], [0, 0, 1, 1], [], []>} : vector<128x36xf32>, vector<36x128xf32>, vector<128x128xf32> -> vector<128x128xf32>
    %150 = vector.extract_strided_slice %149 {offsets = [0, 0], sizes = [32, 128], strides = [1, 1]} : vector<128x128xf32> to vector<32x128xf32>
    %151 = vector.extract_strided_slice %149 {offsets = [32, 0], sizes = [32, 128], strides = [1, 1]} : vector<128x128xf32> to vector<32x128xf32>
    %152 = arith.maximumf %150, %151 : vector<32x128xf32>
    %153 = vector.extract_strided_slice %149 {offsets = [64, 0], sizes = [32, 128], strides = [1, 1]} : vector<128x128xf32> to vector<32x128xf32>
    %154 = vector.extract_strided_slice %149 {offsets = [96, 0], sizes = [32, 128], strides = [1, 1]} : vector<128x128xf32> to vector<32x128xf32>
    %155 = arith.maximumf %153, %154 : vector<32x128xf32>
    %156 = arith.maximumf %152, %155 : vector<32x128xf32>
    %157 = arith.mulf %156, %3 : vector<32x128xf32>
    %158 = arith.addf %157, %6 : vector<32x128xf32>
    %cst_58 = arith.constant 0.000000e+00 : f32
    %159 = vector.broadcast %cst_58 : f32 to vector<32x128xf32>
    %160 = arith.subf %159, %158 : vector<32x128xf32>
    %161 = math.exp %160 : vector<32x128xf32>
    %cst_59 = arith.constant 1.000000e+00 : f32
    %162 = vector.broadcast %cst_59 : f32 to vector<32x128xf32>
    %163 = arith.addf %162, %161 : vector<32x128xf32>
    %cst_60 = arith.constant 1.000000e+00 : f32
    %164 = vector.broadcast %cst_60 : f32 to vector<32x128xf32>
    %165 = arith.divf %164, %163 : vector<32x128xf32>
    %c224 = arith.constant 224 : index
    %c0_61 = arith.constant 0 : index
    %166 = vector.load %arg15[%c224, %c0_61] : memref<1152x128xf32, #tpu.memory_space<vmem>>, vector<32x128xf32>
    tpu.vector_store %arg15[%c224, %c0_61], %165 {strides = array<i32>} : memref<1152x128xf32, #tpu.memory_space<vmem>>, vector<32x128xf32>,
    %c8 = arith.constant 8 : index
    %c0_62 = arith.constant 0 : index
    %c0_63 = arith.constant 0 : index
    %167 = vector.load %arg1[%c8, %c0_62, %c0_63] : memref<36x36x128xf32, #tpu.memory_space<vmem>>, vector<1x36x128xf32>
    %168 = vector.shape_cast %167 : vector<1x36x128xf32> to vector<36x128xf32>
    %cst_64 = arith.constant dense<0.000000e+00> : vector<128x128xf32>
    %169 = tpu.matmul %0, %168, %cst_64 {dimension_numbers = #tpu.dot_dimension_numbers<[1], [0], [0], [1], [0, 0, 1, 1], [], []>} : vector<128x36xf32>, vector<36x128xf32>, vector<128x128xf32> -> vector<128x128xf32>
    %170 = vector.extract_strided_slice %169 {offsets = [0, 0], sizes = [32, 128], strides = [1, 1]} : vector<128x128xf32> to vector<32x128xf32>
    %171 = vector.extract_strided_slice %169 {offsets = [32, 0], sizes = [32, 128], strides = [1, 1]} : vector<128x128xf32> to vector<32x128xf32>
    %172 = arith.maximumf %170, %171 : vector<32x128xf32>
    %173 = vector.extract_strided_slice %169 {offsets = [64, 0], sizes = [32, 128], strides = [1, 1]} : vector<128x128xf32> to vector<32x128xf32>
    %174 = vector.extract_strided_slice %169 {offsets = [96, 0], sizes = [32, 128], strides = [1, 1]} : vector<128x128xf32> to vector<32x128xf32>
    %175 = arith.maximumf %173, %174 : vector<32x128xf32>
    %176 = arith.maximumf %172, %175 : vector<32x128xf32>
    %177 = arith.mulf %176, %3 : vector<32x128xf32>
    %178 = arith.addf %177, %6 : vector<32x128xf32>
    %cst_65 = arith.constant 0.000000e+00 : f32
    %179 = vector.broadcast %cst_65 : f32 to vector<32x128xf32>
    %180 = arith.subf %179, %178 : vector<32x128xf32>
    %181 = math.exp %180 : vector<32x128xf32>
    %cst_66 = arith.constant 1.000000e+00 : f32
    %182 = vector.broadcast %cst_66 : f32 to vector<32x128xf32>
    %183 = arith.addf %182, %181 : vector<32x128xf32>
    %cst_67 = arith.constant 1.000000e+00 : f32
    %184 = vector.broadcast %cst_67 : f32 to vector<32x128xf32>
    %185 = arith.divf %184, %183 : vector<32x128xf32>
    %c256 = arith.constant 256 : index
    %c0_68 = arith.constant 0 : index
    %186 = vector.load %arg15[%c256, %c0_68] : memref<1152x128xf32, #tpu.memory_space<vmem>>, vector<32x128xf32>
    tpu.vector_store %arg15[%c256, %c0_68], %185 {strides = array<i32>} : memref<1152x128xf32, #tpu.memory_space<vmem>>, vector<32x128xf32>,
    %c9 = arith.constant 9 : index
    %c0_69 = arith.constant 0 : index
    %c0_70 = arith.constant 0 : index
    %187 = vector.load %arg1[%c9, %c0_69, %c0_70] : memref<36x36x128xf32, #tpu.memory_space<vmem>>, vector<1x36x128xf32>
    %188 = vector.shape_cast %187 : vector<1x36x128xf32> to vector<36x128xf32>
    %cst_71 = arith.constant dense<0.000000e+00> : vector<128x128xf32>
    %189 = tpu.matmul %0, %188, %cst_71 {dimension_numbers = #tpu.dot_dimension_numbers<[1], [0], [0], [1], [0, 0, 1, 1], [], []>} : vector<128x36xf32>, vector<36x128xf32>, vector<128x128xf32> -> vector<128x128xf32>
    %190 = vector.extract_strided_slice %189 {offsets = [0, 0], sizes = [32, 128], strides = [1, 1]} : vector<128x128xf32> to vector<32x128xf32>
    %191 = vector.extract_strided_slice %189 {offsets = [32, 0], sizes = [32, 128], strides = [1, 1]} : vector<128x128xf32> to vector<32x128xf32>
    %192 = arith.maximumf %190, %191 : vector<32x128xf32>
    %193 = vector.extract_strided_slice %189 {offsets = [64, 0], sizes = [32, 128], strides = [1, 1]} : vector<128x128xf32> to vector<32x128xf32>
    %194 = vector.extract_strided_slice %189 {offsets = [96, 0], sizes = [32, 128], strides = [1, 1]} : vector<128x128xf32> to vector<32x128xf32>
    %195 = arith.maximumf %193, %194 : vector<32x128xf32>
    %196 = arith.maximumf %192, %195 : vector<32x128xf32>
    %197 = arith.mulf %196, %3 : vector<32x128xf32>
    %198 = arith.addf %197, %6 : vector<32x128xf32>
    %cst_72 = arith.constant 0.000000e+00 : f32
    %199 = vector.broadcast %cst_72 : f32 to vector<32x128xf32>
    %200 = arith.subf %199, %198 : vector<32x128xf32>
    %201 = math.exp %200 : vector<32x128xf32>
    %cst_73 = arith.constant 1.000000e+00 : f32
    %202 = vector.broadcast %cst_73 : f32 to vector<32x128xf32>
    %203 = arith.addf %202, %201 : vector<32x128xf32>
    %cst_74 = arith.constant 1.000000e+00 : f32
    %204 = vector.broadcast %cst_74 : f32 to vector<32x128xf32>
    %205 = arith.divf %204, %203 : vector<32x128xf32>
    %c288 = arith.constant 288 : index
    %c0_75 = arith.constant 0 : index
    %206 = vector.load %arg15[%c288, %c0_75] : memref<1152x128xf32, #tpu.memory_space<vmem>>, vector<32x128xf32>
    tpu.vector_store %arg15[%c288, %c0_75], %205 {strides = array<i32>} : memref<1152x128xf32, #tpu.memory_space<vmem>>, vector<32x128xf32>,
    %c10 = arith.constant 10 : index
    %c0_76 = arith.constant 0 : index
    %c0_77 = arith.constant 0 : index
    %207 = vector.load %arg1[%c10, %c0_76, %c0_77] : memref<36x36x128xf32, #tpu.memory_space<vmem>>, vector<1x36x128xf32>
    %208 = vector.shape_cast %207 : vector<1x36x128xf32> to vector<36x128xf32>
    %cst_78 = arith.constant dense<0.000000e+00> : vector<128x128xf32>
    %209 = tpu.matmul %0, %208, %cst_78 {dimension_numbers = #tpu.dot_dimension_numbers<[1], [0], [0], [1], [0, 0, 1, 1], [], []>} : vector<128x36xf32>, vector<36x128xf32>, vector<128x128xf32> -> vector<128x128xf32>
    %210 = vector.extract_strided_slice %209 {offsets = [0, 0], sizes = [32, 128], strides = [1, 1]} : vector<128x128xf32> to vector<32x128xf32>
    %211 = vector.extract_strided_slice %209 {offsets = [32, 0], sizes = [32, 128], strides = [1, 1]} : vector<128x128xf32> to vector<32x128xf32>
    %212 = arith.maximumf %210, %211 : vector<32x128xf32>
    %213 = vector.extract_strided_slice %209 {offsets = [64, 0], sizes = [32, 128], strides = [1, 1]} : vector<128x128xf32> to vector<32x128xf32>
    %214 = vector.extract_strided_slice %209 {offsets = [96, 0], sizes = [32, 128], strides = [1, 1]} : vector<128x128xf32> to vector<32x128xf32>
    %215 = arith.maximumf %213, %214 : vector<32x128xf32>
    %216 = arith.maximumf %212, %215 : vector<32x128xf32>
    %217 = arith.mulf %216, %3 : vector<32x128xf32>
    %218 = arith.addf %217, %6 : vector<32x128xf32>
    %cst_79 = arith.constant 0.000000e+00 : f32
    %219 = vector.broadcast %cst_79 : f32 to vector<32x128xf32>
    %220 = arith.subf %219, %218 : vector<32x128xf32>
    %221 = math.exp %220 : vector<32x128xf32>
    %cst_80 = arith.constant 1.000000e+00 : f32
    %222 = vector.broadcast %cst_80 : f32 to vector<32x128xf32>
    %223 = arith.addf %222, %221 : vector<32x128xf32>
    %cst_81 = arith.constant 1.000000e+00 : f32
    %224 = vector.broadcast %cst_81 : f32 to vector<32x128xf32>
    %225 = arith.divf %224, %223 : vector<32x128xf32>
    %c320 = arith.constant 320 : index
    %c0_82 = arith.constant 0 : index
    %226 = vector.load %arg15[%c320, %c0_82] : memref<1152x128xf32, #tpu.memory_space<vmem>>, vector<32x128xf32>
    tpu.vector_store %arg15[%c320, %c0_82], %225 {strides = array<i32>} : memref<1152x128xf32, #tpu.memory_space<vmem>>, vector<32x128xf32>,
    %c11 = arith.constant 11 : index
    %c0_83 = arith.constant 0 : index
    %c0_84 = arith.constant 0 : index
    %227 = vector.load %arg1[%c11, %c0_83, %c0_84] : memref<36x36x128xf32, #tpu.memory_space<vmem>>, vector<1x36x128xf32>
    %228 = vector.shape_cast %227 : vector<1x36x128xf32> to vector<36x128xf32>
    %cst_85 = arith.constant dense<0.000000e+00> : vector<128x128xf32>
    %229 = tpu.matmul %0, %228, %cst_85 {dimension_numbers = #tpu.dot_dimension_numbers<[1], [0], [0], [1], [0, 0, 1, 1], [], []>} : vector<128x36xf32>, vector<36x128xf32>, vector<128x128xf32> -> vector<128x128xf32>
    %230 = vector.extract_strided_slice %229 {offsets = [0, 0], sizes = [32, 128], strides = [1, 1]} : vector<128x128xf32> to vector<32x128xf32>
    %231 = vector.extract_strided_slice %229 {offsets = [32, 0], sizes = [32, 128], strides = [1, 1]} : vector<128x128xf32> to vector<32x128xf32>
    %232 = arith.maximumf %230, %231 : vector<32x128xf32>
    %233 = vector.extract_strided_slice %229 {offsets = [64, 0], sizes = [32, 128], strides = [1, 1]} : vector<128x128xf32> to vector<32x128xf32>
    %234 = vector.extract_strided_slice %229 {offsets = [96, 0], sizes = [32, 128], strides = [1, 1]} : vector<128x128xf32> to vector<32x128xf32>
    %235 = arith.maximumf %233, %234 : vector<32x128xf32>
    %236 = arith.maximumf %232, %235 : vector<32x128xf32>
    %237 = arith.mulf %236, %3 : vector<32x128xf32>
    %238 = arith.addf %237, %6 : vector<32x128xf32>
    %cst_86 = arith.constant 0.000000e+00 : f32
    %239 = vector.broadcast %cst_86 : f32 to vector<32x128xf32>
    %240 = arith.subf %239, %238 : vector<32x128xf32>
    %241 = math.exp %240 : vector<32x128xf32>
    %cst_87 = arith.constant 1.000000e+00 : f32
    %242 = vector.broadcast %cst_87 : f32 to vector<32x128xf32>
    %243 = arith.addf %242, %241 : vector<32x128xf32>
    %cst_88 = arith.constant 1.000000e+00 : f32
    %244 = vector.broadcast %cst_88 : f32 to vector<32x128xf32>
    %245 = arith.divf %244, %243 : vector<32x128xf32>
    %c352 = arith.constant 352 : index
    %c0_89 = arith.constant 0 : index
    %246 = vector.load %arg15[%c352, %c0_89] : memref<1152x128xf32, #tpu.memory_space<vmem>>, vector<32x128xf32>
    tpu.vector_store %arg15[%c352, %c0_89], %245 {strides = array<i32>} : memref<1152x128xf32, #tpu.memory_space<vmem>>, vector<32x128xf32>,
    %c12 = arith.constant 12 : index
    %c0_90 = arith.constant 0 : index
    %c0_91 = arith.constant 0 : index
    %247 = vector.load %arg1[%c12, %c0_90, %c0_91] : memref<36x36x128xf32, #tpu.memory_space<vmem>>, vector<1x36x128xf32>
    %248 = vector.shape_cast %247 : vector<1x36x128xf32> to vector<36x128xf32>
    %cst_92 = arith.constant dense<0.000000e+00> : vector<128x128xf32>
    %249 = tpu.matmul %0, %248, %cst_92 {dimension_numbers = #tpu.dot_dimension_numbers<[1], [0], [0], [1], [0, 0, 1, 1], [], []>} : vector<128x36xf32>, vector<36x128xf32>, vector<128x128xf32> -> vector<128x128xf32>
    %250 = vector.extract_strided_slice %249 {offsets = [0, 0], sizes = [32, 128], strides = [1, 1]} : vector<128x128xf32> to vector<32x128xf32>
    %251 = vector.extract_strided_slice %249 {offsets = [32, 0], sizes = [32, 128], strides = [1, 1]} : vector<128x128xf32> to vector<32x128xf32>
    %252 = arith.maximumf %250, %251 : vector<32x128xf32>
    %253 = vector.extract_strided_slice %249 {offsets = [64, 0], sizes = [32, 128], strides = [1, 1]} : vector<128x128xf32> to vector<32x128xf32>
    %254 = vector.extract_strided_slice %249 {offsets = [96, 0], sizes = [32, 128], strides = [1, 1]} : vector<128x128xf32> to vector<32x128xf32>
    %255 = arith.maximumf %253, %254 : vector<32x128xf32>
    %256 = arith.maximumf %252, %255 : vector<32x128xf32>
    %257 = arith.mulf %256, %3 : vector<32x128xf32>
    %258 = arith.addf %257, %6 : vector<32x128xf32>
    %cst_93 = arith.constant 0.000000e+00 : f32
    %259 = vector.broadcast %cst_93 : f32 to vector<32x128xf32>
    %260 = arith.subf %259, %258 : vector<32x128xf32>
    %261 = math.exp %260 : vector<32x128xf32>
    %cst_94 = arith.constant 1.000000e+00 : f32
    %262 = vector.broadcast %cst_94 : f32 to vector<32x128xf32>
    %263 = arith.addf %262, %261 : vector<32x128xf32>
    %cst_95 = arith.constant 1.000000e+00 : f32
    %264 = vector.broadcast %cst_95 : f32 to vector<32x128xf32>
    %265 = arith.divf %264, %263 : vector<32x128xf32>
    %c384 = arith.constant 384 : index
    %c0_96 = arith.constant 0 : index
    %266 = vector.load %arg15[%c384, %c0_96] : memref<1152x128xf32, #tpu.memory_space<vmem>>, vector<32x128xf32>
    tpu.vector_store %arg15[%c384, %c0_96], %265 {strides = array<i32>} : memref<1152x128xf32, #tpu.memory_space<vmem>>, vector<32x128xf32>,
    %c13 = arith.constant 13 : index
    %c0_97 = arith.constant 0 : index
    %c0_98 = arith.constant 0 : index
    %267 = vector.load %arg1[%c13, %c0_97, %c0_98] : memref<36x36x128xf32, #tpu.memory_space<vmem>>, vector<1x36x128xf32>
    %268 = vector.shape_cast %267 : vector<1x36x128xf32> to vector<36x128xf32>
    %cst_99 = arith.constant dense<0.000000e+00> : vector<128x128xf32>
    %269 = tpu.matmul %0, %268, %cst_99 {dimension_numbers = #tpu.dot_dimension_numbers<[1], [0], [0], [1], [0, 0, 1, 1], [], []>} : vector<128x36xf32>, vector<36x128xf32>, vector<128x128xf32> -> vector<128x128xf32>
    %270 = vector.extract_strided_slice %269 {offsets = [0, 0], sizes = [32, 128], strides = [1, 1]} : vector<128x128xf32> to vector<32x128xf32>
    %271 = vector.extract_strided_slice %269 {offsets = [32, 0], sizes = [32, 128], strides = [1, 1]} : vector<128x128xf32> to vector<32x128xf32>
    %272 = arith.maximumf %270, %271 : vector<32x128xf32>
    %273 = vector.extract_strided_slice %269 {offsets = [64, 0], sizes = [32, 128], strides = [1, 1]} : vector<128x128xf32> to vector<32x128xf32>
    %274 = vector.extract_strided_slice %269 {offsets = [96, 0], sizes = [32, 128], strides = [1, 1]} : vector<128x128xf32> to vector<32x128xf32>
    %275 = arith.maximumf %273, %274 : vector<32x128xf32>
    %276 = arith.maximumf %272, %275 : vector<32x128xf32>
    %277 = arith.mulf %276, %3 : vector<32x128xf32>
    %278 = arith.addf %277, %6 : vector<32x128xf32>
    %cst_100 = arith.constant 0.000000e+00 : f32
    %279 = vector.broadcast %cst_100 : f32 to vector<32x128xf32>
    %280 = arith.subf %279, %278 : vector<32x128xf32>
    %281 = math.exp %280 : vector<32x128xf32>
    %cst_101 = arith.constant 1.000000e+00 : f32
    %282 = vector.broadcast %cst_101 : f32 to vector<32x128xf32>
    %283 = arith.addf %282, %281 : vector<32x128xf32>
    %cst_102 = arith.constant 1.000000e+00 : f32
    %284 = vector.broadcast %cst_102 : f32 to vector<32x128xf32>
    %285 = arith.divf %284, %283 : vector<32x128xf32>
    %c416 = arith.constant 416 : index
    %c0_103 = arith.constant 0 : index
    %286 = vector.load %arg15[%c416, %c0_103] : memref<1152x128xf32, #tpu.memory_space<vmem>>, vector<32x128xf32>
    tpu.vector_store %arg15[%c416, %c0_103], %285 {strides = array<i32>} : memref<1152x128xf32, #tpu.memory_space<vmem>>, vector<32x128xf32>,
    %c14 = arith.constant 14 : index
    %c0_104 = arith.constant 0 : index
    %c0_105 = arith.constant 0 : index
    %287 = vector.load %arg1[%c14, %c0_104, %c0_105] : memref<36x36x128xf32, #tpu.memory_space<vmem>>, vector<1x36x128xf32>
    %288 = vector.shape_cast %287 : vector<1x36x128xf32> to vector<36x128xf32>
    %cst_106 = arith.constant dense<0.000000e+00> : vector<128x128xf32>
    %289 = tpu.matmul %0, %288, %cst_106 {dimension_numbers = #tpu.dot_dimension_numbers<[1], [0], [0], [1], [0, 0, 1, 1], [], []>} : vector<128x36xf32>, vector<36x128xf32>, vector<128x128xf32> -> vector<128x128xf32>
    %290 = vector.extract_strided_slice %289 {offsets = [0, 0], sizes = [32, 128], strides = [1, 1]} : vector<128x128xf32> to vector<32x128xf32>
    %291 = vector.extract_strided_slice %289 {offsets = [32, 0], sizes = [32, 128], strides = [1, 1]} : vector<128x128xf32> to vector<32x128xf32>
    %292 = arith.maximumf %290, %291 : vector<32x128xf32>
    %293 = vector.extract_strided_slice %289 {offsets = [64, 0], sizes = [32, 128], strides = [1, 1]} : vector<128x128xf32> to vector<32x128xf32>
    %294 = vector.extract_strided_slice %289 {offsets = [96, 0], sizes = [32, 128], strides = [1, 1]} : vector<128x128xf32> to vector<32x128xf32>
    %295 = arith.maximumf %293, %294 : vector<32x128xf32>
    %296 = arith.maximumf %292, %295 : vector<32x128xf32>
    %297 = arith.mulf %296, %3 : vector<32x128xf32>
    %298 = arith.addf %297, %6 : vector<32x128xf32>
    %cst_107 = arith.constant 0.000000e+00 : f32
    %299 = vector.broadcast %cst_107 : f32 to vector<32x128xf32>
    %300 = arith.subf %299, %298 : vector<32x128xf32>
    %301 = math.exp %300 : vector<32x128xf32>
    %cst_108 = arith.constant 1.000000e+00 : f32
    %302 = vector.broadcast %cst_108 : f32 to vector<32x128xf32>
    %303 = arith.addf %302, %301 : vector<32x128xf32>
    %cst_109 = arith.constant 1.000000e+00 : f32
    %304 = vector.broadcast %cst_109 : f32 to vector<32x128xf32>
    %305 = arith.divf %304, %303 : vector<32x128xf32>
    %c448 = arith.constant 448 : index
    %c0_110 = arith.constant 0 : index
    %306 = vector.load %arg15[%c448, %c0_110] : memref<1152x128xf32, #tpu.memory_space<vmem>>, vector<32x128xf32>
    tpu.vector_store %arg15[%c448, %c0_110], %305 {strides = array<i32>} : memref<1152x128xf32, #tpu.memory_space<vmem>>, vector<32x128xf32>,
    %c15 = arith.constant 15 : index
    %c0_111 = arith.constant 0 : index
    %c0_112 = arith.constant 0 : index
    %307 = vector.load %arg1[%c15, %c0_111, %c0_112] : memref<36x36x128xf32, #tpu.memory_space<vmem>>, vector<1x36x128xf32>
    %308 = vector.shape_cast %307 : vector<1x36x128xf32> to vector<36x128xf32>
    %cst_113 = arith.constant dense<0.000000e+00> : vector<128x128xf32>
    %309 = tpu.matmul %0, %308, %cst_113 {dimension_numbers = #tpu.dot_dimension_numbers<[1], [0], [0], [1], [0, 0, 1, 1], [], []>} : vector<128x36xf32>, vector<36x128xf32>, vector<128x128xf32> -> vector<128x128xf32>
    %310 = vector.extract_strided_slice %309 {offsets = [0, 0], sizes = [32, 128], strides = [1, 1]} : vector<128x128xf32> to vector<32x128xf32>
    %311 = vector.extract_strided_slice %309 {offsets = [32, 0], sizes = [32, 128], strides = [1, 1]} : vector<128x128xf32> to vector<32x128xf32>
    %312 = arith.maximumf %310, %311 : vector<32x128xf32>
    %313 = vector.extract_strided_slice %309 {offsets = [64, 0], sizes = [32, 128], strides = [1, 1]} : vector<128x128xf32> to vector<32x128xf32>
    %314 = vector.extract_strided_slice %309 {offsets = [96, 0], sizes = [32, 128], strides = [1, 1]} : vector<128x128xf32> to vector<32x128xf32>
    %315 = arith.maximumf %313, %314 : vector<32x128xf32>
    %316 = arith.maximumf %312, %315 : vector<32x128xf32>
    %317 = arith.mulf %316, %3 : vector<32x128xf32>
    %318 = arith.addf %317, %6 : vector<32x128xf32>
    %cst_114 = arith.constant 0.000000e+00 : f32
    %319 = vector.broadcast %cst_114 : f32 to vector<32x128xf32>
    %320 = arith.subf %319, %318 : vector<32x128xf32>
    %321 = math.exp %320 : vector<32x128xf32>
    %cst_115 = arith.constant 1.000000e+00 : f32
    %322 = vector.broadcast %cst_115 : f32 to vector<32x128xf32>
    %323 = arith.addf %322, %321 : vector<32x128xf32>
    %cst_116 = arith.constant 1.000000e+00 : f32
    %324 = vector.broadcast %cst_116 : f32 to vector<32x128xf32>
    %325 = arith.divf %324, %323 : vector<32x128xf32>
    %c480 = arith.constant 480 : index
    %c0_117 = arith.constant 0 : index
    %326 = vector.load %arg15[%c480, %c0_117] : memref<1152x128xf32, #tpu.memory_space<vmem>>, vector<32x128xf32>
    tpu.vector_store %arg15[%c480, %c0_117], %325 {strides = array<i32>} : memref<1152x128xf32, #tpu.memory_space<vmem>>, vector<32x128xf32>,
    %c16 = arith.constant 16 : index
    %c0_118 = arith.constant 0 : index
    %c0_119 = arith.constant 0 : index
    %327 = vector.load %arg1[%c16, %c0_118, %c0_119] : memref<36x36x128xf32, #tpu.memory_space<vmem>>, vector<1x36x128xf32>
    %328 = vector.shape_cast %327 : vector<1x36x128xf32> to vector<36x128xf32>
    %cst_120 = arith.constant dense<0.000000e+00> : vector<128x128xf32>
    %329 = tpu.matmul %0, %328, %cst_120 {dimension_numbers = #tpu.dot_dimension_numbers<[1], [0], [0], [1], [0, 0, 1, 1], [], []>} : vector<128x36xf32>, vector<36x128xf32>, vector<128x128xf32> -> vector<128x128xf32>
    %330 = vector.extract_strided_slice %329 {offsets = [0, 0], sizes = [32, 128], strides = [1, 1]} : vector<128x128xf32> to vector<32x128xf32>
    %331 = vector.extract_strided_slice %329 {offsets = [32, 0], sizes = [32, 128], strides = [1, 1]} : vector<128x128xf32> to vector<32x128xf32>
    %332 = arith.maximumf %330, %331 : vector<32x128xf32>
    %333 = vector.extract_strided_slice %329 {offsets = [64, 0], sizes = [32, 128], strides = [1, 1]} : vector<128x128xf32> to vector<32x128xf32>
    %334 = vector.extract_strided_slice %329 {offsets = [96, 0], sizes = [32, 128], strides = [1, 1]} : vector<128x128xf32> to vector<32x128xf32>
    %335 = arith.maximumf %333, %334 : vector<32x128xf32>
    %336 = arith.maximumf %332, %335 : vector<32x128xf32>
    %337 = arith.mulf %336, %3 : vector<32x128xf32>
    %338 = arith.addf %337, %6 : vector<32x128xf32>
    %cst_121 = arith.constant 0.000000e+00 : f32
    %339 = vector.broadcast %cst_121 : f32 to vector<32x128xf32>
    %340 = arith.subf %339, %338 : vector<32x128xf32>
    %341 = math.exp %340 : vector<32x128xf32>
    %cst_122 = arith.constant 1.000000e+00 : f32
    %342 = vector.broadcast %cst_122 : f32 to vector<32x128xf32>
    %343 = arith.addf %342, %341 : vector<32x128xf32>
    %cst_123 = arith.constant 1.000000e+00 : f32
    %344 = vector.broadcast %cst_123 : f32 to vector<32x128xf32>
    %345 = arith.divf %344, %343 : vector<32x128xf32>
    %c512 = arith.constant 512 : index
    %c0_124 = arith.constant 0 : index
    %346 = vector.load %arg15[%c512, %c0_124] : memref<1152x128xf32, #tpu.memory_space<vmem>>, vector<32x128xf32>
    tpu.vector_store %arg15[%c512, %c0_124], %345 {strides = array<i32>} : memref<1152x128xf32, #tpu.memory_space<vmem>>, vector<32x128xf32>,
    %c17 = arith.constant 17 : index
    %c0_125 = arith.constant 0 : index
    %c0_126 = arith.constant 0 : index
    %347 = vector.load %arg1[%c17, %c0_125, %c0_126] : memref<36x36x128xf32, #tpu.memory_space<vmem>>, vector<1x36x128xf32>
    %348 = vector.shape_cast %347 : vector<1x36x128xf32> to vector<36x128xf32>
    %cst_127 = arith.constant dense<0.000000e+00> : vector<128x128xf32>
    %349 = tpu.matmul %0, %348, %cst_127 {dimension_numbers = #tpu.dot_dimension_numbers<[1], [0], [0], [1], [0, 0, 1, 1], [], []>} : vector<128x36xf32>, vector<36x128xf32>, vector<128x128xf32> -> vector<128x128xf32>
    %350 = vector.extract_strided_slice %349 {offsets = [0, 0], sizes = [32, 128], strides = [1, 1]} : vector<128x128xf32> to vector<32x128xf32>
    %351 = vector.extract_strided_slice %349 {offsets = [32, 0], sizes = [32, 128], strides = [1, 1]} : vector<128x128xf32> to vector<32x128xf32>
    %352 = arith.maximumf %350, %351 : vector<32x128xf32>
    %353 = vector.extract_strided_slice %349 {offsets = [64, 0], sizes = [32, 128], strides = [1, 1]} : vector<128x128xf32> to vector<32x128xf32>
    %354 = vector.extract_strided_slice %349 {offsets = [96, 0], sizes = [32, 128], strides = [1, 1]} : vector<128x128xf32> to vector<32x128xf32>
    %355 = arith.maximumf %353, %354 : vector<32x128xf32>
    %356 = arith.maximumf %352, %355 : vector<32x128xf32>
    %357 = arith.mulf %356, %3 : vector<32x128xf32>
    %358 = arith.addf %357, %6 : vector<32x128xf32>
    %cst_128 = arith.constant 0.000000e+00 : f32
    %359 = vector.broadcast %cst_128 : f32 to vector<32x128xf32>
    %360 = arith.subf %359, %358 : vector<32x128xf32>
    %361 = math.exp %360 : vector<32x128xf32>
    %cst_129 = arith.constant 1.000000e+00 : f32
    %362 = vector.broadcast %cst_129 : f32 to vector<32x128xf32>
    %363 = arith.addf %362, %361 : vector<32x128xf32>
    %cst_130 = arith.constant 1.000000e+00 : f32
    %364 = vector.broadcast %cst_130 : f32 to vector<32x128xf32>
    %365 = arith.divf %364, %363 : vector<32x128xf32>
    %c544 = arith.constant 544 : index
    %c0_131 = arith.constant 0 : index
    %366 = vector.load %arg15[%c544, %c0_131] : memref<1152x128xf32, #tpu.memory_space<vmem>>, vector<32x128xf32>
    tpu.vector_store %arg15[%c544, %c0_131], %365 {strides = array<i32>} : memref<1152x128xf32, #tpu.memory_space<vmem>>, vector<32x128xf32>,
    %c18 = arith.constant 18 : index
    %c0_132 = arith.constant 0 : index
    %c0_133 = arith.constant 0 : index
    %367 = vector.load %arg1[%c18, %c0_132, %c0_133] : memref<36x36x128xf32, #tpu.memory_space<vmem>>, vector<1x36x128xf32>
    %368 = vector.shape_cast %367 : vector<1x36x128xf32> to vector<36x128xf32>
    %cst_134 = arith.constant dense<0.000000e+00> : vector<128x128xf32>
    %369 = tpu.matmul %0, %368, %cst_134 {dimension_numbers = #tpu.dot_dimension_numbers<[1], [0], [0], [1], [0, 0, 1, 1], [], []>} : vector<128x36xf32>, vector<36x128xf32>, vector<128x128xf32> -> vector<128x128xf32>
    %370 = vector.extract_strided_slice %369 {offsets = [0, 0], sizes = [32, 128], strides = [1, 1]} : vector<128x128xf32> to vector<32x128xf32>
    %371 = vector.extract_strided_slice %369 {offsets = [32, 0], sizes = [32, 128], strides = [1, 1]} : vector<128x128xf32> to vector<32x128xf32>
    %372 = arith.maximumf %370, %371 : vector<32x128xf32>
    %373 = vector.extract_strided_slice %369 {offsets = [64, 0], sizes = [32, 128], strides = [1, 1]} : vector<128x128xf32> to vector<32x128xf32>
    %374 = vector.extract_strided_slice %369 {offsets = [96, 0], sizes = [32, 128], strides = [1, 1]} : vector<128x128xf32> to vector<32x128xf32>
    %375 = arith.maximumf %373, %374 : vector<32x128xf32>
    %376 = arith.maximumf %372, %375 : vector<32x128xf32>
    %377 = arith.mulf %376, %3 : vector<32x128xf32>
    %378 = arith.addf %377, %6 : vector<32x128xf32>
    %cst_135 = arith.constant 0.000000e+00 : f32
    %379 = vector.broadcast %cst_135 : f32 to vector<32x128xf32>
    %380 = arith.subf %379, %378 : vector<32x128xf32>
    %381 = math.exp %380 : vector<32x128xf32>
    %cst_136 = arith.constant 1.000000e+00 : f32
    %382 = vector.broadcast %cst_136 : f32 to vector<32x128xf32>
    %383 = arith.addf %382, %381 : vector<32x128xf32>
    %cst_137 = arith.constant 1.000000e+00 : f32
    %384 = vector.broadcast %cst_137 : f32 to vector<32x128xf32>
    %385 = arith.divf %384, %383 : vector<32x128xf32>
    %c576 = arith.constant 576 : index
    %c0_138 = arith.constant 0 : index
    %386 = vector.load %arg15[%c576, %c0_138] : memref<1152x128xf32, #tpu.memory_space<vmem>>, vector<32x128xf32>
    tpu.vector_store %arg15[%c576, %c0_138], %385 {strides = array<i32>} : memref<1152x128xf32, #tpu.memory_space<vmem>>, vector<32x128xf32>,
    %c19 = arith.constant 19 : index
    %c0_139 = arith.constant 0 : index
    %c0_140 = arith.constant 0 : index
    %387 = vector.load %arg1[%c19, %c0_139, %c0_140] : memref<36x36x128xf32, #tpu.memory_space<vmem>>, vector<1x36x128xf32>
    %388 = vector.shape_cast %387 : vector<1x36x128xf32> to vector<36x128xf32>
    %cst_141 = arith.constant dense<0.000000e+00> : vector<128x128xf32>
    %389 = tpu.matmul %0, %388, %cst_141 {dimension_numbers = #tpu.dot_dimension_numbers<[1], [0], [0], [1], [0, 0, 1, 1], [], []>} : vector<128x36xf32>, vector<36x128xf32>, vector<128x128xf32> -> vector<128x128xf32>
    %390 = vector.extract_strided_slice %389 {offsets = [0, 0], sizes = [32, 128], strides = [1, 1]} : vector<128x128xf32> to vector<32x128xf32>
    %391 = vector.extract_strided_slice %389 {offsets = [32, 0], sizes = [32, 128], strides = [1, 1]} : vector<128x128xf32> to vector<32x128xf32>
    %392 = arith.maximumf %390, %391 : vector<32x128xf32>
    %393 = vector.extract_strided_slice %389 {offsets = [64, 0], sizes = [32, 128], strides = [1, 1]} : vector<128x128xf32> to vector<32x128xf32>
    %394 = vector.extract_strided_slice %389 {offsets = [96, 0], sizes = [32, 128], strides = [1, 1]} : vector<128x128xf32> to vector<32x128xf32>
    %395 = arith.maximumf %393, %394 : vector<32x128xf32>
    %396 = arith.maximumf %392, %395 : vector<32x128xf32>
    %397 = arith.mulf %396, %3 : vector<32x128xf32>
    %398 = arith.addf %397, %6 : vector<32x128xf32>
    %cst_142 = arith.constant 0.000000e+00 : f32
    %399 = vector.broadcast %cst_142 : f32 to vector<32x128xf32>
    %400 = arith.subf %399, %398 : vector<32x128xf32>
    %401 = math.exp %400 : vector<32x128xf32>
    %cst_143 = arith.constant 1.000000e+00 : f32
    %402 = vector.broadcast %cst_143 : f32 to vector<32x128xf32>
    %403 = arith.addf %402, %401 : vector<32x128xf32>
    %cst_144 = arith.constant 1.000000e+00 : f32
    %404 = vector.broadcast %cst_144 : f32 to vector<32x128xf32>
    %405 = arith.divf %404, %403 : vector<32x128xf32>
    %c608 = arith.constant 608 : index
    %c0_145 = arith.constant 0 : index
    %406 = vector.load %arg15[%c608, %c0_145] : memref<1152x128xf32, #tpu.memory_space<vmem>>, vector<32x128xf32>
    tpu.vector_store %arg15[%c608, %c0_145], %405 {strides = array<i32>} : memref<1152x128xf32, #tpu.memory_space<vmem>>, vector<32x128xf32>,
    %c20 = arith.constant 20 : index
    %c0_146 = arith.constant 0 : index
    %c0_147 = arith.constant 0 : index
    %407 = vector.load %arg1[%c20, %c0_146, %c0_147] : memref<36x36x128xf32, #tpu.memory_space<vmem>>, vector<1x36x128xf32>
    %408 = vector.shape_cast %407 : vector<1x36x128xf32> to vector<36x128xf32>
    %cst_148 = arith.constant dense<0.000000e+00> : vector<128x128xf32>
    %409 = tpu.matmul %0, %408, %cst_148 {dimension_numbers = #tpu.dot_dimension_numbers<[1], [0], [0], [1], [0, 0, 1, 1], [], []>} : vector<128x36xf32>, vector<36x128xf32>, vector<128x128xf32> -> vector<128x128xf32>
    %410 = vector.extract_strided_slice %409 {offsets = [0, 0], sizes = [32, 128], strides = [1, 1]} : vector<128x128xf32> to vector<32x128xf32>
    %411 = vector.extract_strided_slice %409 {offsets = [32, 0], sizes = [32, 128], strides = [1, 1]} : vector<128x128xf32> to vector<32x128xf32>
    %412 = arith.maximumf %410, %411 : vector<32x128xf32>
    %413 = vector.extract_strided_slice %409 {offsets = [64, 0], sizes = [32, 128], strides = [1, 1]} : vector<128x128xf32> to vector<32x128xf32>
    %414 = vector.extract_strided_slice %409 {offsets = [96, 0], sizes = [32, 128], strides = [1, 1]} : vector<128x128xf32> to vector<32x128xf32>
    %415 = arith.maximumf %413, %414 : vector<32x128xf32>
    %416 = arith.maximumf %412, %415 : vector<32x128xf32>
    %417 = arith.mulf %416, %3 : vector<32x128xf32>
    %418 = arith.addf %417, %6 : vector<32x128xf32>
    %cst_149 = arith.constant 0.000000e+00 : f32
    %419 = vector.broadcast %cst_149 : f32 to vector<32x128xf32>
    %420 = arith.subf %419, %418 : vector<32x128xf32>
    %421 = math.exp %420 : vector<32x128xf32>
    %cst_150 = arith.constant 1.000000e+00 : f32
    %422 = vector.broadcast %cst_150 : f32 to vector<32x128xf32>
    %423 = arith.addf %422, %421 : vector<32x128xf32>
    %cst_151 = arith.constant 1.000000e+00 : f32
    %424 = vector.broadcast %cst_151 : f32 to vector<32x128xf32>
    %425 = arith.divf %424, %423 : vector<32x128xf32>
    %c640 = arith.constant 640 : index
    %c0_152 = arith.constant 0 : index
    %426 = vector.load %arg15[%c640, %c0_152] : memref<1152x128xf32, #tpu.memory_space<vmem>>, vector<32x128xf32>
    tpu.vector_store %arg15[%c640, %c0_152], %425 {strides = array<i32>} : memref<1152x128xf32, #tpu.memory_space<vmem>>, vector<32x128xf32>,
    %c21 = arith.constant 21 : index
    %c0_153 = arith.constant 0 : index
    %c0_154 = arith.constant 0 : index
    %427 = vector.load %arg1[%c21, %c0_153, %c0_154] : memref<36x36x128xf32, #tpu.memory_space<vmem>>, vector<1x36x128xf32>
    %428 = vector.shape_cast %427 : vector<1x36x128xf32> to vector<36x128xf32>
    %cst_155 = arith.constant dense<0.000000e+00> : vector<128x128xf32>
    %429 = tpu.matmul %0, %428, %cst_155 {dimension_numbers = #tpu.dot_dimension_numbers<[1], [0], [0], [1], [0, 0, 1, 1], [], []>} : vector<128x36xf32>, vector<36x128xf32>, vector<128x128xf32> -> vector<128x128xf32>
    %430 = vector.extract_strided_slice %429 {offsets = [0, 0], sizes = [32, 128], strides = [1, 1]} : vector<128x128xf32> to vector<32x128xf32>
    %431 = vector.extract_strided_slice %429 {offsets = [32, 0], sizes = [32, 128], strides = [1, 1]} : vector<128x128xf32> to vector<32x128xf32>
    %432 = arith.maximumf %430, %431 : vector<32x128xf32>
    %433 = vector.extract_strided_slice %429 {offsets = [64, 0], sizes = [32, 128], strides = [1, 1]} : vector<128x128xf32> to vector<32x128xf32>
    %434 = vector.extract_strided_slice %429 {offsets = [96, 0], sizes = [32, 128], strides = [1, 1]} : vector<128x128xf32> to vector<32x128xf32>
    %435 = arith.maximumf %433, %434 : vector<32x128xf32>
    %436 = arith.maximumf %432, %435 : vector<32x128xf32>
    %437 = arith.mulf %436, %3 : vector<32x128xf32>
    %438 = arith.addf %437, %6 : vector<32x128xf32>
    %cst_156 = arith.constant 0.000000e+00 : f32
    %439 = vector.broadcast %cst_156 : f32 to vector<32x128xf32>
    %440 = arith.subf %439, %438 : vector<32x128xf32>
    %441 = math.exp %440 : vector<32x128xf32>
    %cst_157 = arith.constant 1.000000e+00 : f32
    %442 = vector.broadcast %cst_157 : f32 to vector<32x128xf32>
    %443 = arith.addf %442, %441 : vector<32x128xf32>
    %cst_158 = arith.constant 1.000000e+00 : f32
    %444 = vector.broadcast %cst_158 : f32 to vector<32x128xf32>
    %445 = arith.divf %444, %443 : vector<32x128xf32>
    %c672 = arith.constant 672 : index
    %c0_159 = arith.constant 0 : index
    %446 = vector.load %arg15[%c672, %c0_159] : memref<1152x128xf32, #tpu.memory_space<vmem>>, vector<32x128xf32>
    tpu.vector_store %arg15[%c672, %c0_159], %445 {strides = array<i32>} : memref<1152x128xf32, #tpu.memory_space<vmem>>, vector<32x128xf32>,
    %c22 = arith.constant 22 : index
    %c0_160 = arith.constant 0 : index
    %c0_161 = arith.constant 0 : index
    %447 = vector.load %arg1[%c22, %c0_160, %c0_161] : memref<36x36x128xf32, #tpu.memory_space<vmem>>, vector<1x36x128xf32>
    %448 = vector.shape_cast %447 : vector<1x36x128xf32> to vector<36x128xf32>
    %cst_162 = arith.constant dense<0.000000e+00> : vector<128x128xf32>
    %449 = tpu.matmul %0, %448, %cst_162 {dimension_numbers = #tpu.dot_dimension_numbers<[1], [0], [0], [1], [0, 0, 1, 1], [], []>} : vector<128x36xf32>, vector<36x128xf32>, vector<128x128xf32> -> vector<128x128xf32>
    %450 = vector.extract_strided_slice %449 {offsets = [0, 0], sizes = [32, 128], strides = [1, 1]} : vector<128x128xf32> to vector<32x128xf32>
    %451 = vector.extract_strided_slice %449 {offsets = [32, 0], sizes = [32, 128], strides = [1, 1]} : vector<128x128xf32> to vector<32x128xf32>
    %452 = arith.maximumf %450, %451 : vector<32x128xf32>
    %453 = vector.extract_strided_slice %449 {offsets = [64, 0], sizes = [32, 128], strides = [1, 1]} : vector<128x128xf32> to vector<32x128xf32>
    %454 = vector.extract_strided_slice %449 {offsets = [96, 0], sizes = [32, 128], strides = [1, 1]} : vector<128x128xf32> to vector<32x128xf32>
    %455 = arith.maximumf %453, %454 : vector<32x128xf32>
    %456 = arith.maximumf %452, %455 : vector<32x128xf32>
    %457 = arith.mulf %456, %3 : vector<32x128xf32>
    %458 = arith.addf %457, %6 : vector<32x128xf32>
    %cst_163 = arith.constant 0.000000e+00 : f32
    %459 = vector.broadcast %cst_163 : f32 to vector<32x128xf32>
    %460 = arith.subf %459, %458 : vector<32x128xf32>
    %461 = math.exp %460 : vector<32x128xf32>
    %cst_164 = arith.constant 1.000000e+00 : f32
    %462 = vector.broadcast %cst_164 : f32 to vector<32x128xf32>
    %463 = arith.addf %462, %461 : vector<32x128xf32>
    %cst_165 = arith.constant 1.000000e+00 : f32
    %464 = vector.broadcast %cst_165 : f32 to vector<32x128xf32>
    %465 = arith.divf %464, %463 : vector<32x128xf32>
    %c704 = arith.constant 704 : index
    %c0_166 = arith.constant 0 : index
    %466 = vector.load %arg15[%c704, %c0_166] : memref<1152x128xf32, #tpu.memory_space<vmem>>, vector<32x128xf32>
    tpu.vector_store %arg15[%c704, %c0_166], %465 {strides = array<i32>} : memref<1152x128xf32, #tpu.memory_space<vmem>>, vector<32x128xf32>,
    %c23 = arith.constant 23 : index
    %c0_167 = arith.constant 0 : index
    %c0_168 = arith.constant 0 : index
    %467 = vector.load %arg1[%c23, %c0_167, %c0_168] : memref<36x36x128xf32, #tpu.memory_space<vmem>>, vector<1x36x128xf32>
    %468 = vector.shape_cast %467 : vector<1x36x128xf32> to vector<36x128xf32>
    %cst_169 = arith.constant dense<0.000000e+00> : vector<128x128xf32>
    %469 = tpu.matmul %0, %468, %cst_169 {dimension_numbers = #tpu.dot_dimension_numbers<[1], [0], [0], [1], [0, 0, 1, 1], [], []>} : vector<128x36xf32>, vector<36x128xf32>, vector<128x128xf32> -> vector<128x128xf32>
    %470 = vector.extract_strided_slice %469 {offsets = [0, 0], sizes = [32, 128], strides = [1, 1]} : vector<128x128xf32> to vector<32x128xf32>
    %471 = vector.extract_strided_slice %469 {offsets = [32, 0], sizes = [32, 128], strides = [1, 1]} : vector<128x128xf32> to vector<32x128xf32>
    %472 = arith.maximumf %470, %471 : vector<32x128xf32>
    %473 = vector.extract_strided_slice %469 {offsets = [64, 0], sizes = [32, 128], strides = [1, 1]} : vector<128x128xf32> to vector<32x128xf32>
    %474 = vector.extract_strided_slice %469 {offsets = [96, 0], sizes = [32, 128], strides = [1, 1]} : vector<128x128xf32> to vector<32x128xf32>
    %475 = arith.maximumf %473, %474 : vector<32x128xf32>
    %476 = arith.maximumf %472, %475 : vector<32x128xf32>
    %477 = arith.mulf %476, %3 : vector<32x128xf32>
    %478 = arith.addf %477, %6 : vector<32x128xf32>
    %cst_170 = arith.constant 0.000000e+00 : f32
    %479 = vector.broadcast %cst_170 : f32 to vector<32x128xf32>
    %480 = arith.subf %479, %478 : vector<32x128xf32>
    %481 = math.exp %480 : vector<32x128xf32>
    %cst_171 = arith.constant 1.000000e+00 : f32
    %482 = vector.broadcast %cst_171 : f32 to vector<32x128xf32>
    %483 = arith.addf %482, %481 : vector<32x128xf32>
    %cst_172 = arith.constant 1.000000e+00 : f32
    %484 = vector.broadcast %cst_172 : f32 to vector<32x128xf32>
    %485 = arith.divf %484, %483 : vector<32x128xf32>
    %c736 = arith.constant 736 : index
    %c0_173 = arith.constant 0 : index
    %486 = vector.load %arg15[%c736, %c0_173] : memref<1152x128xf32, #tpu.memory_space<vmem>>, vector<32x128xf32>
    tpu.vector_store %arg15[%c736, %c0_173], %485 {strides = array<i32>} : memref<1152x128xf32, #tpu.memory_space<vmem>>, vector<32x128xf32>,
    %c24 = arith.constant 24 : index
    %c0_174 = arith.constant 0 : index
    %c0_175 = arith.constant 0 : index
    %487 = vector.load %arg1[%c24, %c0_174, %c0_175] : memref<36x36x128xf32, #tpu.memory_space<vmem>>, vector<1x36x128xf32>
    %488 = vector.shape_cast %487 : vector<1x36x128xf32> to vector<36x128xf32>
    %cst_176 = arith.constant dense<0.000000e+00> : vector<128x128xf32>
    %489 = tpu.matmul %0, %488, %cst_176 {dimension_numbers = #tpu.dot_dimension_numbers<[1], [0], [0], [1], [0, 0, 1, 1], [], []>} : vector<128x36xf32>, vector<36x128xf32>, vector<128x128xf32> -> vector<128x128xf32>
    %490 = vector.extract_strided_slice %489 {offsets = [0, 0], sizes = [32, 128], strides = [1, 1]} : vector<128x128xf32> to vector<32x128xf32>
    %491 = vector.extract_strided_slice %489 {offsets = [32, 0], sizes = [32, 128], strides = [1, 1]} : vector<128x128xf32> to vector<32x128xf32>
    %492 = arith.maximumf %490, %491 : vector<32x128xf32>
    %493 = vector.extract_strided_slice %489 {offsets = [64, 0], sizes = [32, 128], strides = [1, 1]} : vector<128x128xf32> to vector<32x128xf32>
    %494 = vector.extract_strided_slice %489 {offsets = [96, 0], sizes = [32, 128], strides = [1, 1]} : vector<128x128xf32> to vector<32x128xf32>
    %495 = arith.maximumf %493, %494 : vector<32x128xf32>
    %496 = arith.maximumf %492, %495 : vector<32x128xf32>
    %497 = arith.mulf %496, %3 : vector<32x128xf32>
    %498 = arith.addf %497, %6 : vector<32x128xf32>
    %cst_177 = arith.constant 0.000000e+00 : f32
    %499 = vector.broadcast %cst_177 : f32 to vector<32x128xf32>
    %500 = arith.subf %499, %498 : vector<32x128xf32>
    %501 = math.exp %500 : vector<32x128xf32>
    %cst_178 = arith.constant 1.000000e+00 : f32
    %502 = vector.broadcast %cst_178 : f32 to vector<32x128xf32>
    %503 = arith.addf %502, %501 : vector<32x128xf32>
    %cst_179 = arith.constant 1.000000e+00 : f32
    %504 = vector.broadcast %cst_179 : f32 to vector<32x128xf32>
    %505 = arith.divf %504, %503 : vector<32x128xf32>
    %c768 = arith.constant 768 : index
    %c0_180 = arith.constant 0 : index
    %506 = vector.load %arg15[%c768, %c0_180] : memref<1152x128xf32, #tpu.memory_space<vmem>>, vector<32x128xf32>
    tpu.vector_store %arg15[%c768, %c0_180], %505 {strides = array<i32>} : memref<1152x128xf32, #tpu.memory_space<vmem>>, vector<32x128xf32>,
    %c25 = arith.constant 25 : index
    %c0_181 = arith.constant 0 : index
    %c0_182 = arith.constant 0 : index
    %507 = vector.load %arg1[%c25, %c0_181, %c0_182] : memref<36x36x128xf32, #tpu.memory_space<vmem>>, vector<1x36x128xf32>
    %508 = vector.shape_cast %507 : vector<1x36x128xf32> to vector<36x128xf32>
    %cst_183 = arith.constant dense<0.000000e+00> : vector<128x128xf32>
    %509 = tpu.matmul %0, %508, %cst_183 {dimension_numbers = #tpu.dot_dimension_numbers<[1], [0], [0], [1], [0, 0, 1, 1], [], []>} : vector<128x36xf32>, vector<36x128xf32>, vector<128x128xf32> -> vector<128x128xf32>
    %510 = vector.extract_strided_slice %509 {offsets = [0, 0], sizes = [32, 128], strides = [1, 1]} : vector<128x128xf32> to vector<32x128xf32>
    %511 = vector.extract_strided_slice %509 {offsets = [32, 0], sizes = [32, 128], strides = [1, 1]} : vector<128x128xf32> to vector<32x128xf32>
    %512 = arith.maximumf %510, %511 : vector<32x128xf32>
    %513 = vector.extract_strided_slice %509 {offsets = [64, 0], sizes = [32, 128], strides = [1, 1]} : vector<128x128xf32> to vector<32x128xf32>
    %514 = vector.extract_strided_slice %509 {offsets = [96, 0], sizes = [32, 128], strides = [1, 1]} : vector<128x128xf32> to vector<32x128xf32>
    %515 = arith.maximumf %513, %514 : vector<32x128xf32>
    %516 = arith.maximumf %512, %515 : vector<32x128xf32>
    %517 = arith.mulf %516, %3 : vector<32x128xf32>
    %518 = arith.addf %517, %6 : vector<32x128xf32>
    %cst_184 = arith.constant 0.000000e+00 : f32
    %519 = vector.broadcast %cst_184 : f32 to vector<32x128xf32>
    %520 = arith.subf %519, %518 : vector<32x128xf32>
    %521 = math.exp %520 : vector<32x128xf32>
    %cst_185 = arith.constant 1.000000e+00 : f32
    %522 = vector.broadcast %cst_185 : f32 to vector<32x128xf32>
    %523 = arith.addf %522, %521 : vector<32x128xf32>
    %cst_186 = arith.constant 1.000000e+00 : f32
    %524 = vector.broadcast %cst_186 : f32 to vector<32x128xf32>
    %525 = arith.divf %524, %523 : vector<32x128xf32>
    %c800 = arith.constant 800 : index
    %c0_187 = arith.constant 0 : index
    %526 = vector.load %arg15[%c800, %c0_187] : memref<1152x128xf32, #tpu.memory_space<vmem>>, vector<32x128xf32>
    tpu.vector_store %arg15[%c800, %c0_187], %525 {strides = array<i32>} : memref<1152x128xf32, #tpu.memory_space<vmem>>, vector<32x128xf32>,
    %c26 = arith.constant 26 : index
    %c0_188 = arith.constant 0 : index
    %c0_189 = arith.constant 0 : index
    %527 = vector.load %arg1[%c26, %c0_188, %c0_189] : memref<36x36x128xf32, #tpu.memory_space<vmem>>, vector<1x36x128xf32>
    %528 = vector.shape_cast %527 : vector<1x36x128xf32> to vector<36x128xf32>
    %cst_190 = arith.constant dense<0.000000e+00> : vector<128x128xf32>
    %529 = tpu.matmul %0, %528, %cst_190 {dimension_numbers = #tpu.dot_dimension_numbers<[1], [0], [0], [1], [0, 0, 1, 1], [], []>} : vector<128x36xf32>, vector<36x128xf32>, vector<128x128xf32> -> vector<128x128xf32>
    %530 = vector.extract_strided_slice %529 {offsets = [0, 0], sizes = [32, 128], strides = [1, 1]} : vector<128x128xf32> to vector<32x128xf32>
    %531 = vector.extract_strided_slice %529 {offsets = [32, 0], sizes = [32, 128], strides = [1, 1]} : vector<128x128xf32> to vector<32x128xf32>
    %532 = arith.maximumf %530, %531 : vector<32x128xf32>
    %533 = vector.extract_strided_slice %529 {offsets = [64, 0], sizes = [32, 128], strides = [1, 1]} : vector<128x128xf32> to vector<32x128xf32>
    %534 = vector.extract_strided_slice %529 {offsets = [96, 0], sizes = [32, 128], strides = [1, 1]} : vector<128x128xf32> to vector<32x128xf32>
    %535 = arith.maximumf %533, %534 : vector<32x128xf32>
    %536 = arith.maximumf %532, %535 : vector<32x128xf32>
    %537 = arith.mulf %536, %3 : vector<32x128xf32>
    %538 = arith.addf %537, %6 : vector<32x128xf32>
    %cst_191 = arith.constant 0.000000e+00 : f32
    %539 = vector.broadcast %cst_191 : f32 to vector<32x128xf32>
    %540 = arith.subf %539, %538 : vector<32x128xf32>
    %541 = math.exp %540 : vector<32x128xf32>
    %cst_192 = arith.constant 1.000000e+00 : f32
    %542 = vector.broadcast %cst_192 : f32 to vector<32x128xf32>
    %543 = arith.addf %542, %541 : vector<32x128xf32>
    %cst_193 = arith.constant 1.000000e+00 : f32
    %544 = vector.broadcast %cst_193 : f32 to vector<32x128xf32>
    %545 = arith.divf %544, %543 : vector<32x128xf32>
    %c832 = arith.constant 832 : index
    %c0_194 = arith.constant 0 : index
    %546 = vector.load %arg15[%c832, %c0_194] : memref<1152x128xf32, #tpu.memory_space<vmem>>, vector<32x128xf32>
    tpu.vector_store %arg15[%c832, %c0_194], %545 {strides = array<i32>} : memref<1152x128xf32, #tpu.memory_space<vmem>>, vector<32x128xf32>,
    %c27 = arith.constant 27 : index
    %c0_195 = arith.constant 0 : index
    %c0_196 = arith.constant 0 : index
    %547 = vector.load %arg1[%c27, %c0_195, %c0_196] : memref<36x36x128xf32, #tpu.memory_space<vmem>>, vector<1x36x128xf32>
    %548 = vector.shape_cast %547 : vector<1x36x128xf32> to vector<36x128xf32>
    %cst_197 = arith.constant dense<0.000000e+00> : vector<128x128xf32>
    %549 = tpu.matmul %0, %548, %cst_197 {dimension_numbers = #tpu.dot_dimension_numbers<[1], [0], [0], [1], [0, 0, 1, 1], [], []>} : vector<128x36xf32>, vector<36x128xf32>, vector<128x128xf32> -> vector<128x128xf32>
    %550 = vector.extract_strided_slice %549 {offsets = [0, 0], sizes = [32, 128], strides = [1, 1]} : vector<128x128xf32> to vector<32x128xf32>
    %551 = vector.extract_strided_slice %549 {offsets = [32, 0], sizes = [32, 128], strides = [1, 1]} : vector<128x128xf32> to vector<32x128xf32>
    %552 = arith.maximumf %550, %551 : vector<32x128xf32>
    %553 = vector.extract_strided_slice %549 {offsets = [64, 0], sizes = [32, 128], strides = [1, 1]} : vector<128x128xf32> to vector<32x128xf32>
    %554 = vector.extract_strided_slice %549 {offsets = [96, 0], sizes = [32, 128], strides = [1, 1]} : vector<128x128xf32> to vector<32x128xf32>
    %555 = arith.maximumf %553, %554 : vector<32x128xf32>
    %556 = arith.maximumf %552, %555 : vector<32x128xf32>
    %557 = arith.mulf %556, %3 : vector<32x128xf32>
    %558 = arith.addf %557, %6 : vector<32x128xf32>
    %cst_198 = arith.constant 0.000000e+00 : f32
    %559 = vector.broadcast %cst_198 : f32 to vector<32x128xf32>
    %560 = arith.subf %559, %558 : vector<32x128xf32>
    %561 = math.exp %560 : vector<32x128xf32>
    %cst_199 = arith.constant 1.000000e+00 : f32
    %562 = vector.broadcast %cst_199 : f32 to vector<32x128xf32>
    %563 = arith.addf %562, %561 : vector<32x128xf32>
    %cst_200 = arith.constant 1.000000e+00 : f32
    %564 = vector.broadcast %cst_200 : f32 to vector<32x128xf32>
    %565 = arith.divf %564, %563 : vector<32x128xf32>
    %c864 = arith.constant 864 : index
    %c0_201 = arith.constant 0 : index
    %566 = vector.load %arg15[%c864, %c0_201] : memref<1152x128xf32, #tpu.memory_space<vmem>>, vector<32x128xf32>
    tpu.vector_store %arg15[%c864, %c0_201], %565 {strides = array<i32>} : memref<1152x128xf32, #tpu.memory_space<vmem>>, vector<32x128xf32>,
    %c28 = arith.constant 28 : index
    %c0_202 = arith.constant 0 : index
    %c0_203 = arith.constant 0 : index
    %567 = vector.load %arg1[%c28, %c0_202, %c0_203] : memref<36x36x128xf32, #tpu.memory_space<vmem>>, vector<1x36x128xf32>
    %568 = vector.shape_cast %567 : vector<1x36x128xf32> to vector<36x128xf32>
    %cst_204 = arith.constant dense<0.000000e+00> : vector<128x128xf32>
    %569 = tpu.matmul %0, %568, %cst_204 {dimension_numbers = #tpu.dot_dimension_numbers<[1], [0], [0], [1], [0, 0, 1, 1], [], []>} : vector<128x36xf32>, vector<36x128xf32>, vector<128x128xf32> -> vector<128x128xf32>
    %570 = vector.extract_strided_slice %569 {offsets = [0, 0], sizes = [32, 128], strides = [1, 1]} : vector<128x128xf32> to vector<32x128xf32>
    %571 = vector.extract_strided_slice %569 {offsets = [32, 0], sizes = [32, 128], strides = [1, 1]} : vector<128x128xf32> to vector<32x128xf32>
    %572 = arith.maximumf %570, %571 : vector<32x128xf32>
    %573 = vector.extract_strided_slice %569 {offsets = [64, 0], sizes = [32, 128], strides = [1, 1]} : vector<128x128xf32> to vector<32x128xf32>
    %574 = vector.extract_strided_slice %569 {offsets = [96, 0], sizes = [32, 128], strides = [1, 1]} : vector<128x128xf32> to vector<32x128xf32>
    %575 = arith.maximumf %573, %574 : vector<32x128xf32>
    %576 = arith.maximumf %572, %575 : vector<32x128xf32>
    %577 = arith.mulf %576, %3 : vector<32x128xf32>
    %578 = arith.addf %577, %6 : vector<32x128xf32>
    %cst_205 = arith.constant 0.000000e+00 : f32
    %579 = vector.broadcast %cst_205 : f32 to vector<32x128xf32>
    %580 = arith.subf %579, %578 : vector<32x128xf32>
    %581 = math.exp %580 : vector<32x128xf32>
    %cst_206 = arith.constant 1.000000e+00 : f32
    %582 = vector.broadcast %cst_206 : f32 to vector<32x128xf32>
    %583 = arith.addf %582, %581 : vector<32x128xf32>
    %cst_207 = arith.constant 1.000000e+00 : f32
    %584 = vector.broadcast %cst_207 : f32 to vector<32x128xf32>
    %585 = arith.divf %584, %583 : vector<32x128xf32>
    %c896 = arith.constant 896 : index
    %c0_208 = arith.constant 0 : index
    %586 = vector.load %arg15[%c896, %c0_208] : memref<1152x128xf32, #tpu.memory_space<vmem>>, vector<32x128xf32>
    tpu.vector_store %arg15[%c896, %c0_208], %585 {strides = array<i32>} : memref<1152x128xf32, #tpu.memory_space<vmem>>, vector<32x128xf32>,
    %c29 = arith.constant 29 : index
    %c0_209 = arith.constant 0 : index
    %c0_210 = arith.constant 0 : index
    %587 = vector.load %arg1[%c29, %c0_209, %c0_210] : memref<36x36x128xf32, #tpu.memory_space<vmem>>, vector<1x36x128xf32>
    %588 = vector.shape_cast %587 : vector<1x36x128xf32> to vector<36x128xf32>
    %cst_211 = arith.constant dense<0.000000e+00> : vector<128x128xf32>
    %589 = tpu.matmul %0, %588, %cst_211 {dimension_numbers = #tpu.dot_dimension_numbers<[1], [0], [0], [1], [0, 0, 1, 1], [], []>} : vector<128x36xf32>, vector<36x128xf32>, vector<128x128xf32> -> vector<128x128xf32>
    %590 = vector.extract_strided_slice %589 {offsets = [0, 0], sizes = [32, 128], strides = [1, 1]} : vector<128x128xf32> to vector<32x128xf32>
    %591 = vector.extract_strided_slice %589 {offsets = [32, 0], sizes = [32, 128], strides = [1, 1]} : vector<128x128xf32> to vector<32x128xf32>
    %592 = arith.maximumf %590, %591 : vector<32x128xf32>
    %593 = vector.extract_strided_slice %589 {offsets = [64, 0], sizes = [32, 128], strides = [1, 1]} : vector<128x128xf32> to vector<32x128xf32>
    %594 = vector.extract_strided_slice %589 {offsets = [96, 0], sizes = [32, 128], strides = [1, 1]} : vector<128x128xf32> to vector<32x128xf32>
    %595 = arith.maximumf %593, %594 : vector<32x128xf32>
    %596 = arith.maximumf %592, %595 : vector<32x128xf32>
    %597 = arith.mulf %596, %3 : vector<32x128xf32>
    %598 = arith.addf %597, %6 : vector<32x128xf32>
    %cst_212 = arith.constant 0.000000e+00 : f32
    %599 = vector.broadcast %cst_212 : f32 to vector<32x128xf32>
    %600 = arith.subf %599, %598 : vector<32x128xf32>
    %601 = math.exp %600 : vector<32x128xf32>
    %cst_213 = arith.constant 1.000000e+00 : f32
    %602 = vector.broadcast %cst_213 : f32 to vector<32x128xf32>
    %603 = arith.addf %602, %601 : vector<32x128xf32>
    %cst_214 = arith.constant 1.000000e+00 : f32
    %604 = vector.broadcast %cst_214 : f32 to vector<32x128xf32>
    %605 = arith.divf %604, %603 : vector<32x128xf32>
    %c928 = arith.constant 928 : index
    %c0_215 = arith.constant 0 : index
    %606 = vector.load %arg15[%c928, %c0_215] : memref<1152x128xf32, #tpu.memory_space<vmem>>, vector<32x128xf32>
    tpu.vector_store %arg15[%c928, %c0_215], %605 {strides = array<i32>} : memref<1152x128xf32, #tpu.memory_space<vmem>>, vector<32x128xf32>,
    %c30 = arith.constant 30 : index
    %c0_216 = arith.constant 0 : index
    %c0_217 = arith.constant 0 : index
    %607 = vector.load %arg1[%c30, %c0_216, %c0_217] : memref<36x36x128xf32, #tpu.memory_space<vmem>>, vector<1x36x128xf32>
    %608 = vector.shape_cast %607 : vector<1x36x128xf32> to vector<36x128xf32>
    %cst_218 = arith.constant dense<0.000000e+00> : vector<128x128xf32>
    %609 = tpu.matmul %0, %608, %cst_218 {dimension_numbers = #tpu.dot_dimension_numbers<[1], [0], [0], [1], [0, 0, 1, 1], [], []>} : vector<128x36xf32>, vector<36x128xf32>, vector<128x128xf32> -> vector<128x128xf32>
    %610 = vector.extract_strided_slice %609 {offsets = [0, 0], sizes = [32, 128], strides = [1, 1]} : vector<128x128xf32> to vector<32x128xf32>
    %611 = vector.extract_strided_slice %609 {offsets = [32, 0], sizes = [32, 128], strides = [1, 1]} : vector<128x128xf32> to vector<32x128xf32>
    %612 = arith.maximumf %610, %611 : vector<32x128xf32>
    %613 = vector.extract_strided_slice %609 {offsets = [64, 0], sizes = [32, 128], strides = [1, 1]} : vector<128x128xf32> to vector<32x128xf32>
    %614 = vector.extract_strided_slice %609 {offsets = [96, 0], sizes = [32, 128], strides = [1, 1]} : vector<128x128xf32> to vector<32x128xf32>
    %615 = arith.maximumf %613, %614 : vector<32x128xf32>
    %616 = arith.maximumf %612, %615 : vector<32x128xf32>
    %617 = arith.mulf %616, %3 : vector<32x128xf32>
    %618 = arith.addf %617, %6 : vector<32x128xf32>
    %cst_219 = arith.constant 0.000000e+00 : f32
    %619 = vector.broadcast %cst_219 : f32 to vector<32x128xf32>
    %620 = arith.subf %619, %618 : vector<32x128xf32>
    %621 = math.exp %620 : vector<32x128xf32>
    %cst_220 = arith.constant 1.000000e+00 : f32
    %622 = vector.broadcast %cst_220 : f32 to vector<32x128xf32>
    %623 = arith.addf %622, %621 : vector<32x128xf32>
    %cst_221 = arith.constant 1.000000e+00 : f32
    %624 = vector.broadcast %cst_221 : f32 to vector<32x128xf32>
    %625 = arith.divf %624, %623 : vector<32x128xf32>
    %c960 = arith.constant 960 : index
    %c0_222 = arith.constant 0 : index
    %626 = vector.load %arg15[%c960, %c0_222] : memref<1152x128xf32, #tpu.memory_space<vmem>>, vector<32x128xf32>
    tpu.vector_store %arg15[%c960, %c0_222], %625 {strides = array<i32>} : memref<1152x128xf32, #tpu.memory_space<vmem>>, vector<32x128xf32>,
    %c31 = arith.constant 31 : index
    %c0_223 = arith.constant 0 : index
    %c0_224 = arith.constant 0 : index
    %627 = vector.load %arg1[%c31, %c0_223, %c0_224] : memref<36x36x128xf32, #tpu.memory_space<vmem>>, vector<1x36x128xf32>
    %628 = vector.shape_cast %627 : vector<1x36x128xf32> to vector<36x128xf32>
    %cst_225 = arith.constant dense<0.000000e+00> : vector<128x128xf32>
    %629 = tpu.matmul %0, %628, %cst_225 {dimension_numbers = #tpu.dot_dimension_numbers<[1], [0], [0], [1], [0, 0, 1, 1], [], []>} : vector<128x36xf32>, vector<36x128xf32>, vector<128x128xf32> -> vector<128x128xf32>
    %630 = vector.extract_strided_slice %629 {offsets = [0, 0], sizes = [32, 128], strides = [1, 1]} : vector<128x128xf32> to vector<32x128xf32>
    %631 = vector.extract_strided_slice %629 {offsets = [32, 0], sizes = [32, 128], strides = [1, 1]} : vector<128x128xf32> to vector<32x128xf32>
    %632 = arith.maximumf %630, %631 : vector<32x128xf32>
    %633 = vector.extract_strided_slice %629 {offsets = [64, 0], sizes = [32, 128], strides = [1, 1]} : vector<128x128xf32> to vector<32x128xf32>
    %634 = vector.extract_strided_slice %629 {offsets = [96, 0], sizes = [32, 128], strides = [1, 1]} : vector<128x128xf32> to vector<32x128xf32>
    %635 = arith.maximumf %633, %634 : vector<32x128xf32>
    %636 = arith.maximumf %632, %635 : vector<32x128xf32>
    %637 = arith.mulf %636, %3 : vector<32x128xf32>
    %638 = arith.addf %637, %6 : vector<32x128xf32>
    %cst_226 = arith.constant 0.000000e+00 : f32
    %639 = vector.broadcast %cst_226 : f32 to vector<32x128xf32>
    %640 = arith.subf %639, %638 : vector<32x128xf32>
    %641 = math.exp %640 : vector<32x128xf32>
    %cst_227 = arith.constant 1.000000e+00 : f32
    %642 = vector.broadcast %cst_227 : f32 to vector<32x128xf32>
    %643 = arith.addf %642, %641 : vector<32x128xf32>
    %cst_228 = arith.constant 1.000000e+00 : f32
    %644 = vector.broadcast %cst_228 : f32 to vector<32x128xf32>
    %645 = arith.divf %644, %643 : vector<32x128xf32>
    %c992 = arith.constant 992 : index
    %c0_229 = arith.constant 0 : index
    %646 = vector.load %arg15[%c992, %c0_229] : memref<1152x128xf32, #tpu.memory_space<vmem>>, vector<32x128xf32>
    tpu.vector_store %arg15[%c992, %c0_229], %645 {strides = array<i32>} : memref<1152x128xf32, #tpu.memory_space<vmem>>, vector<32x128xf32>,
    %c32_230 = arith.constant 32 : index
    %c0_231 = arith.constant 0 : index
    %c0_232 = arith.constant 0 : index
    %647 = vector.load %arg1[%c32_230, %c0_231, %c0_232] : memref<36x36x128xf32, #tpu.memory_space<vmem>>, vector<1x36x128xf32>
    %648 = vector.shape_cast %647 : vector<1x36x128xf32> to vector<36x128xf32>
    %cst_233 = arith.constant dense<0.000000e+00> : vector<128x128xf32>
    %649 = tpu.matmul %0, %648, %cst_233 {dimension_numbers = #tpu.dot_dimension_numbers<[1], [0], [0], [1], [0, 0, 1, 1], [], []>} : vector<128x36xf32>, vector<36x128xf32>, vector<128x128xf32> -> vector<128x128xf32>
    %650 = vector.extract_strided_slice %649 {offsets = [0, 0], sizes = [32, 128], strides = [1, 1]} : vector<128x128xf32> to vector<32x128xf32>
    %651 = vector.extract_strided_slice %649 {offsets = [32, 0], sizes = [32, 128], strides = [1, 1]} : vector<128x128xf32> to vector<32x128xf32>
    %652 = arith.maximumf %650, %651 : vector<32x128xf32>
    %653 = vector.extract_strided_slice %649 {offsets = [64, 0], sizes = [32, 128], strides = [1, 1]} : vector<128x128xf32> to vector<32x128xf32>
    %654 = vector.extract_strided_slice %649 {offsets = [96, 0], sizes = [32, 128], strides = [1, 1]} : vector<128x128xf32> to vector<32x128xf32>
    %655 = arith.maximumf %653, %654 : vector<32x128xf32>
    %656 = arith.maximumf %652, %655 : vector<32x128xf32>
    %657 = arith.mulf %656, %3 : vector<32x128xf32>
    %658 = arith.addf %657, %6 : vector<32x128xf32>
    %cst_234 = arith.constant 0.000000e+00 : f32
    %659 = vector.broadcast %cst_234 : f32 to vector<32x128xf32>
    %660 = arith.subf %659, %658 : vector<32x128xf32>
    %661 = math.exp %660 : vector<32x128xf32>
    %cst_235 = arith.constant 1.000000e+00 : f32
    %662 = vector.broadcast %cst_235 : f32 to vector<32x128xf32>
    %663 = arith.addf %662, %661 : vector<32x128xf32>
    %cst_236 = arith.constant 1.000000e+00 : f32
    %664 = vector.broadcast %cst_236 : f32 to vector<32x128xf32>
    %665 = arith.divf %664, %663 : vector<32x128xf32>
    %c1024 = arith.constant 1024 : index
    %c0_237 = arith.constant 0 : index
    %666 = vector.load %arg15[%c1024, %c0_237] : memref<1152x128xf32, #tpu.memory_space<vmem>>, vector<32x128xf32>
    tpu.vector_store %arg15[%c1024, %c0_237], %665 {strides = array<i32>} : memref<1152x128xf32, #tpu.memory_space<vmem>>, vector<32x128xf32>,
    %c33 = arith.constant 33 : index
    %c0_238 = arith.constant 0 : index
    %c0_239 = arith.constant 0 : index
    %667 = vector.load %arg1[%c33, %c0_238, %c0_239] : memref<36x36x128xf32, #tpu.memory_space<vmem>>, vector<1x36x128xf32>
    %668 = vector.shape_cast %667 : vector<1x36x128xf32> to vector<36x128xf32>
    %cst_240 = arith.constant dense<0.000000e+00> : vector<128x128xf32>
    %669 = tpu.matmul %0, %668, %cst_240 {dimension_numbers = #tpu.dot_dimension_numbers<[1], [0], [0], [1], [0, 0, 1, 1], [], []>} : vector<128x36xf32>, vector<36x128xf32>, vector<128x128xf32> -> vector<128x128xf32>
    %670 = vector.extract_strided_slice %669 {offsets = [0, 0], sizes = [32, 128], strides = [1, 1]} : vector<128x128xf32> to vector<32x128xf32>
    %671 = vector.extract_strided_slice %669 {offsets = [32, 0], sizes = [32, 128], strides = [1, 1]} : vector<128x128xf32> to vector<32x128xf32>
    %672 = arith.maximumf %670, %671 : vector<32x128xf32>
    %673 = vector.extract_strided_slice %669 {offsets = [64, 0], sizes = [32, 128], strides = [1, 1]} : vector<128x128xf32> to vector<32x128xf32>
    %674 = vector.extract_strided_slice %669 {offsets = [96, 0], sizes = [32, 128], strides = [1, 1]} : vector<128x128xf32> to vector<32x128xf32>
    %675 = arith.maximumf %673, %674 : vector<32x128xf32>
    %676 = arith.maximumf %672, %675 : vector<32x128xf32>
    %677 = arith.mulf %676, %3 : vector<32x128xf32>
    %678 = arith.addf %677, %6 : vector<32x128xf32>
    %cst_241 = arith.constant 0.000000e+00 : f32
    %679 = vector.broadcast %cst_241 : f32 to vector<32x128xf32>
    %680 = arith.subf %679, %678 : vector<32x128xf32>
    %681 = math.exp %680 : vector<32x128xf32>
    %cst_242 = arith.constant 1.000000e+00 : f32
    %682 = vector.broadcast %cst_242 : f32 to vector<32x128xf32>
    %683 = arith.addf %682, %681 : vector<32x128xf32>
    %cst_243 = arith.constant 1.000000e+00 : f32
    %684 = vector.broadcast %cst_243 : f32 to vector<32x128xf32>
    %685 = arith.divf %684, %683 : vector<32x128xf32>
    %c1056 = arith.constant 1056 : index
    %c0_244 = arith.constant 0 : index
    %686 = vector.load %arg15[%c1056, %c0_244] : memref<1152x128xf32, #tpu.memory_space<vmem>>, vector<32x128xf32>
    tpu.vector_store %arg15[%c1056, %c0_244], %685 {strides = array<i32>} : memref<1152x128xf32, #tpu.memory_space<vmem>>, vector<32x128xf32>,
    %c34 = arith.constant 34 : index
    %c0_245 = arith.constant 0 : index
    %c0_246 = arith.constant 0 : index
    %687 = vector.load %arg1[%c34, %c0_245, %c0_246] : memref<36x36x128xf32, #tpu.memory_space<vmem>>, vector<1x36x128xf32>
    %688 = vector.shape_cast %687 : vector<1x36x128xf32> to vector<36x128xf32>
    %cst_247 = arith.constant dense<0.000000e+00> : vector<128x128xf32>
    %689 = tpu.matmul %0, %688, %cst_247 {dimension_numbers = #tpu.dot_dimension_numbers<[1], [0], [0], [1], [0, 0, 1, 1], [], []>} : vector<128x36xf32>, vector<36x128xf32>, vector<128x128xf32> -> vector<128x128xf32>
    %690 = vector.extract_strided_slice %689 {offsets = [0, 0], sizes = [32, 128], strides = [1, 1]} : vector<128x128xf32> to vector<32x128xf32>
    %691 = vector.extract_strided_slice %689 {offsets = [32, 0], sizes = [32, 128], strides = [1, 1]} : vector<128x128xf32> to vector<32x128xf32>
    %692 = arith.maximumf %690, %691 : vector<32x128xf32>
    %693 = vector.extract_strided_slice %689 {offsets = [64, 0], sizes = [32, 128], strides = [1, 1]} : vector<128x128xf32> to vector<32x128xf32>
    %694 = vector.extract_strided_slice %689 {offsets = [96, 0], sizes = [32, 128], strides = [1, 1]} : vector<128x128xf32> to vector<32x128xf32>
    %695 = arith.maximumf %693, %694 : vector<32x128xf32>
    %696 = arith.maximumf %692, %695 : vector<32x128xf32>
    %697 = arith.mulf %696, %3 : vector<32x128xf32>
    %698 = arith.addf %697, %6 : vector<32x128xf32>
    %cst_248 = arith.constant 0.000000e+00 : f32
    %699 = vector.broadcast %cst_248 : f32 to vector<32x128xf32>
    %700 = arith.subf %699, %698 : vector<32x128xf32>
    %701 = math.exp %700 : vector<32x128xf32>
    %cst_249 = arith.constant 1.000000e+00 : f32
    %702 = vector.broadcast %cst_249 : f32 to vector<32x128xf32>
    %703 = arith.addf %702, %701 : vector<32x128xf32>
    %cst_250 = arith.constant 1.000000e+00 : f32
    %704 = vector.broadcast %cst_250 : f32 to vector<32x128xf32>
    %705 = arith.divf %704, %703 : vector<32x128xf32>
    %c1088 = arith.constant 1088 : index
    %c0_251 = arith.constant 0 : index
    %706 = vector.load %arg15[%c1088, %c0_251] : memref<1152x128xf32, #tpu.memory_space<vmem>>, vector<32x128xf32>
    tpu.vector_store %arg15[%c1088, %c0_251], %705 {strides = array<i32>} : memref<1152x128xf32, #tpu.memory_space<vmem>>, vector<32x128xf32>,
    %c35 = arith.constant 35 : index
    %c0_252 = arith.constant 0 : index
    %c0_253 = arith.constant 0 : index
    %707 = vector.load %arg1[%c35, %c0_252, %c0_253] : memref<36x36x128xf32, #tpu.memory_space<vmem>>, vector<1x36x128xf32>
    %708 = vector.shape_cast %707 : vector<1x36x128xf32> to vector<36x128xf32>
    %cst_254 = arith.constant dense<0.000000e+00> : vector<128x128xf32>
    %709 = tpu.matmul %0, %708, %cst_254 {dimension_numbers = #tpu.dot_dimension_numbers<[1], [0], [0], [1], [0, 0, 1, 1], [], []>} : vector<128x36xf32>, vector<36x128xf32>, vector<128x128xf32> -> vector<128x128xf32>
    %710 = vector.extract_strided_slice %709 {offsets = [0, 0], sizes = [32, 128], strides = [1, 1]} : vector<128x128xf32> to vector<32x128xf32>
    %711 = vector.extract_strided_slice %709 {offsets = [32, 0], sizes = [32, 128], strides = [1, 1]} : vector<128x128xf32> to vector<32x128xf32>
    %712 = arith.maximumf %710, %711 : vector<32x128xf32>
    %713 = vector.extract_strided_slice %709 {offsets = [64, 0], sizes = [32, 128], strides = [1, 1]} : vector<128x128xf32> to vector<32x128xf32>
    %714 = vector.extract_strided_slice %709 {offsets = [96, 0], sizes = [32, 128], strides = [1, 1]} : vector<128x128xf32> to vector<32x128xf32>
    %715 = arith.maximumf %713, %714 : vector<32x128xf32>
    %716 = arith.maximumf %712, %715 : vector<32x128xf32>
    %717 = arith.mulf %716, %3 : vector<32x128xf32>
    %718 = arith.addf %717, %6 : vector<32x128xf32>
    %cst_255 = arith.constant 0.000000e+00 : f32
    %719 = vector.broadcast %cst_255 : f32 to vector<32x128xf32>
    %720 = arith.subf %719, %718 : vector<32x128xf32>
    %721 = math.exp %720 : vector<32x128xf32>
    %cst_256 = arith.constant 1.000000e+00 : f32
    %722 = vector.broadcast %cst_256 : f32 to vector<32x128xf32>
    %723 = arith.addf %722, %721 : vector<32x128xf32>
    %cst_257 = arith.constant 1.000000e+00 : f32
    %724 = vector.broadcast %cst_257 : f32 to vector<32x128xf32>
    %725 = arith.divf %724, %723 : vector<32x128xf32>
    %c1120 = arith.constant 1120 : index
    %c0_258 = arith.constant 0 : index
    %726 = vector.load %arg15[%c1120, %c0_258] : memref<1152x128xf32, #tpu.memory_space<vmem>>, vector<32x128xf32>
    tpu.vector_store %arg15[%c1120, %c0_258], %725 {strides = array<i32>} : memref<1152x128xf32, #tpu.memory_space<vmem>>, vector<32x128xf32>,
    %c0_259 = arith.constant 0 : index
    %c0_260 = arith.constant 0 : index
    %727 = vector.load %arg5[%c0_259, %c0_260] : memref<128x1152xf32, #tpu.memory_space<vmem>>, vector<128x1152xf32>
    %c0_261 = arith.constant 0 : index
    %c0_262 = arith.constant 0 : index
    %728 = vector.load %arg15[%c0_261, %c0_262] : memref<1152x128xf32, #tpu.memory_space<vmem>>, vector<1152x128xf32>
    %cst_263 = arith.constant dense<0.000000e+00> : vector<128x128xf32>
    %729 = tpu.matmul %727, %728, %cst_263 {dimension_numbers = #tpu.dot_dimension_numbers<[1], [0], [0], [1], [0, 0, 1, 1], [], []>} : vector<128x1152xf32>, vector<1152x128xf32>, vector<128x128xf32> -> vector<128x128xf32>
    %730 = vector.extract_strided_slice %729 {offsets = [0, 0], sizes = [32, 128], strides = [1, 1]} : vector<128x128xf32> to vector<32x128xf32>
    %731 = vector.extract_strided_slice %729 {offsets = [32, 0], sizes = [32, 128], strides = [1, 1]} : vector<128x128xf32> to vector<32x128xf32>
    %732 = arith.maximumf %730, %731 : vector<32x128xf32>
    %733 = vector.extract_strided_slice %729 {offsets = [64, 0], sizes = [32, 128], strides = [1, 1]} : vector<128x128xf32> to vector<32x128xf32>
    %734 = vector.extract_strided_slice %729 {offsets = [96, 0], sizes = [32, 128], strides = [1, 1]} : vector<128x128xf32> to vector<32x128xf32>
    %735 = arith.maximumf %733, %734 : vector<32x128xf32>
    %736 = arith.maximumf %732, %735 : vector<32x128xf32>
    %c0_264 = arith.constant 0 : index
    %c0_265 = arith.constant 0 : index
    %737 = vector.load %arg6[%c0_264, %c0_265] : memref<32x1xf32, #tpu.memory_space<vmem>>, vector<32x1xf32>
    %738 = vector.shape_cast %737 : vector<32x1xf32> to vector<32x1xf32>
    %739 = vector.broadcast %738 : vector<32x1xf32> to vector<32x128xf32>
    %740 = arith.mulf %736, %739 : vector<32x128xf32>
    %c0_266 = arith.constant 0 : index
    %c0_267 = arith.constant 0 : index
    %741 = vector.load %arg7[%c0_266, %c0_267] : memref<32x1xf32, #tpu.memory_space<vmem>>, vector<32x1xf32>
    %742 = vector.shape_cast %741 : vector<32x1xf32> to vector<32x1xf32>
    %743 = vector.broadcast %742 : vector<32x1xf32> to vector<32x128xf32>
    %744 = arith.addf %740, %743 : vector<32x128xf32>
    %cst_268 = arith.constant 0.000000e+00 : f32
    %745 = vector.broadcast %cst_268 : f32 to vector<32x128xf32>
    %746 = arith.subf %745, %744 : vector<32x128xf32>
    %747 = math.exp %746 : vector<32x128xf32>
    %cst_269 = arith.constant 1.000000e+00 : f32
    %748 = vector.broadcast %cst_269 : f32 to vector<32x128xf32>
    %749 = arith.addf %748, %747 : vector<32x128xf32>
    %cst_270 = arith.constant 1.000000e+00 : f32
    %750 = vector.broadcast %cst_270 : f32 to vector<32x128xf32>
    %751 = arith.divf %750, %749 : vector<32x128xf32>
    %c0_271 = arith.constant 0 : index
    %c0_272 = arith.constant 0 : index
    %752 = vector.load %arg8[%c0_271, %c0_272] : memref<32x32xf32, #tpu.memory_space<vmem>>, vector<32x32xf32>
    %cst_273 = arith.constant dense<0.000000e+00> : vector<32x128xf32>
    %753 = tpu.matmul %752, %751, %cst_273 {dimension_numbers = #tpu.dot_dimension_numbers<[1], [0], [0], [1], [0, 0, 1, 1], [], []>} : vector<32x32xf32>, vector<32x128xf32>, vector<32x128xf32> -> vector<32x128xf32>
    %c0_274 = arith.constant 0 : index
    %c0_275 = arith.constant 0 : index
    %754 = vector.load %arg9[%c0_274, %c0_275] : memref<32x1xf32, #tpu.memory_space<vmem>>, vector<32x1xf32>
    %755 = vector.broadcast %754 : vector<32x1xf32> to vector<32x128xf32>
    %756 = arith.addf %753, %755 : vector<32x128xf32>
    %cst_276 = arith.constant 0.000000e+00 : f32
    %757 = vector.broadcast %cst_276 : f32 to vector<32x128xf32>
    %758 = arith.subf %757, %756 : vector<32x128xf32>
    %759 = math.exp %758 : vector<32x128xf32>
    %cst_277 = arith.constant 1.000000e+00 : f32
    %760 = vector.broadcast %cst_277 : f32 to vector<32x128xf32>
    %761 = arith.addf %760, %759 : vector<32x128xf32>
    %cst_278 = arith.constant 1.000000e+00 : f32
    %762 = vector.broadcast %cst_278 : f32 to vector<32x128xf32>
    %763 = arith.divf %762, %761 : vector<32x128xf32>
    %c0_279 = arith.constant 0 : index
    %c0_280 = arith.constant 0 : index
    %764 = vector.load %arg10[%c0_279, %c0_280] : memref<32x32xf32, #tpu.memory_space<vmem>>, vector<32x32xf32>
    %cst_281 = arith.constant dense<0.000000e+00> : vector<32x128xf32>
    %765 = tpu.matmul %764, %763, %cst_281 {dimension_numbers = #tpu.dot_dimension_numbers<[1], [0], [0], [1], [0, 0, 1, 1], [], []>} : vector<32x32xf32>, vector<32x128xf32>, vector<32x128xf32> -> vector<32x128xf32>
    %c0_282 = arith.constant 0 : index
    %c0_283 = arith.constant 0 : index
    %766 = vector.load %arg11[%c0_282, %c0_283] : memref<32x1xf32, #tpu.memory_space<vmem>>, vector<32x1xf32>
    %767 = vector.broadcast %766 : vector<32x1xf32> to vector<32x128xf32>
    %768 = arith.addf %765, %767 : vector<32x128xf32>
    %cst_284 = arith.constant 0.000000e+00 : f32
    %769 = vector.broadcast %cst_284 : f32 to vector<32x128xf32>
    %770 = arith.subf %769, %768 : vector<32x128xf32>
    %771 = math.exp %770 : vector<32x128xf32>
    %cst_285 = arith.constant 1.000000e+00 : f32
    %772 = vector.broadcast %cst_285 : f32 to vector<32x128xf32>
    %773 = arith.addf %772, %771 : vector<32x128xf32>
    %cst_286 = arith.constant 1.000000e+00 : f32
    %774 = vector.broadcast %cst_286 : f32 to vector<32x128xf32>
    %775 = arith.divf %774, %773 : vector<32x128xf32>
    %c0_287 = arith.constant 0 : index
    %c0_288 = arith.constant 0 : index
    %776 = vector.load %arg12[%c0_287, %c0_288] : memref<1x32xf32, #tpu.memory_space<vmem>>, vector<1x32xf32>
    %cst_289 = arith.constant dense<0.000000e+00> : vector<1x128xf32>
    %777 = tpu.matmul %776, %775, %cst_289 {dimension_numbers = #tpu.dot_dimension_numbers<[1], [0], [0], [1], [0, 0, 1, 1], [], []>} : vector<1x32xf32>, vector<32x128xf32>, vector<1x128xf32> -> vector<1x128xf32>
    %c0_290 = arith.constant 0 : index
    %c0_291 = arith.constant 0 : index
    %778 = vector.load %arg13[%c0_290, %c0_291] : memref<1x1xf32, #tpu.memory_space<vmem>>, vector<1x1xf32>
    %779 = vector.broadcast %778 : vector<1x1xf32> to vector<1x128xf32>
    %780 = arith.addf %777, %779 : vector<1x128xf32>
    %c0_292 = arith.constant 0 : index
    %c0_293 = arith.constant 0 : index
    %781 = vector.load %arg14[%c0_292, %c0_293] : memref<1x128xf32, #tpu.memory_space<vmem>>, vector<1x128xf32>
    tpu.vector_store %arg14[%c0_292, %c0_293], %780 {strides = array<i32>} : memref<1x128xf32, #tpu.memory_space<vmem>>, vector<1x128xf32>,
    return
  }
  func.func @transform_0(%arg0: i32) -> (i32, i32, i32) {
    %c0_i32 = arith.constant 0 : i32
    %c0_i32_0 = arith.constant 0 : i32
    %c0_i32_1 = arith.constant 0 : i32
    return %c0_i32, %c0_i32_0, %arg0 : i32, i32, i32
  }
  func.func @transform_1(%arg0: i32) -> (i32, i32) {
    %c0_i32 = arith.constant 0 : i32
    %c0_i32_0 = arith.constant 0 : i32
    %c0_i32_1 = arith.constant 0 : i32
    return %c0_i32, %c0_i32_0 : i32, i32
  }
  func.func @transform_2(%arg0: i32) -> (i32, i32) {
    %c0_i32 = arith.constant 0 : i32
    %c0_i32_0 = arith.constant 0 : i32
    %c0_i32_1 = arith.constant 0 : i32
    return %c0_i32, %c0_i32_0 : i32, i32
  }
  func.func @transform_3(%arg0: i32) -> (i32, i32) {
    %c0_i32 = arith.constant 0 : i32
    %c0_i32_0 = arith.constant 0 : i32
    %c0_i32_1 = arith.constant 0 : i32
    return %c0_i32, %c0_i32_0 : i32, i32
  }
  func.func @transform_4(%arg0: i32) -> (i32, i32) {
    %c0_i32 = arith.constant 0 : i32
    %c0_i32_0 = arith.constant 0 : i32
    %c0_i32_1 = arith.constant 0 : i32
    return %c0_i32, %c0_i32_0 : i32, i32
  }
  func.func @transform_5(%arg0: i32) -> (i32, i32) {
    %c0_i32 = arith.constant 0 : i32
    %c0_i32_0 = arith.constant 0 : i32
    %c0_i32_1 = arith.constant 0 : i32
    return %c0_i32, %c0_i32_0 : i32, i32
  }
  func.func @transform_6(%arg0: i32) -> (i32, i32) {
    %c0_i32 = arith.constant 0 : i32
    %c0_i32_0 = arith.constant 0 : i32
    %c0_i32_1 = arith.constant 0 : i32
    return %c0_i32, %c0_i32_0 : i32, i32
  }
  func.func @transform_7(%arg0: i32) -> (i32, i32) {
    %c0_i32 = arith.constant 0 : i32
    %c0_i32_0 = arith.constant 0 : i32
    %c0_i32_1 = arith.constant 0 : i32
    return %c0_i32, %c0_i32_0 : i32, i32
  }
  func.func @transform_8(%arg0: i32) -> (i32, i32) {
    %c0_i32 = arith.constant 0 : i32
    %c0_i32_0 = arith.constant 0 : i32
    %c0_i32_1 = arith.constant 0 : i32
    return %c0_i32, %c0_i32_0 : i32, i32
  }
  func.func @transform_9(%arg0: i32) -> (i32, i32) {
    %c0_i32 = arith.constant 0 : i32
    %c0_i32_0 = arith.constant 0 : i32
    %c0_i32_1 = arith.constant 0 : i32
    return %c0_i32, %c0_i32_0 : i32, i32
  }
  func.func @transform_10(%arg0: i32) -> (i32, i32) {
    %c0_i32 = arith.constant 0 : i32
    %c0_i32_0 = arith.constant 0 : i32
    %c0_i32_1 = arith.constant 0 : i32
    return %c0_i32, %c0_i32_0 : i32, i32
  }
  func.func @transform_11(%arg0: i32) -> (i32, i32) {
    %c0_i32 = arith.constant 0 : i32
    %c0_i32_0 = arith.constant 0 : i32
    %c0_i32_1 = arith.constant 0 : i32
    return %c0_i32, %c0_i32_0 : i32, i32
  }
  func.func @transform_12(%arg0: i32) -> (i32, i32) {
    %c0_i32 = arith.constant 0 : i32
    %c0_i32_0 = arith.constant 0 : i32
    %c0_i32_1 = arith.constant 0 : i32
    return %c0_i32, %c0_i32_0 : i32, i32
  }
  func.func @transform_13(%arg0: i32) -> (i32, i32) {
    %c0_i32 = arith.constant 0 : i32
    %c0_i32_0 = arith.constant 0 : i32
    return %c0_i32, %arg0 : i32, i32
  }
}

</mosaic_0001>

<bundles_post_ra>
// kernel: rf_cnn_forward.1
= control target key start
LH: loop header
LB: loop body
LE: loop exit
PB: predicated region body
PF: predicated region fallthrough
CT: control target
= control target key end

     0   :  { %v13332_v3 = vmov 0   ;;  %vm115_vm0 = vcmask 293888   ;;  %vm164_vm1 = vcmask 1043456   ;;  %vm8564_vm2 = vcmask 261120   ;;  %s18515_s0 = inlined_call_operand.vmem [shape: f32[36,36,128], index: 0, kind: input, shape index: {}]   ;;  %s18516_s1 = inlined_call_operand.vmem [shape: f32[128,36], index: 1, kind: input, shape index: {}]   ;;  %s18517_s3 = inlined_call_operand.vmem [shape: f32[32,1], index: 3, kind: input, shape index: {}]   ;;  %s18518_s2 = inlined_call_operand.vmem [shape: f32[32,1], index: 2, kind: input, shape index: {}]   ;;  %s18519_s5 = inlined_call_operand.vmem [shape: f32[32,1], index: 5, kind: input, shape index: {}]   ;;  %s18520_s6 = inlined_call_operand.vmem [shape: f32[32,1], index: 6, kind: input, shape index: {}]   ;;  %s18521_s8 = inlined_call_operand.vmem [shape: f32[32,1], index: 8, kind: input, shape index: {}]   ;;  %s18522_s12 = inlined_call_operand.<no memory space> [shape: f32[1,1], index: 12, kind: input, shape index: {}]   ;;  %s18523_s10 = inlined_call_operand.vmem [shape: f32[32,1], index: 10, kind: input, shape index: {}]   ;;  %s18524_s4 = inlined_call_operand.vmem [shape: f32[128,1152], index: 4, kind: input, shape index: {}]   ;;  %s18525_s7 = inlined_call_operand.vmem [shape: f32[32,32], index: 7, kind: input, shape index: {}]   ;;  %s18526_s9 = inlined_call_operand.vmem [shape: f32[32,32], index: 9, kind: input, shape index: {}]   ;;  %s18527_s11 = inlined_call_operand.vmem [shape: f32[1,32], index: 11, kind: input, shape index: {}]   ;;  %s18528_s13 = inlined_call_operand.vmem [shape: f32[1,128], index: 13, kind: output, shape index: {}]  }
   0x1   :  { %v110_v0 = vld [vmem:[%s18515_s0] sm:$0xff]  ;;  %v111_v1 = vld [vmem:[%s18515_s0 + $0x8] sm:$0xff]  ;;  %12643 = vset.pattern.permute.xlu1 %v13332_v3  ;;  %12642 = vset.pattern.permute.xlu0 %v13332_v3  ;;  %v8942_v5 = vld [vmem:[%s18515_s0 + $0x30] sm:$0xff]  ;;  %vm13334_vm3 = vmmov 0  }
   0x2   :  { %v8941_v2 = vld [vmem:[%s18515_s0 + $0x28] sm:$0xff]  ;;  %v12168_v4 = vpack.c.bf16 %v111_v1, %v110_v0  ;;  %v112_v6 = vld [vmem:[%s18515_s0 + $0x10] sm:$0xff]  ;;  %v113_v7 = vld [vmem:[%s18515_s0 + $0x18] sm:$0xff] }
   0x3   :  { %v12176_v8 = vpack.c.bf16 %v8942_v5, %v8941_v2  ;;  %v12172_v9 = vpack.c.bf16 %v113_v7, %v112_v6  ;;  %v8943_v10 = vld [vmem:[%s18515_s0 + $0x38] sm:$0xff]  ;;  %v8944_v11 = vld [vmem:[%s18515_s0 + $0x40] sm:$0xff]  ;;  %v8945_v15 = vld [vmem:[%s18515_s0 + $0x48] sm:$0xf] }
   0x4   :  { %12169 = vmatprep.subr.bf16.mxu0 %v12168_v4  ;;  %v12180_v12 = vpack.c.bf16 %v8944_v11, %v8943_v10  ;;  %v13433_v13 = vld [vmem:[%s18516_s1] sm:$0xff]  ;;  %v8963_v16 = vld [vmem:[%s18515_s0 + $0x50] sm:$0xff]  ;;  %v8964_v17 = vld [vmem:[%s18515_s0 + $0x58] sm:$0xff] }
   0x5   :  { %12177 = vmatprep.subr.bf16.mxu1 %v12176_v8  ;;  %12171 = vmatpush3.bf16.msra.mxu0 %v12168_v4  ;;  %v114_v14 = vld [vmem:[%s18515_s0 + $0x20] sm:$0xf]  ;;  %v8985_v18 = vld [vmem:[%s18515_s0 + $0x78] sm:$0xff]  ;;  %v13462_v20 = vld [vmem:[%s18516_s1 + $0x8] sm:$0xff]  ;;  %v12184_v22 = vpack.c.bf16 %v8964_v17, %v8963_v16 }
   0x6   :  { %12179 = vmatpush3.bf16.msra.mxu1 %v12176_v8  ;;  %12173 = vmatprep.subr.bf16.mxu0 %v12172_v9  ;;  %v8986_v19 = vld [vmem:[%s18515_s0 + $0x80] sm:$0xff]  ;;  %v13467_v21 = vld [vmem:[%s18516_s1 + $0x10] sm:$0xff]  ;;  %v8966_v25 = vld [vmem:[%s18515_s0 + $0x68] sm:$0xff] }
   0x7   :  { %12181 = vmatprep.subr.bf16.mxu1 %v12180_v12  ;;  %10859 = vmatprep.mubr.msk.f32.mxu0 %vm115_vm0, %v13433_v13  ;;  %v12192_v23 = vpack.c.bf16 %v8986_v19, %v8985_v18  ;;  %v8965_v24 = vld [vmem:[%s18515_s0 + $0x60] sm:$0xff]  ;;  %v8987_v26 = vld [vmem:[%s18515_s0 + $0x88] sm:$0xff]  ;;  %v8988_v27 = vld [vmem:[%s18515_s0 + $0x90] sm:$0xff] }
   0x8   :  { %10893 = vmatprep.mubr.msk.f32.mxu1 %vm115_vm0, %v13433_v13  ;;  %v13492_v28 = vld [vmem:[%s18516_s1 + $0x18] sm:$0xff]  ;;  %v13499_v29 = vld [vmem:[%s18516_s1 + $0x20] sm:$0xff]  ;;  %v12188_v30 = vpack.c.bf16 %v8966_v25, %v8965_v24  ;;  %v12196_v31 = vpack.c.bf16 %v8988_v27, %v8987_v26  ;;  %v13510_v32 = vld [vmem:[%s18516_s1 + $0x28] sm:$0xff] }
   0x9   :  { %12175 = vmatpush3.bf16.msra.mxu0 %v12172_v9  ;;  %v13517_v33 = vld [vmem:[%s18516_s1 + $0x30] sm:$0xff]  ;;  %v9007_v35 = vld [vmem:[%s18515_s0 + $0xa0] sm:$0xff]  ;;  %v9008_v36 = vld [vmem:[%s18515_s0 + $0xa8] sm:$0xff] }
   0xa   :  { %12183 = vmatpush3.bf16.msra.mxu1 %v12180_v12  ;;  %10857 = vmatprep.subr.msk.mxu0 %vm164_vm1, %v114_v14  ;;  %v8967_v34 = vld [vmem:[%s18515_s0 + $0x70] sm:$0xf]  ;;  %v8989_v37 = vld [vmem:[%s18515_s0 + $0x98] sm:$0xf]  ;;  %v9029_v38 = vld [vmem:[%s18515_s0 + $0xc8] sm:$0xff]  ;;  %v12200_v42 = vpack.c.bf16 %v9008_v36, %v9007_v35 }
   0xb   :  { %10891 = vmatprep.subr.msk.mxu1 %vm164_vm1, %v8945_v15  ;;  %v9030_v39 = vld [vmem:[%s18515_s0 + $0xd0] sm:$0xff]  ;;  %v13546_v40 = vld [vmem:[%s18516_s1 + $0x38] sm:$0xff]  ;;  %v13553_v41 = vld [vmem:[%s18516_s1 + $0x40] sm:$0xff] }
   0xc   :  { %v12208_v43 = vpack.c.bf16 %v9030_v39, %v9029_v38  ;;  %v86_v44 = vld [vmem:[%s18517_s3] sm:$0xff]  ;;  %v13571_v45 = vld [vmem:[%s18516_s1 + $0x48] sm:$0xff]  ;;  %v13581_v47 = vld [vmem:[%s18516_s1 + $0x50] sm:$0xff] }
   0xd   :  { %10858 = vmatpush3.msk.msra.mxu0 %vm164_vm1, %v114_v14  ;;  %v62_v46 = vld [vmem:[%s18518_s2] sm:$0xff]  ;;  %92 = vperm.xlu1 %12643, %v86_v44   ;;  %v87_v48 = vld [vmem:[%s18517_s3 + $0x8] sm:$0xff]  ;;  %v13595_v49 = vld [vmem:[%s18516_s1 + $0x58] sm:$0xff] }
   0xe   :  { %10892 = vmatpush3.msk.msra.mxu1 %vm164_vm1, %v8945_v15  ;;  %10860 = vmatmul.mubr.msk.f32.vlgmr.msra.gmra.mrb[0].mxu0 %vm115_vm0, %v13462_v20  ;;  %v63_v50 = vld [vmem:[%s18518_s2 + $0x8] sm:$0xff]  ;;  %v13605_v51 = vld [vmem:[%s18516_s1 + $0x60] sm:$0xff]  ;;  %v65_v52 = vld [vmem:[%s18518_s2 + $0x18] sm:$0xff] }
   0xf   :  { %10894 = vmatmul.mubr.msk.f32.vlgmr.msra.gmra.mrb[0].mxu1 %vm115_vm0, %v13462_v20  ;;  %10862 = vmatprep.mubr.msk.f32.mxu0 %vm115_vm0, %v13467_v21  ;;  %v13619_v53 = vld [vmem:[%s18516_s1 + $0x68] sm:$0xff]  ;;  %v64_v54 = vld [vmem:[%s18518_s2 + $0x10] sm:$0xff]  ;;  %v89_v56 = vld [vmem:[%s18517_s3 + $0x18] sm:$0xff] }
  0x10   :  { %10896 = vmatprep.mubr.msk.f32.mxu1 %vm115_vm0, %v13467_v21  ;;  %12185 = vmatprep.subr.bf16.mxu0 %v12184_v22  ;;  %v13629_v55 = vld [vmem:[%s18516_s1 + $0x70] sm:$0xff]  ;;  %v13643_v57 = vld [vmem:[%s18516_s1 + $0x78] sm:$0xff]  ;;  %v9032_v62 = vld [vmem:[%s18515_s0 + $0xe0] sm:$0xff] }
  0x11   :  { %12193 = vmatprep.subr.bf16.mxu1 %v12192_v23  ;;  %12187 = vmatpush3.bf16.msra.mxu0 %v12184_v22  ;;  %v88_v58 = vld [vmem:[%s18517_s3 + $0x10] sm:$0xff]  ;;  %v9010_v60 = vld [vmem:[%s18515_s0 + $0xb8] sm:$0xff]  ;;  %v9011_v1 = vld [vmem:[%s18515_s0 + $0xc0] sm:$0xf] }
  0x12   :  { %10863 = vmatmul.mubr.msk.f32.gmra.mrb[2].mxu0 %vm115_vm0, %v13492_v28  ;;  %12195 = vmatpush3.bf16.msra.mxu1 %v12192_v23  ;;  %v9009_v59 = vld [vmem:[%s18515_s0 + $0xb0] sm:$0xff]  ;;  %v9031_v61 = vld [vmem:[%s18515_s0 + $0xd8] sm:$0xff]  ;;  %v9033_v4 = vld [vmem:[%s18515_s0 + $0xe8] sm:$0xf] }
  0x13   :  { %10897 = vmatmul.mubr.msk.f32.gmra.mrb[2].mxu1 %vm115_vm0, %v13492_v28  ;;  %10865 = vmatprep.mubr.msk.f32.mxu0 %vm115_vm0, %v13499_v29  ;;  %v12204_v63 = vpack.c.bf16 %v9010_v60, %v9009_v59  ;;  %v12212_v0 = vpack.c.bf16 %v9032_v62, %v9031_v61  ;;  %v9051_v2 = vld [vmem:[%s18515_s0 + $0xf0] sm:$0xff]  ;;  %v9052_v3 = vld [vmem:[%s18515_s0 + $0xf8] sm:$0xff]  ;;  %v9074_v6 = vld [vmem:[%s18515_s0 + $0x120] sm:$0xff] }
  0x14   :  { %10899 = vmatprep.mubr.msk.f32.mxu1 %vm115_vm0, %v13499_v29  ;;  %12189 = vmatprep.subr.bf16.mxu0 %v12188_v30  ;;  %v9073_v5 = vld [vmem:[%s18515_s0 + $0x118] sm:$0xff]  ;;  %v12216_v7 = vpack.c.bf16 %v9052_v3, %v9051_v2  ;;  %v9053_v9 = vld [vmem:[%s18515_s0 + $0x100] sm:$0xff]  ;;  %v9054_v10 = vld [vmem:[%s18515_s0 + $0x108] sm:$0xff] }
  0x15   :  { %12197 = vmatprep.subr.bf16.mxu1 %v12196_v31  ;;  %12191 = vmatpush3.bf16.msra.mxu0 %v12188_v30  ;;  %v12224_v8 = vpack.c.bf16 %v9074_v6, %v9073_v5  ;;  %v9075_v11 = vld [vmem:[%s18515_s0 + $0x128] sm:$0xff]  ;;  %v9076_v12 = vld [vmem:[%s18515_s0 + $0x130] sm:$0xff]  ;;  %v12220_v14 = vpack.c.bf16 %v9054_v10, %v9053_v9  ;;  %v9095_v17 = vld [vmem:[%s18515_s0 + $0x140] sm:$0xff] }
  0x16   :  { %10866 = vmatmul.mubr.msk.f32.gmra.mrb[4].mxu0 %vm115_vm0, %v13510_v32  ;;  %12199 = vmatpush3.bf16.msra.mxu1 %v12196_v31  ;;  %v12228_v15 = vpack.c.bf16 %v9076_v12, %v9075_v11  ;;  %v9055_v16 = vld [vmem:[%s18515_s0 + $0x110] sm:$0xf]  ;;  %v9096_v18 = vld [vmem:[%s18515_s0 + $0x148] sm:$0xff]  ;;  %v9077_v19 = vld [vmem:[%s18515_s0 + $0x138] sm:$0xf] }
  0x17   :  { %10900 = vmatmul.mubr.msk.f32.gmra.mrb[4].mxu1 %vm115_vm0, %v13510_v32  ;;  %10868 = vmatprep.mubr.msk.f32.mxu0 %vm115_vm0, %v13517_v33  ;;  %v9117_v22 = vld [vmem:[%s18515_s0 + $0x168] sm:$0xff]  ;;  %v9118_v23 = vld [vmem:[%s18515_s0 + $0x170] sm:$0xff]  ;;  %v12232_v24 = vpack.c.bf16 %v9096_v18, %v9095_v17  ;;  %v9098_v27 = vld [vmem:[%s18515_s0 + $0x158] sm:$0xff] }
  0x18   :  { %10902 = vmatprep.mubr.msk.f32.mxu1 %vm115_vm0, %v13517_v33  ;;  %10925 = vmatprep.subr.msk.mxu0 %vm164_vm1, %v8967_v34  ;;  %v12240_v25 = vpack.c.bf16 %v9118_v23, %v9117_v22  ;;  %v9097_v26 = vld [vmem:[%s18515_s0 + $0x150] sm:$0xff]  ;;  %v9119_v30 = vld [vmem:[%s18515_s0 + $0x178] sm:$0xff]  ;;  %v9120_v31 = vld [vmem:[%s18515_s0 + $0x180] sm:$0xff] }
  0x19   :  { %10959 = vmatprep.subr.msk.mxu1 %vm164_vm1, %v8989_v37  ;;  %10926 = vmatpush3.msk.msra.mxu0 %vm164_vm1, %v8967_v34  ;;  %v12236_v34 = vpack.c.bf16 %v9098_v27, %v9097_v26  ;;  %v12244_v35 = vpack.c.bf16 %v9120_v31, %v9119_v30  ;;  %v9099_v36 = vld [vmem:[%s18515_s0 + $0x160] sm:$0xf]  ;;  %v9140_v38 = vld [vmem:[%s18515_s0 + $0x198] sm:$0xff]  ;;  %v9121_v39 = vld [vmem:[%s18515_s0 + $0x188] sm:$0xf] }
  0x1a   :  { %10869 = vmatmul.mubr.msk.f32.gmra.mrb[6].mxu0 %vm115_vm0, %v13546_v40  ;;  %10960 = vmatpush3.msk.msra.mxu1 %vm164_vm1, %v8989_v37  ;;  %v9139_v37 = vld [vmem:[%s18515_s0 + $0x190] sm:$0xff]  ;;  %v9183_v60 = vld [vmem:[%s18515_s0 + $0x1e0] sm:$0xff]  ;;  %v9184_v61 = vld [vmem:[%s18515_s0 + $0x1e8] sm:$0xff] }
  0x1b   :  { %10903 = vmatmul.mubr.msk.f32.gmra.mrb[6].mxu1 %vm115_vm0, %v13546_v40  ;;  %10871 = vmatprep.mubr.msk.f32.mxu0 %vm115_vm0, %v13553_v41  ;;  %v12248_v44 = vpack.c.bf16 %v9140_v38, %v9139_v37  ;;  %v9143_v59 = vld [vmem:[%s18515_s0 + $0x1b0] sm:$0xf]  ;;  %v9165_v62 = vld [vmem:[%s18515_s0 + $0x1d8] sm:$0xf]  ;;  %v9208_v6 = vld [vmem:[%s18515_s0 + $0x220] sm:$0xff] }
  0x1c   :  { %10905 = vmatprep.mubr.msk.f32.mxu1 %vm115_vm0, %v13553_v41  ;;  %12201 = vmatprep.subr.bf16.mxu0 %v12200_v42  ;;  %v9185_v3 = vld [vmem:[%s18515_s0 + $0x1f0] sm:$0xff]  ;;  %v9207_v5 = vld [vmem:[%s18515_s0 + $0x218] sm:$0xff]  ;;  %v9187_v9 = vld [vmem:[%s18515_s0 + $0x200] sm:$0xf] }
  0x1d   :  { %12209 = vmatprep.subr.bf16.mxu1 %v12208_v43  ;;  %68 = vperm.xlu0 %12642, %v62_v46   ;;  %v9227_v10 = vld [vmem:[%s18515_s0 + $0x230] sm:$0xff]  ;;  %v9228_v11 = vld [vmem:[%s18515_s0 + $0x238] sm:$0xff]  ;;  %v9209_v12 = vld [vmem:[%s18515_s0 + $0x228] sm:$0xf] }
  0x1e   :  { %10872 = vmatmul.mubr.msk.f32.gmra.mrb[8].mxu0 %vm115_vm0, %v13571_v45  ;;  %97 = vperm.xlu1 %12643, %v87_v48   ;;  %v9141_v48 = vld [vmem:[%s18515_s0 + $0x1a0] sm:$0xff]  ;;  %v9251_v22 = vld [vmem:[%s18515_s0 + $0x268] sm:$0xff]  ;;  %v9252_v23 = vld [vmem:[%s18515_s0 + $0x270] sm:$0xff] }
  0x1f   :  { %10906 = vmatmul.mubr.msk.f32.gmra.mrb[8].mxu1 %vm115_vm0, %v13571_v45  ;;  %10874 = vmatprep.mubr.msk.f32.mxu0 %vm115_vm0, %v13581_v47  ;;  %v9229_v18 = vld [vmem:[%s18515_s0 + $0x240] sm:$0xff]  ;;  %v9231_v26 = vld [vmem:[%s18515_s0 + $0x250] sm:$0xf]  ;;  %v9272_v30 = vld [vmem:[%s18515_s0 + $0x288] sm:$0xff] }
  0x20   :  { %10908 = vmatprep.mubr.msk.f32.mxu1 %vm115_vm0, %v13581_v47  ;;  %v9271_v27 = vld [vmem:[%s18515_s0 + $0x280] sm:$0xff]  ;;  %v9253_v31 = vld [vmem:[%s18515_s0 + $0x278] sm:$0xf] }
  0x21   :  { %73 = vperm.xlu0 %12642, %v63_v50   ;;  %v9142_v50 = vld [vmem:[%s18515_s0 + $0x1a8] sm:$0xff] }
  0x22   :  { %10875 = vmatmul.mubr.msk.f32.gmra.mrb[10].mxu0 %vm115_vm0, %v13595_v49  ;;  %83 = vperm.xlu1 %12643, %v65_v52   ;;  %v9163_v52 = vld [vmem:[%s18515_s0 + $0x1c8] sm:$0xff] }
  0x23   :  { %10909 = vmatmul.mubr.msk.f32.gmra.mrb[10].mxu1 %vm115_vm0, %v13595_v49  ;;  %10877 = vmatprep.mubr.msk.f32.mxu0 %vm115_vm0, %v13605_v51 }
  0x24   :  { %10911 = vmatprep.mubr.msk.f32.mxu1 %vm115_vm0, %v13605_v51 }
  0x25   :  { %78 = vperm.xlu0 %12642, %v64_v54   ;;  %v9164_v54 = vld [vmem:[%s18515_s0 + $0x1d0] sm:$0xff] }
  0x26   :  { %10878 = vmatmul.mubr.msk.f32.gmra.mrb[12].mxu0 %vm115_vm0, %v13619_v53  ;;  %107 = vperm.xlu1 %12643, %v89_v56   ;;  %v12252_v56 = vpack.c.bf16 %v9142_v50, %v9141_v48 }
  0x27   :  { %10912 = vmatmul.mubr.msk.f32.gmra.mrb[12].mxu1 %vm115_vm0, %v13619_v53  ;;  %10880 = vmatprep.mubr.msk.f32.mxu0 %vm115_vm0, %v13629_v55 }
  0x28   :  { %10914 = vmatprep.mubr.msk.f32.mxu1 %vm115_vm0, %v13629_v55 }
  0x29   :  { %102 = vperm.xlu0 %12642, %v88_v58   ;;  %v12260_v58 = vpack.c.bf16 %v9164_v54, %v9163_v52 }
  0x2a   :  { %10881 = vmatmul.mubr.msk.f32.gmra.mrb[14].mxu0 %vm115_vm0, %v13643_v57 }
  0x2b   :  { %10915 = vmatmul.mubr.msk.f32.gmra.mrb[14].mxu1 %vm115_vm0, %v13643_v57  ;;  %10927 = vmatprep.mubr.msk.f32.mxu0 %vm115_vm0, %v13433_v13 }
  0x2c   :  { %10961 = vmatprep.mubr.msk.f32.mxu1 %vm115_vm0, %v13433_v13 }
  0x2e   :  { %10928 = vmatmul.mubr.msk.f32.vlgmr.msra.gmra.mrb[16].mxu0 %vm115_vm0, %v13462_v20 }
  0x2f   :  { %10962 = vmatmul.mubr.msk.f32.vlgmr.msra.gmra.mrb[16].mxu1 %vm115_vm0, %v13462_v20  ;;  %10930 = vmatprep.mubr.msk.f32.mxu0 %vm115_vm0, %v13467_v21 }
  0x30   :  { %10964 = vmatprep.mubr.msk.f32.mxu1 %vm115_vm0, %v13467_v21  ;;  %12203 = vmatpush3.bf16.msra.mxu0 %v12200_v42  ;;  %v9161_v42 = vld [vmem:[%s18515_s0 + $0x1b8] sm:$0xff] }
  0x31   :  { %12211 = vmatpush3.bf16.msra.mxu1 %v12208_v43  ;;  %12205 = vmatprep.subr.bf16.mxu0 %v12204_v63  ;;  %v9162_v43 = vld [vmem:[%s18515_s0 + $0x1c0] sm:$0xff] }
  0x32   :  { %10931 = vmatmul.mubr.msk.f32.gmra.mrb[18].mxu0 %vm115_vm0, %v13492_v28  ;;  %12213 = vmatprep.subr.bf16.mxu1 %v12212_v0  ;;  %v12256_v46 = vpack.c.bf16 %v9162_v43, %v9161_v42 }
  0x33   :  { %10965 = vmatmul.mubr.msk.f32.gmra.mrb[18].mxu1 %vm115_vm0, %v13492_v28  ;;  %10933 = vmatprep.mubr.msk.f32.mxu0 %vm115_vm0, %v13499_v29 }
  0x34   :  { %10967 = vmatprep.mubr.msk.f32.mxu1 %vm115_vm0, %v13499_v29  ;;  %12207 = vmatpush3.bf16.msra.mxu0 %v12204_v63  ;;  %v9205_v63 = vld [vmem:[%s18515_s0 + $0x208] sm:$0xff] }
  0x35   :  { %12215 = vmatpush3.bf16.msra.mxu1 %v12212_v0  ;;  %10993 = vmatprep.subr.msk.mxu0 %vm164_vm1, %v9011_v1  ;;  %v9206_v0 = vld [vmem:[%s18515_s0 + $0x210] sm:$0xff] }
  0x36   :  { %10934 = vmatmul.mubr.msk.f32.gmra.mrb[20].mxu0 %vm115_vm0, %v13510_v32  ;;  %11027 = vmatprep.subr.msk.mxu1 %vm164_vm1, %v9033_v4  ;;  %v12272_v2 = vpack.c.bf16 %v9206_v0, %v9205_v63  ;;  %v9295_v63 = vld [vmem:[%s18515_s0 + $0x2b8] sm:$0xff]  ;;  %v9296_v0 = vld [vmem:[%s18515_s0 + $0x2c0] sm:$0xff] }
  0x37   :  { %10968 = vmatmul.mubr.msk.f32.gmra.mrb[20].mxu1 %vm115_vm0, %v13510_v32  ;;  %10936 = vmatprep.mubr.msk.f32.mxu0 %vm115_vm0, %v13517_v33 }
  0x38   :  { %10970 = vmatprep.mubr.msk.f32.mxu1 %vm115_vm0, %v13517_v33  ;;  %10994 = vmatpush3.msk.msra.mxu0 %vm164_vm1, %v9011_v1  ;;  %v12264_v1 = vpack.c.bf16 %v9184_v61, %v9183_v60 }
  0x39   :  { %11028 = vmatpush3.msk.msra.mxu1 %vm164_vm1, %v9033_v4  ;;  %12217 = vmatprep.subr.bf16.mxu0 %v12216_v7  ;;  %v9186_v4 = vld [vmem:[%s18515_s0 + $0x1f8] sm:$0xff] }
  0x3a   :  { %10937 = vmatmul.mubr.msk.f32.gmra.mrb[22].mxu0 %vm115_vm0, %v13546_v40  ;;  %12225 = vmatprep.subr.bf16.mxu1 %v12224_v8 }
  0x3b   :  { %10971 = vmatmul.mubr.msk.f32.gmra.mrb[22].mxu1 %vm115_vm0, %v13546_v40  ;;  %10939 = vmatprep.mubr.msk.f32.mxu0 %vm115_vm0, %v13553_v41 }
  0x3c   :  { %10973 = vmatprep.mubr.msk.f32.mxu1 %vm115_vm0, %v13553_v41 }
  0x3e   :  { %10940 = vmatmul.mubr.msk.f32.gmra.mrb[24].mxu0 %vm115_vm0, %v13571_v45 }
  0x3f   :  { %10974 = vmatmul.mubr.msk.f32.gmra.mrb[24].mxu1 %vm115_vm0, %v13571_v45  ;;  %10942 = vmatprep.mubr.msk.f32.mxu0 %vm115_vm0, %v13581_v47 }
  0x40   :  { %10976 = vmatprep.mubr.msk.f32.mxu1 %vm115_vm0, %v13581_v47 }
  0x42   :  { %10943 = vmatmul.mubr.msk.f32.gmra.mrb[26].mxu0 %vm115_vm0, %v13595_v49 }
  0x43   :  { %10977 = vmatmul.mubr.msk.f32.gmra.mrb[26].mxu1 %vm115_vm0, %v13595_v49  ;;  %10945 = vmatprep.mubr.msk.f32.mxu0 %vm115_vm0, %v13605_v51 }
  0x44   :  { %10979 = vmatprep.mubr.msk.f32.mxu1 %vm115_vm0, %v13605_v51 }
  0x46   :  { %10946 = vmatmul.mubr.msk.f32.gmra.mrb[28].mxu0 %vm115_vm0, %v13619_v53 }
  0x47   :  { %10980 = vmatmul.mubr.msk.f32.gmra.mrb[28].mxu1 %vm115_vm0, %v13619_v53  ;;  %10948 = vmatprep.mubr.msk.f32.mxu0 %vm115_vm0, %v13629_v55 }
  0x48   :  { %10982 = vmatprep.mubr.msk.f32.mxu1 %vm115_vm0, %v13629_v55 }
  0x4a   :  { %10949 = vmatmul.mubr.msk.f32.gmra.mrb[30].mxu0 %vm115_vm0, %v13643_v57 }
  0x4b   :  { %10983 = vmatmul.mubr.msk.f32.gmra.mrb[30].mxu1 %vm115_vm0, %v13643_v57  ;;  %10995 = vmatprep.mubr.msk.f32.mxu0 %vm115_vm0, %v13433_v13 }
  0x4c   :  { %11029 = vmatprep.mubr.msk.f32.mxu1 %vm115_vm0, %v13433_v13 }
  0x4e   :  { %10996 = vmatmul.mubr.msk.f32.vlgmr.msra.gmra.mrb[32].mxu0 %vm115_vm0, %v13462_v20 }
  0x4f   :  { %11030 = vmatmul.mubr.msk.f32.vlgmr.msra.gmra.mrb[32].mxu1 %vm115_vm0, %v13462_v20  ;;  %10998 = vmatprep.mubr.msk.f32.mxu0 %vm115_vm0, %v13467_v21 }
  0x50   :  { %11032 = vmatprep.mubr.msk.f32.mxu1 %vm115_vm0, %v13467_v21  ;;  %12219 = vmatpush3.bf16.msra.mxu0 %v12216_v7  ;;  %v12268_v7 = vpack.c.bf16 %v9186_v4, %v9185_v3 }
  0x51   :  { %12227 = vmatpush3.bf16.msra.mxu1 %v12224_v8  ;;  %12221 = vmatprep.subr.bf16.mxu0 %v12220_v14  ;;  %v12276_v8 = vpack.c.bf16 %v9208_v6, %v9207_v5 }
  0x52   :  { %10999 = vmatmul.mubr.msk.f32.gmra.mrb[34].mxu0 %vm115_vm0, %v13492_v28  ;;  %12229 = vmatprep.subr.bf16.mxu1 %v12228_v15 }
  0x53   :  { %11033 = vmatmul.mubr.msk.f32.gmra.mrb[34].mxu1 %vm115_vm0, %v13492_v28  ;;  %11001 = vmatprep.mubr.msk.f32.mxu0 %vm115_vm0, %v13499_v29 }
  0x54   :  { %11035 = vmatprep.mubr.msk.f32.mxu1 %vm115_vm0, %v13499_v29  ;;  %12223 = vmatpush3.bf16.msra.mxu0 %v12220_v14  ;;  %v9249_v14 = vld [vmem:[%s18515_s0 + $0x258] sm:$0xff] }
  0x55   :  { %12231 = vmatpush3.bf16.msra.mxu1 %v12228_v15  ;;  %11061 = vmatprep.subr.msk.mxu0 %vm164_vm1, %v9055_v16  ;;  %v9250_v15 = vld [vmem:[%s18515_s0 + $0x260] sm:$0xff] }
  0x56   :  { %11002 = vmatmul.mubr.msk.f32.gmra.mrb[36].mxu0 %vm115_vm0, %v13510_v32  ;;  %11095 = vmatprep.subr.msk.mxu1 %vm164_vm1, %v9077_v19  ;;  %v12288_v17 = vpack.c.bf16 %v9250_v15, %v9249_v14  ;;  %v9275_v15 = vld [vmem:[%s18515_s0 + $0x2a0] sm:$0xf] }
  0x57   :  { %11036 = vmatmul.mubr.msk.f32.gmra.mrb[36].mxu1 %vm115_vm0, %v13510_v32  ;;  %11004 = vmatprep.mubr.msk.f32.mxu0 %vm115_vm0, %v13517_v33 }
  0x58   :  { %11038 = vmatprep.mubr.msk.f32.mxu1 %vm115_vm0, %v13517_v33  ;;  %11062 = vmatpush3.msk.msra.mxu0 %vm164_vm1, %v9055_v16  ;;  %v12280_v16 = vpack.c.bf16 %v9228_v11, %v9227_v10 }
  0x59   :  { %11096 = vmatpush3.msk.msra.mxu1 %vm164_vm1, %v9077_v19  ;;  %12233 = vmatprep.subr.bf16.mxu0 %v12232_v24  ;;  %v9230_v19 = vld [vmem:[%s18515_s0 + $0x248] sm:$0xff] }
  0x5a   :  { %11005 = vmatmul.mubr.msk.f32.gmra.mrb[38].mxu0 %vm115_vm0, %v13546_v40  ;;  %12241 = vmatprep.subr.bf16.mxu1 %v12240_v25 }
  0x5b   :  { %11039 = vmatmul.mubr.msk.f32.gmra.mrb[38].mxu1 %vm115_vm0, %v13546_v40  ;;  %11007 = vmatprep.mubr.msk.f32.mxu0 %vm115_vm0, %v13553_v41 }
  0x5c   :  { %11041 = vmatprep.mubr.msk.f32.mxu1 %vm115_vm0, %v13553_v41 }
  0x5e   :  { %11008 = vmatmul.mubr.msk.f32.gmra.mrb[40].mxu0 %vm115_vm0, %v13571_v45 }
  0x5f   :  { %11042 = vmatmul.mubr.msk.f32.gmra.mrb[40].mxu1 %vm115_vm0, %v13571_v45  ;;  %11010 = vmatprep.mubr.msk.f32.mxu0 %vm115_vm0, %v13581_v47 }
  0x60   :  { %11044 = vmatprep.mubr.msk.f32.mxu1 %vm115_vm0, %v13581_v47 }
  0x62   :  { %11011 = vmatmul.mubr.msk.f32.gmra.mrb[42].mxu0 %vm115_vm0, %v13595_v49 }
  0x63   :  { %11045 = vmatmul.mubr.msk.f32.gmra.mrb[42].mxu1 %vm115_vm0, %v13595_v49  ;;  %11013 = vmatprep.mubr.msk.f32.mxu0 %vm115_vm0, %v13605_v51 }
  0x64   :  { %11047 = vmatprep.mubr.msk.f32.mxu1 %vm115_vm0, %v13605_v51 }
  0x66   :  { %11014 = vmatmul.mubr.msk.f32.gmra.mrb[44].mxu0 %vm115_vm0, %v13619_v53 }
  0x67   :  { %11048 = vmatmul.mubr.msk.f32.gmra.mrb[44].mxu1 %vm115_vm0, %v13619_v53  ;;  %11016 = vmatprep.mubr.msk.f32.mxu0 %vm115_vm0, %v13629_v55 }
  0x68   :  { %11050 = vmatprep.mubr.msk.f32.mxu1 %vm115_vm0, %v13629_v55 }
  0x6a   :  { %11017 = vmatmul.mubr.msk.f32.gmra.mrb[46].mxu0 %vm115_vm0, %v13643_v57 }
  0x6b   :  { %11051 = vmatmul.mubr.msk.f32.gmra.mrb[46].mxu1 %vm115_vm0, %v13643_v57  ;;  %11063 = vmatprep.mubr.msk.f32.mxu0 %vm115_vm0, %v13433_v13 }
  0x6c   :  { %11097 = vmatprep.mubr.msk.f32.mxu1 %vm115_vm0, %v13433_v13 }
  0x6e   :  { %11064 = vmatmul.mubr.msk.f32.vlgmr.msra.gmra.mrb[48].mxu0 %vm115_vm0, %v13462_v20 }
  0x6f   :  { %11098 = vmatmul.mubr.msk.f32.vlgmr.msra.gmra.mrb[48].mxu1 %vm115_vm0, %v13462_v20  ;;  %11066 = vmatprep.mubr.msk.f32.mxu0 %vm115_vm0, %v13467_v21 }
  0x70   :  { %11100 = vmatprep.mubr.msk.f32.mxu1 %vm115_vm0, %v13467_v21  ;;  %12235 = vmatpush3.bf16.msra.mxu0 %v12232_v24  ;;  %v12284_v24 = vpack.c.bf16 %v9230_v19, %v9229_v18  ;;  %v9297_v19 = vld [vmem:[%s18515_s0 + $0x2c8] sm:$0xf] }
  0x71   :  { %12243 = vmatpush3.bf16.msra.mxu1 %v12240_v25  ;;  %12237 = vmatprep.subr.bf16.mxu0 %v12236_v34  ;;  %v12292_v25 = vpack.c.bf16 %v9252_v23, %v9251_v22  ;;  %v9337_v22 = vld [vmem:[%s18515_s0 + $0x2f8] sm:$0xff]  ;;  %v9338_v23 = vld [vmem:[%s18515_s0 + $0x300] sm:$0xff] }
  0x72   :  { %11067 = vmatmul.mubr.msk.f32.gmra.mrb[50].mxu0 %vm115_vm0, %v13492_v28  ;;  %12245 = vmatprep.subr.bf16.mxu1 %v12244_v35 }
  0x73   :  { %11101 = vmatmul.mubr.msk.f32.gmra.mrb[50].mxu1 %vm115_vm0, %v13492_v28  ;;  %11069 = vmatprep.mubr.msk.f32.mxu0 %vm115_vm0, %v13499_v29 }
  0x74   :  { %11103 = vmatprep.mubr.msk.f32.mxu1 %vm115_vm0, %v13499_v29  ;;  %12239 = vmatpush3.bf16.msra.mxu0 %v12236_v34  ;;  %v9293_v34 = vld [vmem:[%s18515_s0 + $0x2a8] sm:$0xff] }
  0x75   :  { %12247 = vmatpush3.bf16.msra.mxu1 %v12244_v35  ;;  %11129 = vmatprep.subr.msk.mxu0 %vm164_vm1, %v9099_v36  ;;  %v9294_v35 = vld [vmem:[%s18515_s0 + $0x2b0] sm:$0xff] }
  0x76   :  { %11070 = vmatmul.mubr.msk.f32.gmra.mrb[52].mxu0 %vm115_vm0, %v13510_v32  ;;  %11163 = vmatprep.subr.msk.mxu1 %vm164_vm1, %v9121_v39  ;;  %v14200_v37 = vpack.c.bf16 %v9294_v35, %v9293_v34 }
  0x77   :  { %11104 = vmatmul.mubr.msk.f32.gmra.mrb[52].mxu1 %vm115_vm0, %v13510_v32  ;;  %11072 = vmatprep.mubr.msk.f32.mxu0 %vm115_vm0, %v13517_v33 }
  0x78   :  { %11106 = vmatprep.mubr.msk.f32.mxu1 %vm115_vm0, %v13517_v33  ;;  %11130 = vmatpush3.msk.msra.mxu0 %vm164_vm1, %v9099_v36  ;;  %v14195_v36 = vpack.c.bf16 %v9272_v30, %v9271_v27  ;;  %v14362_v30 = vpack.c.bf16 %v9338_v23, %v9337_v22 }
  0x79   :  { %11164 = vmatpush3.msk.msra.mxu1 %vm164_vm1, %v9121_v39  ;;  %12249 = vmatprep.subr.bf16.mxu0 %v12248_v44 }
  0x7a   :  { %11073 = vmatmul.mubr.msk.f32.gmra.mrb[54].mxu0 %vm115_vm0, %v13546_v40  ;;  %12257 = vmatprep.subr.bf16.mxu1 %v12256_v46 }
  0x7b   :  { %11107 = vmatmul.mubr.msk.f32.gmra.mrb[54].mxu1 %vm115_vm0, %v13546_v40  ;;  %11075 = vmatprep.mubr.msk.f32.mxu0 %vm115_vm0, %v13553_v41 }
  0x7c   :  { %11109 = vmatprep.mubr.msk.f32.mxu1 %vm115_vm0, %v13553_v41 }
  0x7e   :  { %11076 = vmatmul.mubr.msk.f32.gmra.mrb[56].mxu0 %vm115_vm0, %v13571_v45 }
  0x7f   :  { %11110 = vmatmul.mubr.msk.f32.gmra.mrb[56].mxu1 %vm115_vm0, %v13571_v45  ;;  %11078 = vmatprep.mubr.msk.f32.mxu0 %vm115_vm0, %v13581_v47 }
  0x80   :  { %11112 = vmatprep.mubr.msk.f32.mxu1 %vm115_vm0, %v13581_v47 }
  0x82   :  { %11079 = vmatmul.mubr.msk.f32.gmra.mrb[58].mxu0 %vm115_vm0, %v13595_v49 }
  0x83   :  { %11113 = vmatmul.mubr.msk.f32.gmra.mrb[58].mxu1 %vm115_vm0, %v13595_v49  ;;  %11081 = vmatprep.mubr.msk.f32.mxu0 %vm115_vm0, %v13605_v51 }
  0x84   :  { %11115 = vmatprep.mubr.msk.f32.mxu1 %vm115_vm0, %v13605_v51 }
  0x86   :  { %11082 = vmatmul.mubr.msk.f32.gmra.mrb[60].mxu0 %vm115_vm0, %v13619_v53 }
  0x87   :  { %11116 = vmatmul.mubr.msk.f32.gmra.mrb[60].mxu1 %vm115_vm0, %v13619_v53  ;;  %11084 = vmatprep.mubr.msk.f32.mxu0 %vm115_vm0, %v13629_v55 }
  0x88   :  { %11118 = vmatprep.mubr.msk.f32.mxu1 %vm115_vm0, %v13629_v55 }
  0x8a   :  { %11085 = vmatmul.mubr.msk.f32.gmra.mrb[62].mxu0 %vm115_vm0, %v13643_v57 }
  0x8b   :  { %11119 = vmatmul.mubr.msk.f32.gmra.mrb[62].mxu1 %vm115_vm0, %v13643_v57  ;;  %11131 = vmatprep.mubr.msk.f32.mxu0 %vm115_vm0, %v13433_v13 }
  0x8c   :  { %11165 = vmatprep.mubr.msk.f32.mxu1 %vm115_vm0, %v13433_v13 }
  0x8e   :  { %11132 = vmatmul.mubr.msk.f32.vlgmr.msra.gmra.mrb[64].mxu0 %vm115_vm0, %v13462_v20 }
  0x8f   :  { %11166 = vmatmul.mubr.msk.f32.vlgmr.msra.gmra.mrb[64].mxu1 %vm115_vm0, %v13462_v20  ;;  %11134 = vmatprep.mubr.msk.f32.mxu0 %vm115_vm0, %v13467_v21 }
  0x90   :  { %11168 = vmatprep.mubr.msk.f32.mxu1 %vm115_vm0, %v13467_v21  ;;  %12251 = vmatpush3.bf16.msra.mxu0 %v12248_v44 }
  0x91   :  { %12259 = vmatpush3.bf16.msra.mxu1 %v12256_v46  ;;  %12253 = vmatprep.subr.bf16.mxu0 %v12252_v56 }
  0x92   :  { %11135 = vmatmul.mubr.msk.f32.gmra.mrb[66].mxu0 %vm115_vm0, %v13492_v28  ;;  %12261 = vmatprep.subr.bf16.mxu1 %v12260_v58 }
  0x93   :  { %11169 = vmatmul.mubr.msk.f32.gmra.mrb[66].mxu1 %vm115_vm0, %v13492_v28  ;;  %11137 = vmatprep.mubr.msk.f32.mxu0 %vm115_vm0, %v13499_v29 }
  0x94   :  { %11171 = vmatprep.mubr.msk.f32.mxu1 %vm115_vm0, %v13499_v29  ;;  %12255 = vmatpush3.bf16.msra.mxu0 %v12252_v56 }
  0x95   :  { %12263 = vmatpush3.bf16.msra.mxu1 %v12260_v58  ;;  %11197 = vmatprep.subr.msk.mxu0 %vm164_vm1, %v9143_v59 }
  0x96   :  { %11138 = vmatmul.mubr.msk.f32.gmra.mrb[68].mxu0 %vm115_vm0, %v13510_v32  ;;  %11231 = vmatprep.subr.msk.mxu1 %vm164_vm1, %v9165_v62 }
  0x97   :  { %11172 = vmatmul.mubr.msk.f32.gmra.mrb[68].mxu1 %vm115_vm0, %v13510_v32  ;;  %11140 = vmatprep.mubr.msk.f32.mxu0 %vm115_vm0, %v13517_v33 }
  0x98   :  { %11174 = vmatprep.mubr.msk.f32.mxu1 %vm115_vm0, %v13517_v33  ;;  %11198 = vmatpush3.msk.msra.mxu0 %vm164_vm1, %v9143_v59  ;;  %v9273_v59 = vld [vmem:[%s18515_s0 + $0x290] sm:$0xff] }
  0x99   :  { %11232 = vmatpush3.msk.msra.mxu1 %vm164_vm1, %v9165_v62  ;;  %12265 = vmatprep.subr.bf16.mxu0 %v12264_v1 }
  0x9a   :  { %11141 = vmatmul.mubr.msk.f32.gmra.mrb[70].mxu0 %vm115_vm0, %v13546_v40  ;;  %12273 = vmatprep.subr.bf16.mxu1 %v12272_v2 }
  0x9b   :  { %11175 = vmatmul.mubr.msk.f32.gmra.mrb[70].mxu1 %vm115_vm0, %v13546_v40  ;;  %11143 = vmatprep.mubr.msk.f32.mxu0 %vm115_vm0, %v13553_v41 }
  0x9c   :  { %11177 = vmatprep.mubr.msk.f32.mxu1 %vm115_vm0, %v13553_v41  ;;  %v14318_v10 = vpop.permute.xlu0 %68 }
  0x9e   :  { %11144 = vmatmul.mubr.msk.f32.gmra.mrb[72].mxu0 %vm115_vm0, %v13571_v45 }
  0x9f   :  { %11178 = vmatmul.mubr.msk.f32.gmra.mrb[72].mxu1 %vm115_vm0, %v13571_v45  ;;  %11146 = vmatprep.mubr.msk.f32.mxu0 %vm115_vm0, %v13581_v47 }
  0xa0   :  { %11180 = vmatprep.mubr.msk.f32.mxu1 %vm115_vm0, %v13581_v47 }
  0xa2   :  { %11147 = vmatmul.mubr.msk.f32.gmra.mrb[74].mxu0 %vm115_vm0, %v13595_v49 }
  0xa3   :  { %11181 = vmatmul.mubr.msk.f32.gmra.mrb[74].mxu1 %vm115_vm0, %v13595_v49  ;;  %11149 = vmatprep.mubr.msk.f32.mxu0 %vm115_vm0, %v13605_v51 }
  0xa4   :  { %11183 = vmatprep.mubr.msk.f32.mxu1 %vm115_vm0, %v13605_v51 }
  0xa6   :  { %11150 = vmatmul.mubr.msk.f32.gmra.mrb[76].mxu0 %vm115_vm0, %v13619_v53 }
  0xa7   :  { %11184 = vmatmul.mubr.msk.f32.gmra.mrb[76].mxu1 %vm115_vm0, %v13619_v53  ;;  %11152 = vmatprep.mubr.msk.f32.mxu0 %vm115_vm0, %v13629_v55 }
  0xa8   :  { %11186 = vmatprep.mubr.msk.f32.mxu1 %vm115_vm0, %v13629_v55 }
  0xaa   :  { %11153 = vmatmul.mubr.msk.f32.gmra.mrb[78].mxu0 %vm115_vm0, %v13643_v57 }
  0xab   :  { %11187 = vmatmul.mubr.msk.f32.gmra.mrb[78].mxu1 %vm115_vm0, %v13643_v57  ;;  %11199 = vmatprep.mubr.msk.f32.mxu0 %vm115_vm0, %v13433_v13 }
  0xac   :  { %11233 = vmatprep.mubr.msk.f32.mxu1 %vm115_vm0, %v13433_v13 }
  0xae   :  { %11200 = vmatmul.mubr.msk.f32.vlgmr.msra.gmra.mrb[80].mxu0 %vm115_vm0, %v13462_v20 }
  0xaf   :  { %11234 = vmatmul.mubr.msk.f32.vlgmr.msra.gmra.mrb[80].mxu1 %vm115_vm0, %v13462_v20  ;;  %11202 = vmatprep.mubr.msk.f32.mxu0 %vm115_vm0, %v13467_v21 }
  0xb0   :  { %11236 = vmatprep.mubr.msk.f32.mxu1 %vm115_vm0, %v13467_v21  ;;  %12267 = vmatpush3.bf16.msra.mxu0 %v12264_v1 }
  0xb1   :  { %12275 = vmatpush3.bf16.msra.mxu1 %v12272_v2  ;;  %12269 = vmatprep.subr.bf16.mxu0 %v12268_v7 }
  0xb2   :  { %11203 = vmatmul.mubr.msk.f32.gmra.mrb[82].mxu0 %vm115_vm0, %v13492_v28  ;;  %12277 = vmatprep.subr.bf16.mxu1 %v12276_v8 }
  0xb3   :  { %11237 = vmatmul.mubr.msk.f32.gmra.mrb[82].mxu1 %vm115_vm0, %v13492_v28  ;;  %11205 = vmatprep.mubr.msk.f32.mxu0 %vm115_vm0, %v13499_v29 }
  0xb4   :  { %11239 = vmatprep.mubr.msk.f32.mxu1 %vm115_vm0, %v13499_v29  ;;  %12271 = vmatpush3.bf16.msra.mxu0 %v12268_v7  ;;  %v12308_v7 = vpack.c.bf16 %v9296_v0, %v9295_v63 }
  0xb5   :  { %12279 = vmatpush3.bf16.msra.mxu1 %v12276_v8  ;;  %11265 = vmatprep.subr.msk.mxu0 %vm164_vm1, %v9187_v9 }
  0xb6   :  { %11206 = vmatmul.mubr.msk.f32.gmra.mrb[84].mxu0 %vm115_vm0, %v13510_v32  ;;  %11299 = vmatprep.subr.msk.mxu1 %vm164_vm1, %v9209_v12 }
  0xb7   :  { %11240 = vmatmul.mubr.msk.f32.gmra.mrb[84].mxu1 %vm115_vm0, %v13510_v32  ;;  %11208 = vmatprep.mubr.msk.f32.mxu0 %vm115_vm0, %v13517_v33 }
  0xb8   :  { %11242 = vmatprep.mubr.msk.f32.mxu1 %vm115_vm0, %v13517_v33  ;;  %11266 = vmatpush3.msk.msra.mxu0 %vm164_vm1, %v9187_v9 }
  0xb9   :  { %11300 = vmatpush3.msk.msra.mxu1 %vm164_vm1, %v9209_v12  ;;  %12281 = vmatprep.subr.bf16.mxu0 %v12280_v16 }
  0xba   :  { %11209 = vmatmul.mubr.msk.f32.gmra.mrb[86].mxu0 %vm115_vm0, %v13546_v40  ;;  %12289 = vmatprep.subr.bf16.mxu1 %v12288_v17 }
  0xbb   :  { %11243 = vmatmul.mubr.msk.f32.gmra.mrb[86].mxu1 %vm115_vm0, %v13546_v40  ;;  %11211 = vmatprep.mubr.msk.f32.mxu0 %vm115_vm0, %v13553_v41 }
  0xbc   :  { %11245 = vmatprep.mubr.msk.f32.mxu1 %vm115_vm0, %v13553_v41 }
  0xbe   :  { %11212 = vmatmul.mubr.msk.f32.gmra.mrb[88].mxu0 %vm115_vm0, %v13571_v45 }
  0xbf   :  { %11246 = vmatmul.mubr.msk.f32.gmra.mrb[88].mxu1 %vm115_vm0, %v13571_v45  ;;  %11214 = vmatprep.mubr.msk.f32.mxu0 %vm115_vm0, %v13581_v47 }
  0xc0   :  { %11248 = vmatprep.mubr.msk.f32.mxu1 %vm115_vm0, %v13581_v47 }
  0xc2   :  { %11215 = vmatmul.mubr.msk.f32.gmra.mrb[90].mxu0 %vm115_vm0, %v13595_v49 }
  0xc3   :  { %11249 = vmatmul.mubr.msk.f32.gmra.mrb[90].mxu1 %vm115_vm0, %v13595_v49  ;;  %11217 = vmatprep.mubr.msk.f32.mxu0 %vm115_vm0, %v13605_v51 }
  0xc4   :  { %11251 = vmatprep.mubr.msk.f32.mxu1 %vm115_vm0, %v13605_v51 }
  0xc6   :  { %11218 = vmatmul.mubr.msk.f32.gmra.mrb[92].mxu0 %vm115_vm0, %v13619_v53 }
  0xc7   :  { %11252 = vmatmul.mubr.msk.f32.gmra.mrb[92].mxu1 %vm115_vm0, %v13619_v53  ;;  %11220 = vmatprep.mubr.msk.f32.mxu0 %vm115_vm0, %v13629_v55 }
  0xc8   :  { %11254 = vmatprep.mubr.msk.f32.mxu1 %vm115_vm0, %v13629_v55 }
  0xca   :  { %11221 = vmatmul.mubr.msk.f32.gmra.mrb[94].mxu0 %vm115_vm0, %v13643_v57 }
  0xcb   :  { %11255 = vmatmul.mubr.msk.f32.gmra.mrb[94].mxu1 %vm115_vm0, %v13643_v57  ;;  %11267 = vmatprep.mubr.msk.f32.mxu0 %vm115_vm0, %v13433_v13 }
  0xcc   :  { %11301 = vmatprep.mubr.msk.f32.mxu1 %vm115_vm0, %v13433_v13 }
  0xce   :  { %11268 = vmatmul.mubr.msk.f32.vlgmr.msra.gmra.mrb[96].mxu0 %vm115_vm0, %v13462_v20 }
  0xcf   :  { %11302 = vmatmul.mubr.msk.f32.vlgmr.msra.gmra.mrb[96].mxu1 %vm115_vm0, %v13462_v20  ;;  %11270 = vmatprep.mubr.msk.f32.mxu0 %vm115_vm0, %v13467_v21 }
  0xd0   :  { %11304 = vmatprep.mubr.msk.f32.mxu1 %vm115_vm0, %v13467_v21  ;;  %12283 = vmatpush3.bf16.msra.mxu0 %v12280_v16  ;;  %v9316_v16 = vld [vmem:[%s18515_s0 + $0x2d8] sm:$0xff] }
  0xd1   :  { %12291 = vmatpush3.bf16.msra.mxu1 %v12288_v17  ;;  %12285 = vmatprep.subr.bf16.mxu0 %v12284_v24 }
  0xd2   :  { %11271 = vmatmul.mubr.msk.f32.gmra.mrb[98].mxu0 %vm115_vm0, %v13492_v28  ;;  %12293 = vmatprep.subr.bf16.mxu1 %v12292_v25 }
  0xd3   :  { %11305 = vmatmul.mubr.msk.f32.gmra.mrb[98].mxu1 %vm115_vm0, %v13492_v28  ;;  %11273 = vmatprep.mubr.msk.f32.mxu0 %vm115_vm0, %v13499_v29 }
  0xd4   :  { %11307 = vmatprep.mubr.msk.f32.mxu1 %vm115_vm0, %v13499_v29  ;;  %12287 = vmatpush3.bf16.msra.mxu0 %v12284_v24  ;;  %v14354_v24 = vpop.permute.xlu0 %73 }
  0xd5   :  { %12295 = vmatpush3.bf16.msra.mxu1 %v12292_v25  ;;  %11333 = vmatprep.subr.msk.mxu0 %vm164_vm1, %v9231_v26 }
  0xd6   :  { %11274 = vmatmul.mubr.msk.f32.gmra.mrb[100].mxu0 %vm115_vm0, %v13510_v32  ;;  %11367 = vmatprep.subr.msk.mxu1 %vm164_vm1, %v9253_v31 }
  0xd7   :  { %11308 = vmatmul.mubr.msk.f32.gmra.mrb[100].mxu1 %vm115_vm0, %v13510_v32  ;;  %11276 = vmatprep.mubr.msk.f32.mxu0 %vm115_vm0, %v13517_v33 }
  0xd8   :  { %11310 = vmatprep.mubr.msk.f32.mxu1 %vm115_vm0, %v13517_v33  ;;  %11334 = vmatpush3.msk.msra.mxu0 %vm164_vm1, %v9231_v26 }
  0xd9   :  { %11368 = vmatpush3.msk.msra.mxu1 %vm164_vm1, %v9253_v31  ;;  %12297 = vmatprep.subr.bf16.mxu0 %v14195_v36 }
  0xda   :  { %11277 = vmatmul.mubr.msk.f32.gmra.mrb[102].mxu0 %vm115_vm0, %v13546_v40  ;;  %12305 = vmatprep.subr.bf16.mxu1 %v14200_v37 }
  0xdb   :  { %11311 = vmatmul.mubr.msk.f32.gmra.mrb[102].mxu1 %vm115_vm0, %v13546_v40  ;;  %11279 = vmatprep.mubr.msk.f32.mxu0 %vm115_vm0, %v13553_v41 }
  0xdc   :  { %11313 = vmatprep.mubr.msk.f32.mxu1 %vm115_vm0, %v13553_v41 }
  0xde   :  { %11280 = vmatmul.mubr.msk.f32.gmra.mrb[104].mxu0 %vm115_vm0, %v13571_v45 }
  0xdf   :  { %11314 = vmatmul.mubr.msk.f32.gmra.mrb[104].mxu1 %vm115_vm0, %v13571_v45  ;;  %11282 = vmatprep.mubr.msk.f32.mxu0 %vm115_vm0, %v13581_v47 }
  0xe0   :  { %11316 = vmatprep.mubr.msk.f32.mxu1 %vm115_vm0, %v13581_v47 }
  0xe1   :  { %v14228_v38 = vpop.f32.mrb[0].mxu0 }
  0xe2   :  { %v14230_v39 = vpop.f32.mrb[1].mxu0  ;;  %11283 = vmatmul.mubr.msk.f32.gmra.mrb[106].mxu0 %vm115_vm0, %v13595_v49  ;;  %v14234_v42 = vpop.f32.mrb[0].mxu1 }
  0xe3   :  { %11317 = vmatmul.mubr.msk.f32.gmra.mrb[106].mxu1 %vm115_vm0, %v13595_v49  ;;  %11285 = vmatprep.mubr.msk.f32.mxu0 %vm115_vm0, %v13605_v51  ;;  %v14240_v43 = vpop.f32.mrb[1].mxu1 }
  0xe4   :  { %11319 = vmatprep.mubr.msk.f32.mxu1 %vm115_vm0, %v13605_v51 }
  0xe5   :  { %v14244_v44 = vpop.f32.mrb[2].mxu0 }
  0xe6   :  { %v14246_v46 = vpop.f32.mrb[3].mxu0  ;;  %11286 = vmatmul.mubr.msk.f32.gmra.mrb[108].mxu0 %vm115_vm0, %v13619_v53  ;;  %v14250_v48 = vpop.f32.mrb[2].mxu1 }
  0xe7   :  { %11320 = vmatmul.mubr.msk.f32.gmra.mrb[108].mxu1 %vm115_vm0, %v13619_v53  ;;  %v14254_v50 = vpop.f32.mrb[3].mxu1  ;;  %11288 = vmatprep.mubr.msk.f32.mxu0 %vm115_vm0, %v13629_v55 }
  0xe8   :  { %11322 = vmatprep.mubr.msk.f32.mxu1 %vm115_vm0, %v13629_v55  ;;  %v9274_v55 = vld [vmem:[%s18515_s0 + $0x298] sm:$0xff] }
  0xe9   :  { %v14260_v52 = vpop.f32.mrb[4].mxu0  ;;  %v12300_v3 = vpack.c.bf16 %v9274_v55, %v9273_v59  ;;  %v14382_v55 = vpop.permute.xlu0 %78 }
  0xea   :  { %v314_v54 = vmax.f32 %v14228_v38, %v14260_v52  ;;  %v14264_v56 = vpop.f32.mrb[4].mxu1  ;;  %v14266_v58 = vpop.f32.mrb[5].mxu0  ;;  %11289 = vmatmul.mubr.msk.f32.gmra.mrb[110].mxu0 %vm115_vm0, %v13643_v57 }
  0xeb   :  { %v516_v60 = vmax.f32 %v14234_v42, %v14264_v56  ;;  %v313_v61 = vmax.f32 %v14230_v39, %v14266_v58  ;;  %v14280_v62 = vpop.f32.mrb[5].mxu1  ;;  %11323 = vmatmul.mubr.msk.f32.gmra.mrb[110].mxu1 %vm115_vm0, %v13643_v57  ;;  %11335 = vmatprep.mubr.msk.f32.mxu0 %vm115_vm0, %v13433_v13  ;;  %v14298_v57 = vpop.permute.xlu1 %92 }
  0xec   :  { %v515_v1 = vmax.f32 %v14240_v43, %v14280_v62  ;;  %11369 = vmatprep.mubr.msk.f32.mxu1 %vm115_vm0, %v13433_v13 }
  0xed   :  { %v14296_v2 = vpop.f32.mrb[6].mxu0 }
  0xee   :  { %v316_v4 = vmax.f32 %v14244_v44, %v14296_v2  ;;  %v14302_v5 = vpop.f32.mrb[6].mxu1  ;;  %v14304_v6 = vpop.f32.mrb[7].mxu0  ;;  %11336 = vmatmul.mubr.msk.f32.vlgmr.msra.gmra.mrb[112].mxu0 %vm115_vm0, %v13462_v20 }
  0xef   :  { %v518_v8 = vmax.f32 %v14250_v48, %v14302_v5  ;;  %v315_v13 = vmax.f32 %v14246_v46, %v14304_v6  ;;  %v14312_v9 = vpop.f32.mrb[7].mxu1  ;;  %11370 = vmatmul.mubr.msk.f32.vlgmr.msra.gmra.mrb[112].mxu1 %vm115_vm0, %v13462_v20  ;;  %11338 = vmatprep.mubr.msk.f32.mxu0 %vm115_vm0, %v13467_v21  ;;  %v14341_v18 = vpop.permute.xlu1 %97 }
  0xf0   :  { %v517_v11 = vmax.f32 %v14254_v50, %v14312_v9  ;;  %11372 = vmatprep.mubr.msk.f32.mxu1 %vm115_vm0, %v13467_v21  ;;  %12299 = vmatpush3.bf16.msra.mxu0 %v14195_v36  ;;  %v9315_v21 = vld [vmem:[%s18515_s0 + $0x2d0] sm:$0xff]  ;;  %v14424_v2 = vpop.permute.xlu0 %102 }
  0xf1   :  { %v10873_v12 = vpop.f32.mrb[8].mxu0  ;;  %12307 = vmatpush3.bf16.msra.mxu1 %v14200_v37  ;;  %12301 = vmatprep.subr.bf16.mxu0 %v12300_v3  ;;  %v14357_v25 = vpack.c.bf16 %v9316_v16, %v9315_v21 }
  0xf2   :  { %v274_v14 = vpop.f32.mrb[9].mxu0  ;;  %11339 = vmatmul.mubr.msk.f32.gmra.mrb[114].mxu0 %vm115_vm0, %v13492_v28  ;;  %v10907_v20 = vpop.f32.mrb[8].mxu1  ;;  %12309 = vmatprep.subr.bf16.mxu1 %v12308_v7 }
  0xf3   :  { %11373 = vmatmul.mubr.msk.f32.gmra.mrb[114].mxu1 %vm115_vm0, %v13492_v28  ;;  %11341 = vmatprep.mubr.msk.f32.mxu0 %vm115_vm0, %v13499_v29  ;;  %v476_v17 = vpop.f32.mrb[9].mxu1  ;;  %v14371_v34 = vpop.permute.xlu1 %83 }
  0xf4   :  { %11375 = vmatprep.mubr.msk.f32.mxu1 %vm115_vm0, %v13499_v29  ;;  %12303 = vmatpush3.bf16.msra.mxu0 %v12300_v3 }
  0xf5   :  { %v10876_v28 = vpop.f32.mrb[10].mxu0  ;;  %12311 = vmatpush3.bf16.msra.mxu1 %v12308_v7  ;;  %11401 = vmatprep.subr.msk.mxu0 %vm164_vm1, %v9275_v15 }
  0xf6   :  { %v284_v26 = vpop.f32.mrb[11].mxu0  ;;  %11342 = vmatmul.mubr.msk.f32.gmra.mrb[116].mxu0 %vm115_vm0, %v13510_v32  ;;  %v10910_v27 = vpop.f32.mrb[10].mxu1  ;;  %11435 = vmatprep.subr.msk.mxu1 %vm164_vm1, %v9297_v19 }
  0xf7   :  { %11376 = vmatmul.mubr.msk.f32.gmra.mrb[116].mxu1 %vm115_vm0, %v13510_v32  ;;  %v486_v29 = vpop.f32.mrb[11].mxu1  ;;  %11344 = vmatprep.mubr.msk.f32.mxu0 %vm115_vm0, %v13517_v33 }
  0xf8   :  { %11378 = vmatprep.mubr.msk.f32.mxu1 %vm115_vm0, %v13517_v33  ;;  %11402 = vmatpush3.msk.msra.mxu0 %vm164_vm1, %v9275_v15 }
  0xf9   :  { %v10879_v31 = vpop.f32.mrb[12].mxu0  ;;  %11436 = vmatpush3.msk.msra.mxu1 %vm164_vm1, %v9297_v19  ;;  %12313 = vmatprep.subr.bf16.mxu0 %v14357_v25 }
  0xfa   :  { %v318_v35 = vmax.f32 %v10873_v12, %v10879_v31  ;;  %v10913_v36 = vpop.f32.mrb[12].mxu1  ;;  %v294_v37 = vpop.f32.mrb[13].mxu0  ;;  %11345 = vmatmul.mubr.msk.f32.gmra.mrb[118].mxu0 %vm115_vm0, %v13546_v40  ;;  %12321 = vmatprep.subr.bf16.mxu1 %v14362_v30  ;;  %v14463_v31 = vld [vmem:[%s18516_s1 + $0x68] sm:$0xff] }
  0xfb   :  { %v520_v32 = vmax.f32 %v10907_v20, %v10913_v36  ;;  %v317_v59 = vmax.f32 %v274_v14, %v294_v37  ;;  %v496_v33 = vpop.f32.mrb[13].mxu1  ;;  %11379 = vmatmul.mubr.msk.f32.gmra.mrb[118].mxu1 %vm115_vm0, %v13546_v40  ;;  %11347 = vmatprep.mubr.msk.f32.mxu0 %vm115_vm0, %v13553_v41 }
  0xfc   :  { %v322_v63 = vmax.f32 %v314_v54, %v318_v35  ;;  %v519_v0 = vmax.f32 %v476_v17, %v496_v33  ;;  %11381 = vmatprep.mubr.msk.f32.mxu1 %vm115_vm0, %v13553_v41 }
  0xfd   :  { %v524_v3 = vmax.f32 %v516_v60, %v520_v32  ;;  %v321_v40 = vmax.f32 %v313_v61, %v317_v59  ;;  %v10882_v7 = vpop.f32.mrb[14].mxu0  ;;  %v14412_v61 = vpop.permute.xlu1 %107 }
  0xfe   :  { %v523_v12 = vmax.f32 %v515_v1, %v519_v0  ;;  %v320_v14 = vmax.f32 %v10876_v28, %v10882_v7  ;;  %v10916_v38 = vpop.f32.mrb[14].mxu1  ;;  %v304_v52 = vpop.f32.mrb[15].mxu0  ;;  %11348 = vmatmul.mubr.msk.f32.gmra.mrb[120].mxu0 %vm115_vm0, %v13571_v45  ;;  %v326_v41 = vmul.f32 %v322_v63, %v14354_v24 }
  0xff   :  { %v325_v42 = vmul.f32 %v321_v40, %v14318_v10  ;;  %v522_v54 = vmax.f32 %v10910_v27, %v10916_v38  ;;  %v319_v56 = vmax.f32 %v284_v26, %v304_v52  ;;  %v506_v60 = vpop.f32.mrb[15].mxu1  ;;  %11382 = vmatmul.mubr.msk.f32.gmra.mrb[120].mxu1 %vm115_vm0, %v13571_v45  ;;  %11350 = vmatprep.mubr.msk.f32.mxu0 %vm115_vm0, %v13581_v47  ;;  %v9317_v38 = vld [vmem:[%s18515_s0 + $0x2e0] sm:$0xff]  ;;  %v9318_v52 = vld [vmem:[%s18515_s0 + $0x2e8] sm:$0xff] }
 0x100   :  { %v527_v39 = vmul.f32 %v523_v12, %v14318_v10  ;;  %v324_v43 = vmax.f32 %v316_v4, %v320_v14  ;;  %v521_v58 = vmax.f32 %v486_v29, %v506_v60  ;;  %11384 = vmatprep.mubr.msk.f32.mxu1 %vm115_vm0, %v13581_v47  ;;  %v330_v62 = vadd.f32 %v326_v41, %v14341_v18  ;;  %v14491_v14 = vld [vmem:[%s18516_s1 + $0x78] sm:$0xff]  ;;  %v9339_v60 = vld [vmem:[%s18515_s0 + $0x308] sm:$0xff] }
 0x101   :  { %v329_v1 = vadd.f32 %v325_v42, %v14298_v57  ;;  %v526_v45 = vmax.f32 %v518_v8, %v522_v54  ;;  %v323_v20 = vmax.f32 %v315_v13, %v319_v56  ;;  %v14422_v44 = vpop.f32.mrb[16].mxu0  ;;  %v528_v47 = vmul.f32 %v524_v3, %v14354_v24  ;;  %v14512_v56 = vld [vmem:[%s18516_s1] sm:$0xff] }
 0x102   :  { %v531_v4 = vadd.f32 %v527_v39, %v14298_v57  ;;  %v525_v15 = vmax.f32 %v517_v11, %v521_v58  ;;  %v14431_v21 = vpop.f32.mrb[17].mxu0  ;;  %11351 = vmatmul.mubr.msk.f32.gmra.mrb[122].mxu0 %vm115_vm0, %v13595_v49  ;;  %v14435_v48 = vpop.f32.mrb[16].mxu1  ;;  %v334_v46 = vsub.f32 0.0, %v330_v62  ;;  %v328_v5 = vmul.f32 %v324_v43, %v14371_v34  ;;  %v9340_v39 = vld [vmem:[%s18515_s0 + $0x310] sm:$0xff] }
 0x103   :  { %v333_v6 = vsub.f32 0.0, %v329_v1  ;;  %11385 = vmatmul.mubr.msk.f32.gmra.mrb[122].mxu1 %vm115_vm0, %v13595_v49  ;;  %11353 = vmatprep.mubr.msk.f32.mxu0 %vm115_vm0, %v13605_v51  ;;  %v14442_v8 = vpop.f32.mrb[17].mxu1  ;;  %v327_v50 = vmul.f32 %v323_v20, %v14382_v55  ;;  %v532_v13 = vadd.f32 %v528_v47, %v14341_v18  ;;  %v530_v9 = vmul.f32 %v526_v45, %v14371_v34 }
 0x104   :  { %v535_v11 = vsub.f32 0.0, %v531_v4  ;;  %11387 = vmatprep.mubr.msk.f32.mxu1 %vm115_vm0, %v13605_v51  ;;  %v339_v16 = vmul.f32 1.442695, %v334_v46  ;;  %v332_v17 = vadd.f32 %v328_v5, %v14412_v61  ;;  %v529_v51 = vmul.f32 %v525_v15, %v14382_v55  ;;  %v14537_v15 = vld [vmem:[%s18516_s1 + $0x8] sm:$0xff] }
 0x105   :  { %v337_v19 = vmul.f32 1.442695, %v333_v6  ;;  %v14450_v49 = vpop.f32.mrb[18].mxu0  ;;  %v331_v22 = vadd.f32 %v327_v50, %v14424_v2  ;;  %v536_v23 = vsub.f32 0.0, %v532_v13  ;;  %v534_v37 = vadd.f32 %v530_v9, %v14412_v61  ;;  %v14552_v9 = vld [vmem:[%s18516_s1 + $0x10] sm:$0xff] }
 0x106   :  { %v539_v28 = vmul.f32 1.442695, %v535_v11  ;;  %v14453_v26 = vpop.f32.mrb[19].mxu0  ;;  %11354 = vmatmul.mubr.msk.f32.gmra.mrb[124].mxu0 %vm115_vm0, %v13619_v53  ;;  %v14457_v27 = vpop.f32.mrb[18].mxu1  ;;  %12644 = vpow2.f32 %v339_v16  ;;  %v336_v29 = vsub.f32 0.0, %v332_v17  ;;  %v14472_v53 = vld [vmem:[%s18516_s1 + $0x70] sm:$0xff]  ;;  %v533_v0 = vadd.f32 %v529_v51, %v14424_v2 }
 0x107   :  { %12646 = vpow2.f32 %v337_v19  ;;  %11388 = vmatmul.mubr.msk.f32.gmra.mrb[124].mxu1 %vm115_vm0, %v14463_v31  ;;  %v14467_v35 = vpop.f32.mrb[19].mxu1  ;;  %11356 = vmatprep.mubr.msk.f32.mxu0 %vm115_vm0, %v14472_v53  ;;  %v335_v36 = vsub.f32 0.0, %v331_v22  ;;  %v541_v59 = vmul.f32 1.442695, %v536_v23  ;;  %v538_v3 = vsub.f32 0.0, %v534_v37  ;;  %v9360_v51 = vld [vmem:[%s18515_s0 + $0x328] sm:$0xff] }
 0x108   :  { %12648 = vpow2.f32 %v539_v28  ;;  %11390 = vmatprep.mubr.msk.f32.mxu1 %vm115_vm0, %v14472_v53  ;;  %v343_v32 = vmul.f32 1.442695, %v336_v29  ;;  %v537_v43 = vsub.f32 0.0, %v533_v0  ;;  %v12316_v45 = vpack.c.bf16 %v9318_v52, %v9317_v38  ;;  %v14569_v28 = vld [vmem:[%s18516_s1 + $0x18] sm:$0xff] }
 0x109   :  { %v14479_v33 = vpop.f32.mrb[20].mxu0  ;;  %v341_v63 = vmul.f32 1.442695, %v335_v36  ;;  %v545_v62 = vmul.f32 1.442695, %v538_v3  ;;  %v12324_v46 = vpack.c.bf16 %v9340_v39, %v9339_v60  ;;  %18602 = vst [vmem:[#allocation4_spill] sm:$0xff] %v14569_v28 }
 0x10a   :  { %v718_v40 = vmax.f32 %v14422_v44, %v14479_v33  ;;  %v14484_v7 = vpop.f32.mrb[20].mxu1  ;;  %v14486_v12 = vpop.f32.mrb[21].mxu0  ;;  %11357 = vmatmul.mubr.msk.f32.gmra.mrb[126].mxu0 %vm115_vm0, %v14491_v14  ;;  %12650 = vpow2.f32 %v343_v32  ;;  %v543_v5 = vmul.f32 1.442695, %v537_v43  ;;  %v14589_v36 = vld [vmem:[%s18516_s1 + $0x20] sm:$0xff] }
 0x10b   :  { %v920_v41 = vmax.f32 %v14435_v48, %v14484_v7  ;;  %v717_v42 = vmax.f32 %v14431_v21, %v14486_v12  ;;  %v14505_v54 = vpop.f32.mrb[21].mxu1  ;;  %11391 = vmatmul.mubr.msk.f32.gmra.mrb[126].mxu1 %vm115_vm0, %v14491_v14  ;;  %11403 = vmatprep.mubr.msk.f32.mxu0 %vm115_vm0, %v14512_v56  ;;  %12652 = vpow2.f32 %v341_v63  ;;  %18603 = vst [vmem:[#allocation5_spill] sm:$0xff] %v14589_v36  ;;  %v9341_v32 = vld [vmem:[%s18515_s0 + $0x318] sm:$0xf]  ;;  %v9382_v63 = vld [vmem:[%s18515_s0 + $0x350] sm:$0xff]  ;;  %v14681_v48 = vld [vmem:[%s18516_s1 + $0x48] sm:$0xff] }
 0x10c   :  { %v919_v58 = vmax.f32 %v14442_v8, %v14505_v54  ;;  %11437 = vmatprep.mubr.msk.f32.mxu1 %vm115_vm0, %v14512_v56  ;;  %12654 = vpow2.f32 %v541_v59  ;;  %v9381_v59 = vld [vmem:[%s18515_s0 + $0x348] sm:$0xff] }
 0x10d   :  { %v14526_v1 = vpop.f32.mrb[22].mxu0  ;;  %12656 = vpow2.f32 %v545_v62 }
 0x10e   :  { %v720_v20 = vmax.f32 %v14450_v49, %v14526_v1  ;;  %v14530_v47 = vpop.f32.mrb[22].mxu1  ;;  %v14532_v4 = vpop.f32.mrb[23].mxu0  ;;  %11404 = vmatmul.mubr.msk.f32.vlgmr.msra.gmra.mrb[128].mxu0 %vm115_vm0, %v14537_v15  ;;  %12658 = vpow2.f32 %v543_v5 }
 0x10f   :  { %v14545_v13 = vpop.f32.mrb[23].mxu1  ;;  %11438 = vmatmul.mubr.msk.f32.vlgmr.msra.gmra.mrb[128].mxu1 %vm115_vm0, %v14537_v15  ;;  %11406 = vmatprep.mubr.msk.f32.mxu0 %vm115_vm0, %v14552_v9  ;;  %v18605_v49 = vmax.f32 %v14457_v27, %v14530_v47 }
 0x110   :  { %v12645_v11 = vpop.eup %12644  ;;  %11440 = vmatprep.mubr.msk.f32.mxu1 %vm115_vm0, %v14552_v9  ;;  %12315 = vmatpush3.bf16.msra.mxu0 %v14357_v25  ;;  %v9319_v25 = vld [vmem:[%s18515_s0 + $0x2f0] sm:$0xf]  ;;  %v18608_v27 = vmax.f32 %v14467_v35, %v14545_v13  ;;  %v14745_v13 = vld [vmem:[%s18516_s1 + $0x60] sm:$0xff] }
 0x111   :  { %v12647_v17 = vpop.eup %12646  ;;  %v14561_v19 = vpop.f32.mrb[24].mxu0  ;;  %12323 = vmatpush3.bf16.msra.mxu1 %v14362_v30  ;;  %12317 = vmatprep.subr.bf16.mxu0 %v12316_v45  ;;  %v9359_v30 = vld [vmem:[%s18515_s0 + $0x320] sm:$0xff]  ;;  %v346_v0 = vadd.f32 1.0, %v12645_v11  ;;  %v14616_v11 = vld [vmem:[%s18516_s1 + $0x28] sm:$0xff] }
 0x112   :  { %v12649_v22 = vpop.eup %12648  ;;  %v14564_v23 = vpop.f32.mrb[25].mxu0  ;;  %11407 = vmatmul.mubr.msk.f32.gmra.mrb[130].mxu0 %vm115_vm0, %v14569_v28  ;;  %12325 = vmatprep.subr.bf16.mxu1 %v12324_v46  ;;  %v345_v38 = vadd.f32 1.0, %v12647_v17  ;;  %v14609_v43 = vpack.c.bf16 %v9360_v51, %v9359_v30  ;;  %v14632_v30 = vld [vmem:[%s18516_s1 + $0x30] sm:$0xff] }
 0x113   :  { %v14573_v29 = vpop.f32.mrb[24].mxu1  ;;  %11441 = vmatmul.mubr.msk.f32.gmra.mrb[130].mxu1 %vm115_vm0, %v14569_v28  ;;  %11409 = vmatprep.mubr.msk.f32.mxu0 %vm115_vm0, %v14589_v36  ;;  %v547_v60 = vadd.f32 1.0, %v12649_v22  ;;  %12660 = vrcp.f32 %v346_v0 }
 0x114   :  { %v14593_v37 = vpop.f32.mrb[25].mxu1  ;;  %v12651_v3 = vpop.eup %12650  ;;  %11443 = vmatprep.mubr.msk.f32.mxu1 %vm115_vm0, %v14589_v36  ;;  %12319 = vmatpush3.bf16.msra.mxu0 %v12316_v45  ;;  %12662 = vrcp.f32 %v345_v38  ;;  %v14645_v38 = vld [vmem:[%s18516_s1 + $0x38] sm:$0xff] }
 0x115   :  { %v12653_v52 = vpop.eup %12652  ;;  %v14606_v39 = vpop.f32.mrb[26].mxu0  ;;  %12327 = vmatpush3.bf16.msra.mxu1 %v12324_v46  ;;  %11469 = vmatprep.subr.msk.mxu0 %vm164_vm1, %v9319_v25  ;;  %v14623_v46 = vpack.c.bf16 %v9382_v63, %v9381_v59  ;;  %v348_v17 = vadd.f32 1.0, %v12651_v3  ;;  %12664 = vrcp.f32 %v547_v60 }
 0x116   :  { %v12655_v62 = vpop.eup %12654  ;;  %v14611_v5 = vpop.f32.mrb[27].mxu0  ;;  %11410 = vmatmul.mubr.msk.f32.gmra.mrb[132].mxu0 %vm115_vm0, %v14616_v11  ;;  %11503 = vmatprep.subr.msk.mxu1 %vm164_vm1, %v9341_v32  ;;  %v347_v51 = vadd.f32 1.0, %v12653_v52 }
 0x117   :  { %v14620_v45 = vpop.f32.mrb[26].mxu1  ;;  %11444 = vmatmul.mubr.msk.f32.gmra.mrb[132].mxu1 %vm115_vm0, %v14616_v11  ;;  %11412 = vmatprep.mubr.msk.f32.mxu0 %vm115_vm0, %v14632_v30  ;;  %v12657_v16 = vpop.eup %12656  ;;  %v548_v59 = vadd.f32 1.0, %v12655_v62  ;;  %12666 = vrcp.f32 %v348_v17 }
 0x118   :  { %v14627_v22 = vpop.f32.mrb[27].mxu1  ;;  %11446 = vmatprep.mubr.msk.f32.mxu1 %vm115_vm0, %v14632_v30  ;;  %11470 = vmatpush3.msk.msra.mxu0 %vm164_vm1, %v9319_v25  ;;  %v550_v3 = vadd.f32 1.0, %v12657_v16  ;;  %v12659_v50 = vpop.eup %12658  ;;  %12668 = vrcp.f32 %v347_v51 }
 0x119   :  { %v10947_v63 = vpop.f32.mrb[28].mxu0  ;;  %11504 = vmatpush3.msk.msra.mxu1 %vm164_vm1, %v9341_v32  ;;  %12329 = vmatprep.subr.bf16.mxu0 %v14609_v43  ;;  %v549_v60 = vadd.f32 1.0, %v12659_v50  ;;  %12670 = vrcp.f32 %v548_v59 }
 0x11a   :  { %v722_v6 = vmax.f32 %v14561_v19, %v10947_v63  ;;  %v10981_v0 = vpop.f32.mrb[28].mxu1  ;;  %v698_v52 = vpop.f32.mrb[29].mxu0  ;;  %11413 = vmatmul.mubr.msk.f32.gmra.mrb[134].mxu0 %vm115_vm0, %v14645_v38  ;;  %12337 = vmatprep.subr.bf16.mxu1 %v14623_v46  ;;  %v14657_v19 = vld [vmem:[%s18516_s1 + $0x40] sm:$0xff]  ;;  %12672 = vrcp.f32 %v550_v3 }
 0x11b   :  { %v924_v25 = vmax.f32 %v14573_v29, %v10981_v0  ;;  %v721_v16 = vmax.f32 %v14564_v23, %v698_v52  ;;  %v900_v32 = vpop.f32.mrb[29].mxu1  ;;  %11447 = vmatmul.mubr.msk.f32.gmra.mrb[134].mxu1 %vm115_vm0, %v14645_v38  ;;  %11415 = vmatprep.mubr.msk.f32.mxu0 %vm115_vm0, %v14657_v19  ;;  %12674 = vrcp.f32 %v549_v60 }
 0x11c   :  { %v726_v29 = vmax.f32 %v718_v40, %v722_v6  ;;  %v923_v23 = vmax.f32 %v14593_v37, %v900_v32  ;;  %11449 = vmatprep.mubr.msk.f32.mxu1 %vm115_vm0, %v14657_v19 }
 0x11d   :  { %v928_v62 = vmax.f32 %v920_v41, %v924_v25  ;;  %v725_v17 = vmax.f32 %v717_v42, %v721_v16  ;;  %v10950_v51 = vpop.f32.mrb[30].mxu0 }
 0x11e   :  { %v730_v50 = vmul.f32 %v726_v29, %v14354_v24  ;;  %v927_v44 = vmax.f32 %v919_v58, %v923_v23  ;;  %v724_v33 = vmax.f32 %v14606_v39, %v10950_v51  ;;  %v10984_v40 = vpop.f32.mrb[30].mxu1  ;;  %v708_v6 = vpop.f32.mrb[31].mxu0  ;;  %11416 = vmatmul.mubr.msk.f32.gmra.mrb[136].mxu0 %vm115_vm0, %v14681_v48  ;;  %v14700_v39 = vld [vmem:[%s18516_s1 + $0x50] sm:$0xff] }
 0x11f   :  { %v932_v21 = vmul.f32 %v928_v62, %v14354_v24  ;;  %v729_v7 = vmul.f32 %v725_v17, %v14318_v10  ;;  %v926_v8 = vmax.f32 %v14620_v45, %v10984_v40  ;;  %v723_v12 = vmax.f32 %v14611_v5, %v708_v6  ;;  %v910_v41 = vpop.f32.mrb[31].mxu1  ;;  %11450 = vmatmul.mubr.msk.f32.gmra.mrb[136].mxu1 %vm115_vm0, %v14681_v48  ;;  %v14704_v5 = vpop.eup %12660 }
 0x120   :  { %v734_v42 = vadd.f32 %v730_v50, %v14341_v18  ;;  %v931_v54 = vmul.f32 %v927_v44, %v14318_v10  ;;  %v728_v58 = vmax.f32 %v720_v20, %v724_v33  ;;  %v925_v37 = vmax.f32 %v14627_v22, %v910_v41  ;;  %11418 = vmatprep.mubr.msk.f32.mxu0 %vm115_vm0, %v14700_v39  ;;  %v14718_v3 = vpop.eup %12662 }
 0x121   :  { %18604 = vst [vmem:[#allocation6_spill] sm:$0xff] %v14704_v5  ;;  %v936_v45 = vadd.f32 %v932_v21, %v14341_v18  ;;  %v733_v59 = vadd.f32 %v729_v7, %v14298_v57  ;;  %v930_v1 = vmax.f32 %v18605_v49, %v926_v8  ;;  %v18606_v20 = vmax.f32 %v14453_v26, %v14532_v4  ;;  %v14714_v63 = vpop.f32.mrb[32].mxu0  ;;  %v14730_v26 = vld [vmem:[%s18516_s1 + $0x58] sm:$0xff]  ;;  %v14736_v32 = vpop.eup %12664 }
 0x122   :  { %11452 = vmatprep.mubr.msk.f32.mxu1 %vm115_vm0, %v14700_v39  ;;  %18607 = vst [vmem:[#allocation7_spill] sm:$0xff] %v14718_v3  ;;  %v738_v0 = vsub.f32 0.0, %v734_v42  ;;  %v935_v52 = vadd.f32 %v931_v54, %v14298_v57  ;;  %v732_v25 = vmul.f32 %v728_v58, %v14371_v34  ;;  %v929_v47 = vmax.f32 %v18608_v27, %v925_v37  ;;  %v14725_v16 = vpop.f32.mrb[33].mxu0  ;;  %v14734_v4 = vpop.f32.mrb[32].mxu1 }
 0x123   :  { %v727_v22 = vmax.f32 %v18606_v20, %v723_v12  ;;  %11419 = vmatmul.mubr.msk.f32.gmra.mrb[138].mxu0 %vm115_vm0, %v14730_v26  ;;  %18609 = vst [vmem:[#allocation8_spill] sm:$0xff] %v14736_v32  ;;  %v940_v60 = vsub.f32 0.0, %v936_v45  ;;  %v737_v29 = vsub.f32 0.0, %v733_v59  ;;  %v934_v23 = vmul.f32 %v930_v1, %v14371_v34  ;;  %11453 = vmatmul.mubr.msk.f32.gmra.mrb[138].mxu1 %vm115_vm0, %v14730_v26  ;;  %v14749_v62 = vpop.f32.mrb[33].mxu1  ;;  %v14751_v17 = vpop.eup %12666 }
 0x124   :  { %11421 = vmatprep.mubr.msk.f32.mxu0 %vm115_vm0, %v14745_v13  ;;  %18610 = vst [vmem:[#allocation9_spill] sm:$0xff] %v14751_v17  ;;  %v743_v51 = vmul.f32 1.442695, %v738_v0  ;;  %v939_v50 = vsub.f32 0.0, %v935_v52  ;;  %v736_v44 = vadd.f32 %v732_v25, %v14412_v61  ;;  %v933_v33 = vmul.f32 %v929_v47, %v14382_v55  ;;  %11455 = vmatprep.mubr.msk.f32.mxu1 %vm115_vm0, %v14745_v13  ;;  %v14757_v40 = vpop.eup %12668 }
 0x125   :  { %v731_v35 = vmul.f32 %v727_v22, %v14382_v55  ;;  %18611 = vst [vmem:[#allocation10_spill] sm:$0xff] %v14757_v40  ;;  %v945_v6 = vmul.f32 1.442695, %v940_v60  ;;  %v741_v21 = vmul.f32 1.442695, %v737_v29  ;;  %v938_v7 = vadd.f32 %v934_v23, %v14412_v61  ;;  %v14761_v12 = vpop.f32.mrb[34].mxu0  ;;  %v14763_v41 = vpop.eup %12670 }
 0x126   :  { %18612 = vst [vmem:[#allocation11_spill] sm:$0xff] %v14763_v41  ;;  %12676 = vpow2.f32 %v743_v51  ;;  %v943_v42 = vmul.f32 1.442695, %v939_v50  ;;  %v740_v54 = vsub.f32 0.0, %v736_v44  ;;  %v937_v58 = vadd.f32 %v933_v33, %v14424_v2  ;;  %v14766_v37 = vpop.f32.mrb[35].mxu0  ;;  %v14770_v45 = vpop.f32.mrb[34].mxu1 }
 0x127   :  { %v735_v8 = vadd.f32 %v731_v35, %v14424_v2  ;;  %11422 = vmatmul.mubr.msk.f32.gmra.mrb[140].mxu0 %vm115_vm0, %v14463_v31  ;;  %v14772_v59 = vpop.eup %12672  ;;  %12678 = vpow2.f32 %v945_v6  ;;  %v942_v49 = vsub.f32 0.0, %v938_v7  ;;  %11456 = vmatmul.mubr.msk.f32.gmra.mrb[140].mxu1 %vm115_vm0, %v14463_v31  ;;  %v14776_v20 = vpop.f32.mrb[35].mxu1  ;;  %v9361_v51 = vld [vmem:[%s18515_s0 + $0x330] sm:$0xff]  ;;  %v9362_v50 = vld [vmem:[%s18515_s0 + $0x338] sm:$0xff]  ;;  %v9384_v7 = vld [vmem:[%s18515_s0 + $0x360] sm:$0xff] }
 0x128   :  { %18613 = vst [vmem:[#allocation12_spill] sm:$0xff] %v14772_v59  ;;  %11424 = vmatprep.mubr.msk.f32.mxu0 %vm115_vm0, %v14472_v53  ;;  %v14780_v22 = vpop.eup %12674  ;;  %12680 = vpow2.f32 %v741_v21  ;;  %v747_v0 = vmul.f32 1.442695, %v740_v54  ;;  %v941_v52 = vsub.f32 0.0, %v937_v58  ;;  %11458 = vmatprep.mubr.msk.f32.mxu1 %vm115_vm0, %v14472_v53  ;;  %v9383_v21 = vld [vmem:[%s18515_s0 + $0x358] sm:$0xff] }
 0x129   :  { %v739_v1 = vsub.f32 0.0, %v735_v8  ;;  %18614 = vst [vmem:[#allocation13_spill] sm:$0xff] %v14780_v22  ;;  %12682 = vpow2.f32 %v943_v42  ;;  %v949_v25 = vmul.f32 1.442695, %v942_v49  ;;  %v14784_v47 = vpop.f32.mrb[36].mxu0  ;;  %v12340_v54 = vpack.c.bf16 %v9384_v7, %v9383_v21  ;;  %v9425_v29 = vld [vmem:[%s18515_s0 + $0x398] sm:$0xff] }
 0x12a   :  { %12684 = vpow2.f32 %v747_v0  ;;  %v947_v60 = vmul.f32 1.442695, %v941_v52  ;;  %v14788_v23 = vpop.f32.mrb[36].mxu1  ;;  %v14790_v35 = vpop.f32.mrb[37].mxu0  ;;  %v9363_v58 = vld [vmem:[%s18515_s0 + $0x340] sm:$0xf] }
 0x12b   :  { %v745_v27 = vmul.f32 1.442695, %v739_v1  ;;  %11425 = vmatmul.mubr.msk.f32.gmra.mrb[142].mxu0 %vm115_vm0, %v14491_v14  ;;  %12686 = vpow2.f32 %v949_v25  ;;  %v14804_v6 = vpop.f32.mrb[37].mxu1  ;;  %11459 = vmatmul.mubr.msk.f32.gmra.mrb[142].mxu1 %vm115_vm0, %v14491_v14  ;;  %v12332_v1 = vpack.c.bf16 %v9362_v50, %v9361_v51  ;;  %v9385_v44 = vld [vmem:[%s18515_s0 + $0x368] sm:$0xf]  ;;  %v9426_v22 = vld [vmem:[%s18515_s0 + $0x3a0] sm:$0xff] }
 0x12c   :  { %11471 = vmatprep.mubr.msk.f32.mxu0 %vm115_vm0, %v14512_v56  ;;  %11505 = vmatprep.mubr.msk.f32.mxu1 %vm115_vm0, %v14512_v56 }
 0x12d   :  { %12688 = vpow2.f32 %v745_v27  ;;  %v14826_v49 = vpop.f32.mrb[38].mxu0 }
 0x12e   :  { %12690 = vpow2.f32 %v947_v60  ;;  %v14832_v25 = vpop.f32.mrb[38].mxu1  ;;  %v14834_v27 = vpop.f32.mrb[39].mxu0 }
 0x12f   :  { %11472 = vmatmul.mubr.msk.f32.vlgmr.msra.gmra.mrb[144].mxu0 %vm115_vm0, %v14537_v15  ;;  %v14842_v50 = vpop.f32.mrb[39].mxu1  ;;  %11506 = vmatmul.mubr.msk.f32.vlgmr.msra.gmra.mrb[144].mxu1 %vm115_vm0, %v14537_v15 }
 0x130   :  { %11474 = vmatprep.mubr.msk.f32.mxu0 %vm115_vm0, %v14552_v9  ;;  %v12677_v0 = vpop.eup %12676  ;;  %11508 = vmatprep.mubr.msk.f32.mxu1 %vm115_vm0, %v14552_v9 }
 0x131   :  { %12331 = vmatpush3.bf16.msra.mxu0 %v14609_v43  ;;  %v12679_v21 = vpop.eup %12678  ;;  %v14853_v7 = vpop.f32.mrb[40].mxu0  ;;  %12339 = vmatpush3.bf16.msra.mxu1 %v14623_v46  ;;  %v9403_v43 = vld [vmem:[%s18515_s0 + $0x370] sm:$0xff]  ;;  %v9404_v46 = vld [vmem:[%s18515_s0 + $0x378] sm:$0xff]  ;;  %v750_v42 = vadd.f32 1.0, %v12677_v0 }
 0x132   :  { %12333 = vmatprep.subr.bf16.mxu0 %v12332_v1  ;;  %v12681_v8 = vpop.eup %12680  ;;  %v14856_v51 = vpop.f32.mrb[41].mxu0  ;;  %12341 = vmatprep.subr.bf16.mxu1 %v12340_v54  ;;  %v952_v59 = vadd.f32 1.0, %v12679_v21  ;;  %v14889_v17 = vpack.c.bf16 %v9404_v46, %v9403_v43 }
 0x133   :  { %11475 = vmatmul.mubr.msk.f32.gmra.mrb[146].mxu0 %vm115_vm0, %v14569_v28  ;;  %v14860_v60 = vpop.f32.mrb[40].mxu1  ;;  %v12683_v52 = vpop.eup %12682  ;;  %11509 = vmatmul.mubr.msk.f32.gmra.mrb[146].mxu1 %vm115_vm0, %v14569_v28  ;;  %v749_v41 = vadd.f32 1.0, %v12681_v8  ;;  %12692 = vrcp.f32 %v750_v42 }
 0x134   :  { %11477 = vmatprep.mubr.msk.f32.mxu0 %vm115_vm0, %v14589_v36  ;;  %v1284_v33 = vpop.f32.mrb[41].mxu1  ;;  %v12685_v0 = vpop.eup %12684  ;;  %11511 = vmatprep.mubr.msk.f32.mxu1 %vm115_vm0, %v14589_v36  ;;  %v951_v5 = vadd.f32 1.0, %v12683_v52  ;;  %12694 = vrcp.f32 %v952_v59 }
 0x135   :  { %12335 = vmatpush3.bf16.msra.mxu0 %v12332_v1  ;;  %v12687_v32 = vpop.eup %12686  ;;  %v14886_v40 = vpop.f32.mrb[42].mxu0  ;;  %12343 = vmatpush3.bf16.msra.mxu1 %v12340_v54  ;;  %v14896_v1 = vpack.c.bf16 %v9426_v22, %v9425_v29  ;;  %v752_v36 = vadd.f32 1.0, %v12685_v0  ;;  %12696 = vrcp.f32 %v749_v41 }
 0x136   :  { %11537 = vmatprep.subr.msk.mxu0 %vm164_vm1, %v9363_v58  ;;  %v14891_v28 = vpop.f32.mrb[43].mxu0  ;;  %v11046_v21 = vpop.f32.mrb[42].mxu1  ;;  %11571 = vmatprep.subr.msk.mxu1 %vm164_vm1, %v9385_v44  ;;  %v954_v52 = vadd.f32 1.0, %v12687_v32  ;;  %12698 = vrcp.f32 %v951_v5  ;;  %v18615_v5 = vmax.f32 %v14714_v63, %v14784_v47  ;;  %v18618_v63 = vmax.f32 %v14749_v62, %v14804_v6 }
 0x137   :  { %v12689_v3 = vpop.eup %12688  ;;  %11478 = vmatmul.mubr.msk.f32.gmra.mrb[148].mxu0 %vm115_vm0, %v14616_v11  ;;  %11512 = vmatmul.mubr.msk.f32.gmra.mrb[148].mxu1 %vm115_vm0, %v14616_v11  ;;  %v1294_v54 = vpop.f32.mrb[43].mxu1  ;;  %12700 = vrcp.f32 %v752_v36  ;;  %v18616_v36 = vmax.f32 %v14734_v4, %v14788_v23  ;;  %v18619_v6 = vmax.f32 %v14761_v12, %v14826_v49 }
 0x138   :  { %v12691_v8 = vpop.eup %12690  ;;  %11480 = vmatprep.mubr.msk.f32.mxu0 %vm115_vm0, %v14632_v30  ;;  %11514 = vmatprep.mubr.msk.f32.mxu1 %vm115_vm0, %v14632_v30  ;;  %v751_v22 = vadd.f32 1.0, %v12689_v3  ;;  %12702 = vrcp.f32 %v954_v52 }
 0x139   :  { %11538 = vmatpush3.msk.msra.mxu0 %vm164_vm1, %v9363_v58  ;;  %v11015_v29 = vpop.f32.mrb[44].mxu0  ;;  %11572 = vmatpush3.msk.msra.mxu1 %vm164_vm1, %v9385_v44  ;;  %v953_v42 = vadd.f32 1.0, %v12691_v8 }
 0x13a   :  { %12345 = vmatprep.subr.bf16.mxu0 %v14889_v17  ;;  %v1126_v43 = vmax.f32 %v14853_v7, %v11015_v29  ;;  %v11049_v46 = vpop.f32.mrb[44].mxu1  ;;  %v1102_v0 = vpop.f32.mrb[45].mxu0  ;;  %12353 = vmatprep.subr.bf16.mxu1 %v14896_v1  ;;  %12704 = vrcp.f32 %v751_v22 }
 0x13b   :  { %11481 = vmatmul.mubr.msk.f32.gmra.mrb[150].mxu0 %vm115_vm0, %v14645_v38  ;;  %v1328_v32 = vmax.f32 %v14860_v60, %v11049_v46  ;;  %v1125_v3 = vmax.f32 %v14856_v51, %v1102_v0  ;;  %v1304_v41 = vpop.f32.mrb[45].mxu1  ;;  %11515 = vmatmul.mubr.msk.f32.gmra.mrb[150].mxu1 %vm115_vm0, %v14645_v38  ;;  %v18617_v60 = vmax.f32 %v14725_v16, %v14790_v35  ;;  %12706 = vrcp.f32 %v953_v42 }
 0x13c   :  { %11483 = vmatprep.mubr.msk.f32.mxu0 %vm115_vm0, %v14657_v19  ;;  %v1130_v59 = vmax.f32 %v18615_v5, %v1126_v43  ;;  %v1327_v44 = vmax.f32 %v1284_v33, %v1304_v41  ;;  %11517 = vmatprep.mubr.msk.f32.mxu1 %vm115_vm0, %v14657_v19  ;;  %v18621_v0 = vmax.f32 %v14770_v45, %v14832_v25 }
 0x13d   :  { %v1332_v58 = vmax.f32 %v18616_v36, %v1328_v32  ;;  %v1129_v51 = vmax.f32 %v18617_v60, %v1125_v3  ;;  %v11018_v7 = vpop.f32.mrb[46].mxu0  ;;  %v14947_v46 = vpop.eup %12692  ;;  %v18622_v3 = vmax.f32 %v14766_v37, %v14834_v27  ;;  %v18624_v45 = vmax.f32 %v14776_v20, %v14842_v50 }
 0x13e   :  { %v1134_v8 = vmul.f32 %v1130_v59, %v14354_v24  ;;  %v1331_v47 = vmax.f32 %v18618_v63, %v1327_v44  ;;  %v1128_v33 = vmax.f32 %v14886_v40, %v11018_v7  ;;  %v11052_v52 = vpop.f32.mrb[46].mxu1  ;;  %v1112_v22 = vpop.f32.mrb[47].mxu0  ;;  %18620 = vst [vmem:[#allocation14_spill] sm:$0xff] %v14947_v46 }
 0x13f   :  { %11484 = vmatmul.mubr.msk.f32.gmra.mrb[152].mxu0 %vm115_vm0, %v14681_v48  ;;  %v1336_v4 = vmul.f32 %v1332_v58, %v14354_v24  ;;  %v1133_v16 = vmul.f32 %v1129_v51, %v14318_v10  ;;  %v1330_v23 = vmax.f32 %v11046_v21, %v11052_v52  ;;  %v1127_v35 = vmax.f32 %v14891_v28, %v1112_v22  ;;  %v1314_v29 = vpop.f32.mrb[47].mxu1  ;;  %v14961_v49 = vpop.eup %12694 }
 0x140   :  { %11518 = vmatmul.mubr.msk.f32.gmra.mrb[152].mxu1 %vm115_vm0, %v14681_v48  ;;  %v1138_v62 = vadd.f32 %v1134_v8, %v14341_v18  ;;  %v1335_v40 = vmul.f32 %v1331_v47, %v14318_v10  ;;  %v1132_v42 = vmax.f32 %v18619_v6, %v1128_v33  ;;  %v1329_v43 = vmax.f32 %v1294_v54, %v1314_v29  ;;  %v14974_v27 = vpop.eup %12696 }
 0x141   :  { %11486 = vmatprep.mubr.msk.f32.mxu0 %vm115_vm0, %v14700_v39  ;;  %v1340_v28 = vadd.f32 %v1336_v4, %v14341_v18  ;;  %v1137_v21 = vadd.f32 %v1133_v16, %v14298_v57  ;;  %v1334_v32 = vmax.f32 %v18621_v0, %v1330_v23  ;;  %v1131_v41 = vmax.f32 %v18622_v3, %v1127_v35  ;;  %v14957_v12 = vpop.f32.mrb[48].mxu0  ;;  %v14984_v50 = vpop.eup %12698 }
 0x142   :  { %11520 = vmatprep.mubr.msk.f32.mxu1 %vm115_vm0, %v14700_v39  ;;  %18623 = vst [vmem:[#allocation15_spill] sm:$0xff] %v14961_v49  ;;  %v1142_v54 = vsub.f32 0.0, %v1138_v62  ;;  %v1339_v5 = vadd.f32 %v1335_v40, %v14298_v57  ;;  %v1136_v59 = vmul.f32 %v1132_v42, %v14371_v34  ;;  %v1333_v25 = vmax.f32 %v18624_v45, %v1329_v43  ;;  %v14968_v44 = vpop.f32.mrb[49].mxu0  ;;  %v14972_v37 = vpop.f32.mrb[48].mxu1 }
 0x143   :  { %11487 = vmatmul.mubr.msk.f32.gmra.mrb[154].mxu0 %vm115_vm0, %v14730_v26  ;;  %18625 = vst [vmem:[#allocation16_spill] sm:$0xff] %v14974_v27  ;;  %v1344_v36 = vsub.f32 0.0, %v1340_v28  ;;  %v1141_v58 = vsub.f32 0.0, %v1137_v21  ;;  %v1338_v60 = vmul.f32 %v1334_v32, %v14371_v34  ;;  %v1135_v51 = vmul.f32 %v1131_v41, %v14382_v55  ;;  %v14982_v20 = vpop.f32.mrb[49].mxu1  ;;  %18626 = vst [vmem:[#allocation17_spill] sm:$0xff] %v14984_v50  ;;  %v14990_v33 = vpop.eup %12700 }
 0x144   :  { %11521 = vmatmul.mubr.msk.f32.gmra.mrb[154].mxu1 %vm115_vm0, %v14730_v26  ;;  %11489 = vmatprep.mubr.msk.f32.mxu0 %vm115_vm0, %v14745_v13  ;;  %v1147_v7 = vmul.f32 1.442695, %v1142_v54  ;;  %v1343_v8 = vsub.f32 0.0, %v1339_v5  ;;  %v1140_v63 = vadd.f32 %v1136_v59, %v14412_v61  ;;  %v1337_v47 = vmul.f32 %v1333_v25, %v14382_v55  ;;  %18627 = vst [vmem:[#allocation18_spill] sm:$0xff] %v14990_v33  ;;  %v14996_v35 = vpop.eup %12702 }
 0x145   :  { %11523 = vmatprep.mubr.msk.f32.mxu1 %vm115_vm0, %v14745_v13  ;;  %v1349_v52 = vmul.f32 1.442695, %v1344_v36  ;;  %v1145_v22 = vmul.f32 1.442695, %v1141_v58  ;;  %v1342_v4 = vadd.f32 %v1338_v60, %v14412_v61  ;;  %v1139_v16 = vadd.f32 %v1135_v51, %v14424_v2  ;;  %v14994_v23 = vpop.f32.mrb[50].mxu0  ;;  %18628 = vst [vmem:[#allocation19_spill] sm:$0xff] %v14996_v35  ;;  %v15005_v43 = vpop.eup %12704 }
 0x146   :  { %12708 = vpow2.f32 %v1147_v7  ;;  %v1347_v29 = vmul.f32 1.442695, %v1343_v8  ;;  %v1144_v62 = vsub.f32 0.0, %v1140_v63  ;;  %v1341_v40 = vadd.f32 %v1337_v47, %v14424_v2  ;;  %v14999_v6 = vpop.f32.mrb[51].mxu0  ;;  %v15003_v42 = vpop.f32.mrb[50].mxu1  ;;  %18629 = vst [vmem:[#allocation20_spill] sm:$0xff] %v15005_v43 }
 0x147   :  { %11490 = vmatmul.mubr.msk.f32.gmra.mrb[156].mxu0 %vm115_vm0, %v14463_v31  ;;  %12710 = vpow2.f32 %v1349_v52  ;;  %v1346_v28 = vsub.f32 0.0, %v1342_v4  ;;  %v1143_v21 = vsub.f32 0.0, %v1139_v16  ;;  %v15009_v0 = vpop.f32.mrb[51].mxu1  ;;  %v15013_v32 = vpop.eup %12706  ;;  %v9406_v58 = vld [vmem:[%s18515_s0 + $0x388] sm:$0xff]  ;;  %v9428_v63 = vld [vmem:[%s18515_s0 + $0x3b0] sm:$0xff] }
 0x148   :  { %11524 = vmatmul.mubr.msk.f32.gmra.mrb[156].mxu1 %vm115_vm0, %v14463_v31  ;;  %11492 = vmatprep.mubr.msk.f32.mxu0 %vm115_vm0, %v14472_v53  ;;  %18630 = vst [vmem:[#allocation21_spill] sm:$0xff] %v15013_v32  ;;  %12712 = vpow2.f32 %v1145_v22  ;;  %v1151_v3 = vmul.f32 1.442695, %v1144_v62  ;;  %v1345_v41 = vsub.f32 0.0, %v1341_v40  ;;  %v9427_v8 = vld [vmem:[%s18515_s0 + $0x3a8] sm:$0xff] }
 0x149   :  { %11526 = vmatprep.mubr.msk.f32.mxu1 %vm115_vm0, %v14472_v53  ;;  %12714 = vpow2.f32 %v1347_v29  ;;  %v1353_v54 = vmul.f32 1.442695, %v1346_v28  ;;  %v1149_v5 = vmul.f32 1.442695, %v1143_v21  ;;  %v15017_v59 = vpop.f32.mrb[52].mxu0  ;;  %v9405_v53 = vld [vmem:[%s18515_s0 + $0x380] sm:$0xff] }
 0x14a   :  { %12716 = vpow2.f32 %v1151_v3  ;;  %v1351_v31 = vmul.f32 1.442695, %v1345_v41  ;;  %v15021_v25 = vpop.f32.mrb[52].mxu1  ;;  %v15023_v36 = vpop.f32.mrb[53].mxu0  ;;  %v12348_v16 = vpack.c.bf16 %v9406_v58, %v9405_v53  ;;  %v9469_v3 = vld [vmem:[%s18515_s0 + $0x3e8] sm:$0xff]  ;;  %v9470_v21 = vld [vmem:[%s18515_s0 + $0x3f0] sm:$0xff] }
 0x14b   :  { %11493 = vmatmul.mubr.msk.f32.gmra.mrb[158].mxu0 %vm115_vm0, %v14491_v14  ;;  %12718 = vpow2.f32 %v1353_v54  ;;  %v15037_v7 = vpop.f32.mrb[53].mxu1 }
 0x14c   :  { %11527 = vmatmul.mubr.msk.f32.gmra.mrb[158].mxu1 %vm115_vm0, %v14491_v14  ;;  %11539 = vmatprep.mubr.msk.f32.mxu0 %vm115_vm0, %v14512_v56  ;;  %12720 = vpow2.f32 %v1149_v5  ;;  %v18632_v14 = vld [vmem:[#allocation5_spill] sm:$0xff]  ;;  %v9429_v5 = vld [vmem:[%s18515_s0 + $0x3b8] sm:$0xf] }
 0x14d   :  { %11573 = vmatprep.mubr.msk.f32.mxu1 %vm115_vm0, %v14512_v56  ;;  %12722 = vpow2.f32 %v1351_v31  ;;  %v15059_v4 = vpop.f32.mrb[54].mxu0  ;;  %v12356_v56 = vpack.c.bf16 %v9428_v63, %v9427_v8  ;;  %v18631_v8 = vld [vmem:[#allocation4_spill] sm:$0xff] }
 0x14e   :  { %v15065_v40 = vpop.f32.mrb[54].mxu1  ;;  %v15067_v28 = vpop.f32.mrb[55].mxu0 }
 0x14f   :  { %11540 = vmatmul.mubr.msk.f32.vlgmr.msra.gmra.mrb[160].mxu0 %vm115_vm0, %v14537_v15  ;;  %v15075_v41 = vpop.f32.mrb[55].mxu1 }
 0x150   :  { %11574 = vmatmul.mubr.msk.f32.vlgmr.msra.gmra.mrb[160].mxu1 %vm115_vm0, %v14537_v15  ;;  %11542 = vmatprep.mubr.msk.f32.mxu0 %vm115_vm0, %v14552_v9  ;;  %v12709_v54 = vpop.eup %12708 }
 0x151   :  { %11576 = vmatprep.mubr.msk.f32.mxu1 %vm115_vm0, %v14552_v9  ;;  %12347 = vmatpush3.bf16.msra.mxu0 %v14889_v17  ;;  %v12711_v31 = vpop.eup %12710  ;;  %v15086_v53 = vpop.f32.mrb[56].mxu0  ;;  %v9407_v9 = vld [vmem:[%s18515_s0 + $0x390] sm:$0xf]  ;;  %v9447_v17 = vld [vmem:[%s18515_s0 + $0x3c0] sm:$0xff]  ;;  %v1154_v22 = vadd.f32 1.0, %v12709_v54 }
 0x152   :  { %12355 = vmatpush3.bf16.msra.mxu1 %v14896_v1  ;;  %12349 = vmatprep.subr.bf16.mxu0 %v12348_v16  ;;  %v12713_v58 = vpop.eup %12712  ;;  %v15089_v15 = vpop.f32.mrb[57].mxu0  ;;  %v9448_v1 = vld [vmem:[%s18515_s0 + $0x3c8] sm:$0xff]  ;;  %v1356_v62 = vadd.f32 1.0, %v12711_v31 }
 0x153   :  { %11543 = vmatmul.mubr.msk.f32.gmra.mrb[162].mxu0 %vm115_vm0, %v18631_v8  ;;  %v15093_v63 = vpop.f32.mrb[56].mxu1  ;;  %12357 = vmatprep.subr.bf16.mxu1 %v12356_v56  ;;  %v12715_v29 = vpop.eup %12714  ;;  %v1153_v52 = vadd.f32 1.0, %v12713_v58  ;;  %v15122_v60 = vpack.c.bf16 %v9448_v1, %v9447_v17  ;;  %12724 = vrcp.f32 %v1154_v22 }
 0x154   :  { %11577 = vmatmul.mubr.msk.f32.gmra.mrb[162].mxu1 %vm115_vm0, %v18631_v8  ;;  %11545 = vmatprep.mubr.msk.f32.mxu0 %vm115_vm0, %v18632_v14  ;;  %v1688_v47 = vpop.f32.mrb[57].mxu1  ;;  %v12717_v54 = vpop.eup %12716  ;;  %v1355_v32 = vadd.f32 1.0, %v12715_v29  ;;  %12726 = vrcp.f32 %v1356_v62 }
 0x155   :  { %11579 = vmatprep.mubr.msk.f32.mxu1 %vm115_vm0, %v18632_v14  ;;  %12351 = vmatpush3.bf16.msra.mxu0 %v12348_v16  ;;  %v12719_v8 = vpop.eup %12718  ;;  %v15119_v51 = vpop.f32.mrb[58].mxu0  ;;  %v15129_v14 = vpack.c.bf16 %v9470_v21, %v9469_v3  ;;  %v1156_v58 = vadd.f32 1.0, %v12717_v54  ;;  %12728 = vrcp.f32 %v1153_v52 }
 0x156   :  { %12359 = vmatpush3.bf16.msra.mxu1 %v12356_v56  ;;  %11605 = vmatprep.subr.msk.mxu0 %vm164_vm1, %v9407_v9  ;;  %v12721_v45 = vpop.eup %12720  ;;  %v15124_v35 = vpop.f32.mrb[59].mxu0  ;;  %v1358_v29 = vadd.f32 1.0, %v12719_v8  ;;  %12730 = vrcp.f32 %v1355_v32  ;;  %v18633_v32 = vmax.f32 %v14957_v12, %v15017_v59  ;;  %v18636_v12 = vmax.f32 %v14982_v20, %v15037_v7 }
 0x157   :  { %11546 = vmatmul.mubr.msk.f32.gmra.mrb[164].mxu0 %vm115_vm0, %v14616_v11  ;;  %v11114_v31 = vpop.f32.mrb[58].mxu1  ;;  %11639 = vmatprep.subr.msk.mxu1 %vm164_vm1, %v9429_v5  ;;  %v12723_v16 = vpop.eup %12722  ;;  %v1155_v21 = vadd.f32 1.0, %v12721_v45  ;;  %12732 = vrcp.f32 %v1156_v58  ;;  %v18637_v7 = vmax.f32 %v14994_v23, %v15059_v4 }
 0x158   :  { %11580 = vmatmul.mubr.msk.f32.gmra.mrb[164].mxu1 %vm115_vm0, %v14616_v11  ;;  %v1698_v56 = vpop.f32.mrb[59].mxu1  ;;  %11548 = vmatprep.mubr.msk.f32.mxu0 %vm115_vm0, %v14632_v30  ;;  %v1357_v11 = vadd.f32 1.0, %v12723_v16  ;;  %12734 = vrcp.f32 %v1358_v29 }
 0x159   :  { %11582 = vmatprep.mubr.msk.f32.mxu1 %vm115_vm0, %v14632_v30  ;;  %11606 = vmatpush3.msk.msra.mxu0 %vm164_vm1, %v9407_v9  ;;  %v11083_v3 = vpop.f32.mrb[60].mxu0  ;;  %12736 = vrcp.f32 %v1155_v21 }
 0x15a   :  { %11640 = vmatpush3.msk.msra.mxu1 %vm164_vm1, %v9429_v5  ;;  %12361 = vmatprep.subr.bf16.mxu0 %v15122_v60  ;;  %v1530_v22 = vmax.f32 %v15086_v53, %v11083_v3  ;;  %v11117_v17 = vpop.f32.mrb[60].mxu1  ;;  %v1506_v1 = vpop.f32.mrb[61].mxu0  ;;  %v18634_v53 = vmax.f32 %v14972_v37, %v15021_v25  ;;  %12738 = vrcp.f32 %v1357_v11  ;;  %v18640_v11 = vmax.f32 %v14999_v6, %v15067_v28 }
 0x15b   :  { %11549 = vmatmul.mubr.msk.f32.gmra.mrb[166].mxu0 %vm115_vm0, %v14645_v38  ;;  %12369 = vmatprep.subr.bf16.mxu1 %v15129_v14  ;;  %v1732_v30 = vmax.f32 %v15093_v63, %v11117_v17  ;;  %v1529_v45 = vmax.f32 %v15089_v15, %v1506_v1  ;;  %v1708_v52 = vpop.f32.mrb[61].mxu1 }
 0x15c   :  { %11583 = vmatmul.mubr.msk.f32.gmra.mrb[166].mxu1 %vm115_vm0, %v14645_v38  ;;  %11551 = vmatprep.mubr.msk.f32.mxu0 %vm115_vm0, %v14657_v19  ;;  %v1534_v62 = vmax.f32 %v18633_v32, %v1530_v22  ;;  %v1731_v5 = vmax.f32 %v1688_v47, %v1708_v52  ;;  %v18635_v38 = vmax.f32 %v14968_v44, %v15023_v36 }
 0x15d   :  { %11585 = vmatprep.mubr.msk.f32.mxu1 %vm115_vm0, %v14657_v19  ;;  %v1736_v15 = vmax.f32 %v18634_v53, %v1732_v30  ;;  %v11086_v9 = vpop.f32.mrb[62].mxu0  ;;  %v15180_v21 = vpop.eup %12724 }
 0x15e   :  { %v1533_v63 = vmax.f32 %v18635_v38, %v1529_v45  ;;  %v1538_v54 = vmul.f32 %v1534_v62, %v14354_v24  ;;  %v1735_v59 = vmax.f32 %v18636_v12, %v1731_v5  ;;  %v1532_v47 = vmax.f32 %v15119_v51, %v11086_v9  ;;  %v11120_v19 = vpop.f32.mrb[62].mxu1  ;;  %v1516_v8 = vpop.f32.mrb[63].mxu0  ;;  %18638 = vst [vmem:[#allocation4_spill] sm:$0xff] %v15180_v21 }
 0x15f   :  { %11552 = vmatmul.mubr.msk.f32.gmra.mrb[168].mxu0 %vm115_vm0, %v14681_v48  ;;  %v1740_v37 = vmul.f32 %v1736_v15, %v14354_v24  ;;  %v1734_v25 = vmax.f32 %v11114_v31, %v11120_v19  ;;  %v1531_v36 = vmax.f32 %v15124_v35, %v1516_v8  ;;  %v1718_v16 = vpop.f32.mrb[63].mxu1  ;;  %v15194_v4 = vpop.eup %12726 }
 0x160   :  { %v1537_v44 = vmul.f32 %v1533_v63, %v14318_v10  ;;  %11586 = vmatmul.mubr.msk.f32.gmra.mrb[168].mxu1 %vm115_vm0, %v14681_v48  ;;  %v1542_v20 = vadd.f32 %v1538_v54, %v14341_v18  ;;  %v1739_v51 = vmul.f32 %v1735_v59, %v14318_v10  ;;  %v1536_v58 = vmax.f32 %v18637_v7, %v1532_v47  ;;  %v15207_v28 = vpop.eup %12728 }
 0x161   :  { %v1733_v29 = vmax.f32 %v1698_v56, %v1718_v16  ;;  %11554 = vmatprep.mubr.msk.f32.mxu0 %vm115_vm0, %v14700_v39  ;;  %v1744_v35 = vadd.f32 %v1740_v37, %v14341_v18  ;;  %v18639_v48 = vmax.f32 %v15003_v42, %v15065_v40  ;;  %v1535_v22 = vmax.f32 %v18640_v11, %v1531_v36  ;;  %v15190_v23 = vpop.f32.mrb[64].mxu0 }
 0x162   :  { %v1541_v31 = vadd.f32 %v1537_v44, %v14298_v57  ;;  %11588 = vmatprep.mubr.msk.f32.mxu1 %vm115_vm0, %v14700_v39  ;;  %18641 = vst [vmem:[#allocation5_spill] sm:$0xff] %v15194_v4  ;;  %v1546_v56 = vsub.f32 0.0, %v1542_v20  ;;  %v1743_v17 = vadd.f32 %v1739_v51, %v14298_v57  ;;  %v1540_v1 = vmul.f32 %v1536_v58, %v14371_v34  ;;  %v15201_v30 = vpop.f32.mrb[65].mxu0  ;;  %v15205_v6 = vpop.f32.mrb[64].mxu1  ;;  %v15252_v51 = vld [vmem:[%s18516_s1 + $0x70] sm:$0xff] }
 0x163   :  { %v1738_v3 = vmax.f32 %v18639_v48, %v1734_v25  ;;  %v18642_v42 = vmax.f32 %v15009_v0, %v15075_v41  ;;  %11555 = vmatmul.mubr.msk.f32.gmra.mrb[170].mxu0 %vm115_vm0, %v14730_v26  ;;  %18643 = vst [vmem:[#allocation22_spill] sm:$0xff] %v15207_v28  ;;  %v1748_v39 = vsub.f32 0.0, %v1744_v35  ;;  %v1539_v32 = vmul.f32 %v1535_v22, %v14382_v55  ;;  %v15215_v0 = vpop.f32.mrb[65].mxu1  ;;  %v15217_v41 = vpop.eup %12730 }
 0x164   :  { %v1545_v45 = vsub.f32 0.0, %v1541_v31  ;;  %11589 = vmatmul.mubr.msk.f32.gmra.mrb[170].mxu1 %vm115_vm0, %v14730_v26  ;;  %11557 = vmatprep.mubr.msk.f32.mxu0 %vm115_vm0, %v14745_v13  ;;  %18644 = vst [vmem:[#allocation23_spill] sm:$0xff] %v15217_v41  ;;  %v1551_v62 = vmul.f32 1.442695, %v1546_v56  ;;  %v1747_v5 = vsub.f32 0.0, %v1743_v17  ;;  %v1544_v53 = vadd.f32 %v1540_v1, %v14412_v61  ;;  %v15223_v38 = vpop.eup %12732  ;;  %v15274_v1 = vld [vmem:[%s18516_s1 + $0x78] sm:$0xff] }
 0x165   :  { %v1737_v40 = vmax.f32 %v18642_v42, %v1733_v29  ;;  %v1742_v52 = vmul.f32 %v1738_v3, %v14371_v34  ;;  %11591 = vmatprep.mubr.msk.f32.mxu1 %vm115_vm0, %v14745_v13  ;;  %18645 = vst [vmem:[#allocation24_spill] sm:$0xff] %v15223_v38  ;;  %v1753_v63 = vmul.f32 1.442695, %v1748_v39  ;;  %v1543_v54 = vadd.f32 %v1539_v32, %v14424_v2  ;;  %v15227_v12 = vpop.f32.mrb[66].mxu0  ;;  %v15229_v59 = vpop.eup %12734  ;;  %v15237_v13 = vld [vmem:[%s18516_s1 + $0x68] sm:$0xff]  ;;  %v9449_v3 = vld [vmem:[%s18515_s0 + $0x3d0] sm:$0xff] }
 0x166   :  { %v1549_v26 = vmul.f32 1.442695, %v1545_v45  ;;  %18646 = vst [vmem:[#allocation25_spill] sm:$0xff] %v15229_v59  ;;  %12740 = vpow2.f32 %v1551_v62  ;;  %v1751_v47 = vmul.f32 1.442695, %v1747_v5  ;;  %v1548_v19 = vsub.f32 0.0, %v1544_v53  ;;  %v15243_v25 = vpop.eup %12736 }
 0x167   :  { %v1741_v15 = vmul.f32 %v1737_v40, %v14382_v55  ;;  %v1746_v9 = vadd.f32 %v1742_v52, %v14412_v61  ;;  %v15232_v37 = vpop.f32.mrb[67].mxu0  ;;  %11558 = vmatmul.mubr.msk.f32.gmra.mrb[172].mxu0 %vm115_vm0, %v15237_v13  ;;  %v15241_v44 = vpop.f32.mrb[66].mxu1  ;;  %18647 = vst [vmem:[#allocation26_spill] sm:$0xff] %v15243_v25  ;;  %12742 = vpow2.f32 %v1753_v63  ;;  %v1547_v16 = vsub.f32 0.0, %v1543_v54  ;;  %v9450_v42 = vld [vmem:[%s18515_s0 + $0x3d8] sm:$0xff]  ;;  %v8456_v40 = vld [vmem:[%s18519_s5] sm:$0xff] }
 0x168   :  { %11592 = vmatmul.mubr.msk.f32.gmra.mrb[172].mxu1 %vm115_vm0, %v15237_v13  ;;  %v15247_v20 = vpop.f32.mrb[67].mxu1  ;;  %11560 = vmatprep.mubr.msk.f32.mxu0 %vm115_vm0, %v15252_v51  ;;  %v15256_v7 = vpop.eup %12738  ;;  %12744 = vpow2.f32 %v1549_v26  ;;  %v1555_v58 = vmul.f32 1.442695, %v1548_v19  ;;  %v15295_v32 = vld [vmem:[%s18516_s1] sm:$0xff]  ;;  %v9471_v62 = vld [vmem:[%s18515_s0 + $0x3f8] sm:$0xff]  ;;  %v12364_v54 = vpack.c.bf16 %v9450_v42, %v9449_v3  ;;  %v15343_v3 = vld [vmem:[%s18516_s1 + $0x10] sm:$0xff] }
 0x169   :  { %v1745_v8 = vadd.f32 %v1741_v15, %v14424_v2  ;;  %v1750_v36 = vsub.f32 0.0, %v1746_v9  ;;  %18648 = vst [vmem:[#allocation27_spill] sm:$0xff] %v15256_v7  ;;  %11594 = vmatprep.mubr.msk.f32.mxu1 %vm115_vm0, %v15252_v51  ;;  %12746 = vpow2.f32 %v1751_v47  ;;  %v1553_v31 = vmul.f32 1.442695, %v1547_v16  ;;  %v15260_v48 = vpop.f32.mrb[68].mxu0  ;;  %v9472_v5 = vld [vmem:[%s18515_s0 + $0x400] sm:$0xff]  ;;  %8462 = vperm.xlu0 %12642, %v8456_v40  }
 0x16a   :  { %12748 = vpow2.f32 %v1555_v58  ;;  %v15267_v56 = vpop.f32.mrb[68].mxu1  ;;  %v15269_v17 = vpop.f32.mrb[69].mxu0  ;;  %v15328_v16 = vld [vmem:[%s18516_s1 + $0x8] sm:$0xff]  ;;  %v12372_v58 = vpack.c.bf16 %v9472_v5, %v9471_v62  ;;  %v15360_v26 = vld [vmem:[%s18516_s1 + $0x18] sm:$0xff]  ;;  %v9514_v45 = vld [vmem:[%s18515_s0 + $0x440] sm:$0xff] }
 0x16b   :  { %v1749_v29 = vsub.f32 0.0, %v1745_v8  ;;  %v1757_v35 = vmul.f32 1.442695, %v1750_v36  ;;  %11561 = vmatmul.mubr.msk.f32.gmra.mrb[174].mxu0 %vm115_vm0, %v15274_v1  ;;  %v15288_v52 = vpop.f32.mrb[69].mxu1  ;;  %18649 = vst [vmem:[#allocation28_spill] sm:$0xff] %v15360_v26  ;;  %v9492_v53 = vld [vmem:[%s18515_s0 + $0x418] sm:$0xff] }
 0x16c   :  { %11595 = vmatmul.mubr.msk.f32.gmra.mrb[174].mxu1 %vm115_vm0, %v15274_v1  ;;  %11607 = vmatprep.mubr.msk.f32.mxu0 %vm115_vm0, %v15295_v32  ;;  %v9473_v15 = vld [vmem:[%s18515_s0 + $0x408] sm:$0xf] }
 0x16d   :  { %v1755_v11 = vmul.f32 1.442695, %v1749_v29  ;;  %12750 = vpow2.f32 %v1757_v35  ;;  %11641 = vmatprep.mubr.msk.f32.mxu1 %vm115_vm0, %v15295_v32  ;;  %v15315_v9 = vpop.f32.mrb[70].mxu0  ;;  %v15380_v29 = vld [vmem:[%s18516_s1 + $0x20] sm:$0xff] }
 0x16e   :  { %12752 = vpow2.f32 %v1553_v31  ;;  %v15321_v8 = vpop.f32.mrb[70].mxu1  ;;  %v15323_v36 = vpop.f32.mrb[71].mxu0 }
 0x16f   :  { %12754 = vpow2.f32 %v1755_v11  ;;  %11608 = vmatmul.mubr.msk.f32.vlgmr.msra.gmra.mrb[176].mxu0 %vm115_vm0, %v15328_v16  ;;  %v15336_v31 = vpop.f32.mrb[71].mxu1 }
 0x170   :  { %11642 = vmatmul.mubr.msk.f32.vlgmr.msra.gmra.mrb[176].mxu1 %vm115_vm0, %v15328_v16  ;;  %11610 = vmatprep.mubr.msk.f32.mxu0 %vm115_vm0, %v15343_v3  ;;  %v12741_v11 = vpop.eup %12740 }
 0x171   :  { %11644 = vmatprep.mubr.msk.f32.mxu1 %vm115_vm0, %v15343_v3  ;;  %12363 = vmatpush3.bf16.msra.mxu0 %v15122_v60  ;;  %v12743_v40 = vpop.eup %12742  ;;  %v15352_v62 = vpop.f32.mrb[72].mxu0  ;;  %v9451_v60 = vld [vmem:[%s18515_s0 + $0x3e0] sm:$0xf]  ;;  %v1558_v35 = vadd.f32 1.0, %v12741_v11  ;;  %v9513_v11 = vld [vmem:[%s18515_s0 + $0x438] sm:$0xff] }
 0x172   :  { %12371 = vmatpush3.bf16.msra.mxu1 %v15129_v14  ;;  %12365 = vmatprep.subr.bf16.mxu0 %v12364_v54  ;;  %v12745_v5 = vpop.eup %12744  ;;  %v15355_v47 = vpop.f32.mrb[73].mxu0  ;;  %v9491_v14 = vld [vmem:[%s18515_s0 + $0x410] sm:$0xff]  ;;  %v1760_v22 = vadd.f32 1.0, %v12743_v40  ;;  %v15407_v40 = vld [vmem:[%s18516_s1 + $0x28] sm:$0xff] }
 0x173   :  { %11611 = vmatmul.mubr.msk.f32.gmra.mrb[178].mxu0 %vm115_vm0, %v15360_v26  ;;  %v15364_v63 = vpop.f32.mrb[72].mxu1  ;;  %12373 = vmatprep.subr.bf16.mxu1 %v12372_v58  ;;  %v12747_v42 = vpop.eup %12746  ;;  %v1557_v49 = vadd.f32 1.0, %v12745_v5  ;;  %v15400_v33 = vpack.c.bf16 %v9492_v53, %v9491_v14  ;;  %12756 = vrcp.f32 %v1558_v35  ;;  %v15423_v14 = vld [vmem:[%s18516_s1 + $0x30] sm:$0xff]  ;;  %v8457_v35 = vld [vmem:[%s18519_s5 + $0x8] sm:$0xff] }
 0x174   :  { %11645 = vmatmul.mubr.msk.f32.gmra.mrb[178].mxu1 %vm115_vm0, %v15360_v26  ;;  %11613 = vmatprep.mubr.msk.f32.mxu0 %vm115_vm0, %v15380_v29  ;;  %v15384_v19 = vpop.f32.mrb[73].mxu1  ;;  %v12749_v39 = vpop.eup %12748  ;;  %v1759_v46 = vadd.f32 1.0, %v12747_v42  ;;  %12758 = vrcp.f32 %v1760_v22 }
 0x175   :  { %11647 = vmatprep.mubr.msk.f32.mxu1 %vm115_vm0, %v15380_v29  ;;  %12367 = vmatpush3.bf16.msra.mxu0 %v12364_v54  ;;  %v15397_v43 = vpop.f32.mrb[74].mxu0  ;;  %v1560_v5 = vadd.f32 1.0, %v12749_v39  ;;  %12760 = vrcp.f32 %v1557_v49  ;;  %v15439_v49 = vld [vmem:[%s18516_s1 + $0x38] sm:$0xff] }
 0x176   :  { %12375 = vmatpush3.bf16.msra.mxu1 %v12372_v58  ;;  %11673 = vmatprep.subr.msk.mxu0 %vm164_vm1, %v9451_v60  ;;  %v15402_v7 = vpop.f32.mrb[75].mxu0  ;;  %v15411_v54 = vpop.f32.mrb[74].mxu1  ;;  %v15414_v58 = vpack.c.bf16 %v9514_v45, %v9513_v11  ;;  %12762 = vrcp.f32 %v1759_v46 }
 0x177   :  { %v12751_v50 = vpop.eup %12750  ;;  %11614 = vmatmul.mubr.msk.f32.gmra.mrb[180].mxu0 %vm115_vm0, %v15407_v40  ;;  %11707 = vmatprep.subr.msk.mxu1 %vm164_vm1, %v9473_v15  ;;  %v15418_v42 = vpop.f32.mrb[75].mxu1  ;;  %12764 = vrcp.f32 %v1560_v5 }
 0x178   :  { %v12753_v27 = vpop.eup %12752  ;;  %11648 = vmatmul.mubr.msk.f32.gmra.mrb[180].mxu1 %vm115_vm0, %v15407_v40  ;;  %11616 = vmatprep.mubr.msk.f32.mxu0 %vm115_vm0, %v15423_v14  ;;  %v1762_v59 = vadd.f32 1.0, %v12751_v50 }
 0x179   :  { %v12755_v53 = vpop.eup %12754  ;;  %11650 = vmatprep.mubr.msk.f32.mxu1 %vm115_vm0, %v15423_v14  ;;  %11674 = vmatpush3.msk.msra.mxu0 %vm164_vm1, %v9451_v60  ;;  %v1559_v39 = vadd.f32 1.0, %v12753_v27  ;;  %v11151_v45 = vpop.f32.mrb[76].mxu0  ;;  %v8484_v27 = vld [vmem:[%s18520_s6] sm:$0xff] }
 0x17a   :  { %11708 = vmatpush3.msk.msra.mxu1 %vm164_vm1, %v9473_v15  ;;  %12377 = vmatprep.subr.bf16.mxu0 %v15400_v33  ;;  %v1761_v11 = vadd.f32 1.0, %v12755_v53  ;;  %v1934_v50 = vmax.f32 %v15352_v62, %v11151_v45  ;;  %v11185_v22 = vpop.f32.mrb[76].mxu1  ;;  %v1910_v41 = vpop.f32.mrb[77].mxu0  ;;  %v15454_v60 = vld [vmem:[%s18516_s1 + $0x40] sm:$0xff]  ;;  %12766 = vrcp.f32 %v1762_v59  ;;  %v18650_v53 = vmax.f32 %v15190_v23, %v15260_v48 }
 0x17b   :  { %11617 = vmatmul.mubr.msk.f32.gmra.mrb[182].mxu0 %vm115_vm0, %v15439_v49  ;;  %12385 = vmatprep.subr.bf16.mxu1 %v15414_v58  ;;  %v2136_v46 = vmax.f32 %v15364_v63, %v11185_v22  ;;  %v1933_v15 = vmax.f32 %v15355_v47, %v1910_v41  ;;  %v2112_v62 = vpop.f32.mrb[77].mxu1  ;;  %12768 = vrcp.f32 %v1559_v39  ;;  %v18651_v41 = vmax.f32 %v15205_v6, %v15267_v56  ;;  %v15478_v6 = vld [vmem:[%s18516_s1 + $0x48] sm:$0xff] }
 0x17c   :  { %11651 = vmatmul.mubr.msk.f32.gmra.mrb[182].mxu1 %vm115_vm0, %v15439_v49  ;;  %11619 = vmatprep.mubr.msk.f32.mxu0 %vm115_vm0, %v15454_v60  ;;  %v1938_v5 = vmax.f32 %v18650_v53, %v1934_v50  ;;  %v2135_v63 = vmax.f32 %v15384_v19, %v2112_v62  ;;  %v18652_v45 = vmax.f32 %v15201_v30, %v15269_v17  ;;  %12770 = vrcp.f32 %v1761_v11 }
 0x17d   :  { %11653 = vmatprep.mubr.msk.f32.mxu1 %vm115_vm0, %v15454_v60  ;;  %8467 = vperm.xlu1 %12643, %v8457_v35   ;;  %v2140_v47 = vmax.f32 %v18651_v41, %v2136_v46  ;;  %v11154_v59 = vpop.f32.mrb[78].mxu0  ;;  %v18653_v48 = vmax.f32 %v15215_v0, %v15288_v52  ;;  %v18654_v46 = vmax.f32 %v15227_v12, %v15315_v9  ;;  %v15504_v62 = vpop.eup %12756 }
 0x17e   :  { %v1937_v22 = vmax.f32 %v18652_v45, %v1933_v15  ;;  %8490 = vperm.xlu0 %12642, %v8484_v27   ;;  %v1942_v23 = vmul.f32 %v1938_v5, %v14354_v24  ;;  %v1936_v35 = vmax.f32 %v15397_v43, %v11154_v59  ;;  %v11188_v39 = vpop.f32.mrb[78].mxu1  ;;  %v1920_v50 = vpop.f32.mrb[79].mxu0  ;;  %v8485_v43 = vld [vmem:[%s18520_s6 + $0x8] sm:$0xff]  ;;  %18655 = vst [vmem:[#allocation29_spill] sm:$0xff] %v15504_v62 }
 0x17f   :  { %v2139_v19 = vmax.f32 %v18653_v48, %v2135_v63  ;;  %11620 = vmatmul.mubr.msk.f32.gmra.mrb[184].mxu0 %vm115_vm0, %v15478_v6  ;;  %v2144_v30 = vmul.f32 %v2140_v47, %v14354_v24  ;;  %v2138_v17 = vmax.f32 %v15411_v54, %v11188_v39  ;;  %v1935_v0 = vmax.f32 %v15402_v7, %v1920_v50  ;;  %v2122_v52 = vpop.f32.mrb[79].mxu1  ;;  %v15500_v7 = vld [vmem:[%s18516_s1 + $0x50] sm:$0xff]  ;;  %v15521_v45 = vpop.eup %12758  ;;  %v15548_v50 = vld [vmem:[%s18516_s1 + $0x60] sm:$0xff] }
 0x180   :  { %v1941_v56 = vmul.f32 %v1937_v22, %v14318_v10  ;;  %11654 = vmatmul.mubr.msk.f32.gmra.mrb[184].mxu1 %vm115_vm0, %v15478_v6  ;;  %v1946_v11 = vadd.f32 %v1942_v23, %v14341_v18  ;;  %v1940_v15 = vmax.f32 %v18654_v46, %v1936_v35  ;;  %v2137_v54 = vmax.f32 %v15418_v42, %v2122_v52  ;;  %v8458_v47 = vld [vmem:[%s18519_s5 + $0x10] sm:$0xff]  ;;  %v15533_v23 = vld [vmem:[%s18516_s1 + $0x58] sm:$0xff] }
 0x181   :  { %v2143_v27 = vmul.f32 %v2139_v19, %v14318_v10  ;;  %11622 = vmatprep.mubr.msk.f32.mxu0 %vm115_vm0, %v15500_v7  ;;  %v2148_v53 = vadd.f32 %v2144_v30, %v14341_v18  ;;  %v18656_v12 = vmax.f32 %v15241_v44, %v15321_v8  ;;  %v18657_v42 = vmax.f32 %v15232_v37, %v15323_v36  ;;  %v15514_v41 = vpop.f32.mrb[80].mxu0  ;;  %v15539_v19 = vpop.eup %12760 }
 0x182   :  { %v1945_v5 = vadd.f32 %v1941_v56, %v14298_v57  ;;  %11656 = vmatprep.mubr.msk.f32.mxu1 %vm115_vm0, %v15500_v7  ;;  %18658 = vst [vmem:[#allocation30_spill] sm:$0xff] %v15521_v45  ;;  %v1950_v22 = vsub.f32 0.0, %v1946_v11  ;;  %v1944_v44 = vmul.f32 %v1940_v15, %v14371_v34  ;;  %v18659_v37 = vmax.f32 %v15247_v20, %v15336_v31  ;;  %v15528_v36 = vpop.f32.mrb[81].mxu0  ;;  %v15537_v48 = vpop.f32.mrb[80].mxu1  ;;  %v8459_v56 = vld [vmem:[%s18519_s5 + $0x18] sm:$0xff] }
 0x183   :  { %v2142_v9 = vmax.f32 %v18656_v12, %v2138_v17  ;;  %v1939_v63 = vmax.f32 %v18657_v42, %v1935_v0  ;;  %v2147_v59 = vadd.f32 %v2143_v27, %v14298_v57  ;;  %11623 = vmatmul.mubr.msk.f32.gmra.mrb[186].mxu0 %vm115_vm0, %v15533_v23  ;;  %8495 = vperm.xlu1 %12643, %v8485_v43   ;;  %v2152_v35 = vsub.f32 0.0, %v2148_v53  ;;  %v15552_v30 = vpop.f32.mrb[81].mxu1  ;;  %v15557_v17 = vpop.eup %12762  ;;  %v8486_v12 = vld [vmem:[%s18520_s6 + $0x10] sm:$0xff] }
 0x184   :  { %v2141_v8 = vmax.f32 %v18659_v37, %v2137_v54  ;;  %18660 = vst [vmem:[#allocation31_spill] sm:$0xff] %v15539_v19  ;;  %v1949_v39 = vsub.f32 0.0, %v1945_v5  ;;  %11657 = vmatmul.mubr.msk.f32.gmra.mrb[186].mxu1 %vm115_vm0, %v15533_v23  ;;  %11625 = vmatprep.mubr.msk.f32.mxu0 %vm115_vm0, %v15548_v50  ;;  %18661 = vst [vmem:[#allocation32_spill] sm:$0xff] %v15557_v17  ;;  %v1955_v0 = vmul.f32 1.442695, %v1950_v22  ;;  %v15563_v27 = vpop.eup %12764  ;;  %v9557_v17 = vld [vmem:[%s18515_s0 + $0x488] sm:$0xff] }
 0x185   :  { %v2146_v20 = vmul.f32 %v2142_v9, %v14371_v34  ;;  %v1943_v31 = vmul.f32 %v1939_v63, %v14382_v55  ;;  %v2151_v52 = vsub.f32 0.0, %v2147_v59  ;;  %v1948_v43 = vadd.f32 %v1944_v44, %v14412_v61  ;;  %11659 = vmatprep.mubr.msk.f32.mxu1 %vm115_vm0, %v15548_v50  ;;  %8472 = vperm.xlu0 %12642, %v8458_v47   ;;  %v15567_v5 = vpop.f32.mrb[82].mxu0  ;;  %v15572_v9 = vpop.eup %12766 }
 0x186   :  { %v2145_v11 = vmul.f32 %v2141_v8, %v14382_v55  ;;  %18662 = vst [vmem:[#allocation33_spill] sm:$0xff] %v15563_v27  ;;  %v2157_v46 = vmul.f32 1.442695, %v2152_v35  ;;  %v1953_v15 = vmul.f32 1.442695, %v1949_v39  ;;  %18663 = vst [vmem:[#allocation34_spill] sm:$0xff] %v15572_v9  ;;  %12772 = vpow2.f32 %v1955_v0  ;;  %v15581_v44 = vpop.eup %12768 }
 0x187   :  { %v2150_v54 = vadd.f32 %v2146_v20, %v14412_v61  ;;  %v1947_v53 = vadd.f32 %v1943_v31, %v14424_v2  ;;  %v2155_v42 = vmul.f32 1.442695, %v2151_v52  ;;  %v1952_v63 = vsub.f32 0.0, %v1948_v43  ;;  %v15575_v22 = vpop.f32.mrb[83].mxu0  ;;  %11626 = vmatmul.mubr.msk.f32.gmra.mrb[188].mxu0 %vm115_vm0, %v15237_v13  ;;  %v15579_v59 = vpop.f32.mrb[82].mxu1  ;;  %8477 = vperm.xlu1 %12643, %v8459_v56   ;;  %18664 = vst [vmem:[#allocation35_spill] sm:$0xff] %v15581_v44 }
 0x188   :  { %v2149_v47 = vadd.f32 %v2145_v11, %v14424_v2  ;;  %12774 = vpow2.f32 %v2157_v46  ;;  %11660 = vmatmul.mubr.msk.f32.gmra.mrb[188].mxu1 %vm115_vm0, %v15237_v13  ;;  %v15585_v35 = vpop.f32.mrb[83].mxu1  ;;  %11628 = vmatprep.mubr.msk.f32.mxu0 %vm115_vm0, %v15252_v51  ;;  %v8487_v39 = vld [vmem:[%s18520_s6 + $0x18] sm:$0xff]  ;;  %v15592_v20 = vpop.eup %12770  ;;  %v8540_v11 = vld [vmem:[%s18521_s8] sm:$0xff] }
 0x189   :  { %v2154_v37 = vsub.f32 0.0, %v2150_v54  ;;  %v1951_v8 = vsub.f32 0.0, %v1947_v53  ;;  %18665 = vst [vmem:[#allocation36_spill] sm:$0xff] %v15592_v20  ;;  %12776 = vpow2.f32 %v1953_v15  ;;  %v1959_v31 = vmul.f32 1.442695, %v1952_v63  ;;  %11662 = vmatprep.mubr.msk.f32.mxu1 %vm115_vm0, %v15252_v51  ;;  %8500 = vperm.xlu0 %12642, %v8486_v12   ;;  %v15596_v43 = vpop.f32.mrb[84].mxu0 }
 0x18a   :  { %v2153_v56 = vsub.f32 0.0, %v2149_v47  ;;  %12778 = vpow2.f32 %v2155_v42  ;;  %v15603_v54 = vpop.f32.mrb[84].mxu1  ;;  %v15605_v53 = vpop.f32.mrb[85].mxu0  ;;  %v9493_v12 = vld [vmem:[%s18515_s0 + $0x420] sm:$0xff]  ;;  %v9494_v42 = vld [vmem:[%s18515_s0 + $0x428] sm:$0xff] }
 0x18b   :  { %v2161_v0 = vmul.f32 1.442695, %v2154_v37  ;;  %v1957_v52 = vmul.f32 1.442695, %v1951_v8  ;;  %12780 = vpow2.f32 %v1959_v31  ;;  %11629 = vmatmul.mubr.msk.f32.gmra.mrb[190].mxu0 %vm115_vm0, %v15274_v1  ;;  %8505 = vperm.xlu1 %12643, %v8487_v39   ;;  %v15619_v37 = vpop.f32.mrb[85].mxu1  ;;  %v9515_v8 = vld [vmem:[%s18515_s0 + $0x448] sm:$0xff]  ;;  %v12380_v4 = vpack.c.bf16 %v9494_v42, %v9493_v12 }
 0x18c   :  { %v2159_v46 = vmul.f32 1.442695, %v2153_v56  ;;  %11663 = vmatmul.mubr.msk.f32.gmra.mrb[190].mxu1 %vm115_vm0, %v15274_v1  ;;  %11675 = vmatprep.mubr.msk.f32.mxu0 %vm115_vm0, %v15295_v32  ;;  %v9516_v39 = vld [vmem:[%s18515_s0 + $0x450] sm:$0xff]  ;;  %v8541_v31 = vld [vmem:[%s18521_s8 + $0x8] sm:$0xff]  ;;  %v18_v56 = vstv %s18522_s12  ;;  %v9517_v9 = vld [vmem:[%s18515_s0 + $0x458] sm:$0xf] }
 0x18d   :  { %12782 = vpow2.f32 %v2161_v0  ;;  %11709 = vmatprep.mubr.msk.f32.mxu1 %vm115_vm0, %v15295_v32  ;;  %8546 = vperm.xlu0 %12642, %v8540_v11   ;;  %19 = vst [vmem:[#allocation3] sm:$0x1] %v18_v56  ;;  %v15645_v15 = vpop.f32.mrb[86].mxu0 }
 0x18e   :  { %12784 = vpow2.f32 %v1957_v52  ;;  %v15653_v56 = vpop.f32.mrb[86].mxu1  ;;  %v15655_v25 = vpop.f32.mrb[87].mxu0 }
 0x18f   :  { %12786 = vpow2.f32 %v2159_v46  ;;  %11676 = vmatmul.mubr.msk.f32.vlgmr.msra.gmra.mrb[192].mxu0 %vm115_vm0, %v15328_v16  ;;  %v12388_v46 = vpack.c.bf16 %v9516_v39, %v9515_v8  ;;  %8551 = vperm.xlu1 %12643, %v8541_v31   ;;  %v15663_v52 = vpop.f32.mrb[87].mxu1  ;;  %v9495_v31 = vld [vmem:[%s18515_s0 + $0x430] sm:$0xf] }
 0x190   :  { %11710 = vmatmul.mubr.msk.f32.vlgmr.msra.gmra.mrb[192].mxu1 %vm115_vm0, %v15328_v16  ;;  %11678 = vmatprep.mubr.msk.f32.mxu0 %vm115_vm0, %v15343_v3  ;;  %v12773_v0 = vpop.eup %12772 }
 0x191   :  { %11712 = vmatprep.mubr.msk.f32.mxu1 %vm115_vm0, %v15343_v3  ;;  %12379 = vmatpush3.bf16.msra.mxu0 %v15400_v33  ;;  %v15674_v39 = vpop.f32.mrb[88].mxu0  ;;  %v1962_v42 = vadd.f32 1.0, %v12773_v0  ;;  %v9535_v33 = vld [vmem:[%s18515_s0 + $0x460] sm:$0xff] }
 0x192   :  { %v12775_v8 = vpop.eup %12774  ;;  %12387 = vmatpush3.bf16.msra.mxu1 %v15414_v58  ;;  %12381 = vmatprep.subr.bf16.mxu0 %v12380_v4  ;;  %v15680_v12 = vpop.f32.mrb[89].mxu0  ;;  %v9536_v58 = vld [vmem:[%s18515_s0 + $0x468] sm:$0xff] }
 0x193   :  { %v12777_v47 = vpop.eup %12776  ;;  %11679 = vmatmul.mubr.msk.f32.gmra.mrb[194].mxu0 %vm115_vm0, %v15360_v26  ;;  %v15684_v63 = vpop.f32.mrb[88].mxu1  ;;  %12389 = vmatprep.subr.bf16.mxu1 %v12388_v46  ;;  %v2164_v20 = vadd.f32 1.0, %v12775_v8  ;;  %v9558_v8 = vld [vmem:[%s18515_s0 + $0x490] sm:$0xff]  ;;  %v15712_v38 = vpack.c.bf16 %v9536_v58, %v9535_v33  ;;  %12788 = vrcp.f32 %v1962_v42 }
 0x194   :  { %v12779_v11 = vpop.eup %12778  ;;  %11713 = vmatmul.mubr.msk.f32.gmra.mrb[194].mxu1 %vm115_vm0, %v15360_v26  ;;  %11681 = vmatprep.mubr.msk.f32.mxu0 %vm115_vm0, %v15380_v29  ;;  %v15696_v0 = vpop.f32.mrb[89].mxu1  ;;  %v1961_v44 = vadd.f32 1.0, %v12777_v47 }
 0x195   :  { %v12781_v45 = vpop.eup %12780  ;;  %11715 = vmatprep.mubr.msk.f32.mxu1 %vm115_vm0, %v15380_v29  ;;  %12383 = vmatpush3.bf16.msra.mxu0 %v12380_v4  ;;  %v2163_v19 = vadd.f32 1.0, %v12779_v11  ;;  %v15709_v62 = vpop.f32.mrb[90].mxu0  ;;  %v15721_v4 = vpack.c.bf16 %v9558_v8, %v9557_v17  ;;  %12790 = vrcp.f32 %v2164_v20 }
 0x196   :  { %12391 = vmatpush3.bf16.msra.mxu1 %v12388_v46  ;;  %11741 = vmatprep.subr.msk.mxu0 %vm164_vm1, %v9495_v31  ;;  %v1964_v21 = vadd.f32 1.0, %v12781_v45  ;;  %v15714_v26 = vpop.f32.mrb[91].mxu0  ;;  %v15718_v47 = vpop.f32.mrb[90].mxu1  ;;  %12792 = vrcp.f32 %v1961_v44 }
 0x197   :  { %v12783_v27 = vpop.eup %12782  ;;  %11682 = vmatmul.mubr.msk.f32.gmra.mrb[196].mxu0 %vm115_vm0, %v15407_v40  ;;  %11775 = vmatprep.subr.msk.mxu1 %vm164_vm1, %v9517_v9  ;;  %v15725_v33 = vpop.f32.mrb[91].mxu1  ;;  %12794 = vrcp.f32 %v2163_v19  ;;  %v8543_v19 = vld [vmem:[%s18521_s8 + $0x18] sm:$0xff] }
 0x198   :  { %v12785_v28 = vpop.eup %12784  ;;  %11716 = vmatmul.mubr.msk.f32.gmra.mrb[196].mxu1 %vm115_vm0, %v15407_v40  ;;  %11684 = vmatprep.mubr.msk.f32.mxu0 %vm115_vm0, %v15423_v14  ;;  %v2166_v45 = vadd.f32 1.0, %v12783_v27  ;;  %12796 = vrcp.f32 %v1964_v21  ;;  %v18666_v21 = vmax.f32 %v15514_v41, %v15596_v43  ;;  %v18669_v43 = vmax.f32 %v15552_v30, %v15619_v37 }
 0x199   :  { %v12787_v11 = vpop.eup %12786  ;;  %v1963_v46 = vadd.f32 1.0, %v12785_v28  ;;  %11718 = vmatprep.mubr.msk.f32.mxu1 %vm115_vm0, %v15423_v14  ;;  %11742 = vmatpush3.msk.msra.mxu0 %vm164_vm1, %v9495_v31  ;;  %v11219_v42 = vpop.f32.mrb[92].mxu0  ;;  %v8542_v28 = vld [vmem:[%s18521_s8 + $0x10] sm:$0xff] }
 0x19a   :  { %v2165_v17 = vadd.f32 1.0, %v12787_v11  ;;  %11776 = vmatpush3.msk.msra.mxu1 %vm164_vm1, %v9517_v9  ;;  %12393 = vmatprep.subr.bf16.mxu0 %v15712_v38  ;;  %v2338_v44 = vmax.f32 %v15674_v39, %v11219_v42  ;;  %v11253_v27 = vpop.f32.mrb[92].mxu1  ;;  %v2314_v20 = vpop.f32.mrb[93].mxu0  ;;  %v18668_v11 = vmax.f32 %v15528_v36, %v15605_v53 }
 0x19b   :  { %11685 = vmatmul.mubr.msk.f32.gmra.mrb[198].mxu0 %vm115_vm0, %v15439_v49  ;;  %12401 = vmatprep.subr.bf16.mxu1 %v15721_v4  ;;  %12798 = vrcp.f32 %v1963_v46  ;;  %v2540_v9 = vmax.f32 %v15684_v63, %v11253_v27  ;;  %v2337_v31 = vmax.f32 %v15680_v12, %v2314_v20  ;;  %v2516_v58 = vpop.f32.mrb[93].mxu1  ;;  %v18667_v63 = vmax.f32 %v15537_v48, %v15603_v54 }
 0x19c   :  { %11719 = vmatmul.mubr.msk.f32.gmra.mrb[198].mxu1 %vm115_vm0, %v15439_v49  ;;  %11687 = vmatprep.mubr.msk.f32.mxu0 %vm115_vm0, %v15454_v60  ;;  %12800 = vrcp.f32 %v2166_v45  ;;  %v2342_v39 = vmax.f32 %v18666_v21, %v2338_v44  ;;  %v2539_v8 = vmax.f32 %v15696_v0, %v2516_v58  ;;  %v18671_v20 = vmax.f32 %v15567_v5, %v15645_v15 }
 0x19d   :  { %11721 = vmatprep.mubr.msk.f32.mxu1 %vm115_vm0, %v15454_v60  ;;  %8556 = vperm.xlu0 %12642, %v8542_v28   ;;  %12802 = vrcp.f32 %v2165_v17  ;;  %v2544_v12 = vmax.f32 %v18667_v63, %v2540_v9  ;;  %v2341_v46 = vmax.f32 %v18668_v11, %v2337_v31  ;;  %v11222_v45 = vpop.f32.mrb[94].mxu0  ;;  %v15778_v30 = vpop.eup %12788  ;;  %v18673_v58 = vmax.f32 %v15579_v59, %v15653_v56 }
 0x19e   :  { %8561 = vperm.xlu1 %12643, %v8543_v19   ;;  %v2346_v41 = vmul.f32 %v2342_v39, %v14354_v24  ;;  %v2543_v0 = vmax.f32 %v18669_v43, %v2539_v8  ;;  %v2340_v42 = vmax.f32 %v15709_v62, %v11222_v45  ;;  %v11256_v28 = vpop.f32.mrb[94].mxu1  ;;  %v2324_v17 = vpop.f32.mrb[95].mxu0  ;;  %v8690_v62 = vld [vmem:[%s18523_s10] sm:$0xff]  ;;  %18670 = vst [vmem:[#allocation37_spill] sm:$0xff] %v15778_v30 }
 0x19f   :  { %11688 = vmatmul.mubr.msk.f32.gmra.mrb[200].mxu0 %vm115_vm0, %v15478_v6  ;;  %v2548_v48 = vmul.f32 %v2544_v12, %v14354_v24  ;;  %v2345_v36 = vmul.f32 %v2341_v46, %v14318_v10  ;;  %v2542_v54 = vmax.f32 %v15718_v47, %v11256_v28  ;;  %v2339_v53 = vmax.f32 %v15714_v26, %v2324_v17  ;;  %v2526_v44 = vpop.f32.mrb[95].mxu1  ;;  %v15788_v19 = vpop.eup %12790 }
 0x1a0   :  { %11722 = vmatmul.mubr.msk.f32.gmra.mrb[200].mxu1 %vm115_vm0, %v15478_v6  ;;  %v2350_v37 = vadd.f32 %v2346_v41, %v14341_v18  ;;  %v2547_v27 = vmul.f32 %v2543_v0, %v14318_v10  ;;  %v2344_v47 = vmax.f32 %v18671_v20, %v2340_v42  ;;  %v2541_v26 = vmax.f32 %v15725_v33, %v2526_v44  ;;  %v8691_v33 = vld [vmem:[%s18523_s10 + $0x8] sm:$0xff]  ;;  %v15805_v8 = vpop.eup %12792  ;;  %v8693_v20 = vld [vmem:[%s18523_s10 + $0x18] sm:$0xff] }
 0x1a1   :  { %11690 = vmatprep.mubr.msk.f32.mxu0 %vm115_vm0, %v15500_v7  ;;  %18672 = vst [vmem:[#allocation38_spill] sm:$0xff] %v15788_v19  ;;  %v2552_v9 = vadd.f32 %v2548_v48, %v14341_v18  ;;  %v2349_v31 = vadd.f32 %v2345_v36, %v14298_v57  ;;  %v2546_v21 = vmax.f32 %v18673_v58, %v2542_v54  ;;  %v15798_v15 = vpop.f32.mrb[96].mxu0  ;;  %18675 = vst [vmem:[#allocation39_spill] sm:$0xff] %v15805_v8  ;;  %v15818_v46 = vpop.eup %12794 }
 0x1a2   :  { %v18674_v39 = vmax.f32 %v15575_v22, %v15655_v25  ;;  %11724 = vmatprep.mubr.msk.f32.mxu1 %vm115_vm0, %v15500_v7  ;;  %v2354_v63 = vsub.f32 0.0, %v2350_v37  ;;  %v2551_v12 = vadd.f32 %v2547_v27, %v14298_v57  ;;  %v2348_v59 = vmul.f32 %v2344_v47, %v14371_v34  ;;  %v15812_v56 = vpop.f32.mrb[97].mxu0  ;;  %v15816_v11 = vpop.f32.mrb[96].mxu1  ;;  %8696 = vperm.xlu0 %12642, %v8690_v62  }
 0x1a3   :  { %v18676_v25 = vmax.f32 %v15585_v35, %v15663_v52  ;;  %11691 = vmatmul.mubr.msk.f32.gmra.mrb[202].mxu0 %vm115_vm0, %v15533_v23  ;;  %18677 = vst [vmem:[#allocation40_spill] sm:$0xff] %v15818_v46  ;;  %v2556_v45 = vsub.f32 0.0, %v2552_v9  ;;  %v2353_v41 = vsub.f32 0.0, %v2349_v31  ;;  %v2550_v43 = vmul.f32 %v2546_v21, %v14371_v34  ;;  %v15826_v35 = vpop.f32.mrb[97].mxu1  ;;  %v8692_v52 = vld [vmem:[%s18523_s10 + $0x10] sm:$0xff]  ;;  %v15831_v42 = vpop.eup %12796  ;;  %8701 = vperm.xlu1 %12643, %v8691_v33  }
 0x1a4   :  { %v2343_v5 = vmax.f32 %v18674_v39, %v2339_v53  ;;  %11725 = vmatmul.mubr.msk.f32.gmra.mrb[202].mxu1 %vm115_vm0, %v15533_v23  ;;  %11693 = vmatprep.mubr.msk.f32.mxu0 %vm115_vm0, %v15548_v50  ;;  %18678 = vst [vmem:[#allocation41_spill] sm:$0xff] %v15831_v42  ;;  %v2359_v28 = vmul.f32 1.442695, %v2354_v63  ;;  %v2555_v17 = vsub.f32 0.0, %v2551_v12  ;;  %v2352_v48 = vadd.f32 %v2348_v59, %v14412_v61  ;;  %v8836_v12 = vld [vmem:[#allocation3] sm:$0x1] }
 0x1a5   :  { %v2545_v22 = vmax.f32 %v18676_v25, %v2541_v26  ;;  %11727 = vmatprep.mubr.msk.f32.mxu1 %vm115_vm0, %v15548_v50  ;;  %v15837_v54 = vpop.eup %12798  ;;  %v2561_v53 = vmul.f32 1.442695, %v2556_v45  ;;  %v2357_v44 = vmul.f32 1.442695, %v2353_v41  ;;  %v2554_v62 = vadd.f32 %v2550_v43, %v14412_v61  ;;  %v15841_v27 = vpop.f32.mrb[98].mxu0 }
 0x1a6   :  { %v2347_v0 = vmul.f32 %v2343_v5, %v14382_v55  ;;  %18679 = vst [vmem:[#allocation42_spill] sm:$0xff] %v15837_v54  ;;  %v15846_v47 = vpop.eup %12800  ;;  %12804 = vpow2.f32 %v2359_v28  ;;  %v2559_v26 = vmul.f32 1.442695, %v2555_v17  ;;  %v2356_v9 = vsub.f32 0.0, %v2352_v48  ;;  %v15849_v58 = vpop.f32.mrb[99].mxu0  ;;  %8706 = vperm.xlu0 %12642, %v8692_v52   ;;  %v9537_v48 = vld [vmem:[%s18515_s0 + $0x470] sm:$0xff] }
 0x1a7   :  { %v2549_v36 = vmul.f32 %v2545_v22, %v14382_v55  ;;  %18680 = vst [vmem:[#allocation43_spill] sm:$0xff] %v15846_v47  ;;  %11694 = vmatmul.mubr.msk.f32.gmra.mrb[204].mxu0 %vm115_vm0, %v15237_v13  ;;  %v15853_v21 = vpop.f32.mrb[98].mxu1  ;;  %v15855_v39 = vpop.eup %12802  ;;  %12806 = vpow2.f32 %v2561_v53  ;;  %v2558_v5 = vsub.f32 0.0, %v2554_v62  ;;  %8711 = vperm.xlu1 %12643, %v8693_v20   ;;  %v9559_v20 = vld [vmem:[%s18515_s0 + $0x498] sm:$0xff]  ;;  %v9690_v54 = vld [vmem:[%s18515_s0 + $0x580] sm:$0xff] }
 0x1a8   :  { %v2351_v37 = vadd.f32 %v2347_v0, %v14424_v2  ;;  %18681 = vst [vmem:[#allocation44_spill] sm:$0xff] %v15855_v39  ;;  %11728 = vmatmul.mubr.msk.f32.gmra.mrb[204].mxu1 %vm115_vm0, %v15237_v13  ;;  %v15859_v63 = vpop.f32.mrb[99].mxu1  ;;  %11696 = vmatprep.mubr.msk.f32.mxu0 %vm115_vm0, %v15252_v51  ;;  %12808 = vpow2.f32 %v2357_v44  ;;  %v2363_v25 = vmul.f32 1.442695, %v2356_v9  ;;  %v18682_v0 = vld [vmem:[#allocation28_spill] sm:$0xff] }
 0x1a9   :  { %v2553_v31 = vadd.f32 %v2549_v36, %v14424_v2  ;;  %11730 = vmatprep.mubr.msk.f32.mxu1 %vm115_vm0, %v15252_v51  ;;  %12810 = vpow2.f32 %v2559_v26  ;;  %v2565_v13 = vmul.f32 1.442695, %v2558_v5  ;;  %v15869_v43 = vpop.f32.mrb[100].mxu0  ;;  %v9538_v36 = vld [vmem:[%s18515_s0 + $0x478] sm:$0xff]  ;;  %v9560_v26 = vld [vmem:[%s18515_s0 + $0x4a0] sm:$0xff] }
 0x1aa   :  { %v2355_v33 = vsub.f32 0.0, %v2351_v37  ;;  %12812 = vpow2.f32 %v2363_v25  ;;  %v15875_v17 = vpop.f32.mrb[100].mxu1  ;;  %v15877_v51 = vpop.f32.mrb[101].mxu0  ;;  %8839 = vperm.xlu0 %12642, %v8836_v12   ;;  %v12404_v25 = vpack.c.bf16 %v9560_v26, %v9559_v20 }
 0x1ab   :  { %v2557_v22 = vsub.f32 0.0, %v2553_v31  ;;  %11697 = vmatmul.mubr.msk.f32.gmra.mrb[206].mxu0 %vm115_vm0, %v15274_v1  ;;  %12814 = vpow2.f32 %v2565_v13  ;;  %v15893_v37 = vpop.f32.mrb[101].mxu1  ;;  %v12396_v31 = vpack.c.bf16 %v9538_v36, %v9537_v48 }
 0x1ac   :  { %v2361_v41 = vmul.f32 1.442695, %v2355_v33  ;;  %11731 = vmatmul.mubr.msk.f32.gmra.mrb[206].mxu1 %vm115_vm0, %v15274_v1  ;;  %11743 = vmatprep.mubr.msk.f32.mxu0 %vm115_vm0, %v15295_v32 }
 0x1ad   :  { %v2563_v52 = vmul.f32 1.442695, %v2557_v22  ;;  %11777 = vmatprep.mubr.msk.f32.mxu1 %vm115_vm0, %v15295_v32  ;;  %v15909_v1 = vpop.f32.mrb[102].mxu0  ;;  %v9601_v32 = vld [vmem:[%s18515_s0 + $0x4d8] sm:$0xff]  ;;  %v9602_v22 = vld [vmem:[%s18515_s0 + $0x4e0] sm:$0xff] }
 0x1ae   :  { %12816 = vpow2.f32 %v2361_v41  ;;  %v15913_v33 = vpop.f32.mrb[102].mxu1  ;;  %v15915_v12 = vpop.f32.mrb[103].mxu0 }
 0x1af   :  { %12818 = vpow2.f32 %v2563_v52  ;;  %11744 = vmatmul.mubr.msk.f32.vlgmr.msra.gmra.mrb[208].mxu0 %vm115_vm0, %v15328_v16  ;;  %v15923_v13 = vpop.f32.mrb[103].mxu1  ;;  %v9561_v52 = vld [vmem:[%s18515_s0 + $0x4a8] sm:$0xf] }
 0x1b0   :  { %11778 = vmatmul.mubr.msk.f32.vlgmr.msra.gmra.mrb[208].mxu1 %vm115_vm0, %v15328_v16  ;;  %11746 = vmatprep.mubr.msk.f32.mxu0 %vm115_vm0, %v15343_v3  ;;  %v12805_v41 = vpop.eup %12804  ;;  %v9539_v16 = vld [vmem:[%s18515_s0 + $0x480] sm:$0xf] }
 0x1b1   :  { %11780 = vmatprep.mubr.msk.f32.mxu1 %vm115_vm0, %v15343_v3  ;;  %12395 = vmatpush3.bf16.msra.mxu0 %v15712_v38  ;;  %v12807_v48 = vpop.eup %12806  ;;  %v15934_v36 = vpop.f32.mrb[104].mxu0  ;;  %v2366_v26 = vadd.f32 1.0, %v12805_v41  ;;  %v9579_v38 = vld [vmem:[%s18515_s0 + $0x4b0] sm:$0xff] }
 0x1b2   :  { %12403 = vmatpush3.bf16.msra.mxu1 %v15721_v4  ;;  %12397 = vmatprep.subr.bf16.mxu0 %v12396_v31  ;;  %v12809_v20 = vpop.eup %12808  ;;  %v15940_v53 = vpop.f32.mrb[105].mxu0  ;;  %v9580_v4 = vld [vmem:[%s18515_s0 + $0x4b8] sm:$0xff]  ;;  %v2568_v59 = vadd.f32 1.0, %v12807_v48 }
 0x1b3   :  { %11747 = vmatmul.mubr.msk.f32.gmra.mrb[210].mxu0 %vm115_vm0, %v18682_v0  ;;  %v15944_v3 = vpop.f32.mrb[104].mxu1  ;;  %12405 = vmatprep.subr.bf16.mxu1 %v12404_v25  ;;  %v12811_v45 = vpop.eup %12810  ;;  %v2365_v5 = vadd.f32 1.0, %v12809_v20  ;;  %v15970_v44 = vpack.c.bf16 %v9580_v4, %v9579_v38  ;;  %12820 = vrcp.f32 %v2366_v26 }
 0x1b4   :  { %11781 = vmatmul.mubr.msk.f32.gmra.mrb[210].mxu1 %vm115_vm0, %v18682_v0  ;;  %11749 = vmatprep.mubr.msk.f32.mxu0 %vm115_vm0, %v15380_v29  ;;  %v2900_v41 = vpop.f32.mrb[105].mxu1  ;;  %v12813_v48 = vpop.eup %12812  ;;  %v2567_v9 = vadd.f32 1.0, %v12811_v45  ;;  %12822 = vrcp.f32 %v2568_v59 }
 0x1b5   :  { %11783 = vmatprep.mubr.msk.f32.mxu1 %vm115_vm0, %v15380_v29  ;;  %12399 = vmatpush3.bf16.msra.mxu0 %v12396_v31  ;;  %v12815_v0 = vpop.eup %12814  ;;  %v15967_v62 = vpop.f32.mrb[106].mxu0  ;;  %v2368_v39 = vadd.f32 1.0, %v12813_v48  ;;  %v15977_v29 = vpack.c.bf16 %v9602_v22, %v9601_v32  ;;  %12824 = vrcp.f32 %v2365_v5 }
 0x1b6   :  { %12407 = vmatpush3.bf16.msra.mxu1 %v12404_v25  ;;  %11809 = vmatprep.subr.msk.mxu0 %vm164_vm1, %v9539_v16  ;;  %v15972_v47 = vpop.f32.mrb[107].mxu0  ;;  %v11318_v20 = vpop.f32.mrb[106].mxu1  ;;  %v2570_v26 = vadd.f32 1.0, %v12815_v0  ;;  %12826 = vrcp.f32 %v2567_v9 }
 0x1b7   :  { %11750 = vmatmul.mubr.msk.f32.gmra.mrb[212].mxu0 %vm115_vm0, %v15407_v40  ;;  %11843 = vmatprep.subr.msk.mxu1 %vm164_vm1, %v9561_v52  ;;  %v2910_v25 = vpop.f32.mrb[107].mxu1  ;;  %12828 = vrcp.f32 %v2368_v39  ;;  %v18683_v39 = vmax.f32 %v15798_v15, %v15869_v43  ;;  %v18686_v15 = vmax.f32 %v15826_v35, %v15893_v37 }
 0x1b8   :  { %v12817_v28 = vpop.eup %12816  ;;  %11784 = vmatmul.mubr.msk.f32.gmra.mrb[212].mxu1 %vm115_vm0, %v15407_v40  ;;  %11752 = vmatprep.mubr.msk.f32.mxu0 %vm115_vm0, %v15423_v14 }
 0x1b9   :  { %v12819_v45 = vpop.eup %12818  ;;  %v2367_v31 = vadd.f32 1.0, %v12817_v28  ;;  %11786 = vmatprep.mubr.msk.f32.mxu1 %vm115_vm0, %v15423_v14  ;;  %11810 = vmatpush3.msk.msra.mxu0 %vm164_vm1, %v9539_v16  ;;  %v11287_v32 = vpop.f32.mrb[108].mxu0 }
 0x1ba   :  { %v2569_v22 = vadd.f32 1.0, %v12819_v45  ;;  %11844 = vmatpush3.msk.msra.mxu1 %vm164_vm1, %v9561_v52  ;;  %12409 = vmatprep.subr.bf16.mxu0 %v15970_v44  ;;  %v2742_v40 = vmax.f32 %v15934_v36, %v11287_v32  ;;  %v11321_v59 = vpop.f32.mrb[108].mxu1  ;;  %v2718_v28 = vpop.f32.mrb[109].mxu0  ;;  %v18688_v45 = vmax.f32 %v15841_v27, %v15909_v1 }
 0x1bb   :  { %11753 = vmatmul.mubr.msk.f32.gmra.mrb[214].mxu0 %vm115_vm0, %v15439_v49  ;;  %12417 = vmatprep.subr.bf16.mxu1 %v15977_v29  ;;  %12830 = vrcp.f32 %v2367_v31  ;;  %v2944_v14 = vmax.f32 %v15944_v3, %v11321_v59  ;;  %v2741_v9 = vmax.f32 %v15940_v53, %v2718_v28  ;;  %v2920_v5 = vpop.f32.mrb[109].mxu1  ;;  %v18684_v53 = vmax.f32 %v15816_v11, %v15875_v17 }
 0x1bc   :  { %11787 = vmatmul.mubr.msk.f32.gmra.mrb[214].mxu1 %vm115_vm0, %v15439_v49  ;;  %11755 = vmatprep.mubr.msk.f32.mxu0 %vm115_vm0, %v15454_v60  ;;  %12832 = vrcp.f32 %v2570_v26  ;;  %v2746_v52 = vmax.f32 %v18683_v39, %v2742_v40  ;;  %v2943_v36 = vmax.f32 %v2900_v41, %v2920_v5  ;;  %v18685_v49 = vmax.f32 %v15812_v56, %v15877_v51 }
 0x1bd   :  { %11789 = vmatprep.mubr.msk.f32.mxu1 %vm115_vm0, %v15454_v60  ;;  %12834 = vrcp.f32 %v2569_v22  ;;  %v2948_v16 = vmax.f32 %v18684_v53, %v2944_v14  ;;  %v11290_v38 = vpop.f32.mrb[110].mxu0  ;;  %v16021_v35 = vpop.eup %12820  ;;  %v18690_v22 = vmax.f32 %v15853_v21, %v15913_v33  ;;  %v18691_v40 = vmax.f32 %v15849_v58, %v15915_v12 }
 0x1be   :  { %v2745_v3 = vmax.f32 %v18685_v49, %v2741_v9  ;;  %v2750_v4 = vmul.f32 %v2746_v52, %v14354_v24  ;;  %v2947_v43 = vmax.f32 %v18686_v15, %v2943_v36  ;;  %v2744_v41 = vmax.f32 %v15967_v62, %v11290_v38  ;;  %v11324_v48 = vpop.f32.mrb[110].mxu1  ;;  %v2728_v60 = vpop.f32.mrb[111].mxu0  ;;  %18687 = vst [vmem:[#allocation28_spill] sm:$0xff] %v16021_v35 }
 0x1bf   :  { %11756 = vmatmul.mubr.msk.f32.gmra.mrb[216].mxu0 %vm115_vm0, %v15478_v6  ;;  %v2952_v11 = vmul.f32 %v2948_v16, %v14354_v24  ;;  %v2946_v56 = vmax.f32 %v11318_v20, %v11324_v48  ;;  %v2743_v51 = vmax.f32 %v15972_v47, %v2728_v60  ;;  %v2930_v0 = vpop.f32.mrb[111].mxu1  ;;  %v16030_v20 = vpop.eup %12822  ;;  %v18693_v21 = vmax.f32 %v15859_v63, %v15923_v13 }
 0x1c0   :  { %v2749_v17 = vmul.f32 %v2745_v3, %v14318_v10  ;;  %11790 = vmatmul.mubr.msk.f32.gmra.mrb[216].mxu1 %vm115_vm0, %v15478_v6  ;;  %v2754_v62 = vadd.f32 %v2750_v4, %v14341_v18  ;;  %v2951_v37 = vmul.f32 %v2947_v43, %v14318_v10  ;;  %v2748_v31 = vmax.f32 %v18688_v45, %v2744_v41  ;;  %v16044_v1 = vpop.eup %12824  ;;  %v16102_v45 = vld [vmem:[%s18516_s1 + $0x70] sm:$0xff] }
 0x1c1   :  { %v2945_v26 = vmax.f32 %v2910_v25, %v2930_v0  ;;  %11758 = vmatprep.mubr.msk.f32.mxu0 %vm115_vm0, %v15500_v7  ;;  %18689 = vst [vmem:[#allocation45_spill] sm:$0xff] %v16030_v20  ;;  %v2956_v47 = vadd.f32 %v2952_v11, %v14341_v18  ;;  %v2950_v32 = vmax.f32 %v18690_v22, %v2946_v56  ;;  %v16040_v27 = vpop.f32.mrb[112].mxu0  ;;  %18692 = vst [vmem:[#allocation46_spill] sm:$0xff] %v16044_v1  ;;  %v16057_v12 = vpop.eup %12826 }
 0x1c2   :  { %v2753_v6 = vadd.f32 %v2749_v17, %v14298_v57  ;;  %v2747_v59 = vmax.f32 %v18691_v40, %v2743_v51  ;;  %11792 = vmatprep.mubr.msk.f32.mxu1 %vm115_vm0, %v15500_v7  ;;  %v2758_v25 = vsub.f32 0.0, %v2754_v62  ;;  %v2955_v28 = vadd.f32 %v2951_v37, %v14298_v57  ;;  %v16051_v9 = vpop.f32.mrb[113].mxu0  ;;  %v16055_v58 = vpop.f32.mrb[112].mxu1  ;;  %18694 = vst [vmem:[#allocation47_spill] sm:$0xff] %v16057_v12 }
 0x1c3   :  { %v2752_v14 = vmul.f32 %v2748_v31, %v14371_v34  ;;  %v2949_v33 = vmax.f32 %v18693_v21, %v2945_v26  ;;  %11759 = vmatmul.mubr.msk.f32.gmra.mrb[218].mxu0 %vm115_vm0, %v15533_v23  ;;  %v2960_v7 = vsub.f32 0.0, %v2956_v47  ;;  %v2954_v39 = vmul.f32 %v2950_v32, %v14371_v34  ;;  %v16065_v63 = vpop.f32.mrb[113].mxu1  ;;  %v16067_v13 = vpop.eup %12828  ;;  %v16208_v31 = vld [vmem:[%s18516_s1 + $0x18] sm:$0xff] }
 0x1c4   :  { %v2757_v5 = vsub.f32 0.0, %v2753_v6  ;;  %v2751_v52 = vmul.f32 %v2747_v59, %v14382_v55  ;;  %11793 = vmatmul.mubr.msk.f32.gmra.mrb[218].mxu1 %vm115_vm0, %v15533_v23  ;;  %11761 = vmatprep.mubr.msk.f32.mxu0 %vm115_vm0, %v15548_v50  ;;  %18695 = vst [vmem:[#allocation48_spill] sm:$0xff] %v16067_v13  ;;  %v2763_v36 = vmul.f32 1.442695, %v2758_v25  ;;  %v2959_v53 = vsub.f32 0.0, %v2955_v28  ;;  %18699 = vst [vmem:[#allocation52_spill] sm:$0xff] %v16208_v31 }
 0x1c5   :  { %v2756_v16 = vadd.f32 %v2752_v14, %v14412_v61  ;;  %v2953_v49 = vmul.f32 %v2949_v33, %v14382_v55  ;;  %11795 = vmatprep.mubr.msk.f32.mxu1 %vm115_vm0, %v15548_v50  ;;  %v16073_v3 = vpop.eup %12830  ;;  %v2965_v38 = vmul.f32 1.442695, %v2960_v7  ;;  %v2958_v4 = vadd.f32 %v2954_v39, %v14412_v61  ;;  %v16077_v43 = vpop.f32.mrb[114].mxu0  ;;  %v16087_v50 = vld [vmem:[%s18516_s1 + $0x68] sm:$0xff]  ;;  %v16125_v33 = vld [vmem:[%s18516_s1 + $0x78] sm:$0xff]  ;;  %v9581_v7 = vld [vmem:[%s18515_s0 + $0x4c0] sm:$0xff] }
 0x1c6   :  { %18696 = vst [vmem:[#allocation49_spill] sm:$0xff] %v16073_v3  ;;  %v2761_v23 = vmul.f32 1.442695, %v2757_v5  ;;  %v2755_v15 = vadd.f32 %v2751_v52, %v14424_v2  ;;  %v16079_v41 = vpop.eup %12832  ;;  %12836 = vpow2.f32 %v2763_v36  ;;  %v2963_v48 = vmul.f32 1.442695, %v2959_v53  ;;  %v16082_v17 = vpop.f32.mrb[115].mxu0 }
 0x1c7   :  { %18697 = vst [vmem:[#allocation50_spill] sm:$0xff] %v16079_v41  ;;  %v2760_v60 = vsub.f32 0.0, %v2756_v16  ;;  %v2957_v11 = vadd.f32 %v2953_v49, %v14424_v2  ;;  %11762 = vmatmul.mubr.msk.f32.gmra.mrb[220].mxu0 %vm115_vm0, %v16087_v50  ;;  %v16091_v56 = vpop.f32.mrb[114].mxu1  ;;  %v16093_v51 = vpop.eup %12834  ;;  %12838 = vpow2.f32 %v2965_v38  ;;  %v2962_v0 = vsub.f32 0.0, %v2958_v4  ;;  %v9582_v5 = vld [vmem:[%s18515_s0 + $0x4c8] sm:$0xff]  ;;  %v16148_v16 = vld [vmem:[%s18516_s1] sm:$0xff] }
 0x1c8   :  { %18698 = vst [vmem:[#allocation51_spill] sm:$0xff] %v16093_v51  ;;  %v2759_v62 = vsub.f32 0.0, %v2755_v15  ;;  %11796 = vmatmul.mubr.msk.f32.gmra.mrb[220].mxu1 %vm115_vm0, %v16087_v50  ;;  %v16097_v37 = vpop.f32.mrb[115].mxu1  ;;  %11764 = vmatprep.mubr.msk.f32.mxu0 %vm115_vm0, %v16102_v45  ;;  %12840 = vpow2.f32 %v2761_v23  ;;  %v9603_v49 = vld [vmem:[%s18515_s0 + $0x4e8] sm:$0xff]  ;;  %v9604_v38 = vld [vmem:[%s18515_s0 + $0x4f0] sm:$0xff]  ;;  %v12412_v15 = vpack.c.bf16 %v9582_v5, %v9581_v7 }
 0x1c9   :  { %v2767_v26 = vmul.f32 1.442695, %v2760_v60  ;;  %v2961_v47 = vsub.f32 0.0, %v2957_v11  ;;  %11798 = vmatprep.mubr.msk.f32.mxu1 %vm115_vm0, %v16102_v45  ;;  %12842 = vpow2.f32 %v2963_v48  ;;  %v2969_v22 = vmul.f32 1.442695, %v2962_v0  ;;  %v16112_v40 = vpop.f32.mrb[116].mxu0 }
 0x1ca   :  { %v2765_v32 = vmul.f32 1.442695, %v2759_v62  ;;  %v16118_v14 = vpop.f32.mrb[116].mxu1  ;;  %v16120_v21 = vpop.f32.mrb[117].mxu0  ;;  %v16173_v0 = vld [vmem:[%s18516_s1 + $0x8] sm:$0xff]  ;;  %v12420_v62 = vpack.c.bf16 %v9604_v38, %v9603_v49  ;;  %v9646_v36 = vld [vmem:[%s18515_s0 + $0x530] sm:$0xff] }
 0x1cb   :  { %12844 = vpow2.f32 %v2767_v26  ;;  %v2967_v25 = vmul.f32 1.442695, %v2961_v47  ;;  %11765 = vmatmul.mubr.msk.f32.gmra.mrb[222].mxu0 %vm115_vm0, %v16125_v33  ;;  %v16141_v53 = vpop.f32.mrb[117].mxu1  ;;  %v9583_v38 = vld [vmem:[%s18515_s0 + $0x4d0] sm:$0xf]  ;;  %v16225_v26 = vld [vmem:[%s18516_s1 + $0x20] sm:$0xff] }
 0x1cc   :  { %12846 = vpow2.f32 %v2969_v22  ;;  %11799 = vmatmul.mubr.msk.f32.gmra.mrb[222].mxu1 %vm115_vm0, %v16125_v33  ;;  %11811 = vmatprep.mubr.msk.f32.mxu0 %vm115_vm0, %v16148_v16  ;;  %v9605_v23 = vld [vmem:[%s18515_s0 + $0x4f8] sm:$0xf] }
 0x1cd   :  { %12848 = vpow2.f32 %v2765_v32  ;;  %11845 = vmatprep.mubr.msk.f32.mxu1 %vm115_vm0, %v16148_v16  ;;  %v16162_v4 = vpop.f32.mrb[118].mxu0  ;;  %v16188_v32 = vld [vmem:[%s18516_s1 + $0x10] sm:$0xff] }
 0x1ce   :  { %12850 = vpow2.f32 %v2967_v25  ;;  %v16166_v60 = vpop.f32.mrb[118].mxu1  ;;  %v16168_v11 = vpop.f32.mrb[119].mxu0 }
 0x1cf   :  { %11812 = vmatmul.mubr.msk.f32.vlgmr.msra.gmra.mrb[224].mxu0 %vm115_vm0, %v16173_v0  ;;  %v16181_v22 = vpop.f32.mrb[119].mxu1 }
 0x1d0   :  { %11846 = vmatmul.mubr.msk.f32.vlgmr.msra.gmra.mrb[224].mxu1 %vm115_vm0, %v16173_v0  ;;  %11814 = vmatprep.mubr.msk.f32.mxu0 %vm115_vm0, %v16188_v32  ;;  %v12837_v25 = vpop.eup %12836 }
 0x1d1   :  { %11848 = vmatprep.mubr.msk.f32.mxu1 %vm115_vm0, %v16188_v32  ;;  %12411 = vmatpush3.bf16.msra.mxu0 %v15970_v44  ;;  %v12839_v5 = vpop.eup %12838  ;;  %v16197_v49 = vpop.f32.mrb[120].mxu0  ;;  %v2770_v59 = vadd.f32 1.0, %v12837_v25  ;;  %v9624_v25 = vld [vmem:[%s18515_s0 + $0x508] sm:$0xff] }
 0x1d2   :  { %12419 = vmatpush3.bf16.msra.mxu1 %v15977_v29  ;;  %12413 = vmatprep.subr.bf16.mxu0 %v12412_v15  ;;  %v12841_v39 = vpop.eup %12840  ;;  %v16203_v6 = vpop.f32.mrb[121].mxu0  ;;  %v9623_v29 = vld [vmem:[%s18515_s0 + $0x500] sm:$0xff]  ;;  %v2972_v47 = vadd.f32 1.0, %v12839_v5  ;;  %v9645_v5 = vld [vmem:[%s18515_s0 + $0x528] sm:$0xff] }
 0x1d3   :  { %11815 = vmatmul.mubr.msk.f32.gmra.mrb[226].mxu0 %vm115_vm0, %v16208_v31  ;;  %v16212_v44 = vpop.f32.mrb[120].mxu1  ;;  %12421 = vmatprep.subr.bf16.mxu1 %v12420_v62  ;;  %v12843_v7 = vpop.eup %12842  ;;  %v2769_v28 = vadd.f32 1.0, %v12841_v39  ;;  %v16245_v20 = vpack.c.bf16 %v9624_v25, %v9623_v29  ;;  %12852 = vrcp.f32 %v2770_v59  ;;  %v16252_v39 = vld [vmem:[%s18516_s1 + $0x28] sm:$0xff]  ;;  %v16268_v29 = vld [vmem:[%s18516_s1 + $0x30] sm:$0xff] }
 0x1d4   :  { %11849 = vmatmul.mubr.msk.f32.gmra.mrb[226].mxu1 %vm115_vm0, %v16208_v31  ;;  %11817 = vmatprep.mubr.msk.f32.mxu0 %vm115_vm0, %v16225_v26  ;;  %v16229_v48 = vpop.f32.mrb[121].mxu1  ;;  %v2971_v41 = vadd.f32 1.0, %v12843_v7  ;;  %12854 = vrcp.f32 %v2972_v47 }
 0x1d5   :  { %v12845_v52 = vpop.eup %12844  ;;  %11851 = vmatprep.mubr.msk.f32.mxu1 %vm115_vm0, %v16225_v26  ;;  %12415 = vmatpush3.bf16.msra.mxu0 %v12412_v15  ;;  %v16242_v12 = vpop.f32.mrb[122].mxu0  ;;  %12856 = vrcp.f32 %v2769_v28 }
 0x1d6   :  { %v12847_v51 = vpop.eup %12846  ;;  %12423 = vmatpush3.bf16.msra.mxu1 %v12420_v62  ;;  %11877 = vmatprep.subr.msk.mxu0 %vm164_vm1, %v9583_v38  ;;  %v2772_v13 = vadd.f32 1.0, %v12845_v52  ;;  %v16247_v1 = vpop.f32.mrb[123].mxu0  ;;  %v16259_v62 = vpack.c.bf16 %v9646_v36, %v9645_v5  ;;  %12858 = vrcp.f32 %v2971_v41 }
 0x1d7   :  { %v12849_v3 = vpop.eup %12848  ;;  %11818 = vmatmul.mubr.msk.f32.gmra.mrb[228].mxu0 %vm115_vm0, %v16252_v39  ;;  %v16256_v15 = vpop.f32.mrb[122].mxu1  ;;  %11911 = vmatprep.subr.msk.mxu1 %vm164_vm1, %v9605_v23  ;;  %v2974_v25 = vadd.f32 1.0, %v12847_v51  ;;  %v16281_v51 = vld [vmem:[%s18516_s1 + $0x38] sm:$0xff] }
 0x1d8   :  { %v12851_v7 = vpop.eup %12850  ;;  %v2771_v59 = vadd.f32 1.0, %v12849_v3  ;;  %11852 = vmatmul.mubr.msk.f32.gmra.mrb[228].mxu1 %vm115_vm0, %v16252_v39  ;;  %v16263_v52 = vpop.f32.mrb[123].mxu1  ;;  %11820 = vmatprep.mubr.msk.f32.mxu0 %vm115_vm0, %v16268_v29  ;;  %12860 = vrcp.f32 %v2772_v13 }
 0x1d9   :  { %11854 = vmatprep.mubr.msk.f32.mxu1 %vm115_vm0, %v16268_v29  ;;  %11878 = vmatpush3.msk.msra.mxu0 %vm164_vm1, %v9583_v38  ;;  %v2973_v3 = vadd.f32 1.0, %v12851_v7  ;;  %v11355_v36 = vpop.f32.mrb[124].mxu0  ;;  %v18702_v7 = vmax.f32 %v16051_v9, %v16120_v21 }
 0x1da   :  { %11912 = vmatpush3.msk.msra.mxu1 %vm164_vm1, %v9605_v23  ;;  %12425 = vmatprep.subr.bf16.mxu0 %v16245_v20  ;;  %v3146_v47 = vmax.f32 %v16197_v49, %v11355_v36  ;;  %v11389_v5 = vpop.f32.mrb[124].mxu1  ;;  %v3122_v35 = vpop.f32.mrb[125].mxu0  ;;  %12862 = vrcp.f32 %v2771_v59  ;;  %v16293_v23 = vld [vmem:[%s18516_s1 + $0x40] sm:$0xff]  ;;  %v18700_v49 = vmax.f32 %v16040_v27, %v16112_v40  ;;  %v18703_v27 = vmax.f32 %v16065_v63, %v16141_v53 }
 0x1db   :  { %11821 = vmatmul.mubr.msk.f32.gmra.mrb[230].mxu0 %vm115_vm0, %v16281_v51  ;;  %12433 = vmatprep.subr.bf16.mxu1 %v16259_v62  ;;  %v3348_v41 = vmax.f32 %v16212_v44, %v11389_v5  ;;  %v3145_v28 = vmax.f32 %v16203_v6, %v3122_v35  ;;  %v3324_v13 = vpop.f32.mrb[125].mxu1  ;;  %12864 = vrcp.f32 %v2974_v25  ;;  %v18701_v35 = vmax.f32 %v16055_v58, %v16118_v14  ;;  %v16317_v58 = vld [vmem:[%s18516_s1 + $0x48] sm:$0xff] }
 0x1dc   :  { %11855 = vmatmul.mubr.msk.f32.gmra.mrb[230].mxu1 %vm115_vm0, %v16281_v51  ;;  %11823 = vmatprep.mubr.msk.f32.mxu0 %vm115_vm0, %v16293_v23  ;;  %v3150_v38 = vmax.f32 %v18700_v49, %v3146_v47  ;;  %v3347_v44 = vmax.f32 %v16229_v48, %v3324_v13  ;;  %12866 = vrcp.f32 %v2973_v3 }
 0x1dd   :  { %11857 = vmatprep.mubr.msk.f32.mxu1 %vm115_vm0, %v16293_v23  ;;  %v3352_v6 = vmax.f32 %v18701_v35, %v3348_v41  ;;  %v3149_v59 = vmax.f32 %v18702_v7, %v3145_v28  ;;  %v11358_v36 = vpop.f32.mrb[126].mxu0  ;;  %v18705_v28 = vmax.f32 %v16077_v43, %v16162_v4  ;;  %v18707_v43 = vmax.f32 %v16091_v56, %v16166_v60 }
 0x1de   :  { %v3154_v25 = vmul.f32 %v3150_v38, %v14354_v24  ;;  %v3351_v40 = vmax.f32 %v18703_v27, %v3347_v44  ;;  %v3148_v48 = vmax.f32 %v16242_v12, %v11358_v36  ;;  %v11392_v47 = vpop.f32.mrb[126].mxu1  ;;  %v3132_v5 = vpop.f32.mrb[127].mxu0  ;;  %v18710_v56 = vmax.f32 %v16097_v37, %v16181_v22  ;;  %v16383_v22 = vld [vmem:[%s18516_s1 + $0x60] sm:$0xff] }
 0x1df   :  { %11824 = vmatmul.mubr.msk.f32.gmra.mrb[232].mxu0 %vm115_vm0, %v16317_v58  ;;  %v3356_v9 = vmul.f32 %v3352_v6, %v14354_v24  ;;  %v3153_v14 = vmul.f32 %v3149_v59, %v14318_v10  ;;  %v3350_v21 = vmax.f32 %v16256_v15, %v11392_v47  ;;  %v3147_v63 = vmax.f32 %v16247_v1, %v3132_v5  ;;  %v3334_v53 = vpop.f32.mrb[127].mxu1  ;;  %v16327_v12 = vpop.eup %12852  ;;  %v16338_v1 = vld [vmem:[%s18516_s1 + $0x50] sm:$0xff] }
 0x1e0   :  { %11858 = vmatmul.mubr.msk.f32.gmra.mrb[232].mxu1 %vm115_vm0, %v16317_v58  ;;  %18704 = vst [vmem:[#allocation53_spill] sm:$0xff] %v16327_v12  ;;  %v3158_v3 = vadd.f32 %v3154_v25, %v14341_v18  ;;  %v3355_v41 = vmul.f32 %v3351_v40, %v14318_v10  ;;  %v3152_v13 = vmax.f32 %v18705_v28, %v3148_v48  ;;  %v16342_v15 = vpop.eup %12854 }
 0x1e1   :  { %v3349_v49 = vmax.f32 %v16263_v52, %v3334_v53  ;;  %11826 = vmatprep.mubr.msk.f32.mxu0 %vm115_vm0, %v16338_v1  ;;  %18706 = vst [vmem:[#allocation54_spill] sm:$0xff] %v16342_v15  ;;  %v3360_v38 = vadd.f32 %v3356_v9, %v14341_v18  ;;  %v3157_v44 = vadd.f32 %v3153_v14, %v14298_v57  ;;  %v16352_v6 = vpop.f32.mrb[128].mxu0  ;;  %v16356_v7 = vpop.eup %12856  ;;  %v9689_v15 = vld [vmem:[%s18515_s0 + $0x578] sm:$0xff] }
 0x1e2   :  { %v3354_v4 = vmax.f32 %v18707_v43, %v3350_v21  ;;  %v18708_v52 = vmax.f32 %v16082_v17, %v16168_v11  ;;  %11860 = vmatprep.mubr.msk.f32.mxu1 %vm115_vm0, %v16338_v1  ;;  %18709 = vst [vmem:[#allocation55_spill] sm:$0xff] %v16356_v7  ;;  %v3162_v59 = vsub.f32 0.0, %v3158_v3  ;;  %v3359_v36 = vadd.f32 %v3355_v41, %v14298_v57  ;;  %v16363_v27 = vpop.f32.mrb[129].mxu0  ;;  %v16368_v17 = vld [vmem:[%s18516_s1 + $0x58] sm:$0xff]  ;;  %v16372_v11 = vpop.f32.mrb[128].mxu1 }
 0x1e3   :  { %v3156_v25 = vmul.f32 %v3152_v13, %v14371_v34  ;;  %v3353_v60 = vmax.f32 %v18710_v56, %v3349_v49  ;;  %11827 = vmatmul.mubr.msk.f32.gmra.mrb[234].mxu0 %vm115_vm0, %v16368_v17  ;;  %v16374_v40 = vpop.eup %12858  ;;  %v3364_v48 = vsub.f32 0.0, %v3360_v38  ;;  %v3161_v47 = vsub.f32 0.0, %v3157_v44  ;;  %v16387_v9 = vpop.f32.mrb[129].mxu1 }
 0x1e4   :  { %v3151_v35 = vmax.f32 %v18708_v52, %v3147_v63  ;;  %18711 = vst [vmem:[#allocation56_spill] sm:$0xff] %v16374_v40  ;;  %v3358_v5 = vmul.f32 %v3354_v4, %v14371_v34  ;;  %11861 = vmatmul.mubr.msk.f32.gmra.mrb[234].mxu1 %vm115_vm0, %v16368_v17  ;;  %11829 = vmatprep.mubr.msk.f32.mxu0 %vm115_vm0, %v16383_v22  ;;  %v16389_v14 = vpop.eup %12860  ;;  %v3167_v21 = vmul.f32 1.442695, %v3162_v59  ;;  %v3363_v63 = vsub.f32 0.0, %v3359_v36  ;;  %v9649_v40 = vld [vmem:[%s18515_s0 + $0x548] sm:$0xf] }
 0x1e5   :  { %18712 = vst [vmem:[#allocation57_spill] sm:$0xff] %v16389_v14  ;;  %v3160_v53 = vadd.f32 %v3156_v25, %v14412_v61  ;;  %v3357_v3 = vmul.f32 %v3353_v60, %v14382_v55  ;;  %11863 = vmatprep.mubr.msk.f32.mxu1 %vm115_vm0, %v16383_v22  ;;  %v16395_v41 = vpop.eup %12862  ;;  %v3369_v28 = vmul.f32 1.442695, %v3364_v48  ;;  %v3165_v13 = vmul.f32 1.442695, %v3161_v47  ;;  %v16399_v44 = vpop.f32.mrb[130].mxu0 }
 0x1e6   :  { %v3155_v37 = vmul.f32 %v3151_v35, %v14382_v55  ;;  %18713 = vst [vmem:[#allocation58_spill] sm:$0xff] %v16395_v41  ;;  %v3362_v49 = vadd.f32 %v3358_v5, %v14412_v61  ;;  %v16401_v43 = vpop.eup %12864  ;;  %12868 = vpow2.f32 %v3167_v21  ;;  %v3367_v4 = vmul.f32 1.442695, %v3363_v63  ;;  %v16404_v59 = vpop.f32.mrb[131].mxu0 }
 0x1e7   :  { %18714 = vst [vmem:[#allocation59_spill] sm:$0xff] %v16401_v43  ;;  %v3164_v52 = vsub.f32 0.0, %v3160_v53  ;;  %v3361_v35 = vadd.f32 %v3357_v3, %v14424_v2  ;;  %11830 = vmatmul.mubr.msk.f32.gmra.mrb[236].mxu0 %vm115_vm0, %v16087_v50  ;;  %v16408_v36 = vpop.f32.mrb[130].mxu1  ;;  %v16410_v25 = vpop.eup %12866  ;;  %12870 = vpow2.f32 %v3369_v28  ;;  %v9647_v28 = vld [vmem:[%s18515_s0 + $0x538] sm:$0xff] }
 0x1e8   :  { %v3159_v38 = vadd.f32 %v3155_v37, %v14424_v2  ;;  %18715 = vst [vmem:[#allocation60_spill] sm:$0xff] %v16410_v25  ;;  %v3366_v56 = vsub.f32 0.0, %v3362_v49  ;;  %11864 = vmatmul.mubr.msk.f32.gmra.mrb[236].mxu1 %vm115_vm0, %v16087_v50  ;;  %v16414_v48 = vpop.f32.mrb[131].mxu1  ;;  %11832 = vmatprep.mubr.msk.f32.mxu0 %vm115_vm0, %v16102_v45  ;;  %12872 = vpow2.f32 %v3165_v13 }
 0x1e9   :  { %v3171_v5 = vmul.f32 1.442695, %v3164_v52  ;;  %v3365_v37 = vsub.f32 0.0, %v3361_v35  ;;  %11866 = vmatprep.mubr.msk.f32.mxu1 %vm115_vm0, %v16102_v45  ;;  %12874 = vpow2.f32 %v3367_v4  ;;  %v16424_v3 = vpop.f32.mrb[132].mxu0  ;;  %v9625_v4 = vld [vmem:[%s18515_s0 + $0x510] sm:$0xff]  ;;  %v9626_v35 = vld [vmem:[%s18515_s0 + $0x518] sm:$0xff] }
 0x1ea   :  { %v3163_v60 = vsub.f32 0.0, %v3159_v38  ;;  %v3373_v63 = vmul.f32 1.442695, %v3366_v56  ;;  %v16430_v38 = vpop.f32.mrb[132].mxu1  ;;  %v16432_v52 = vpop.f32.mrb[133].mxu0  ;;  %v12428_v47 = vpack.c.bf16 %v9626_v35, %v9625_v4 }
 0x1eb   :  { %12876 = vpow2.f32 %v3171_v5  ;;  %v3371_v49 = vmul.f32 1.442695, %v3365_v37  ;;  %11833 = vmatmul.mubr.msk.f32.gmra.mrb[238].mxu0 %vm115_vm0, %v16125_v33  ;;  %v16448_v37 = vpop.f32.mrb[133].mxu1 }
 0x1ec   :  { %v3169_v53 = vmul.f32 1.442695, %v3163_v60  ;;  %12878 = vpow2.f32 %v3373_v63  ;;  %11867 = vmatmul.mubr.msk.f32.gmra.mrb[238].mxu1 %vm115_vm0, %v16125_v33  ;;  %11879 = vmatprep.mubr.msk.f32.mxu0 %vm115_vm0, %v16148_v16  ;;  %v9648_v63 = vld [vmem:[%s18515_s0 + $0x540] sm:$0xff] }
 0x1ed   :  { %11913 = vmatprep.mubr.msk.f32.mxu1 %vm115_vm0, %v16148_v16  ;;  %v16464_v21 = vpop.f32.mrb[134].mxu0 }
 0x1ee   :  { %12880 = vpow2.f32 %v3169_v53  ;;  %v16468_v60 = vpop.f32.mrb[134].mxu1  ;;  %v16470_v13 = vpop.f32.mrb[135].mxu0  ;;  %v12436_v53 = vpack.c.bf16 %v9648_v63, %v9647_v28 }
 0x1ef   :  { %12882 = vpow2.f32 %v3371_v49  ;;  %11880 = vmatmul.mubr.msk.f32.vlgmr.msra.gmra.mrb[240].mxu0 %vm115_vm0, %v16173_v0  ;;  %v16478_v25 = vpop.f32.mrb[135].mxu1  ;;  %v9627_v49 = vld [vmem:[%s18515_s0 + $0x520] sm:$0xf] }
 0x1f0   :  { %11914 = vmatmul.mubr.msk.f32.vlgmr.msra.gmra.mrb[240].mxu1 %vm115_vm0, %v16173_v0  ;;  %11882 = vmatprep.mubr.msk.f32.mxu0 %vm115_vm0, %v16188_v32  ;;  %v12869_v4 = vpop.eup %12868 }
 0x1f1   :  { %11916 = vmatprep.mubr.msk.f32.mxu1 %vm115_vm0, %v16188_v32  ;;  %12427 = vmatpush3.bf16.msra.mxu0 %v16245_v20  ;;  %v12871_v28 = vpop.eup %12870  ;;  %v16489_v63 = vpop.f32.mrb[136].mxu0  ;;  %v3174_v5 = vadd.f32 1.0, %v12869_v4  ;;  %v9667_v20 = vld [vmem:[%s18515_s0 + $0x550] sm:$0xff] }
 0x1f2   :  { %12435 = vmatpush3.bf16.msra.mxu1 %v16259_v62  ;;  %12429 = vmatprep.subr.bf16.mxu0 %v12428_v47  ;;  %v12873_v56 = vpop.eup %12872  ;;  %v16495_v43 = vpop.f32.mrb[137].mxu0  ;;  %v9668_v62 = vld [vmem:[%s18515_s0 + $0x558] sm:$0xff]  ;;  %v3376_v19 = vadd.f32 1.0, %v12871_v28 }
 0x1f3   :  { %11883 = vmatmul.mubr.msk.f32.gmra.mrb[242].mxu0 %vm115_vm0, %v16208_v31  ;;  %v16499_v35 = vpop.f32.mrb[136].mxu1  ;;  %12437 = vmatprep.subr.bf16.mxu1 %v12436_v53  ;;  %v12875_v46 = vpop.eup %12874  ;;  %v3173_v42 = vadd.f32 1.0, %v12873_v56  ;;  %v16525_v30 = vpack.c.bf16 %v9668_v62, %v9667_v20  ;;  %12884 = vrcp.f32 %v3174_v5 }
 0x1f4   :  { %11917 = vmatmul.mubr.msk.f32.gmra.mrb[242].mxu1 %vm115_vm0, %v16208_v31  ;;  %11885 = vmatprep.mubr.msk.f32.mxu0 %vm115_vm0, %v16225_v26  ;;  %v3708_v4 = vpop.f32.mrb[137].mxu1  ;;  %v3375_v14 = vadd.f32 1.0, %v12875_v46  ;;  %12886 = vrcp.f32 %v3376_v19 }
 0x1f5   :  { %v12877_v28 = vpop.eup %12876  ;;  %11919 = vmatprep.mubr.msk.f32.mxu1 %vm115_vm0, %v16225_v26  ;;  %12431 = vmatpush3.bf16.msra.mxu0 %v12428_v47  ;;  %v16532_v47 = vpack.c.bf16 %v9690_v54, %v9689_v15  ;;  %12888 = vrcp.f32 %v3173_v42 }
 0x1f6   :  { %v12879_v41 = vpop.eup %12878  ;;  %v16522_v8 = vpop.f32.mrb[138].mxu0  ;;  %12439 = vmatpush3.bf16.msra.mxu1 %v12436_v53  ;;  %11945 = vmatprep.subr.msk.mxu0 %vm164_vm1, %v9627_v49  ;;  %v3176_v12 = vadd.f32 1.0, %v12877_v28  ;;  %12890 = vrcp.f32 %v3375_v14 }
 0x1f7   :  { %v16527_v31 = vpop.f32.mrb[139].mxu0  ;;  %11886 = vmatmul.mubr.msk.f32.gmra.mrb[244].mxu0 %vm115_vm0, %v16252_v39  ;;  %v11454_v56 = vpop.f32.mrb[138].mxu1  ;;  %11979 = vmatprep.subr.msk.mxu1 %vm164_vm1, %v9649_v40  ;;  %v3378_v5 = vadd.f32 1.0, %v12879_v41 }
 0x1f8   :  { %v12881_v7 = vpop.eup %12880  ;;  %11920 = vmatmul.mubr.msk.f32.gmra.mrb[244].mxu1 %vm115_vm0, %v16252_v39  ;;  %v3718_v20 = vpop.f32.mrb[139].mxu1  ;;  %11888 = vmatprep.mubr.msk.f32.mxu0 %vm115_vm0, %v16268_v29  ;;  %12892 = vrcp.f32 %v3176_v12  ;;  %v18716_v12 = vmax.f32 %v16352_v6, %v16424_v3  ;;  %v18719_v6 = vmax.f32 %v16387_v9, %v16448_v37 }
 0x1f9   :  { %v12883_v46 = vpop.eup %12882  ;;  %v3175_v53 = vadd.f32 1.0, %v12881_v7  ;;  %11922 = vmatprep.mubr.msk.f32.mxu1 %vm115_vm0, %v16268_v29  ;;  %11946 = vmatpush3.msk.msra.mxu0 %vm164_vm1, %v9627_v49 }
 0x1fa   :  { %v3377_v54 = vadd.f32 1.0, %v12883_v46  ;;  %v11423_v15 = vpop.f32.mrb[140].mxu0  ;;  %11980 = vmatpush3.msk.msra.mxu1 %vm164_vm1, %v9649_v40  ;;  %12441 = vmatprep.subr.bf16.mxu0 %v16525_v30  ;;  %v11457_v7 = vpop.f32.mrb[140].mxu1 }
 0x1fb   :  { %v3550_v19 = vmax.f32 %v16489_v63, %v11423_v15  ;;  %v3526_v62 = vpop.f32.mrb[141].mxu0  ;;  %11889 = vmatmul.mubr.msk.f32.gmra.mrb[246].mxu0 %vm115_vm0, %v16281_v51  ;;  %12449 = vmatprep.subr.bf16.mxu1 %v16532_v47  ;;  %12894 = vrcp.f32 %v3175_v53  ;;  %v3752_v42 = vmax.f32 %v16499_v35, %v11457_v7  ;;  %v3728_v41 = vpop.f32.mrb[141].mxu1  ;;  %v18718_v63 = vmax.f32 %v16363_v27, %v16432_v52 }
 0x1fc   :  { %v3549_v14 = vmax.f32 %v16495_v43, %v3526_v62  ;;  %11923 = vmatmul.mubr.msk.f32.gmra.mrb[246].mxu1 %vm115_vm0, %v16281_v51  ;;  %11891 = vmatprep.mubr.msk.f32.mxu0 %vm115_vm0, %v16293_v23  ;;  %12896 = vrcp.f32 %v3378_v5  ;;  %v3751_v49 = vmax.f32 %v3708_v4, %v3728_v41  ;;  %v18717_v43 = vmax.f32 %v16372_v11, %v16430_v38 }
 0x1fd   :  { %v3554_v40 = vmax.f32 %v18716_v12, %v3550_v19  ;;  %11925 = vmatprep.mubr.msk.f32.mxu1 %vm115_vm0, %v16293_v23  ;;  %12898 = vrcp.f32 %v3377_v54  ;;  %v16576_v9 = vpop.eup %12884  ;;  %v18720_v19 = vmax.f32 %v16399_v44, %v16464_v21  ;;  %v18722_v12 = vmax.f32 %v16404_v59, %v16470_v13 }
 0x1fe   :  { %v3756_v35 = vmax.f32 %v18717_v43, %v3752_v42  ;;  %v3553_v28 = vmax.f32 %v18718_v63, %v3549_v14  ;;  %v11426_v46 = vpop.f32.mrb[142].mxu0  ;;  %v3755_v3 = vmax.f32 %v18719_v6, %v3751_v49  ;;  %v11460_v5 = vpop.f32.mrb[142].mxu1  ;;  %v18721_v14 = vmax.f32 %v16408_v36, %v16468_v60 }
 0x1ff   :  { %v3558_v53 = vmul.f32 %v3554_v40, %v14354_v24  ;;  %v3552_v4 = vmax.f32 %v16522_v8, %v11426_v46  ;;  %v3536_v15 = vpop.f32.mrb[143].mxu0  ;;  %11892 = vmatmul.mubr.msk.f32.gmra.mrb[248].mxu0 %vm115_vm0, %v16317_v58  ;;  %v3754_v27 = vmax.f32 %v11454_v56, %v11460_v5  ;;  %v3738_v54 = vpop.f32.mrb[143].mxu1  ;;  %v18723_v36 = vmax.f32 %v16414_v48, %v16478_v25 }
 0x200   :  { %v3760_v11 = vmul.f32 %v3756_v35, %v14354_v24  ;;  %v3557_v38 = vmul.f32 %v3553_v28, %v14318_v10  ;;  %v3551_v52 = vmax.f32 %v16527_v31, %v3536_v15  ;;  %11926 = vmatmul.mubr.msk.f32.gmra.mrb[248].mxu1 %vm115_vm0, %v16317_v58  ;;  %v3759_v37 = vmul.f32 %v3755_v3, %v14318_v10  ;;  %v16585_v56 = vpop.eup %12886 }
 0x201   :  { %v3562_v8 = vadd.f32 %v3558_v53, %v14341_v18  ;;  %v3556_v7 = vmax.f32 %v18720_v19, %v3552_v4  ;;  %v3753_v62 = vmax.f32 %v3718_v20, %v3738_v54  ;;  %11894 = vmatprep.mubr.msk.f32.mxu0 %vm115_vm0, %v16338_v1  ;;  %v3758_v41 = vmax.f32 %v18721_v14, %v3754_v27  ;;  %v16599_v21 = vpop.eup %12888 }
 0x202   :  { %v3764_v31 = vadd.f32 %v3760_v11, %v14341_v18  ;;  %v3561_v42 = vadd.f32 %v3557_v38, %v14298_v57  ;;  %v3555_v40 = vmax.f32 %v18722_v12, %v3551_v52  ;;  %v16595_v44 = vpop.f32.mrb[144].mxu0  ;;  %11928 = vmatprep.mubr.msk.f32.mxu1 %vm115_vm0, %v16338_v1  ;;  %v3763_v49 = vadd.f32 %v3759_v37, %v14298_v57  ;;  %v16610_v59 = vpop.f32.mrb[144].mxu1 }
 0x203   :  { %v3566_v20 = vsub.f32 0.0, %v3562_v8  ;;  %v3560_v43 = vmul.f32 %v3556_v7, %v14371_v34  ;;  %v3757_v60 = vmax.f32 %v18723_v36, %v3753_v62  ;;  %v16606_v35 = vpop.f32.mrb[145].mxu0  ;;  %11895 = vmatmul.mubr.msk.f32.gmra.mrb[250].mxu0 %vm115_vm0, %v16368_v17  ;;  %v16612_v13 = vpop.eup %12890  ;;  %v3762_v46 = vmul.f32 %v3758_v41, %v14371_v34 }
 0x204   :  { %v3768_v63 = vsub.f32 0.0, %v3764_v31  ;;  %v3565_v28 = vsub.f32 0.0, %v3561_v42  ;;  %v3559_v53 = vmul.f32 %v3555_v40, %v14382_v55  ;;  %11929 = vmatmul.mubr.msk.f32.gmra.mrb[250].mxu1 %vm115_vm0, %v16368_v17  ;;  %11897 = vmatprep.mubr.msk.f32.mxu0 %vm115_vm0, %v16383_v22  ;;  %v16620_v25 = vpop.f32.mrb[145].mxu1  ;;  %v16622_v48 = vpop.eup %12892  ;;  %v3767_v3 = vsub.f32 0.0, %v3763_v49 }
 0x205   :  { %v3571_v6 = vmul.f32 1.442695, %v3566_v20  ;;  %v3564_v4 = vadd.f32 %v3560_v43, %v14412_v61  ;;  %v3761_v5 = vmul.f32 %v3757_v60, %v14382_v55  ;;  %11931 = vmatprep.mubr.msk.f32.mxu1 %vm115_vm0, %v16383_v22  ;;  %v16628_v15 = vpop.eup %12894  ;;  %v3766_v27 = vadd.f32 %v3762_v46, %v14412_v61  ;;  %v18729_v46 = vld [vmem:[#allocation53_spill] sm:$0xff] }
 0x206   :  { %v3773_v11 = vmul.f32 1.442695, %v3768_v63  ;;  %v3569_v38 = vmul.f32 1.442695, %v3565_v28  ;;  %v3563_v52 = vadd.f32 %v3559_v53, %v14424_v2  ;;  %v16632_v54 = vpop.f32.mrb[146].mxu0  ;;  %v16634_v8 = vpop.eup %12896 }
 0x207   :  { %12900 = vpow2.f32 %v3571_v6  ;;  %v3771_v37 = vmul.f32 1.442695, %v3767_v3  ;;  %v3568_v19 = vsub.f32 0.0, %v3564_v4  ;;  %v3765_v7 = vadd.f32 %v3761_v5, %v14424_v2  ;;  %v16637_v62 = vpop.f32.mrb[147].mxu0  ;;  %11898 = vmatmul.mubr.msk.f32.gmra.mrb[252].mxu0 %vm115_vm0, %v16087_v50  ;;  %v16641_v31 = vpop.f32.mrb[146].mxu1  ;;  %v9670_v3 = vld [vmem:[%s18515_s0 + $0x568] sm:$0xff] }
 0x208   :  { %v16643_v42 = vpop.eup %12898  ;;  %12902 = vpow2.f32 %v3773_v11  ;;  %v3770_v14 = vsub.f32 0.0, %v3766_v27  ;;  %v3567_v41 = vsub.f32 0.0, %v3563_v52  ;;  %11932 = vmatmul.mubr.msk.f32.gmra.mrb[252].mxu1 %vm115_vm0, %v16087_v50  ;;  %v16647_v12 = vpop.f32.mrb[147].mxu1  ;;  %11900 = vmatprep.mubr.msk.f32.mxu0 %vm115_vm0, %v16102_v45  ;;  %v9691_v27 = vld [vmem:[%s18515_s0 + $0x588] sm:$0xff]  ;;  %v9692_v52 = vld [vmem:[%s18515_s0 + $0x590] sm:$0xff] }
 0x209   :  { %18724 = vst [vmem:[#allocation61_spill] sm:$0xff] %v16643_v42  ;;  %12904 = vpow2.f32 %v3569_v38  ;;  %v3575_v20 = vmul.f32 1.442695, %v3568_v19  ;;  %v3769_v49 = vsub.f32 0.0, %v3765_v7  ;;  %11934 = vmatprep.mubr.msk.f32.mxu1 %vm115_vm0, %v16102_v45  ;;  %v9669_v45 = vld [vmem:[%s18515_s0 + $0x560] sm:$0xff] }
 0x20a   :  { %12906 = vpow2.f32 %v3771_v37  ;;  %v3777_v36 = vmul.f32 1.442695, %v3770_v14  ;;  %v3573_v50 = vmul.f32 1.442695, %v3567_v41  ;;  %v16657_v60 = vpop.f32.mrb[148].mxu0  ;;  %v16663_v53 = vpop.f32.mrb[148].mxu1  ;;  %v12444_v19 = vpack.c.bf16 %v9670_v3, %v9669_v45 }
 0x20b   :  { %12908 = vpow2.f32 %v3575_v20  ;;  %v3775_v28 = vmul.f32 1.442695, %v3769_v49  ;;  %v16665_v6 = vpop.f32.mrb[149].mxu0  ;;  %11901 = vmatmul.mubr.msk.f32.gmra.mrb[254].mxu0 %vm115_vm0, %v16125_v33  ;;  %v16681_v38 = vpop.f32.mrb[149].mxu1  ;;  %v12452_v20 = vpack.c.bf16 %v9692_v52, %v9691_v27  ;;  %v18730_v42 = vld [vmem:[#allocation55_spill] sm:$0xff] }
 0x20c   :  { %12910 = vpow2.f32 %v3777_v36  ;;  %11935 = vmatmul.mubr.msk.f32.gmra.mrb[254].mxu1 %vm115_vm0, %v16125_v33  ;;  %11947 = vmatprep.mubr.msk.f32.mxu0 %vm115_vm0, %v16148_v16 }
 0x20d   :  { %12912 = vpow2.f32 %v3573_v50  ;;  %11981 = vmatprep.mubr.msk.f32.mxu1 %vm115_vm0, %v16148_v16 }
 0x20e   :  { %12914 = vpow2.f32 %v3775_v28  ;;  %v16697_v33 = vpop.f32.mrb[150].mxu0  ;;  %v16701_v14 = vpop.f32.mrb[150].mxu1 }
 0x20f   :  { %v16703_v41 = vpop.f32.mrb[151].mxu0  ;;  %11948 = vmatmul.mubr.msk.f32.vlgmr.msra.gmra.mrb[0].mxu0 %vm115_vm0, %v16173_v0  ;;  %v16711_v36 = vpop.f32.mrb[151].mxu1 }
 0x210   :  { %11982 = vmatmul.mubr.msk.f32.vlgmr.msra.gmra.mrb[0].mxu1 %vm115_vm0, %v16173_v0  ;;  %12443 = vmatpush3.bf16.msra.mxu0 %v16525_v30  ;;  %v18725_v30 = vld [vmem:[#allocation52_spill] sm:$0xff] }
 0x211   :  { %v12901_v50 = vpop.eup %12900  ;;  %12451 = vmatpush3.bf16.msra.mxu1 %v16532_v47  ;;  %11950 = vmatprep.mubr.msk.f32.mxu0 %vm115_vm0, %v16188_v32  ;;  %v9671_v47 = vld [vmem:[%s18515_s0 + $0x570] sm:$0xf] }
 0x212   :  { %v12903_v45 = vpop.eup %12902  ;;  %v11485_v3 = vpop.f32.mrb[152].mxu0  ;;  %11984 = vmatprep.mubr.msk.f32.mxu1 %vm115_vm0, %v16188_v32  ;;  %12445 = vmatprep.subr.bf16.mxu0 %v12444_v19  ;;  %v3578_v52 = vadd.f32 1.0, %v12901_v50  ;;  %v9693_v32 = vld [vmem:[%s18515_s0 + $0x598] sm:$0xf] }
 0x213   :  { %v12905_v27 = vpop.eup %12904  ;;  %12453 = vmatprep.subr.bf16.mxu1 %v12452_v20  ;;  %v3910_v0 = vpop.f32.mrb[153].mxu0  ;;  %11951 = vmatmul.mubr.msk.f32.gmra.mrb[2].mxu0 %vm115_vm0, %v18725_v30  ;;  %v3780_v43 = vadd.f32 1.0, %v12903_v45 }
 0x214   :  { %v11519_v4 = vpop.f32.mrb[152].mxu1  ;;  %v12907_v63 = vpop.eup %12906  ;;  %11985 = vmatmul.mubr.msk.f32.gmra.mrb[2].mxu1 %vm115_vm0, %v18725_v30  ;;  %12447 = vmatpush3.bf16.msra.mxu0 %v12444_v19  ;;  %v3577_v28 = vadd.f32 1.0, %v12905_v27  ;;  %12916 = vrcp.f32 %v3578_v52  ;;  %v18727_v52 = vld [vmem:[#allocation22_spill] sm:$0xff] }
 0x215   :  { %v4112_v50 = vpop.f32.mrb[153].mxu1  ;;  %v12909_v40 = vpop.eup %12908  ;;  %12455 = vmatpush3.bf16.msra.mxu1 %v12452_v20  ;;  %11953 = vmatprep.mubr.msk.f32.mxu0 %vm115_vm0, %v16225_v26  ;;  %v3779_v49 = vadd.f32 1.0, %v12907_v63  ;;  %12918 = vrcp.f32 %v3780_v43  ;;  %v18731_v43 = vpack.c.bf16 %v18729_v46, %v18730_v42  ;;  %v18732_v42 = vmax.f32 %v16595_v44, %v16657_v60 }
 0x216   :  { %v12911_v16 = vpop.eup %12910  ;;  %v11488_v7 = vpop.f32.mrb[154].mxu0  ;;  %11987 = vmatprep.mubr.msk.f32.mxu1 %vm115_vm0, %v16225_v26  ;;  %12013 = vmatprep.subr.msk.mxu0 %vm164_vm1, %v9671_v47  ;;  %v3580_v45 = vadd.f32 1.0, %v12909_v40  ;;  %12920 = vrcp.f32 %v3577_v28  ;;  %v18726_v40 = vld [vmem:[#allocation4_spill] sm:$0xff]  ;;  %v18735_v44 = vmax.f32 %v16620_v25, %v16681_v38 }
 0x217   :  { %v12913_v19 = vpop.eup %12912  ;;  %12047 = vmatprep.subr.msk.mxu1 %vm164_vm1, %v9693_v32  ;;  %v3920_v30 = vpop.f32.mrb[155].mxu0  ;;  %11954 = vmatmul.mubr.msk.f32.gmra.mrb[4].mxu0 %vm115_vm0, %v16252_v39  ;;  %v3782_v63 = vadd.f32 1.0, %v12911_v16  ;;  %v18728_v11 = vpack.c.bf16 %v18726_v40, %v18727_v52  ;;  %12922 = vrcp.f32 %v3779_v49  ;;  %v18738_v52 = vmax.f32 %v16641_v31, %v16701_v14 }
 0x218   :  { %v11522_v20 = vpop.f32.mrb[154].mxu1  ;;  %v12915_v27 = vpop.eup %12914  ;;  %v3579_v37 = vadd.f32 1.0, %v12913_v19  ;;  %11988 = vmatmul.mubr.msk.f32.gmra.mrb[4].mxu1 %vm115_vm0, %v16252_v39  ;;  %12014 = vmatpush3.msk.msra.mxu0 %vm164_vm1, %v9671_v47  ;;  %12924 = vrcp.f32 %v3580_v45  ;;  %v18740_v31 = vmax.f32 %v16647_v12, %v16711_v36 }
 0x219   :  { %v4122_v26 = vpop.f32.mrb[155].mxu1  ;;  %12048 = vmatpush3.msk.msra.mxu1 %vm164_vm1, %v9693_v32  ;;  %12457 = vmatprep.subr.bf16.mxu0 %v18728_v11  ;;  %v3781_v5 = vadd.f32 1.0, %v12915_v27 }
 0x21a   :  { %12489 = vmatprep.subr.bf16.mxu1 %v18731_v43  ;;  %v11491_v19 = vpop.f32.mrb[156].mxu0  ;;  %11956 = vmatprep.mubr.msk.f32.mxu0 %vm115_vm0, %v16268_v29  ;;  %12926 = vrcp.f32 %v3579_v37 }
 0x21b   :  { %v3954_v39 = vmax.f32 %v11485_v3, %v11491_v19  ;;  %v11525_v28 = vpop.f32.mrb[156].mxu1  ;;  %11990 = vmatprep.mubr.msk.f32.mxu1 %vm115_vm0, %v16268_v29  ;;  %v3930_v16 = vpop.f32.mrb[157].mxu0  ;;  %11957 = vmatmul.mubr.msk.f32.gmra.mrb[6].mxu0 %vm115_vm0, %v16281_v51  ;;  %12928 = vrcp.f32 %v3782_v63  ;;  %v18739_v19 = vmax.f32 %v16637_v62, %v16703_v41 }
 0x21c   :  { %v4156_v11 = vmax.f32 %v11519_v4, %v11525_v28  ;;  %v3953_v49 = vmax.f32 %v3910_v0, %v3930_v16  ;;  %v4132_v47 = vpop.f32.mrb[157].mxu1  ;;  %11991 = vmatmul.mubr.msk.f32.gmra.mrb[6].mxu1 %vm115_vm0, %v16281_v51  ;;  %11959 = vmatprep.mubr.msk.f32.mxu0 %vm115_vm0, %v16293_v23  ;;  %12930 = vrcp.f32 %v3781_v5  ;;  %v18733_v4 = vmax.f32 %v16610_v59, %v16663_v53 }
 0x21d   :  { %v3958_v46 = vmax.f32 %v18732_v42, %v3954_v39  ;;  %v4155_v29 = vmax.f32 %v4112_v50, %v4132_v47  ;;  %11993 = vmatprep.mubr.msk.f32.mxu1 %vm115_vm0, %v16293_v23  ;;  %v18734_v51 = vmax.f32 %v16606_v35, %v16665_v6 }
 0x21e   :  { %v4160_v37 = vmax.f32 %v18733_v4, %v4156_v11  ;;  %v11494_v0 = vpop.f32.mrb[158].mxu0  ;;  %v16782_v5 = vpop.eup %12916 }
 0x21f   :  { %v3957_v3 = vmax.f32 %v18734_v51, %v3953_v49  ;;  %v3962_v32 = vmul.f32 %v3958_v46, %v14354_v24  ;;  %v4159_v60 = vmax.f32 %v18735_v44, %v4155_v29  ;;  %v3956_v50 = vmax.f32 %v11488_v7, %v11494_v0  ;;  %v11528_v45 = vpop.f32.mrb[158].mxu1  ;;  %v3940_v27 = vpop.f32.mrb[159].mxu0  ;;  %11960 = vmatmul.mubr.msk.f32.gmra.mrb[8].mxu0 %vm115_vm0, %v16317_v58 }
 0x220   :  { %v4164_v23 = vmul.f32 %v4160_v37, %v14354_v24  ;;  %v4158_v53 = vmax.f32 %v11522_v20, %v11528_v45  ;;  %v3955_v35 = vmax.f32 %v3920_v30, %v3940_v27  ;;  %v4142_v6 = vpop.f32.mrb[159].mxu1  ;;  %11994 = vmatmul.mubr.msk.f32.gmra.mrb[8].mxu1 %vm115_vm0, %v16317_v58  ;;  %v18736_v7 = vmax.f32 %v16632_v54, %v16697_v33  ;;  %v16791_v20 = vpop.eup %12918 }
 0x221   :  { %v3961_v59 = vmul.f32 %v3957_v3, %v14318_v10  ;;  %v3966_v25 = vadd.f32 %v3962_v32, %v14341_v18  ;;  %v4163_v38 = vmul.f32 %v4159_v60, %v14318_v10  ;;  %v4157_v40 = vmax.f32 %v4122_v26, %v4142_v6  ;;  %11962 = vmatprep.mubr.msk.f32.mxu0 %vm115_vm0, %v16338_v1  ;;  %v16805_v33 = vpop.eup %12920 }
 0x222   :  { %v3960_v63 = vmax.f32 %v18736_v7, %v3956_v50  ;;  %18737 = vst [vmem:[#allocation52_spill] sm:$0xff] %v16791_v20  ;;  %v4168_v30 = vadd.f32 %v4164_v23, %v14341_v18  ;;  %v4162_v43 = vmax.f32 %v18738_v52, %v4158_v53  ;;  %v3959_v39 = vmax.f32 %v18739_v19, %v3955_v35  ;;  %v16801_v54 = vpop.f32.mrb[160].mxu0  ;;  %v16818_v41 = vpop.eup %12922  ;;  %v18756_v7 = vld [vmem:[#allocation58_spill] sm:$0xff]  ;;  %v18777_v20 = vld [vmem:[#allocation27_spill] sm:$0xff] }
 0x223   :  { %v3965_v58 = vadd.f32 %v3961_v59, %v14298_v57  ;;  %11996 = vmatprep.mubr.msk.f32.mxu1 %vm115_vm0, %v16338_v1  ;;  %v3970_v26 = vsub.f32 0.0, %v3966_v25  ;;  %v4167_v28 = vadd.f32 %v4163_v38, %v14298_v57  ;;  %v4161_v14 = vmax.f32 %v18740_v31, %v4157_v40  ;;  %v16812_v11 = vpop.f32.mrb[161].mxu0  ;;  %11963 = vmatmul.mubr.msk.f32.gmra.mrb[10].mxu0 %vm115_vm0, %v16368_v17  ;;  %v16816_v62 = vpop.f32.mrb[160].mxu1  ;;  %v16863_v38 = vld [vmem:[%s18516_s1 + $0x70] sm:$0xff]  ;;  %v16886_v31 = vld [vmem:[%s18516_s1 + $0x78] sm:$0xff] }
 0x224   :  { %v3964_v16 = vmul.f32 %v3960_v63, %v14371_v34  ;;  %18741 = vst [vmem:[#allocation4_spill] sm:$0xff] %v16818_v41  ;;  %v4172_v1 = vsub.f32 0.0, %v4168_v30  ;;  %v4166_v47 = vmul.f32 %v4162_v43, %v14371_v34  ;;  %v3963_v42 = vmul.f32 %v3959_v39, %v14382_v55  ;;  %11997 = vmatmul.mubr.msk.f32.gmra.mrb[10].mxu1 %vm115_vm0, %v16368_v17  ;;  %v16826_v12 = vpop.f32.mrb[161].mxu1  ;;  %v16828_v36 = vpop.eup %12924  ;;  %v18755_v30 = vld [vmem:[#allocation57_spill] sm:$0xff] }
 0x225   :  { %v3969_v49 = vsub.f32 0.0, %v3965_v58  ;;  %11965 = vmatprep.mubr.msk.f32.mxu0 %vm115_vm0, %v16383_v22  ;;  %18742 = vst [vmem:[#allocation22_spill] sm:$0xff] %v16828_v36  ;;  %v3975_v46 = vmul.f32 1.442695, %v3970_v26  ;;  %v4171_v29 = vsub.f32 0.0, %v4167_v28  ;;  %v4165_v37 = vmul.f32 %v4161_v14, %v14382_v55  ;;  %11999 = vmatprep.mubr.msk.f32.mxu1 %vm115_vm0, %v16383_v22  ;;  %v16834_v51 = vpop.eup %12926  ;;  %v16848_v22 = vld [vmem:[%s18516_s1 + $0x68] sm:$0xff] }
 0x226   :  { %v3968_v4 = vadd.f32 %v3964_v16, %v14412_v61  ;;  %18743 = vst [vmem:[#allocation53_spill] sm:$0xff] %v16834_v51  ;;  %v4177_v3 = vmul.f32 1.442695, %v4172_v1  ;;  %v4170_v0 = vadd.f32 %v4166_v47, %v14412_v61  ;;  %v3967_v32 = vadd.f32 %v3963_v42, %v14424_v2  ;;  %v16838_v44 = vpop.f32.mrb[162].mxu0  ;;  %v16840_v60 = vpop.eup %12928  ;;  %v13319_v42 = vld [vmem:[%s18516_s1] sm:$0xff] }
 0x227   :  { %v3973_v17 = vmul.f32 1.442695, %v3969_v49  ;;  %18744 = vst [vmem:[#allocation55_spill] sm:$0xff] %v16840_v60  ;;  %12932 = vpow2.f32 %v3975_v46  ;;  %v4175_v50 = vmul.f32 1.442695, %v4171_v29  ;;  %v4169_v27 = vadd.f32 %v4165_v37, %v14424_v2  ;;  %v16843_v23 = vpop.f32.mrb[163].mxu0  ;;  %11966 = vmatmul.mubr.msk.f32.gmra.mrb[12].mxu0 %vm115_vm0, %v16848_v22  ;;  %v16854_v53 = vpop.eup %12930 }
 0x228   :  { %v3972_v45 = vsub.f32 0.0, %v3968_v4  ;;  %v16852_v59 = vpop.f32.mrb[162].mxu1  ;;  %18745 = vst [vmem:[#allocation62_spill] sm:$0xff] %v16854_v53  ;;  %12934 = vpow2.f32 %v4177_v3  ;;  %v4174_v35 = vsub.f32 0.0, %v4170_v0  ;;  %v3971_v6 = vsub.f32 0.0, %v3967_v32  ;;  %12000 = vmatmul.mubr.msk.f32.gmra.mrb[12].mxu1 %vm115_vm0, %v16848_v22  ;;  %11968 = vmatprep.mubr.msk.f32.mxu0 %vm115_vm0, %v16863_v38  ;;  %v18762_v0 = vld [vmem:[#allocation42_spill] sm:$0xff] }
 0x229   :  { %v16858_v25 = vpop.f32.mrb[163].mxu1  ;;  %12936 = vpow2.f32 %v3973_v17  ;;  %v4173_v40 = vsub.f32 0.0, %v4169_v27  ;;  %12002 = vmatprep.mubr.msk.f32.mxu1 %vm115_vm0, %v16863_v38  ;;  %v13320_v17 = vld [vmem:[%s18516_s1 + $0x8] sm:$0xff]  ;;  %v18747_v27 = vld [vmem:[#allocation7_spill] sm:$0xff] }
 0x22a   :  { %v3979_v63 = vmul.f32 1.442695, %v3972_v45  ;;  %12938 = vpow2.f32 %v4175_v50  ;;  %v4181_v58 = vmul.f32 1.442695, %v4174_v35  ;;  %v3977_v52 = vmul.f32 1.442695, %v3971_v6 }
 0x22b   :  { %v16873_v43 = vpop.f32.mrb[164].mxu0  ;;  %v4179_v39 = vmul.f32 1.442695, %v4173_v40  ;;  %v16879_v28 = vpop.f32.mrb[164].mxu1  ;;  %11969 = vmatmul.mubr.msk.f32.gmra.mrb[14].mxu0 %vm115_vm0, %v16886_v31  ;;  %v18746_v45 = vld [vmem:[#allocation6_spill] sm:$0xff]  ;;  %v18749_v40 = vld [vmem:[#allocation37_spill] sm:$0xff] }
 0x22c   :  { %12940 = vpow2.f32 %v3979_v63  ;;  %v16881_v16 = vpop.f32.mrb[165].mxu0  ;;  %v16896_v47 = vpop.f32.mrb[165].mxu1  ;;  %12003 = vmatmul.mubr.msk.f32.gmra.mrb[14].mxu1 %vm115_vm0, %v16886_v31  ;;  %12015 = vmatprep.mubr.msk.f32.mxu0 %vm115_vm0, %v13319_v42  ;;  %v18748_v35 = vpack.c.bf16 %v18746_v45, %v18747_v27  ;;  %v13321_v45 = vld [vmem:[%s18516_s1 + $0x10] sm:$0xff]  ;;  %v18765_v49 = vld [vmem:[#allocation23_spill] sm:$0xff]  ;;  %v18768_v60 = vld [vmem:[#allocation56_spill] sm:$0xff] }
 0x22d   :  { %12942 = vpow2.f32 %v4181_v58  ;;  %12049 = vmatprep.mubr.msk.f32.mxu1 %vm115_vm0, %v13319_v42  ;;  %v18750_v58 = vld [vmem:[#allocation39_spill] sm:$0xff]  ;;  %v18753_v42 = vld [vmem:[#allocation26_spill] sm:$0xff]  ;;  %v18761_v63 = vld [vmem:[#allocation41_spill] sm:$0xff] }
 0x22e   :  { %12944 = vpow2.f32 %v3977_v52  ;;  %v16907_v29 = vpop.f32.mrb[166].mxu0  ;;  %v18751_v52 = vpack.c.bf16 %v18749_v40, %v18750_v58  ;;  %v18763_v4 = vpack.c.bf16 %v18761_v63, %v18762_v0  ;;  %v18764_v46 = vld [vmem:[#allocation5_spill] sm:$0xff] }
 0x22f   :  { %12946 = vpow2.f32 %v4179_v39  ;;  %v16911_v37 = vpop.f32.mrb[166].mxu1  ;;  %v16913_v3 = vpop.f32.mrb[167].mxu0  ;;  %12016 = vmatmul.mubr.msk.f32.vlgmr.msra.gmra.mrb[16].mxu0 %vm115_vm0, %v13320_v17  ;;  %v18752_v39 = vld [vmem:[#allocation24_spill] sm:$0xff]  ;;  %v18766_v1 = vpack.c.bf16 %v18764_v46, %v18765_v49 }
 0x230   :  { %v16923_v50 = vpop.f32.mrb[167].mxu1  ;;  %12050 = vmatmul.mubr.msk.f32.vlgmr.msra.gmra.mrb[16].mxu1 %vm115_vm0, %v13320_v17  ;;  %12459 = vmatpush3.bf16.msra.mxu0 %v18748_v35  ;;  %v18754_v14 = vpack.c.bf16 %v18752_v39, %v18753_v42  ;;  %v18757_v17 = vpack.c.bf16 %v18755_v30, %v18756_v7  ;;  %v18759_v39 = vld [vmem:[#allocation10_spill] sm:$0xff] }
 0x231   :  { %v12933_v6 = vpop.eup %12932  ;;  %12491 = vmatpush3.bf16.msra.mxu1 %v18751_v52  ;;  %12018 = vmatprep.mubr.msk.f32.mxu0 %vm115_vm0, %v13321_v45  ;;  %v18758_v52 = vld [vmem:[#allocation9_spill] sm:$0xff] }
 0x232   :  { %12461 = vmatprep.subr.bf16.mxu0 %v18754_v14  ;;  %v12935_v19 = vpop.eup %12934  ;;  %12493 = vmatprep.subr.bf16.mxu1 %v18757_v17  ;;  %v16940_v32 = vpop.f32.mrb[168].mxu0  ;;  %v3982_v35 = vadd.f32 1.0, %v12933_v6  ;;  %v13322_v14 = vld [vmem:[%s18516_s1 + $0x18] sm:$0xff]  ;;  %v18760_v42 = vpack.c.bf16 %v18758_v52, %v18759_v39 }
 0x233   :  { %v12937_v27 = vpop.eup %12936  ;;  %12052 = vmatprep.mubr.msk.f32.mxu1 %vm115_vm0, %v13321_v45  ;;  %v16947_v40 = vpop.f32.mrb[169].mxu0  ;;  %12019 = vmatmul.mubr.msk.f32.gmra.mrb[18].mxu0 %vm115_vm0, %v13322_v14  ;;  %v4184_v58 = vadd.f32 1.0, %v12935_v19  ;;  %v18767_v19 = vld [vmem:[#allocation54_spill] sm:$0xff] }
 0x234   :  { %v11587_v7 = vpop.f32.mrb[168].mxu1  ;;  %v12939_v30 = vpop.eup %12938  ;;  %12053 = vmatmul.mubr.msk.f32.gmra.mrb[18].mxu1 %vm115_vm0, %v13322_v14  ;;  %12463 = vmatpush3.bf16.msra.mxu0 %v18760_v42  ;;  %v3981_v45 = vadd.f32 1.0, %v12937_v27  ;;  %v18769_v14 = vpack.c.bf16 %v18767_v19, %v18768_v60  ;;  %v13323_v27 = vld [vmem:[%s18516_s1 + $0x20] sm:$0xff]  ;;  %12948 = vrcp.f32 %v3982_v35  ;;  %v13324_v60 = vld [vmem:[%s18516_s1 + $0x28] sm:$0xff] }
 0x235   :  { %v4516_v6 = vpop.f32.mrb[169].mxu1  ;;  %12495 = vmatpush3.bf16.msra.mxu1 %v18763_v4  ;;  %12465 = vmatprep.subr.bf16.mxu0 %v18766_v1  ;;  %v4183_v53 = vadd.f32 1.0, %v12939_v30  ;;  %12950 = vrcp.f32 %v4184_v58  ;;  %v18770_v30 = vld [vmem:[#allocation11_spill] sm:$0xff]  ;;  %v18771_v35 = vld [vmem:[#allocation8_spill] sm:$0xff] }
 0x236   :  { %v12941_v17 = vpop.eup %12940  ;;  %12497 = vmatprep.subr.bf16.mxu1 %v18769_v14  ;;  %v16966_v41 = vpop.f32.mrb[170].mxu0  ;;  %12021 = vmatprep.mubr.msk.f32.mxu0 %vm115_vm0, %v13323_v27  ;;  %v18772_v52 = vpack.c.bf16 %v18770_v30, %v18771_v35  ;;  %12952 = vrcp.f32 %v3981_v45  ;;  %v18774_v19 = vld [vmem:[#allocation40_spill] sm:$0xff]  ;;  %v13325_v45 = vld [vmem:[%s18516_s1 + $0x30] sm:$0xff] }
 0x237   :  { %v12943_v26 = vpop.eup %12942  ;;  %v3984_v4 = vadd.f32 1.0, %v12941_v17  ;;  %12055 = vmatprep.mubr.msk.f32.mxu1 %vm115_vm0, %v13323_v27  ;;  %v16973_v1 = vpop.f32.mrb[171].mxu0  ;;  %12022 = vmatmul.mubr.msk.f32.gmra.mrb[20].mxu0 %vm115_vm0, %v13324_v60  ;;  %v18773_v17 = vld [vmem:[#allocation38_spill] sm:$0xff]  ;;  %v18776_v27 = vld [vmem:[#allocation25_spill] sm:$0xff]  ;;  %12954 = vrcp.f32 %v4183_v53 }
 0x238   :  { %v12945_v0 = vpop.eup %12944  ;;  %v16979_v49 = vpop.f32.mrb[170].mxu1  ;;  %12056 = vmatmul.mubr.msk.f32.gmra.mrb[20].mxu1 %vm115_vm0, %v13324_v60  ;;  %12467 = vmatpush3.bf16.msra.mxu0 %v18772_v52  ;;  %v4186_v42 = vadd.f32 1.0, %v12943_v26  ;;  %v18775_v14 = vpack.c.bf16 %v18773_v17, %v18774_v19  ;;  %v18778_v51 = vpack.c.bf16 %v18776_v27, %v18777_v20  ;;  %v18780_v60 = vld [vmem:[#allocation60_spill] sm:$0xff]  ;;  %v18783_v52 = vld [vmem:[#allocation13_spill] sm:$0xff]  ;;  %v18785_v17 = vmax.f32 %v16801_v54, %v16873_v43  ;;  %v18786_v27 = vld [vmem:[#allocation43_spill] sm:$0xff] }
 0x239   :  { %v12947_v46 = vpop.eup %12946  ;;  %v3983_v63 = vadd.f32 1.0, %v12945_v0  ;;  %v16985_v39 = vpop.f32.mrb[171].mxu1  ;;  %v18779_v0 = vld [vmem:[#allocation59_spill] sm:$0xff]  ;;  %12024 = vmatprep.mubr.msk.f32.mxu0 %vm115_vm0, %v13325_v45  ;;  %12956 = vrcp.f32 %v3984_v4  ;;  %12058 = vmatprep.mubr.msk.f32.mxu1 %vm115_vm0, %v13325_v45  ;;  %v18782_v4 = vld [vmem:[#allocation12_spill] sm:$0xff]  ;;  %v18794_v54 = vpack.c.bf16 %v16576_v9, %v16599_v21 }
 0x23a   :  { %12499 = vmatpush3.bf16.msra.mxu1 %v18775_v14  ;;  %12469 = vmatprep.subr.bf16.mxu0 %v18778_v51  ;;  %v4185_v58 = vadd.f32 1.0, %v12947_v46  ;;  %v18781_v36 = vpack.c.bf16 %v18779_v0, %v18780_v60  ;;  %v11559_v30 = vpop.f32.mrb[172].mxu0  ;;  %v13326_v51 = vld [vmem:[%s18516_s1 + $0x38] sm:$0xff]  ;;  %v18787_v0 = vld [vmem:[#allocation44_spill] sm:$0xff] }
 0x23b   :  { %v4358_v26 = vmax.f32 %v16940_v32, %v11559_v30  ;;  %v11593_v35 = vpop.f32.mrb[172].mxu1  ;;  %v4334_v20 = vpop.f32.mrb[173].mxu0  ;;  %12025 = vmatmul.mubr.msk.f32.gmra.mrb[22].mxu0 %vm115_vm0, %v13326_v51  ;;  %12958 = vrcp.f32 %v3983_v63  ;;  %v18784_v32 = vpack.c.bf16 %v18782_v4, %v18783_v52  ;;  %v18788_v60 = vpack.c.bf16 %v18786_v27, %v18787_v0  ;;  %v18790_v63 = vld [vmem:[#allocation31_spill] sm:$0xff]  ;;  %v13328_v21 = vld [vmem:[%s18516_s1 + $0x48] sm:$0xff] }
 0x23c   :  { %12501 = vmatprep.subr.bf16.mxu1 %v18781_v36  ;;  %v4560_v36 = vmax.f32 %v11587_v7, %v11593_v35  ;;  %v4357_v53 = vmax.f32 %v16947_v40, %v4334_v20  ;;  %v4536_v46 = vpop.f32.mrb[173].mxu1  ;;  %12059 = vmatmul.mubr.msk.f32.gmra.mrb[22].mxu1 %vm115_vm0, %v13326_v51  ;;  %12960 = vrcp.f32 %v4186_v42  ;;  %v18789_v7 = vld [vmem:[#allocation29_spill] sm:$0xff]  ;;  %v18792_v30 = vmax.f32 %v16816_v62, %v16879_v28 }
 0x23d   :  { %12471 = vmatpush3.bf16.msra.mxu0 %v18784_v32  ;;  %v4362_v19 = vmax.f32 %v18785_v17, %v4358_v26  ;;  %v4559_v14 = vmax.f32 %v4516_v6, %v4536_v46  ;;  %v18791_v40 = vpack.c.bf16 %v18789_v7, %v18790_v63  ;;  %12962 = vrcp.f32 %v4185_v58  ;;  %v13327_v6 = vld [vmem:[%s18516_s1 + $0x40] sm:$0xff]  ;;  %v18797_v32 = vld [vmem:[#allocation14_spill] sm:$0xff] }
 0x23e   :  { %12503 = vmatpush3.bf16.msra.mxu1 %v18788_v60  ;;  %v4564_v45 = vmax.f32 %v18792_v30, %v4560_v36  ;;  %v18793_v42 = vmax.f32 %v16812_v11, %v16881_v16  ;;  %v11562_v43 = vpop.f32.mrb[174].mxu0  ;;  %12027 = vmatprep.mubr.msk.f32.mxu0 %vm115_vm0, %v13327_v6  ;;  %v18795_v62 = vmax.f32 %v16826_v12, %v16896_v47  ;;  %v18798_v17 = vld [vmem:[#allocation16_spill] sm:$0xff] }
 0x23f   :  { %12473 = vmatprep.subr.bf16.mxu0 %v18791_v40  ;;  %12505 = vmatprep.subr.bf16.mxu1 %v18794_v54  ;;  %v4366_v58 = vmul.f32 %v4362_v19, %v14354_v24  ;;  %v4360_v11 = vmax.f32 %v16966_v41, %v11562_v43  ;;  %v11596_v16 = vpop.f32.mrb[174].mxu1  ;;  %v4344_v9 = vpop.f32.mrb[175].mxu0  ;;  %v18796_v46 = vmax.f32 %v16838_v44, %v16907_v29  ;;  %v18802_v60 = vld [vmem:[#allocation28_spill] sm:$0xff] }
 0x240   :  { %v4361_v35 = vmax.f32 %v18793_v42, %v4357_v53  ;;  %v4563_v28 = vmax.f32 %v18795_v62, %v4559_v14  ;;  %12061 = vmatprep.mubr.msk.f32.mxu1 %vm115_vm0, %v13327_v6  ;;  %12028 = vmatmul.mubr.msk.f32.gmra.mrb[24].mxu0 %vm115_vm0, %v13328_v21  ;;  %v4568_v26 = vmul.f32 %v4564_v45, %v14354_v24  ;;  %v4546_v47 = vpop.f32.mrb[175].mxu1  ;;  %v17048_v41 = vpop.eup %12948 }
 0x241   :  { %v4562_v51 = vmax.f32 %v16979_v49, %v11596_v16  ;;  %v4359_v12 = vmax.f32 %v16973_v1, %v4344_v9  ;;  %12062 = vmatmul.mubr.msk.f32.gmra.mrb[24].mxu1 %vm115_vm0, %v13328_v21  ;;  %v4370_v36 = vadd.f32 %v4366_v58, %v14341_v18  ;;  %v4364_v4 = vmax.f32 %v18796_v46, %v4360_v11  ;;  %v17059_v1 = vpop.eup %12950  ;;  %v18810_v46 = vld [vmem:[#allocation18_spill] sm:$0xff] }
 0x242   :  { %v4365_v20 = vmul.f32 %v4361_v35, %v14318_v10  ;;  %v4567_v53 = vmul.f32 %v4563_v28, %v14318_v10  ;;  %v4561_v52 = vmax.f32 %v16985_v39, %v4546_v47  ;;  %v18799_v49 = vpack.c.bf16 %v18797_v32, %v18798_v17  ;;  %v18803_v39 = vld [vmem:[#allocation46_spill] sm:$0xff]  ;;  %v17072_v63 = vpop.f32.mrb[176].mxu0  ;;  %v17074_v40 = vpop.eup %12952  ;;  %v18806_v35 = vld [vmem:[#allocation33_spill] sm:$0xff]  ;;  %v18813_v32 = vld [vmem:[#allocation48_spill] sm:$0xff] }
 0x243   :  { %v4572_v19 = vadd.f32 %v4568_v26, %v14341_v18  ;;  %v18800_v27 = vmax.f32 %v16852_v59, %v16911_v37  ;;  %v18801_v44 = vmax.f32 %v16843_v23, %v16913_v3  ;;  %v18804_v7 = vpack.c.bf16 %v18802_v60, %v18803_v39  ;;  %v18807_v23 = vld [vmem:[#allocation35_spill] sm:$0xff]  ;;  %v17087_v43 = vpop.f32.mrb[177].mxu0  ;;  %v17089_v6 = vpop.f32.mrb[176].mxu1  ;;  %v18814_v17 = vld [vmem:[#allocation49_spill] sm:$0xff]  ;;  %v18817_v60 = vld [vmem:[#allocation32_spill] sm:$0xff] }
 0x244   :  { %12475 = vmatpush3.bf16.msra.mxu0 %v18799_v49  ;;  %v4369_v14 = vadd.f32 %v4365_v20, %v14298_v57  ;;  %v4374_v30 = vsub.f32 0.0, %v4370_v36  ;;  %v4571_v45 = vadd.f32 %v4567_v53, %v14298_v57  ;;  %v4368_v42 = vmul.f32 %v4364_v4, %v14371_v34  ;;  %v17091_v58 = vpop.eup %12954  ;;  %v13330_v20 = vld [vmem:[%s18516_s1 + $0x58] sm:$0xff]  ;;  %v18811_v4 = vld [vmem:[#allocation20_spill] sm:$0xff] }
 0x245   :  { %v4566_v0 = vmax.f32 %v18800_v27, %v4562_v51  ;;  %v4363_v29 = vmax.f32 %v18801_v44, %v4359_v12  ;;  %12507 = vmatpush3.bf16.msra.mxu1 %v18804_v7  ;;  %v18805_v59 = vmax.f32 %v16858_v25, %v16923_v50  ;;  %v18808_v3 = vpack.c.bf16 %v18806_v35, %v18807_v23  ;;  %v13329_v50 = vld [vmem:[%s18516_s1 + $0x50] sm:$0xff]  ;;  %v13331_v35 = vld [vmem:[%s18516_s1 + $0x60] sm:$0xff] }
 0x246   :  { %v18809_v54 = vpack.c.bf16 %v16622_v48, %v16628_v15  ;;  %v4576_v62 = vsub.f32 0.0, %v4572_v19  ;;  %v4373_v28 = vsub.f32 0.0, %v4369_v14  ;;  %12030 = vmatprep.mubr.msk.f32.mxu0 %vm115_vm0, %v13329_v50  ;;  %12064 = vmatprep.mubr.msk.f32.mxu1 %vm115_vm0, %v13329_v50  ;;  %v17100_v48 = vpop.f32.mrb[177].mxu1  ;;  %v17102_v15 = vpop.eup %12956  ;;  %v4379_v16 = vmul.f32 1.442695, %v4374_v30 }
 0x247   :  { %v4565_v37 = vmax.f32 %v18805_v59, %v4561_v52  ;;  %12477 = vmatprep.subr.bf16.mxu0 %v18808_v3  ;;  %v4570_v11 = vmul.f32 %v4566_v0, %v14371_v34  ;;  %v4367_v25 = vmul.f32 %v4363_v29, %v14382_v55  ;;  %v4575_v9 = vsub.f32 0.0, %v4571_v45  ;;  %12031 = vmatmul.mubr.msk.f32.gmra.mrb[26].mxu0 %vm115_vm0, %v13330_v20  ;;  %v17111_v51 = vpop.eup %12958  ;;  %v17121_v19 = vpop.f32.mrb[178].mxu0  ;;  %v18816_v29 = vld [vmem:[#allocation30_spill] sm:$0xff] }
 0x248   :  { %12509 = vmatprep.subr.bf16.mxu1 %v18809_v54  ;;  %v4372_v21 = vadd.f32 %v4368_v42, %v14412_v61  ;;  %12065 = vmatmul.mubr.msk.f32.gmra.mrb[26].mxu1 %vm115_vm0, %v13330_v20  ;;  %v4581_v12 = vmul.f32 1.442695, %v4576_v62  ;;  %v4377_v47 = vmul.f32 1.442695, %v4373_v28  ;;  %v18812_v52 = vpack.c.bf16 %v18810_v46, %v18811_v4  ;;  %v17123_v14 = vpop.eup %12960  ;;  %v17132_v30 = vpop.f32.mrb[179].mxu0 }
 0x249   :  { %v4569_v26 = vmul.f32 %v4565_v37, %v14382_v55  ;;  %v4574_v36 = vadd.f32 %v4570_v11, %v14412_v61  ;;  %v4371_v53 = vadd.f32 %v4367_v25, %v14424_v2  ;;  %v18815_v49 = vpack.c.bf16 %v18813_v32, %v18814_v17  ;;  %v17134_v45 = vpop.f32.mrb[178].mxu1  ;;  %v17136_v42 = vpop.eup %12962  ;;  %12033 = vmatprep.mubr.msk.f32.mxu0 %vm115_vm0, %v13331_v35  ;;  %v18820_v11 = vld [vmem:[#allocation15_spill] sm:$0xff]  ;;  %v18821_v25 = vld [vmem:[#allocation17_spill] sm:$0xff] }
 0x24a   :  { %12479 = vmatpush3.bf16.msra.mxu0 %v18812_v52  ;;  %12964 = vpow2.f32 %v4379_v16  ;;  %v4579_v27 = vmul.f32 1.442695, %v4575_v9  ;;  %v4376_v0 = vsub.f32 0.0, %v4372_v21  ;;  %v18818_v39 = vpack.c.bf16 %v18816_v29, %v18817_v60  ;;  %12067 = vmatprep.mubr.msk.f32.mxu1 %vm115_vm0, %v13331_v35  ;;  %v17143_v23 = vpop.f32.mrb[179].mxu1  ;;  %v18823_v16 = vld [vmem:[#allocation45_spill] sm:$0xff]  ;;  %v18824_v9 = vld [vmem:[#allocation47_spill] sm:$0xff] }
 0x24b   :  { %12511 = vmatpush3.bf16.msra.mxu1 %v18815_v49  ;;  %v4573_v44 = vadd.f32 %v4569_v26, %v14424_v2  ;;  %v18819_v7 = vpack.c.bf16 %v16585_v56, %v16612_v13  ;;  %12966 = vpow2.f32 %v4581_v12  ;;  %v4578_v59 = vsub.f32 0.0, %v4574_v36  ;;  %12034 = vmatmul.mubr.msk.f32.gmra.mrb[28].mxu0 %vm115_vm0, %v16848_v22  ;;  %v17159_v26 = vpop.f32.mrb[180].mxu0  ;;  %v18826_v12 = vld [vmem:[#allocation34_spill] sm:$0xff]  ;;  %v17171_v52 = vpop.f32.mrb[180].mxu1  ;;  %v18832_v29 = vld [vmem:[#allocation21_spill] sm:$0xff]  ;;  %v7431_v35 = vld [vmem:[%s18524_s4] sm:$0xff] }
 0x24c   :  { %12481 = vmatprep.subr.bf16.mxu0 %v18818_v39  ;;  %v4375_v37 = vsub.f32 0.0, %v4371_v53  ;;  %12968 = vpow2.f32 %v4377_v47  ;;  %v4383_v13 = vmul.f32 1.442695, %v4376_v0  ;;  %12068 = vmatmul.mubr.msk.f32.gmra.mrb[28].mxu1 %vm115_vm0, %v16848_v22  ;;  %v18822_v50 = vpack.c.bf16 %v18820_v11, %v18821_v25  ;;  %v18827_v47 = vld [vmem:[#allocation36_spill] sm:$0xff]  ;;  %v18829_v53 = vld [vmem:[#allocation61_spill] sm:$0xff]  ;;  %v17173_v32 = vpop.f32.mrb[181].mxu0 }
 0x24d   :  { %12513 = vmatprep.subr.bf16.mxu1 %v18819_v7  ;;  %v4577_v3 = vsub.f32 0.0, %v4573_v44  ;;  %12970 = vpow2.f32 %v4579_v27  ;;  %v4585_v62 = vmul.f32 1.442695, %v4578_v59  ;;  %v18825_v21 = vpack.c.bf16 %v18823_v16, %v18824_v9  ;;  %12036 = vmatprep.mubr.msk.f32.mxu0 %vm115_vm0, %v16863_v38  ;;  %v17185_v27 = vpop.f32.mrb[181].mxu1  ;;  %v7432_v0 = vld [vmem:[%s18524_s4 + $0x8] sm:$0xff]  ;;  %v18834_v39 = vld [vmem:[#allocation50_spill] sm:$0xff] }
 0x24e   :  { %v4381_v28 = vmul.f32 1.442695, %v4375_v37  ;;  %12483 = vmatpush3.bf16.msra.mxu0 %v18822_v50  ;;  %12972 = vpow2.f32 %v4383_v13  ;;  %v18828_v36 = vpack.c.bf16 %v18826_v12, %v18827_v47  ;;  %v18830_v46 = vpack.c.bf16 %v16634_v8, %v18829_v53  ;;  %12070 = vmatprep.mubr.msk.f32.mxu1 %vm115_vm0, %v16863_v38  ;;  %v18831_v38 = vld [vmem:[#allocation19_spill] sm:$0xff]  ;;  %v17202_v37 = vpop.f32.mrb[182].mxu0 }
 0x24f   :  { %12515 = vmatpush3.bf16.msra.mxu1 %v18825_v21  ;;  %v4583_v22 = vmul.f32 1.442695, %v4577_v3  ;;  %v4758_v4 = vmax.f32 %v17072_v63, %v17159_v26  ;;  %12974 = vpow2.f32 %v4585_v62  ;;  %v4960_v49 = vmax.f32 %v17089_v6, %v17171_v52  ;;  %12037 = vmatmul.mubr.msk.f32.gmra.mrb[30].mxu0 %vm115_vm0, %v16886_v31  ;;  %v18835_v7 = vld [vmem:[#allocation51_spill] sm:$0xff]  ;;  %v17209_v3 = vpop.f32.mrb[182].mxu1  ;;  %v7441_v62 = vld [vmem:[%s18524_s4 + $0x50] sm:$0xff] }
 0x250   :  { %12485 = vmatprep.subr.bf16.mxu0 %v18828_v36  ;;  %12517 = vmatprep.subr.bf16.mxu1 %v18830_v46  ;;  %v4757_v8 = vmax.f32 %v17087_v43, %v17173_v32  ;;  %12976 = vpow2.f32 %v4381_v28  ;;  %v4959_v44 = vmax.f32 %v17100_v48, %v17185_v27  ;;  %v18833_v60 = vpack.c.bf16 %v18831_v38, %v18832_v29  ;;  %v17220_v25 = vpop.f32.mrb[183].mxu1  ;;  %v7450_v46 = vld [vmem:[%s18524_s4 + $0x98] sm:$0xff]  ;;  %v7467_v63 = vld [vmem:[%s18524_s4 + $0x120] sm:$0xff]  ;;  %v7477_v43 = vld [vmem:[%s18524_s4 + $0x170] sm:$0xff] }
 0x251   :  { %12071 = vmatmul.mubr.msk.f32.gmra.mrb[30].mxu1 %vm115_vm0, %v16886_v31  ;;  %12978 = vpow2.f32 %v4583_v22  ;;  %v18836_v59 = vpack.c.bf16 %v18834_v39, %v18835_v7  ;;  %v4760_v13 = vmax.f32 %v17121_v19, %v17202_v37  ;;  %v17211_v31 = vpop.f32.mrb[183].mxu0  ;;  %7783 = vmatprep.mubr.f32.mxu0 %v7432_v0  ;;  %v7440_v22 = vld [vmem:[%s18524_s4 + $0x48] sm:$0xff]  ;;  %v7442_v48 = vld [vmem:[%s18524_s4 + $0x58] sm:$0xff] }
 0x252   :  { %12487 = vmatpush3.bf16.msra.mxu0 %v18833_v60  ;;  %v11621_v21 = vpop.f32.mrb[184].mxu0  ;;  %v18838_v19 = vmax.f32 %v17132_v30, %v17211_v31  ;;  %v7486_v31 = vld [vmem:[%s18524_s4 + $0x1b8] sm:$0xff] }
 0x253   :  { %12519 = vmatpush3.bf16.msra.mxu1 %v18836_v59  ;;  %v4718_v36 = vpop.f32.mrb[185].mxu0  ;;  %v11655_v53 = vpop.f32.mrb[184].mxu1 }
 0x254   :  { %v12965_v50 = vpop.eup %12964  ;;  %v4920_v29 = vpop.f32.mrb[185].mxu1 }
 0x255   :  { %7784 = vmatmul.mubr.f32.vlgmr.msra.gmra.mrb[32].mxu0 %v7431_v35  ;;  %v12967_v9 = vpop.eup %12966  ;;  %v4386_v47 = vadd.f32 1.0, %v12965_v50 }
 0x256   :  { %7788 = vmatprep.mubr.f32.mxu0 %v7441_v62  ;;  %v12969_v12 = vpop.eup %12968  ;;  %v4588_v38 = vadd.f32 1.0, %v12967_v9  ;;  %v11624_v35 = vpop.f32.mrb[186].mxu0  ;;  %v7449_v62 = vld [vmem:[%s18524_s4 + $0x90] sm:$0xff]  ;;  %v7459_v9 = vld [vmem:[%s18524_s4 + $0xe0] sm:$0xff] }
 0x257   :  { %v12971_v0 = vpop.eup %12970  ;;  %v4385_v39 = vadd.f32 1.0, %v12969_v12  ;;  %12980 = vrcp.f32 %v4386_v47  ;;  %v17233_v20 = vpop.f32.mrb[187].mxu0  ;;  %v7458_v47 = vld [vmem:[%s18524_s4 + $0xd8] sm:$0xff] }
 0x258   :  { %v12973_v60 = vpop.eup %12972  ;;  %v4587_v59 = vadd.f32 1.0, %v12971_v0  ;;  %v11658_v54 = vpop.f32.mrb[186].mxu1  ;;  %12982 = vrcp.f32 %v4588_v38  ;;  %v7468_v38 = vld [vmem:[%s18524_s4 + $0x128] sm:$0xff] }
 0x259   :  { %7789 = vmatmul.mubr.f32.gmra.mrb[34].mxu0 %v7440_v22  ;;  %v12975_v7 = vpop.eup %12974  ;;  %v4388_v17 = vadd.f32 1.0, %v12973_v60  ;;  %v17238_v0 = vpop.f32.mrb[187].mxu1  ;;  %12984 = vrcp.f32 %v4385_v39  ;;  %v7434_v39 = vld [vmem:[%s18524_s4 + $0x18] sm:$0xff] }
 0x25a   :  { %7793 = vmatprep.mubr.f32.mxu0 %v7450_v46  ;;  %v12977_v50 = vpop.eup %12976  ;;  %v4590_v46 = vadd.f32 1.0, %v12975_v7  ;;  %12986 = vrcp.f32 %v4587_v59  ;;  %v11627_v16 = vpop.f32.mrb[188].mxu0  ;;  %7928 = vmatprep.mubr.f32.mxu1 %v7434_v39 }
 0x25b   :  { %v12979_v12 = vpop.eup %12978  ;;  %v4387_v22 = vadd.f32 1.0, %v12977_v50  ;;  %12988 = vrcp.f32 %v4388_v17  ;;  %v4762_v60 = vmax.f32 %v11621_v21, %v11627_v16  ;;  %v11661_v11 = vpop.f32.mrb[188].mxu1  ;;  %v7433_v17 = vld [vmem:[%s18524_s4 + $0x10] sm:$0xff]  ;;  %v7443_v50 = vld [vmem:[%s18524_s4 + $0x60] sm:$0xff] }
 0x25c   :  { %v4589_v56 = vadd.f32 1.0, %v12979_v12  ;;  %v4738_v28 = vpop.f32.mrb[189].mxu0  ;;  %v4964_v7 = vmax.f32 %v11655_v53, %v11661_v11  ;;  %7929 = vmatmul.mubr.f32.vlgmr.msra.gmra.mrb[32].mxu1 %v7433_v17 }
 0x25d   :  { %7794 = vmatmul.mubr.f32.gmra.mrb[36].mxu0 %v7449_v62  ;;  %12990 = vrcp.f32 %v4387_v22  ;;  %v4761_v59 = vmax.f32 %v4718_v36, %v4738_v28  ;;  %v4940_v62 = vpop.f32.mrb[189].mxu1  ;;  %v4766_v16 = vmax.f32 %v4758_v4, %v4762_v60  ;;  %7933 = vmatprep.mubr.f32.mxu1 %v7443_v50 }
 0x25e   :  { %7798 = vmatprep.mubr.f32.mxu0 %v7459_v9  ;;  %12992 = vrcp.f32 %v4590_v46  ;;  %v4963_v21 = vmax.f32 %v4920_v29, %v4940_v62  ;;  %v4968_v28 = vmax.f32 %v4960_v49, %v4964_v7  ;;  %v11630_v36 = vpop.f32.mrb[190].mxu0 }
 0x25f   :  { %12994 = vrcp.f32 %v4589_v56  ;;  %v4765_v11 = vmax.f32 %v4757_v8, %v4761_v59  ;;  %v4770_v26 = vmul.f32 %v4766_v16, %v14354_v24  ;;  %v4764_v4 = vmax.f32 %v11624_v35, %v11630_v36  ;;  %v11664_v6 = vpop.f32.mrb[190].mxu1  ;;  %v4748_v52 = vpop.f32.mrb[191].mxu0 }
 0x260   :  { %v4967_v56 = vmax.f32 %v4959_v44, %v4963_v21  ;;  %v4972_v32 = vmul.f32 %v4968_v28, %v14354_v24  ;;  %v4966_v8 = vmax.f32 %v11658_v54, %v11664_v6  ;;  %v4763_v53 = vmax.f32 %v17233_v20, %v4748_v52  ;;  %v4950_v29 = vpop.f32.mrb[191].mxu1  ;;  %v7452_v54 = vld [vmem:[%s18524_s4 + $0xa8] sm:$0xff]  ;;  %7934 = vmatmul.mubr.f32.gmra.mrb[34].mxu1 %v7442_v48 }
 0x261   :  { %7799 = vmatmul.mubr.f32.gmra.mrb[38].mxu0 %v7458_v47  ;;  %v4769_v49 = vmul.f32 %v4765_v11, %v14318_v10  ;;  %v17280_v27 = vpop.eup %12980  ;;  %v4774_v44 = vadd.f32 %v4770_v26, %v14341_v18  ;;  %v4768_v9 = vmax.f32 %v4760_v13, %v4764_v4  ;;  %v4965_v12 = vmax.f32 %v17238_v0, %v4950_v29  ;;  %v7476_v0 = vld [vmem:[%s18524_s4 + $0x168] sm:$0xff] }
 0x262   :  { %7803 = vmatprep.mubr.f32.mxu0 %v7468_v38  ;;  %v4971_v35 = vmul.f32 %v4967_v56, %v14318_v10  ;;  %v17291_v20 = vpop.eup %12982  ;;  %v4976_v22 = vadd.f32 %v4972_v32, %v14341_v18  ;;  %v18837_v47 = vmax.f32 %v17134_v45, %v17209_v3  ;;  %v4767_v37 = vmax.f32 %v18838_v19, %v4763_v53  ;;  %v17301_v13 = vpop.f32.mrb[192].mxu0 }
 0x263   :  { %v4773_v46 = vadd.f32 %v4769_v49, %v14298_v57  ;;  %v12985_v38 = vpop.eup %12984  ;;  %v4778_v39 = vsub.f32 0.0, %v4774_v44  ;;  %v4772_v59 = vmul.f32 %v4768_v9, %v14371_v34  ;;  %v18839_v45 = vmax.f32 %v17143_v23, %v17220_v25  ;;  %v17311_v62 = vpop.f32.mrb[193].mxu0  ;;  %7938 = vmatprep.mubr.f32.mxu1 %v7452_v54  ;;  %v7451_v23 = vld [vmem:[%s18524_s4 + $0xa0] sm:$0xff] }
 0x264   :  { %v4970_v60 = vmax.f32 %v18837_v47, %v4966_v8  ;;  %v4975_v7 = vadd.f32 %v4971_v35, %v14298_v57  ;;  %v17313_v30 = vpop.f32.mrb[192].mxu1  ;;  %v17318_v17 = vpop.eup %12986  ;;  %v4980_v16 = vsub.f32 0.0, %v4976_v22  ;;  %v4771_v28 = vmul.f32 %v4767_v37, %v14382_v55  ;;  %v7485_v8 = vld [vmem:[%s18524_s4 + $0x1b0] sm:$0xff]  ;;  %7939 = vmatmul.mubr.f32.gmra.mrb[36].mxu1 %v7451_v23 }
 0x265   :  { %7804 = vmatmul.mubr.f32.gmra.mrb[40].mxu0 %v7467_v63  ;;  %v4969_v3 = vmax.f32 %v18839_v45, %v4965_v12  ;;  %v4777_v21 = vsub.f32 0.0, %v4773_v46  ;;  %v17322_v11 = vpop.f32.mrb[193].mxu1  ;;  %v12989_v25 = vpop.eup %12988  ;;  %v4783_v36 = vmul.f32 1.442695, %v4778_v39  ;;  %v4776_v26 = vadd.f32 %v4772_v59, %v14412_v61  ;;  %v7495_v12 = vld [vmem:[%s18524_s4 + $0x200] sm:$0xff]  ;;  %v7494_v39 = vld [vmem:[%s18524_s4 + $0x1f8] sm:$0xff] }
 0x266   :  { %7808 = vmatprep.mubr.f32.mxu0 %v7477_v43  ;;  %v4974_v50 = vmul.f32 %v4970_v60, %v14371_v34  ;;  %v4979_v63 = vsub.f32 0.0, %v4975_v7  ;;  %v4985_v6 = vmul.f32 1.442695, %v4980_v16  ;;  %v4775_v32 = vadd.f32 %v4771_v28, %v14424_v2  ;;  %v17331_v49 = vpop.f32.mrb[194].mxu0  ;;  %v7461_v7 = vld [vmem:[%s18524_s4 + $0xf0] sm:$0xff] }
 0x267   :  { %v4973_v56 = vmul.f32 %v4969_v3, %v14382_v55  ;;  %v12991_v4 = vpop.eup %12990  ;;  %v4781_v52 = vmul.f32 1.442695, %v4777_v21  ;;  %12996 = vpow2.f32 %v4783_v36  ;;  %v4780_v48 = vsub.f32 0.0, %v4776_v26  ;;  %v17339_v35 = vpop.f32.mrb[195].mxu0  ;;  %v7460_v3 = vld [vmem:[%s18524_s4 + $0xe8] sm:$0xff]  ;;  %7943 = vmatprep.mubr.f32.mxu1 %v7461_v7  ;;  %v7470_v36 = vld [vmem:[%s18524_s4 + $0x138] sm:$0xff] }
 0x268   :  { %v4978_v43 = vadd.f32 %v4974_v50, %v14412_v61  ;;  %v17336_v53 = vpop.eup %12992  ;;  %v4983_v29 = vmul.f32 1.442695, %v4979_v63  ;;  %v17341_v9 = vpop.f32.mrb[194].mxu1  ;;  %12998 = vpow2.f32 %v4985_v6  ;;  %v4779_v46 = vsub.f32 0.0, %v4775_v32  ;;  %7944 = vmatmul.mubr.f32.gmra.mrb[38].mxu1 %v7460_v3  ;;  %v7503_v26 = vld [vmem:[%s18524_s4 + $0x240] sm:$0xff]  ;;  %v18842_v6 = vld [vmem:[#allocation53_spill] sm:$0xff] }
 0x269   :  { %7809 = vmatmul.mubr.f32.gmra.mrb[42].mxu0 %v7476_v0  ;;  %v4977_v44 = vadd.f32 %v4973_v56, %v14424_v2  ;;  %v17346_v54 = vpop.eup %12994  ;;  %v12520_v47 = vpack.c.bf16 %v17280_v27, %v12985_v38  ;;  %v17349_v60 = vpop.f32.mrb[195].mxu1  ;;  %13000 = vpow2.f32 %v4781_v52  ;;  %v4787_v19 = vmul.f32 1.442695, %v4780_v48  ;;  %7948 = vmatprep.mubr.f32.mxu1 %v7470_v36  ;;  %v7469_v56 = vld [vmem:[%s18524_s4 + $0x130] sm:$0xff]  ;;  %v18844_v7 = vld [vmem:[#allocation52_spill] sm:$0xff] }
 0x26a   :  { %7813 = vmatprep.mubr.f32.mxu0 %v7486_v31  ;;  %v4982_v22 = vsub.f32 0.0, %v4978_v43  ;;  %v12524_v0 = vpack.c.bf16 %v12989_v25, %v12991_v4  ;;  %13002 = vpow2.f32 %v4983_v29  ;;  %v4785_v45 = vmul.f32 1.442695, %v4779_v46  ;;  %v17359_v38 = vpop.f32.mrb[196].mxu0  ;;  %v18841_v4 = vld [vmem:[#allocation22_spill] sm:$0xff] }
 0x26b   :  { %v4981_v37 = vsub.f32 0.0, %v4977_v44  ;;  %12521 = vmatprep.subr.bf16.mxu0 %v12520_v47  ;;  %v12528_v27 = vpack.c.bf16 %v17291_v20, %v17318_v17  ;;  %13004 = vpow2.f32 %v4787_v19  ;;  %v18840_v16 = vpack.c.bf16 %v16782_v5, %v16805_v33  ;;  %v17369_v50 = vpop.f32.mrb[196].mxu1  ;;  %v17371_v28 = vpop.f32.mrb[197].mxu0  ;;  %v7504_v17 = vld [vmem:[%s18524_s4 + $0x248] sm:$0xff] }
 0x26c   :  { %v4989_v59 = vmul.f32 1.442695, %v4982_v22  ;;  %v5162_v21 = vmax.f32 %v17301_v13, %v17359_v38  ;;  %v12532_v20 = vpack.c.bf16 %v17336_v53, %v17346_v54  ;;  %v5364_v5 = vmax.f32 %v17313_v30, %v17369_v50  ;;  %v17382_v23 = vpop.f32.mrb[197].mxu1  ;;  %v7513_v53 = vld [vmem:[%s18524_s4 + $0x290] sm:$0xff]  ;;  %7949 = vmatmul.mubr.f32.gmra.mrb[40].mxu1 %v7469_v56  ;;  %v7479_v22 = vld [vmem:[%s18524_s4 + $0x180] sm:$0xff]  ;;  %v7512_v19 = vld [vmem:[%s18524_s4 + $0x288] sm:$0xff] }
 0x26d   :  { %7814 = vmatmul.mubr.f32.gmra.mrb[44].mxu0 %v7485_v8  ;;  %v4987_v31 = vmul.f32 1.442695, %v4981_v37  ;;  %v5161_v33 = vmax.f32 %v17311_v62, %v17371_v28  ;;  %v5363_v25 = vmax.f32 %v17322_v11, %v17382_v23  ;;  %v18843_v52 = vpack.c.bf16 %v18841_v4, %v18842_v6  ;;  %7953 = vmatprep.mubr.f32.mxu1 %v7479_v22  ;;  %v7478_v37 = vld [vmem:[%s18524_s4 + $0x178] sm:$0xff]  ;;  %v7488_v4 = vld [vmem:[%s18524_s4 + $0x1c8] sm:$0xff]  ;;  %v7539_v13 = vld [vmem:[%s18524_s4 + $0x360] sm:$0xff] }
 0x26e   :  { %7818 = vmatprep.mubr.f32.mxu0 %v7495_v12  ;;  %12523 = vmatpush3.bf16.msra.mxu0 %v18840_v16  ;;  %13006 = vpow2.f32 %v4989_v59  ;;  %v17389_v63 = vpop.f32.mrb[198].mxu0  ;;  %v18845_v59 = vld [vmem:[#allocation4_spill] sm:$0xff]  ;;  %v7549_v62 = vld [vmem:[%s18524_s4 + $0x3b0] sm:$0xff] }
 0x26f   :  { %12525 = vmatprep.subr.bf16.mxu0 %v12524_v0  ;;  %13008 = vpow2.f32 %v4785_v45  ;;  %v5164_v43 = vmax.f32 %v17331_v49, %v17389_v63  ;;  %v17402_v32 = vpop.f32.mrb[198].mxu1  ;;  %v17404_v8 = vpop.f32.mrb[199].mxu0  ;;  %v18846_v45 = vpack.c.bf16 %v18844_v7, %v18845_v59  ;;  %v7515_v11 = vld [vmem:[%s18524_s4 + $0x2a0] sm:$0xff] }
 0x270   :  { %13010 = vpow2.f32 %v4987_v31  ;;  %v5366_v29 = vmax.f32 %v17341_v9, %v17402_v32  ;;  %v5163_v48 = vmax.f32 %v17339_v35, %v17404_v8  ;;  %v17413_v44 = vpop.f32.mrb[199].mxu1  ;;  %v7522_v31 = vld [vmem:[%s18524_s4 + $0x2d8] sm:$0xff]  ;;  %7954 = vmatmul.mubr.f32.gmra.mrb[42].mxu1 %v7478_v37 }
 0x271   :  { %7819 = vmatmul.mubr.f32.gmra.mrb[46].mxu0 %v7494_v39  ;;  %v12997_v12 = vpop.eup %12996  ;;  %v5365_v54 = vmax.f32 %v17349_v60, %v17413_v44  ;;  %7958 = vmatprep.mubr.f32.mxu1 %v7488_v4  ;;  %v18848_v37 = vld [vmem:[#allocation62_spill] sm:$0xff] }
 0x272   :  { %7823 = vmatprep.mubr.f32.mxu0 %v7504_v17  ;;  %12527 = vmatpush3.bf16.msra.mxu0 %v18843_v52  ;;  %v12999_v46 = vpop.eup %12998  ;;  %v17420_v47 = vpop.f32.mrb[200].mxu0  ;;  %v4790_v39 = vadd.f32 1.0, %v12997_v12  ;;  %v7521_v12 = vld [vmem:[%s18524_s4 + $0x2d0] sm:$0xff] }
 0x273   :  { %12529 = vmatprep.subr.bf16.mxu0 %v12528_v27  ;;  %v13001_v0 = vpop.eup %13000  ;;  %v5122_v27 = vpop.f32.mrb[201].mxu0  ;;  %v4992_v17 = vadd.f32 1.0, %v12999_v46 }
 0x274   :  { %v11723_v3 = vpop.f32.mrb[200].mxu1  ;;  %v13003_v16 = vpop.eup %13002  ;;  %v4789_v56 = vadd.f32 1.0, %v13001_v0  ;;  %13012 = vrcp.f32 %v4790_v39 }
 0x275   :  { %7824 = vmatmul.mubr.f32.gmra.mrb[48].mxu0 %v7503_v26  ;;  %v5324_v36 = vpop.f32.mrb[201].mxu1  ;;  %v13005_v26 = vpop.eup %13004  ;;  %v4991_v52 = vadd.f32 1.0, %v13003_v16  ;;  %13014 = vrcp.f32 %v4992_v17  ;;  %v7496_v17 = vld [vmem:[%s18524_s4 + $0x208] sm:$0xff] }
 0x276   :  { %7828 = vmatprep.mubr.f32.mxu0 %v7513_v53  ;;  %12531 = vmatpush3.bf16.msra.mxu0 %v18846_v45  ;;  %v17437_v53 = vpop.f32.mrb[202].mxu0  ;;  %v4792_v46 = vadd.f32 1.0, %v13005_v26  ;;  %v7531_v45 = vld [vmem:[%s18524_s4 + $0x320] sm:$0xff]  ;;  %13016 = vrcp.f32 %v4789_v56  ;;  %v7497_v26 = vld [vmem:[%s18524_s4 + $0x210] sm:$0xff] }
 0x277   :  { %12533 = vmatprep.subr.bf16.mxu0 %v12532_v20  ;;  %v7487_v20 = vld [vmem:[%s18524_s4 + $0x1c0] sm:$0xff]  ;;  %v17448_v7 = vpop.f32.mrb[203].mxu0  ;;  %v17450_v59 = vpop.f32.mrb[202].mxu1  ;;  %13018 = vrcp.f32 %v4991_v52  ;;  %v7540_v52 = vld [vmem:[%s18524_s4 + $0x368] sm:$0xff] }
 0x278   :  { %v13007_v6 = vpop.eup %13006  ;;  %v17455_v4 = vpop.f32.mrb[203].mxu1  ;;  %7959 = vmatmul.mubr.f32.gmra.mrb[44].mxu1 %v7487_v20  ;;  %13020 = vrcp.f32 %v4792_v46  ;;  %v7506_v20 = vld [vmem:[%s18524_s4 + $0x258] sm:$0xff] }
 0x279   :  { %7829 = vmatmul.mubr.f32.gmra.mrb[50].mxu0 %v7512_v19  ;;  %v13009_v22 = vpop.eup %13008  ;;  %v18847_v19 = vld [vmem:[#allocation55_spill] sm:$0xff]  ;;  %v4994_v39 = vadd.f32 1.0, %v13007_v6  ;;  %7963 = vmatprep.mubr.f32.mxu1 %v7497_v26  ;;  %v7505_v26 = vld [vmem:[%s18524_s4 + $0x250] sm:$0xff] }
 0x27a   :  { %7833 = vmatprep.mubr.f32.mxu0 %v7522_v31  ;;  %v18849_v0 = vpack.c.bf16 %v18847_v19, %v18848_v37  ;;  %v13011_v31 = vpop.eup %13010  ;;  %v4791_v16 = vadd.f32 1.0, %v13009_v22  ;;  %v11695_v37 = vpop.f32.mrb[204].mxu0 }
 0x27b   :  { %v4993_v19 = vadd.f32 1.0, %v13011_v31  ;;  %v5166_v56 = vmax.f32 %v17420_v47, %v11695_v37  ;;  %v11729_v6 = vpop.f32.mrb[204].mxu1 }
 0x27c   :  { %12535 = vmatpush3.bf16.msra.mxu0 %v18849_v0  ;;  %v7530_v0 = vld [vmem:[%s18524_s4 + $0x318] sm:$0xff]  ;;  %13022 = vrcp.f32 %v4791_v16  ;;  %v5368_v22 = vmax.f32 %v11723_v3, %v11729_v6  ;;  %v5344_v31 = vpop.f32.mrb[205].mxu1  ;;  %7964 = vmatmul.mubr.f32.gmra.mrb[46].mxu1 %v7496_v17 }
 0x27d   :  { %7834 = vmatmul.mubr.f32.gmra.mrb[52].mxu0 %v7521_v12  ;;  %v5142_v12 = vpop.f32.mrb[205].mxu0  ;;  %13024 = vrcp.f32 %v4994_v39  ;;  %v5170_v47 = vmax.f32 %v5162_v21, %v5166_v56  ;;  %v5367_v46 = vmax.f32 %v5324_v36, %v5344_v31  ;;  %7968 = vmatprep.mubr.f32.mxu1 %v7506_v20 }
 0x27e   :  { %7838 = vmatprep.mubr.f32.mxu0 %v7531_v45  ;;  %v5165_v45 = vmax.f32 %v5122_v27, %v5142_v12  ;;  %13026 = vrcp.f32 %v4993_v19  ;;  %v5372_v3 = vmax.f32 %v5364_v5, %v5368_v22  ;;  %v11698_v16 = vpop.f32.mrb[206].mxu0  ;;  %v17503_v23 = vpop.eup %13012 }
 0x27f   :  { %v5174_v38 = vmul.f32 %v5170_v47, %v14354_v24  ;;  %v5371_v21 = vmax.f32 %v5363_v25, %v5367_v46  ;;  %v5168_v36 = vmax.f32 %v17437_v53, %v11698_v16  ;;  %v11732_v30 = vpop.f32.mrb[206].mxu1  ;;  %v5152_v50 = vpop.f32.mrb[207].mxu0 }
 0x280   :  { %v5169_v27 = vmax.f32 %v5161_v33, %v5165_v45  ;;  %v5376_v28 = vmul.f32 %v5372_v3, %v14354_v24  ;;  %v5370_v33 = vmax.f32 %v17450_v59, %v11732_v30  ;;  %v5167_v39 = vmax.f32 %v17448_v7, %v5152_v50  ;;  %v5354_v19 = vpop.f32.mrb[207].mxu1  ;;  %7969 = vmatmul.mubr.f32.gmra.mrb[48].mxu1 %v7505_v26  ;;  %v7514_v7 = vld [vmem:[%s18524_s4 + $0x298] sm:$0xff]  ;;  %v7557_v50 = vld [vmem:[%s18524_s4 + $0x3f0] sm:$0xff] }
 0x281   :  { %7839 = vmatmul.mubr.f32.gmra.mrb[54].mxu0 %v7530_v0  ;;  %v5178_v25 = vadd.f32 %v5174_v38, %v14341_v18  ;;  %v5375_v53 = vmul.f32 %v5371_v21, %v14318_v10  ;;  %v5172_v37 = vmax.f32 %v5164_v43, %v5168_v36  ;;  %v5369_v59 = vmax.f32 %v17455_v4, %v5354_v19  ;;  %v17514_v0 = vpop.eup %13014  ;;  %v7548_v43 = vld [vmem:[%s18524_s4 + $0x3a8] sm:$0xff] }
 0x282   :  { %7843 = vmatprep.mubr.f32.mxu0 %v7540_v52  ;;  %v5173_v5 = vmul.f32 %v5169_v27, %v14318_v10  ;;  %v5380_v17 = vadd.f32 %v5376_v28, %v14341_v18  ;;  %v5374_v6 = vmax.f32 %v5366_v29, %v5370_v33  ;;  %v5171_v49 = vmax.f32 %v5163_v48, %v5167_v39  ;;  %v17524_v63 = vpop.f32.mrb[208].mxu0  ;;  %v7524_v4 = vld [vmem:[%s18524_s4 + $0x2e8] sm:$0xff]  ;;  %v13017_v12 = vpop.eup %13016  ;;  %v7558_v48 = vld [vmem:[%s18524_s4 + $0x3f8] sm:$0xff]  ;;  %v7523_v27 = vld [vmem:[%s18524_s4 + $0x2e0] sm:$0xff] }
 0x283   :  { %v5182_v52 = vsub.f32 0.0, %v5178_v25  ;;  %v5379_v9 = vadd.f32 %v5375_v53, %v14298_v57  ;;  %v5176_v32 = vmul.f32 %v5172_v37, %v14371_v34  ;;  %v5373_v35 = vmax.f32 %v5365_v54, %v5369_v59  ;;  %v17537_v8 = vpop.f32.mrb[209].mxu0  ;;  %v17539_v29 = vpop.f32.mrb[208].mxu1  ;;  %7973 = vmatprep.mubr.f32.mxu1 %v7515_v11  ;;  %v7567_v11 = vld [vmem:[%s18524_s4 + $0x440] sm:$0xff] }
 0x284   :  { %v5177_v56 = vadd.f32 %v5173_v5, %v14298_v57  ;;  %v17544_v20 = vpop.eup %13018  ;;  %v5384_v22 = vsub.f32 0.0, %v5380_v17  ;;  %v5378_v31 = vmul.f32 %v5374_v6, %v14371_v34  ;;  %v5175_v47 = vmul.f32 %v5171_v49, %v14382_v55  ;;  %v17548_v46 = vpop.f32.mrb[209].mxu1  ;;  %7974 = vmatmul.mubr.f32.gmra.mrb[50].mxu1 %v7514_v7  ;;  %v7566_v49 = vld [vmem:[%s18524_s4 + $0x438] sm:$0xff] }
 0x285   :  { %7844 = vmatmul.mubr.f32.gmra.mrb[56].mxu0 %v7539_v13  ;;  %v13021_v60 = vpop.eup %13020  ;;  %v5187_v44 = vmul.f32 1.442695, %v5182_v52  ;;  %v5383_v54 = vsub.f32 0.0, %v5379_v9  ;;  %v5180_v26 = vadd.f32 %v5176_v32, %v14412_v61  ;;  %v5377_v3 = vmul.f32 %v5373_v35, %v14382_v55  ;;  %7978 = vmatprep.mubr.f32.mxu1 %v7524_v4  ;;  %v7532_v9 = vld [vmem:[%s18524_s4 + $0x328] sm:$0xff] }
 0x286   :  { %7848 = vmatprep.mubr.f32.mxu0 %v7549_v62  ;;  %v5181_v45 = vsub.f32 0.0, %v5177_v56  ;;  %v13023_v16 = vpop.eup %13022  ;;  %v5389_v13 = vmul.f32 1.442695, %v5384_v22  ;;  %v5382_v21 = vadd.f32 %v5378_v31, %v14412_v61  ;;  %v5179_v36 = vadd.f32 %v5175_v47, %v14424_v2  ;;  %v17557_v30 = vpop.f32.mrb[210].mxu0 }
 0x287   :  { %v17562_v62 = vpop.eup %13024  ;;  %13028 = vpow2.f32 %v5187_v44  ;;  %v5387_v28 = vmul.f32 1.442695, %v5383_v54  ;;  %v5184_v5 = vsub.f32 0.0, %v5180_v26  ;;  %v5381_v33 = vadd.f32 %v5377_v3, %v14424_v2  ;;  %v17565_v39 = vpop.f32.mrb[211].mxu0  ;;  %v7541_v54 = vld [vmem:[%s18524_s4 + $0x370] sm:$0xff] }
 0x288   :  { %v5185_v38 = vmul.f32 1.442695, %v5181_v45  ;;  %v17567_v19 = vpop.f32.mrb[210].mxu1  ;;  %v17572_v25 = vpop.eup %13026  ;;  %13030 = vpow2.f32 %v5389_v13  ;;  %v5386_v53 = vsub.f32 0.0, %v5382_v21  ;;  %v5183_v37 = vsub.f32 0.0, %v5179_v36  ;;  %7979 = vmatmul.mubr.f32.gmra.mrb[52].mxu1 %v7523_v27 }
 0x289   :  { %7849 = vmatmul.mubr.f32.gmra.mrb[58].mxu0 %v7548_v43  ;;  %v12536_v59 = vpack.c.bf16 %v17503_v23, %v13017_v12  ;;  %v17575_v7 = vpop.f32.mrb[211].mxu1  ;;  %v5191_v17 = vmul.f32 1.442695, %v5184_v5  ;;  %v5385_v56 = vsub.f32 0.0, %v5381_v33  ;;  %v12540_v6 = vpack.c.bf16 %v13021_v60, %v13023_v16  ;;  %v7533_v43 = vld [vmem:[%s18524_s4 + $0x330] sm:$0xff]  ;;  %v7542_v60 = vld [vmem:[%s18524_s4 + $0x378] sm:$0xff] }
 0x28a   :  { %7853 = vmatprep.mubr.f32.mxu0 %v7558_v48  ;;  %13032 = vpow2.f32 %v5185_v38  ;;  %v5393_v4 = vmul.f32 1.442695, %v5386_v53  ;;  %v5189_v52 = vmul.f32 1.442695, %v5183_v37  ;;  %v12544_v23 = vpack.c.bf16 %v17514_v0, %v17544_v20  ;;  %v17585_v12 = vpop.f32.mrb[212].mxu0  ;;  %v7436_v20 = vld [vmem:[%s18524_s4 + $0x28] sm:$0xff]  ;;  %7983 = vmatprep.mubr.f32.mxu1 %v7533_v43 }
 0x28b   :  { %13034 = vpow2.f32 %v5387_v28  ;;  %12537 = vmatprep.subr.bf16.mxu0 %v12536_v59  ;;  %v5391_v32 = vmul.f32 1.442695, %v5385_v56  ;;  %v18850_v35 = vpack.c.bf16 %v17048_v41, %v17074_v40  ;;  %v5566_v48 = vmax.f32 %v17524_v63, %v17585_v12  ;;  %v17595_v22 = vpop.f32.mrb[212].mxu1  ;;  %v17597_v45 = vpop.f32.mrb[213].mxu0  ;;  %v7550_v28 = vld [vmem:[%s18524_s4 + $0x3b8] sm:$0xff] }
 0x28c   :  { %13036 = vpow2.f32 %v5191_v17  ;;  %v12548_v0 = vpack.c.bf16 %v17562_v62, %v17572_v25  ;;  %v5768_v41 = vmax.f32 %v17539_v29, %v17595_v22  ;;  %v5565_v40 = vmax.f32 %v17537_v8, %v17597_v45  ;;  %v17608_v31 = vpop.f32.mrb[213].mxu1  ;;  %7984 = vmatmul.mubr.f32.gmra.mrb[54].mxu1 %v7532_v9  ;;  %v7453_v29 = vld [vmem:[%s18524_s4 + $0xb0] sm:$0xff] }
 0x28d   :  { %7854 = vmatmul.mubr.f32.gmra.mrb[60].mxu0 %v7557_v50  ;;  %13038 = vpow2.f32 %v5393_v4  ;;  %v5767_v47 = vmax.f32 %v17548_v46, %v17608_v31  ;;  %7988 = vmatprep.mubr.f32.mxu1 %v7542_v60  ;;  %v18851_v26 = vpack.c.bf16 %v17102_v15, %v17111_v51  ;;  %v7551_v51 = vld [vmem:[%s18524_s4 + $0x3c0] sm:$0xff]  ;;  %v18853_v9 = vpack.c.bf16 %v17123_v14, %v17136_v42  ;;  %v7569_v42 = vld [vmem:[%s18524_s4 + $0x450] sm:$0xff] }
 0x28e   :  { %7858 = vmatprep.mubr.f32.mxu0 %v7567_v11  ;;  %12539 = vmatpush3.bf16.msra.mxu0 %v18850_v35  ;;  %13040 = vpow2.f32 %v5189_v52  ;;  %v17615_v44 = vpop.f32.mrb[214].mxu0  ;;  %v18852_v11 = vpack.c.bf16 %v17059_v1, %v17091_v58  ;;  %v7559_v1 = vld [vmem:[%s18524_s4 + $0x400] sm:$0xff] }
 0x28f   :  { %12541 = vmatprep.subr.bf16.mxu0 %v12540_v6  ;;  %13042 = vpow2.f32 %v5391_v32  ;;  %v5568_v3 = vmax.f32 %v17557_v30, %v17615_v44  ;;  %v17625_v27 = vpop.f32.mrb[214].mxu1  ;;  %v17627_v16 = vpop.f32.mrb[215].mxu0  ;;  %v7463_v46 = vld [vmem:[%s18524_s4 + $0x100] sm:$0xff] }
 0x290   :  { %v5770_v13 = vmax.f32 %v17567_v19, %v17625_v27  ;;  %v5567_v38 = vmax.f32 %v17565_v39, %v17627_v16  ;;  %v17633_v21 = vpop.f32.mrb[215].mxu1  ;;  %7989 = vmatmul.mubr.f32.gmra.mrb[56].mxu1 %v7541_v54  ;;  %v7462_v39 = vld [vmem:[%s18524_s4 + $0xf8] sm:$0xff] }
 0x291   :  { %7859 = vmatmul.mubr.f32.gmra.mrb[62].mxu0 %v7566_v49  ;;  %v13029_v36 = vpop.eup %13028  ;;  %v5769_v15 = vmax.f32 %v17575_v7, %v17633_v21  ;;  %7993 = vmatprep.mubr.f32.mxu1 %v7551_v51  ;;  %v7560_v49 = vld [vmem:[%s18524_s4 + $0x408] sm:$0xff] }
 0x292   :  { %8073 = vmatprep.mubr.f32.mxu0 %v7436_v20  ;;  %12543 = vmatpush3.bf16.msra.mxu0 %v18851_v26  ;;  %v13031_v50 = vpop.eup %13030  ;;  %v11757_v62 = vpop.f32.mrb[216].mxu0  ;;  %v5194_v33 = vadd.f32 1.0, %v13029_v36  ;;  %v7445_v26 = vld [vmem:[%s18524_s4 + $0x70] sm:$0xff]  ;;  %v7472_v7 = vld [vmem:[%s18524_s4 + $0x148] sm:$0xff] }
 0x293   :  { %12545 = vmatprep.subr.bf16.mxu0 %v12544_v23  ;;  %v5526_v25 = vpop.f32.mrb[217].mxu0  ;;  %v11791_v53 = vpop.f32.mrb[216].mxu1  ;;  %v5396_v59 = vadd.f32 1.0, %v13031_v50  ;;  %v7568_v50 = vld [vmem:[%s18524_s4 + $0x448] sm:$0xff] }
 0x294   :  { %v13033_v5 = vpop.eup %13032  ;;  %v5728_v17 = vpop.f32.mrb[217].mxu1  ;;  %7994 = vmatmul.mubr.f32.gmra.mrb[58].mxu1 %v7550_v28  ;;  %13044 = vrcp.f32 %v5194_v33 }
 0x295   :  { %v13035_v37 = vpop.eup %13034  ;;  %v5193_v6 = vadd.f32 1.0, %v13033_v5  ;;  %7998 = vmatprep.mubr.f32.mxu1 %v7560_v49  ;;  %13046 = vrcp.f32 %v5396_v59  ;;  %v7454_v49 = vld [vmem:[%s18524_s4 + $0xb8] sm:$0xff] }
 0x296   :  { %12547 = vmatpush3.bf16.msra.mxu0 %v18852_v11  ;;  %v13037_v56 = vpop.eup %13036  ;;  %v5395_v4 = vadd.f32 1.0, %v13035_v37  ;;  %v17649_v52 = vpop.f32.mrb[218].mxu0  ;;  %v7444_v11 = vld [vmem:[%s18524_s4 + $0x68] sm:$0xff]  ;;  %v7438_v37 = vld [vmem:[%s18524_s4 + $0x38] sm:$0xff] }
 0x297   :  { %12549 = vmatprep.subr.bf16.mxu0 %v12548_v0  ;;  %v13039_v43 = vpop.eup %13038  ;;  %v5196_v23 = vadd.f32 1.0, %v13037_v56  ;;  %v17657_v32 = vpop.f32.mrb[219].mxu0  ;;  %v7435_v0 = vld [vmem:[%s18524_s4 + $0x20] sm:$0xff]  ;;  %13048 = vrcp.f32 %v5193_v6 }
 0x298   :  { %v13041_v58 = vpop.eup %13040  ;;  %v11794_v35 = vpop.f32.mrb[218].mxu1  ;;  %7999 = vmatmul.mubr.f32.gmra.mrb[60].mxu1 %v7559_v1  ;;  %v5398_v14 = vadd.f32 1.0, %v13039_v43  ;;  %13050 = vrcp.f32 %v5395_v4 }
 0x299   :  { %v13043_v20 = vpop.eup %13042  ;;  %v5195_v60 = vadd.f32 1.0, %v13041_v58  ;;  %v17662_v54 = vpop.f32.mrb[219].mxu1  ;;  %8003 = vmatprep.mubr.f32.mxu1 %v7569_v42  ;;  %13052 = vrcp.f32 %v5196_v23 }
 0x29a   :  { %12551 = vmatpush3.bf16.msra.mxu0 %v18853_v9  ;;  %v5397_v36 = vadd.f32 1.0, %v13043_v20  ;;  %v11763_v51 = vpop.f32.mrb[220].mxu0 }
 0x29b   :  { %v5570_v28 = vmax.f32 %v11757_v62, %v11763_v51  ;;  %v11797_v5 = vpop.f32.mrb[220].mxu1  ;;  %v5546_v33 = vpop.f32.mrb[221].mxu0  ;;  %13054 = vrcp.f32 %v5195_v60 }
 0x29c   :  { %v5772_v59 = vmax.f32 %v11791_v53, %v11797_v5  ;;  %v5569_v56 = vmax.f32 %v5526_v25, %v5546_v33  ;;  %v5748_v6 = vpop.f32.mrb[221].mxu1  ;;  %8004 = vmatmul.mubr.f32.gmra.mrb[62].mxu1 %v7568_v50  ;;  %13056 = vrcp.f32 %v5398_v14 }
 0x29d   :  { %8074 = vmatmul.mubr.f32.vlgmr.msra.gmra.mrb[64].mxu0 %v7435_v0  ;;  %v5574_v62 = vmax.f32 %v5566_v48, %v5570_v28  ;;  %v5771_v43 = vmax.f32 %v5728_v17, %v5748_v6  ;;  %8218 = vmatprep.mubr.f32.mxu1 %v7438_v37  ;;  %13058 = vrcp.f32 %v5397_v36 }
 0x29e   :  { %8078 = vmatprep.mubr.f32.mxu0 %v7445_v26  ;;  %v5776_v4 = vmax.f32 %v5768_v41, %v5772_v59  ;;  %v5573_v25 = vmax.f32 %v5565_v40, %v5569_v56  ;;  %v11766_v53 = vpop.f32.mrb[222].mxu0  ;;  %v17705_v31 = vpop.eup %13044 }
 0x29f   :  { %v5578_v1 = vmul.f32 %v5574_v62, %v14354_v24  ;;  %v5775_v63 = vmax.f32 %v5767_v47, %v5771_v43  ;;  %v5572_v12 = vmax.f32 %v17649_v52, %v11766_v53  ;;  %v11800_v48 = vpop.f32.mrb[222].mxu1  ;;  %v5556_v17 = vpop.f32.mrb[223].mxu0  ;;  %v7471_v53 = vld [vmem:[%s18524_s4 + $0x140] sm:$0xff] }
 0x2a0   :  { %v5780_v8 = vmul.f32 %v5776_v4, %v14354_v24  ;;  %v5577_v22 = vmul.f32 %v5573_v25, %v14318_v10  ;;  %v5774_v45 = vmax.f32 %v11794_v35, %v11800_v48  ;;  %v5571_v41 = vmax.f32 %v17657_v32, %v5556_v17  ;;  %v5758_v40 = vpop.f32.mrb[223].mxu1  ;;  %v17713_v9 = vpop.eup %13046 }
 0x2a1   :  { %8079 = vmatmul.mubr.f32.gmra.mrb[66].mxu0 %v7444_v11  ;;  %v5582_v47 = vadd.f32 %v5578_v1, %v14341_v18  ;;  %v5779_v52 = vmul.f32 %v5775_v63, %v14318_v10  ;;  %v5576_v58 = vmax.f32 %v5568_v3, %v5572_v12  ;;  %v5773_v23 = vmax.f32 %v17662_v54, %v5758_v40  ;;  %v17725_v30 = vpop.eup %13048 }
 0x2a2   :  { %8083 = vmatprep.mubr.f32.mxu0 %v7454_v49  ;;  %v5784_v32 = vadd.f32 %v5780_v8, %v14341_v18  ;;  %v5581_v35 = vadd.f32 %v5577_v22, %v14298_v57  ;;  %v5778_v0 = vmax.f32 %v5770_v13, %v5774_v45  ;;  %v5575_v20 = vmax.f32 %v5567_v38, %v5571_v41  ;;  %v17723_v60 = vpop.f32.mrb[224].mxu0  ;;  %v17739_v16 = vpop.eup %13050 }
 0x2a3   :  { %v5586_v44 = vsub.f32 0.0, %v5582_v47  ;;  %v5783_v3 = vadd.f32 %v5779_v52, %v14298_v57  ;;  %v5580_v54 = vmul.f32 %v5576_v58, %v14371_v34  ;;  %v5777_v26 = vmax.f32 %v5769_v15, %v5773_v23  ;;  %v17732_v19 = vpop.f32.mrb[225].mxu0  ;;  %v17734_v27 = vpop.f32.mrb[224].mxu1 }
 0x2a4   :  { %v5788_v13 = vsub.f32 0.0, %v5784_v32  ;;  %v5585_v38 = vsub.f32 0.0, %v5581_v35  ;;  %v5782_v14 = vmul.f32 %v5778_v0, %v14371_v34  ;;  %v5579_v42 = vmul.f32 %v5575_v20, %v14382_v55  ;;  %v17743_v36 = vpop.f32.mrb[225].mxu1  ;;  %v17748_v21 = vpop.eup %13052  ;;  %v7480_v35 = vld [vmem:[%s18524_s4 + $0x188] sm:$0xff] }
 0x2a5   :  { %8084 = vmatmul.mubr.f32.gmra.mrb[68].mxu0 %v7453_v29  ;;  %v5591_v15 = vmul.f32 1.442695, %v5586_v44  ;;  %v5787_v51 = vsub.f32 0.0, %v5783_v3  ;;  %v5584_v50 = vadd.f32 %v5580_v54, %v14412_v61  ;;  %v5781_v28 = vmul.f32 %v5777_v26, %v14382_v55  ;;  %v17752_v5 = vpop.eup %13054  ;;  %v7481_v29 = vld [vmem:[%s18524_s4 + $0x190] sm:$0xff]  ;;  %v7490_v54 = vld [vmem:[%s18524_s4 + $0x1d8] sm:$0xff] }
 0x2a6   :  { %8088 = vmatprep.mubr.f32.mxu0 %v7463_v46  ;;  %v5793_v33 = vmul.f32 1.442695, %v5788_v13  ;;  %v5589_v11 = vmul.f32 1.442695, %v5585_v38  ;;  %v5786_v37 = vadd.f32 %v5782_v14, %v14412_v61  ;;  %v5583_v59 = vadd.f32 %v5579_v42, %v14424_v2  ;;  %v17756_v56 = vpop.f32.mrb[226].mxu0  ;;  %v17758_v6 = vpop.eup %13056  ;;  %v7489_v42 = vld [vmem:[%s18524_s4 + $0x1d0] sm:$0xff] }
 0x2a7   :  { %13060 = vpow2.f32 %v5591_v15  ;;  %v5791_v49 = vmul.f32 1.442695, %v5787_v51  ;;  %v5588_v62 = vsub.f32 0.0, %v5584_v50  ;;  %v5785_v43 = vadd.f32 %v5781_v28, %v14424_v2  ;;  %v17761_v4 = vpop.f32.mrb[227].mxu0  ;;  %v17763_v25 = vpop.f32.mrb[226].mxu1  ;;  %v7499_v50 = vld [vmem:[%s18524_s4 + $0x220] sm:$0xff] }
 0x2a8   :  { %v17768_v1 = vpop.eup %13058  ;;  %13062 = vpow2.f32 %v5793_v33  ;;  %v5790_v63 = vsub.f32 0.0, %v5786_v37  ;;  %v5587_v12 = vsub.f32 0.0, %v5583_v59  ;;  %v17770_v48 = vpop.f32.mrb[227].mxu1 }
 0x2a9   :  { %8089 = vmatmul.mubr.f32.gmra.mrb[70].mxu0 %v7462_v39  ;;  %13064 = vpow2.f32 %v5589_v11  ;;  %v5595_v8 = vmul.f32 1.442695, %v5588_v62  ;;  %v5789_v22 = vsub.f32 0.0, %v5785_v43 }
 0x2aa   :  { %8093 = vmatprep.mubr.f32.mxu0 %v7472_v7  ;;  %13066 = vpow2.f32 %v5791_v49  ;;  %v5797_v41 = vmul.f32 1.442695, %v5790_v63  ;;  %v5593_v40 = vmul.f32 1.442695, %v5587_v12  ;;  %v17779_v46 = vpop.f32.mrb[228].mxu0 }
 0x2ab   :  { %13068 = vpow2.f32 %v5595_v8  ;;  %v5795_v52 = vmul.f32 1.442695, %v5789_v22  ;;  %v5970_v58 = vmax.f32 %v17723_v60, %v17779_v46  ;;  %v17785_v23 = vpop.f32.mrb[228].mxu1  ;;  %v17787_v32 = vpop.f32.mrb[229].mxu0  ;;  %v7508_v8 = vld [vmem:[%s18524_s4 + $0x268] sm:$0xff] }
 0x2ac   :  { %13070 = vpow2.f32 %v5797_v41  ;;  %v6172_v20 = vmax.f32 %v17734_v27, %v17785_v23  ;;  %v5969_v44 = vmax.f32 %v17732_v19, %v17787_v32  ;;  %v17798_v3 = vpop.f32.mrb[229].mxu1  ;;  %v7525_v27 = vld [vmem:[%s18524_s4 + $0x2f0] sm:$0xff] }
 0x2ad   :  { %8094 = vmatmul.mubr.f32.gmra.mrb[72].mxu0 %v7471_v53  ;;  %13072 = vpow2.f32 %v5593_v40  ;;  %v6171_v26 = vmax.f32 %v17743_v36, %v17798_v3  ;;  %v7498_v53 = vld [vmem:[%s18524_s4 + $0x218] sm:$0xff]  ;;  %v7535_v36 = vld [vmem:[%s18524_s4 + $0x340] sm:$0xff] }
 0x2ae   :  { %8098 = vmatprep.mubr.f32.mxu0 %v7481_v29  ;;  %13074 = vpow2.f32 %v5795_v52  ;;  %v17805_v39 = vpop.f32.mrb[230].mxu0 }
 0x2af   :  { %v5972_v13 = vmax.f32 %v17756_v56, %v17805_v39  ;;  %v17809_v38 = vpop.f32.mrb[230].mxu1  ;;  %v17811_v14 = vpop.f32.mrb[231].mxu0 }
 0x2b0   :  { %v6174_v7 = vmax.f32 %v17763_v25, %v17809_v38  ;;  %v17820_v51 = vpop.f32.mrb[231].mxu1 }
 0x2b1   :  { %8099 = vmatmul.mubr.f32.gmra.mrb[74].mxu0 %v7480_v35  ;;  %v13061_v28 = vpop.eup %13060 }
 0x2b2   :  { %8103 = vmatprep.mubr.f32.mxu0 %v7490_v54  ;;  %v13063_v11 = vpop.eup %13062  ;;  %v11825_v37 = vpop.f32.mrb[232].mxu0  ;;  %v5598_v49 = vadd.f32 1.0, %v13061_v28 }
 0x2b3   :  { %v13065_v59 = vpop.eup %13064  ;;  %v5930_v62 = vpop.f32.mrb[233].mxu0  ;;  %v5800_v12 = vadd.f32 1.0, %v13063_v11  ;;  %v7507_v11 = vld [vmem:[%s18524_s4 + $0x260] sm:$0xff] }
 0x2b4   :  { %v11859_v43 = vpop.f32.mrb[232].mxu1  ;;  %v13067_v63 = vpop.eup %13066  ;;  %v5597_v41 = vadd.f32 1.0, %v13065_v59  ;;  %13076 = vrcp.f32 %v5598_v49  ;;  %v7517_v59 = vld [vmem:[%s18524_s4 + $0x2b0] sm:$0xff] }
 0x2b5   :  { %8104 = vmatmul.mubr.f32.gmra.mrb[76].mxu0 %v7489_v42  ;;  %v6132_v29 = vpop.f32.mrb[233].mxu1  ;;  %v13069_v22 = vpop.eup %13068  ;;  %v5799_v52 = vadd.f32 1.0, %v13067_v63  ;;  %13078 = vrcp.f32 %v5800_v12  ;;  %v7516_v12 = vld [vmem:[%s18524_s4 + $0x2a8] sm:$0xff] }
 0x2b6   :  { %8108 = vmatprep.mubr.f32.mxu0 %v7499_v50  ;;  %v13071_v40 = vpop.eup %13070  ;;  %v11828_v35 = vpop.f32.mrb[234].mxu0  ;;  %v5600_v42 = vadd.f32 1.0, %v13069_v22  ;;  %13080 = vrcp.f32 %v5597_v41  ;;  %v7526_v41 = vld [vmem:[%s18524_s4 + $0x2f8] sm:$0xff] }
 0x2b7   :  { %v13073_v54 = vpop.eup %13072  ;;  %v5940_v50 = vpop.f32.mrb[235].mxu0  ;;  %13082 = vrcp.f32 %v5799_v52 }
 0x2b8   :  { %v11862_v28 = vpop.f32.mrb[234].mxu1  ;;  %v13075_v0 = vpop.eup %13074  ;;  %v5599_v47 = vadd.f32 1.0, %v13073_v54  ;;  %13084 = vrcp.f32 %v5600_v42 }
 0x2b9   :  { %8109 = vmatmul.mubr.f32.gmra.mrb[78].mxu0 %v7498_v53  ;;  %v6142_v45 = vpop.f32.mrb[235].mxu1  ;;  %v5802_v53 = vadd.f32 1.0, %v13071_v40  ;;  %v5801_v49 = vadd.f32 1.0, %v13075_v0 }
 0x2ba   :  { %8113 = vmatprep.mubr.f32.mxu0 %v7508_v8  ;;  %v11831_v63 = vpop.f32.mrb[236].mxu0  ;;  %13086 = vrcp.f32 %v5599_v47 }
 0x2bb   :  { %v5974_v8 = vmax.f32 %v11825_v37, %v11831_v63  ;;  %v11865_v22 = vpop.f32.mrb[236].mxu1  ;;  %v5950_v17 = vpop.f32.mrb[237].mxu0  ;;  %13088 = vrcp.f32 %v5802_v53  ;;  %v18855_v53 = vmax.f32 %v17770_v48, %v17820_v51  ;;  %v7544_v48 = vld [vmem:[%s18524_s4 + $0x388] sm:$0xff] }
 0x2bc   :  { %v6176_v54 = vmax.f32 %v11859_v43, %v11865_v22  ;;  %v5973_v33 = vmax.f32 %v5930_v62, %v5950_v17  ;;  %v6152_v15 = vpop.f32.mrb[237].mxu1  ;;  %13090 = vrcp.f32 %v5801_v49 }
 0x2bd   :  { %8114 = vmatmul.mubr.f32.gmra.mrb[80].mxu0 %v7507_v11  ;;  %v5978_v0 = vmax.f32 %v5970_v58, %v5974_v8  ;;  %v6175_v37 = vmax.f32 %v6132_v29, %v6152_v15 }
 0x2be   :  { %8118 = vmatprep.mubr.f32.mxu0 %v7517_v59  ;;  %v6180_v40 = vmax.f32 %v6172_v20, %v6176_v54  ;;  %v5977_v17 = vmax.f32 %v5969_v44, %v5973_v33  ;;  %v11834_v47 = vpop.f32.mrb[238].mxu0  ;;  %v17866_v3 = vpop.eup %13076 }
 0x2bf   :  { %v5982_v62 = vmul.f32 %v5978_v0, %v14354_v24  ;;  %v6179_v43 = vmax.f32 %v6171_v26, %v6175_v37  ;;  %v5976_v60 = vmax.f32 %v11828_v35, %v11834_v47  ;;  %v11868_v46 = vpop.f32.mrb[238].mxu1  ;;  %v5960_v58 = vpop.f32.mrb[239].mxu0 }
 0x2c0   :  { %v6184_v23 = vmul.f32 %v6180_v40, %v14354_v24  ;;  %v5981_v19 = vmul.f32 %v5977_v17, %v14318_v10  ;;  %v6178_v32 = vmax.f32 %v11862_v28, %v11868_v46  ;;  %v5975_v20 = vmax.f32 %v5940_v50, %v5960_v58  ;;  %v6162_v44 = vpop.f32.mrb[239].mxu1  ;;  %v17873_v52 = vpop.eup %13078 }
 0x2c1   :  { %8119 = vmatmul.mubr.f32.gmra.mrb[82].mxu0 %v7516_v12  ;;  %v5986_v26 = vadd.f32 %v5982_v62, %v14341_v18  ;;  %v6183_v15 = vmul.f32 %v6179_v43, %v14318_v10  ;;  %v5980_v33 = vmax.f32 %v5972_v13, %v5976_v60  ;;  %v6177_v29 = vmax.f32 %v6142_v45, %v6162_v44  ;;  %v17885_v56 = vpop.eup %13080 }
 0x2c2   :  { %8123 = vmatprep.mubr.f32.mxu0 %v7526_v41  ;;  %v6188_v35 = vadd.f32 %v6184_v23, %v14341_v18  ;;  %v5985_v42 = vadd.f32 %v5981_v19, %v14298_v57  ;;  %v6182_v50 = vmax.f32 %v6174_v7, %v6178_v32  ;;  %v18854_v28 = vmax.f32 %v17761_v4, %v17811_v14  ;;  %v17883_v59 = vpop.f32.mrb[240].mxu0  ;;  %v7534_v4 = vld [vmem:[%s18524_s4 + $0x338] sm:$0xff]  ;;  %v17899_v14 = vpop.eup %13082 }
 0x2c3   :  { %v5990_v45 = vsub.f32 0.0, %v5986_v26  ;;  %v6187_v39 = vadd.f32 %v6183_v15, %v14298_v57  ;;  %v5984_v13 = vmul.f32 %v5980_v33, %v14371_v34  ;;  %v6181_v49 = vmax.f32 %v18855_v53, %v6177_v29  ;;  %v17892_v25 = vpop.f32.mrb[241].mxu0  ;;  %v17894_v38 = vpop.f32.mrb[240].mxu1  ;;  %v7553_v29 = vld [vmem:[%s18524_s4 + $0x3d0] sm:$0xff] }
 0x2c4   :  { %v5979_v11 = vmax.f32 %v18854_v28, %v5975_v20  ;;  %v6192_v7 = vsub.f32 0.0, %v6188_v35  ;;  %v5989_v63 = vsub.f32 0.0, %v5985_v42  ;;  %v6186_v8 = vmul.f32 %v6182_v50, %v14371_v34  ;;  %v17903_v12 = vpop.f32.mrb[241].mxu1  ;;  %v17908_v51 = vpop.eup %13084  ;;  %v7543_v20 = vld [vmem:[%s18524_s4 + $0x380] sm:$0xff] }
 0x2c5   :  { %8124 = vmatmul.mubr.f32.gmra.mrb[84].mxu0 %v7525_v27  ;;  %v5995_v54 = vmul.f32 1.442695, %v5990_v45  ;;  %v6191_v41 = vsub.f32 0.0, %v6187_v39  ;;  %v5988_v0 = vadd.f32 %v5984_v13, %v14412_v61  ;;  %v6185_v37 = vmul.f32 %v6181_v49, %v14382_v55  ;;  %v17912_v40 = vpop.eup %13086 }
 0x2c6   :  { %8128 = vmatprep.mubr.f32.mxu0 %v7535_v36  ;;  %v5983_v22 = vmul.f32 %v5979_v11, %v14382_v55  ;;  %v6197_v17 = vmul.f32 1.442695, %v6192_v7  ;;  %v5993_v47 = vmul.f32 1.442695, %v5989_v63  ;;  %v6190_v62 = vadd.f32 %v6186_v8, %v14412_v61  ;;  %v17916_v60 = vpop.f32.mrb[242].mxu0  ;;  %v17918_v46 = vpop.eup %13088  ;;  %v7552_v7 = vld [vmem:[%s18524_s4 + $0x3c8] sm:$0xff] }
 0x2c7   :  { %18856 = vst [vmem:[#allocation6_spill] sm:$0xff] %v17918_v46  ;;  %13092 = vpow2.f32 %v5995_v54  ;;  %v6195_v58 = vmul.f32 1.442695, %v6191_v41  ;;  %v5992_v27 = vsub.f32 0.0, %v5988_v0  ;;  %v6189_v23 = vadd.f32 %v6185_v37, %v14424_v2  ;;  %v17921_v19 = vpop.f32.mrb[243].mxu0  ;;  %v17923_v32 = vpop.f32.mrb[242].mxu1 }
 0x2c8   :  { %v5987_v43 = vadd.f32 %v5983_v22, %v14424_v2  ;;  %v17928_v44 = vpop.eup %13090  ;;  %13094 = vpow2.f32 %v6197_v17  ;;  %v6194_v36 = vsub.f32 0.0, %v6190_v62  ;;  %v17930_v15 = vpop.f32.mrb[243].mxu1  ;;  %v7562_v54 = vld [vmem:[%s18524_s4 + $0x418] sm:$0xff]  ;;  %v7561_v62 = vld [vmem:[%s18524_s4 + $0x410] sm:$0xff] }
 0x2c9   :  { %8129 = vmatmul.mubr.f32.gmra.mrb[86].mxu0 %v7534_v4  ;;  %18857 = vst [vmem:[#allocation7_spill] sm:$0xff] %v17928_v44  ;;  %13096 = vpow2.f32 %v5993_v47  ;;  %v5999_v35 = vmul.f32 1.442695, %v5992_v27  ;;  %v6193_v42 = vsub.f32 0.0, %v6189_v23  ;;  %v7571_v23 = vld [vmem:[%s18524_s4 + $0x460] sm:$0xff] }
 0x2ca   :  { %8133 = vmatprep.mubr.f32.mxu0 %v7544_v48  ;;  %v5991_v26 = vsub.f32 0.0, %v5987_v43  ;;  %13098 = vpow2.f32 %v6195_v58  ;;  %v6201_v28 = vmul.f32 1.442695, %v6194_v36  ;;  %v17939_v45 = vpop.f32.mrb[244].mxu0 }
 0x2cb   :  { %13100 = vpow2.f32 %v5999_v35  ;;  %v6199_v13 = vmul.f32 1.442695, %v6193_v42  ;;  %v17945_v49 = vpop.f32.mrb[244].mxu1  ;;  %v17947_v4 = vpop.f32.mrb[245].mxu0 }
 0x2cc   :  { %v5997_v11 = vmul.f32 1.442695, %v5991_v26  ;;  %13102 = vpow2.f32 %v6201_v28  ;;  %v17958_v48 = vpop.f32.mrb[245].mxu1 }
 0x2cd   :  { %8134 = vmatmul.mubr.f32.gmra.mrb[88].mxu0 %v7543_v20 }
 0x2ce   :  { %8138 = vmatprep.mubr.f32.mxu0 %v7553_v29  ;;  %13104 = vpow2.f32 %v5997_v11  ;;  %v17965_v0 = vpop.f32.mrb[246].mxu0 }
 0x2cf   :  { %13106 = vpow2.f32 %v6199_v13  ;;  %v17969_v17 = vpop.f32.mrb[246].mxu1  ;;  %v17971_v47 = vpop.f32.mrb[247].mxu0  ;;  %v7570_v13 = vld [vmem:[%s18524_s4 + $0x458] sm:$0xff] }
 0x2d0   :  { %v17980_v27 = vpop.f32.mrb[247].mxu1 }
 0x2d1   :  { %8139 = vmatmul.mubr.f32.gmra.mrb[90].mxu0 %v7552_v7  ;;  %v13093_v20 = vpop.eup %13092 }
 0x2d2   :  { %8143 = vmatprep.mubr.f32.mxu0 %v7562_v54  ;;  %v13095_v26 = vpop.eup %13094  ;;  %v11893_v29 = vpop.f32.mrb[248].mxu0  ;;  %v6002_v42 = vadd.f32 1.0, %v13093_v20 }
 0x2d3   :  { %v13097_v35 = vpop.eup %13096  ;;  %v6334_v28 = vpop.f32.mrb[249].mxu0  ;;  %v6204_v54 = vadd.f32 1.0, %v13095_v26 }
 0x2d4   :  { %v11927_v11 = vpop.f32.mrb[248].mxu1  ;;  %v13099_v7 = vpop.eup %13098  ;;  %v6001_v50 = vadd.f32 1.0, %v13097_v35  ;;  %13108 = vrcp.f32 %v6002_v42 }
 0x2d5   :  { %8144 = vmatmul.mubr.f32.gmra.mrb[92].mxu0 %v7561_v62  ;;  %v6536_v63 = vpop.f32.mrb[249].mxu1  ;;  %v13101_v39 = vpop.eup %13100  ;;  %v6203_v58 = vadd.f32 1.0, %v13099_v7  ;;  %v7439_v62 = vld [vmem:[%s18524_s4 + $0x40] sm:$0xff]  ;;  %13110 = vrcp.f32 %v6204_v54 }
 0x2d6   :  { %8148 = vmatprep.mubr.f32.mxu0 %v7571_v23  ;;  %v13103_v33 = vpop.eup %13102  ;;  %v11896_v36 = vpop.f32.mrb[250].mxu0  ;;  %v6004_v23 = vadd.f32 1.0, %v13101_v39  ;;  %13112 = vrcp.f32 %v6001_v50 }
 0x2d7   :  { %v6344_v43 = vpop.f32.mrb[251].mxu0  ;;  %v11930_v37 = vpop.f32.mrb[250].mxu1  ;;  %v6206_v35 = vadd.f32 1.0, %v13103_v33  ;;  %13114 = vrcp.f32 %v6203_v58  ;;  %v18859_v33 = vmax.f32 %v17894_v38, %v17945_v49 }
 0x2d8   :  { %v13105_v20 = vpop.eup %13104  ;;  %v6546_v22 = vpop.f32.mrb[251].mxu1  ;;  %13116 = vrcp.f32 %v6004_v23 }
 0x2d9   :  { %8149 = vmatmul.mubr.f32.gmra.mrb[94].mxu0 %v7570_v13  ;;  %v13107_v41 = vpop.eup %13106  ;;  %v6003_v26 = vadd.f32 1.0, %v13105_v20 }
 0x2da   :  { %12105 = vmatprep.mubr.f32.mxu0 %v7439_v62  ;;  %v6205_v7 = vadd.f32 1.0, %v13107_v41  ;;  %v11899_v8 = vpop.f32.mrb[252].mxu0  ;;  %v18858_v62 = vmax.f32 %v17883_v59, %v17939_v45 }
 0x2db   :  { %v6378_v13 = vmax.f32 %v11893_v29, %v11899_v8  ;;  %v11933_v53 = vpop.f32.mrb[252].mxu1  ;;  %v6354_v44 = vpop.f32.mrb[253].mxu0  ;;  %13118 = vrcp.f32 %v6003_v26  ;;  %v18860_v8 = vmax.f32 %v17892_v25, %v17947_v4  ;;  %v18862_v26 = vmax.f32 %v17916_v60, %v17965_v0 }
 0x2dc   :  { %v6580_v46 = vmax.f32 %v11927_v11, %v11933_v53  ;;  %v6377_v42 = vmax.f32 %v6334_v28, %v6354_v44  ;;  %v6556_v39 = vpop.f32.mrb[253].mxu1  ;;  %13120 = vrcp.f32 %v6206_v35  ;;  %v18861_v44 = vmax.f32 %v17903_v12, %v17958_v48 }
 0x2dd   :  { %v6382_v54 = vmax.f32 %v18858_v62, %v6378_v13  ;;  %v6579_v20 = vmax.f32 %v6536_v63, %v6556_v39  ;;  %13122 = vrcp.f32 %v6205_v7  ;;  %v18864_v13 = vmax.f32 %v17921_v19, %v17971_v47 }
 0x2de   :  { %v6584_v50 = vmax.f32 %v18859_v33, %v6580_v46  ;;  %v6381_v41 = vmax.f32 %v18860_v8, %v6377_v42  ;;  %v11902_v58 = vpop.f32.mrb[254].mxu0  ;;  %v13109_v23 = vpop.eup %13108 }
 0x2df   :  { %v6386_v53 = vmul.f32 %v6382_v54, %v14354_v24  ;;  %v6583_v29 = vmax.f32 %v18861_v44, %v6579_v20  ;;  %v6380_v28 = vmax.f32 %v11896_v36, %v11902_v58  ;;  %v11936_v59 = vpop.f32.mrb[254].mxu1  ;;  %v6364_v45 = vpop.f32.mrb[255].mxu0  ;;  %v18865_v54 = vmax.f32 %v17930_v15, %v17980_v27 }
 0x2e0   :  { %v6588_v63 = vmul.f32 %v6584_v50, %v14354_v24  ;;  %v6385_v11 = vmul.f32 %v6381_v41, %v14318_v10  ;;  %v6582_v38 = vmax.f32 %v11930_v37, %v11936_v59  ;;  %v6379_v46 = vmax.f32 %v6344_v43, %v6364_v45  ;;  %v6566_v49 = vpop.f32.mrb[255].mxu1  ;;  %v18013_v36 = vpop.eup %13110 }
 0x2e1   :  { %v6390_v25 = vadd.f32 %v6386_v53, %v14341_v18  ;;  %v6587_v4 = vmul.f32 %v6583_v29, %v14318_v10  ;;  %v6384_v12 = vmax.f32 %v18862_v26, %v6380_v28  ;;  %v6581_v48 = vmax.f32 %v6546_v22, %v6566_v49  ;;  %v13113_v62 = vpop.eup %13112 }
 0x2e2   :  { %v6592_v35 = vadd.f32 %v6588_v63, %v14341_v18  ;;  %v6389_v7 = vadd.f32 %v6385_v11, %v14298_v57  ;;  %v18863_v37 = vmax.f32 %v17923_v32, %v17969_v17  ;;  %v6383_v42 = vmax.f32 %v18864_v13, %v6379_v46  ;;  %v18023_v39 = vpop.f32.mrb[0].mxu0  ;;  %v13115_v17 = vpop.eup %13114 }
 0x2e3   :  { %v6394_v60 = vsub.f32 0.0, %v6390_v25  ;;  %v6591_v22 = vadd.f32 %v6587_v4, %v14298_v57  ;;  %v6388_v0 = vmul.f32 %v6384_v12, %v14371_v34  ;;  %v6585_v20 = vmax.f32 %v18865_v54, %v6581_v48  ;;  %v18030_v33 = vpop.f32.mrb[1].mxu0  ;;  %v18032_v32 = vpop.f32.mrb[0].mxu1 }
 0x2e4   :  { %v6586_v43 = vmax.f32 %v18863_v37, %v6582_v38  ;;  %v6596_v50 = vsub.f32 0.0, %v6592_v35  ;;  %v6393_v19 = vsub.f32 0.0, %v6389_v7  ;;  %v6387_v8 = vmul.f32 %v6383_v42, %v14382_v55  ;;  %v18036_v41 = vpop.f32.mrb[1].mxu1  ;;  %v13117_v58 = vpop.eup %13116 }
 0x2e5   :  { %v6399_v53 = vmul.f32 1.442695, %v6394_v60  ;;  %v6595_v44 = vsub.f32 0.0, %v6591_v22  ;;  %v6392_v29 = vadd.f32 %v6388_v0, %v14412_v61  ;;  %v6589_v15 = vmul.f32 %v6585_v20, %v14382_v55  ;;  %v13119_v27 = vpop.eup %13118 }
 0x2e6   :  { %v6590_v47 = vmul.f32 %v6586_v43, %v14371_v34  ;;  %v6601_v28 = vmul.f32 1.442695, %v6596_v50  ;;  %v6397_v59 = vmul.f32 1.442695, %v6393_v19  ;;  %v6391_v63 = vadd.f32 %v6387_v8, %v14424_v2  ;;  %v18042_v11 = vpop.f32.mrb[2].mxu0  ;;  %v13121_v38 = vpop.eup %13120 }
 0x2e7   :  { %13124 = vpow2.f32 %v6399_v53  ;;  %v6599_v46 = vmul.f32 1.442695, %v6595_v44  ;;  %v6396_v49 = vsub.f32 0.0, %v6392_v29  ;;  %v6593_v25 = vadd.f32 %v6589_v15, %v14424_v2  ;;  %v18045_v4 = vpop.f32.mrb[3].mxu0  ;;  %v18047_v26 = vpop.f32.mrb[2].mxu1 }
 0x2e8   :  { %v6594_v45 = vadd.f32 %v6590_v47, %v14412_v61  ;;  %v13123_v12 = vpop.eup %13122  ;;  %13126 = vpow2.f32 %v6601_v28  ;;  %v6395_v35 = vsub.f32 0.0, %v6391_v63  ;;  %v12552_v7 = vpack.c.bf16 %v13109_v23, %v13113_v62  ;;  %v18049_v37 = vpop.f32.mrb[3].mxu1 }
 0x2e9   :  { %13128 = vpow2.f32 %v6397_v59  ;;  %v6403_v43 = vmul.f32 1.442695, %v6396_v49  ;;  %v6597_v13 = vsub.f32 0.0, %v6593_v25  ;;  %v12556_v42 = vpack.c.bf16 %v13117_v58, %v13119_v27 }
 0x2ea   :  { %v6598_v48 = vsub.f32 0.0, %v6594_v45  ;;  %13130 = vpow2.f32 %v6599_v46  ;;  %v6401_v22 = vmul.f32 1.442695, %v6395_v35  ;;  %12553 = vmatprep.subr.bf16.mxu1 %v12552_v7  ;;  %v12560_v0 = vpack.c.bf16 %v18013_v36, %v13115_v17  ;;  %v18052_v54 = vpop.f32.mrb[4].mxu0 }
 0x2eb   :  { %13132 = vpow2.f32 %v6403_v43  ;;  %v6603_v20 = vmul.f32 1.442695, %v6597_v13  ;;  %v18866_v50 = vpack.c.bf16 %v17705_v31, %v17725_v30  ;;  %v6778_v23 = vmax.f32 %v18023_v39, %v18052_v54  ;;  %v18059_v62 = vpop.f32.mrb[4].mxu1  ;;  %v18061_v19 = vpop.f32.mrb[5].mxu0 }
 0x2ec   :  { %v6605_v60 = vmul.f32 1.442695, %v6598_v48  ;;  %v12564_v47 = vpack.c.bf16 %v13121_v38, %v13123_v12  ;;  %v6980_v36 = vmax.f32 %v18032_v32, %v18059_v62  ;;  %v6777_v17 = vmax.f32 %v18030_v33, %v18061_v19  ;;  %v18067_v8 = vpop.f32.mrb[5].mxu1 }
 0x2ed   :  { %12555 = vmatpush3.bf16.msra.mxu1 %v18866_v50  ;;  %v6979_v31 = vmax.f32 %v18036_v41, %v18067_v8  ;;  %v18867_v58 = vpack.c.bf16 %v17748_v21, %v17752_v5  ;;  %v18868_v45 = vpack.c.bf16 %v17713_v9, %v17739_v16 }
 0x2ee   :  { %13134 = vpow2.f32 %v6605_v60  ;;  %12557 = vmatprep.subr.bf16.mxu1 %v12556_v42  ;;  %v18071_v30 = vpop.f32.mrb[6].mxu0  ;;  %v18869_v60 = vpack.c.bf16 %v17758_v6, %v17768_v1 }
 0x2ef   :  { %13136 = vpow2.f32 %v6401_v22  ;;  %v6780_v53 = vmax.f32 %v18042_v11, %v18071_v30  ;;  %v18078_v32 = vpop.f32.mrb[6].mxu1  ;;  %v18080_v44 = vpop.f32.mrb[7].mxu0 }
 0x2f0   :  { %13138 = vpow2.f32 %v6603_v20  ;;  %v6982_v33 = vmax.f32 %v18047_v26, %v18078_v32  ;;  %v6779_v41 = vmax.f32 %v18045_v4, %v18080_v44  ;;  %v18086_v29 = vpop.f32.mrb[7].mxu1 }
 0x2f1   :  { %12559 = vmatpush3.bf16.msra.mxu1 %v18867_v58  ;;  %v13125_v15 = vpop.eup %13124  ;;  %v6981_v21 = vmax.f32 %v18049_v37, %v18086_v29 }
 0x2f2   :  { %12561 = vmatprep.subr.bf16.mxu1 %v12560_v0  ;;  %v13127_v5 = vpop.eup %13126  ;;  %v11961_v27 = vpop.f32.mrb[8].mxu0  ;;  %v6406_v59 = vadd.f32 1.0, %v13125_v15 }
 0x2f3   :  { %v13129_v28 = vpop.eup %13128  ;;  %v6738_v63 = vpop.f32.mrb[9].mxu0  ;;  %v6608_v49 = vadd.f32 1.0, %v13127_v5 }
 0x2f4   :  { %v11995_v38 = vpop.f32.mrb[8].mxu1  ;;  %v13131_v46 = vpop.eup %13130  ;;  %v6405_v48 = vadd.f32 1.0, %v13129_v28  ;;  %13140 = vrcp.f32 %v6406_v59 }
 0x2f5   :  { %12563 = vmatpush3.bf16.msra.mxu1 %v18868_v45  ;;  %v6940_v25 = vpop.f32.mrb[9].mxu1  ;;  %v13133_v12 = vpop.eup %13132  ;;  %v6607_v7 = vadd.f32 1.0, %v13131_v46  ;;  %13142 = vrcp.f32 %v6608_v49 }
 0x2f6   :  { %12565 = vmatprep.subr.bf16.mxu1 %v12564_v47  ;;  %v11964_v43 = vpop.f32.mrb[10].mxu0  ;;  %v6408_v42 = vadd.f32 1.0, %v13133_v12  ;;  %13144 = vrcp.f32 %v6405_v48 }
 0x2f7   :  { %v6748_v9 = vpop.f32.mrb[11].mxu0  ;;  %v11998_v16 = vpop.f32.mrb[10].mxu1  ;;  %13146 = vrcp.f32 %v6607_v7 }
 0x2f8   :  { %v13135_v35 = vpop.eup %13134  ;;  %v6950_v20 = vpop.f32.mrb[11].mxu1  ;;  %13148 = vrcp.f32 %v6408_v42 }
 0x2f9   :  { %v13137_v13 = vpop.eup %13136  ;;  %12567 = vmatpush3.bf16.msra.mxu1 %v18869_v60  ;;  %v6610_v50 = vadd.f32 1.0, %v13135_v35 }
 0x2fa   :  { %v13139_v22 = vpop.eup %13138  ;;  %v6407_v0 = vadd.f32 1.0, %v13137_v13  ;;  %v11967_v19 = vpop.f32.mrb[12].mxu0 }
 0x2fb   :  { %v6609_v62 = vadd.f32 1.0, %v13139_v22  ;;  %v6782_v47 = vmax.f32 %v11961_v27, %v11967_v19  ;;  %v12001_v8 = vpop.f32.mrb[12].mxu1  ;;  %v6758_v58 = vpop.f32.mrb[13].mxu0 }
 0x2fc   :  { %13150 = vrcp.f32 %v6407_v0  ;;  %v6984_v15 = vmax.f32 %v11995_v38, %v12001_v8  ;;  %v6781_v5 = vmax.f32 %v6738_v63, %v6758_v58  ;;  %v6960_v6 = vpop.f32.mrb[13].mxu1 }
 0x2fd   :  { %13152 = vrcp.f32 %v6610_v50  ;;  %v6786_v1 = vmax.f32 %v6778_v23, %v6782_v47  ;;  %v6983_v28 = vmax.f32 %v6940_v25, %v6960_v6 }
 0x2fe   :  { %13154 = vrcp.f32 %v6609_v62  ;;  %v6988_v59 = vmax.f32 %v6980_v36, %v6984_v15  ;;  %v6785_v45 = vmax.f32 %v6777_v17, %v6781_v5  ;;  %v11970_v46 = vpop.f32.mrb[14].mxu0  ;;  %v13141_v39 = vpop.eup %13140 }
 0x2ff   :  { %v6790_v49 = vmul.f32 %v6786_v1, %v14354_v24  ;;  %v6987_v12 = vmax.f32 %v6979_v31, %v6983_v28  ;;  %v6784_v27 = vmax.f32 %v11964_v43, %v11970_v46  ;;  %v12004_v48 = vpop.f32.mrb[14].mxu1  ;;  %v6768_v35 = vpop.f32.mrb[15].mxu0 }
 0x300   :  { %v6992_v38 = vmul.f32 %v6988_v59, %v14354_v24  ;;  %v6789_v63 = vmul.f32 %v6785_v45, %v14318_v10  ;;  %v6986_v7 = vmax.f32 %v11998_v16, %v12004_v48  ;;  %v6783_v13 = vmax.f32 %v6748_v9, %v6768_v35  ;;  %v6970_v42 = vpop.f32.mrb[15].mxu1  ;;  %v18107_v31 = vpop.eup %13142 }
 0x301   :  { %v6794_v54 = vadd.f32 %v6790_v49, %v14341_v18  ;;  %v6991_v23 = vmul.f32 %v6987_v12, %v14318_v10  ;;  %v6788_v36 = vmax.f32 %v6780_v53, %v6784_v27  ;;  %v6985_v17 = vmax.f32 %v6950_v20, %v6970_v42  ;;  %v13145_v22 = vpop.eup %13144 }
 0x302   :  { %v6996_v25 = vadd.f32 %v6992_v38, %v14341_v18  ;;  %v6793_v43 = vadd.f32 %v6789_v63, %v14298_v57  ;;  %v6990_v60 = vmax.f32 %v6982_v33, %v6986_v7  ;;  %v6787_v9 = vmax.f32 %v6779_v41, %v6783_v13  ;;  %v18117_v16 = vpop.f32.mrb[16].mxu0  ;;  %v13147_v32 = vpop.eup %13146 }
 0x303   :  { %v6798_v11 = vsub.f32 0.0, %v6794_v54  ;;  %v6995_v30 = vadd.f32 %v6991_v23, %v14298_v57  ;;  %v6792_v53 = vmul.f32 %v6788_v36, %v14371_v34  ;;  %v6989_v0 = vmax.f32 %v6981_v21, %v6985_v17  ;;  %v18124_v20 = vpop.f32.mrb[17].mxu0  ;;  %v18126_v26 = vpop.f32.mrb[16].mxu1 }
 0x304   :  { %v7000_v33 = vsub.f32 0.0, %v6996_v25  ;;  %v6797_v4 = vsub.f32 0.0, %v6793_v43  ;;  %v6994_v44 = vmul.f32 %v6990_v60, %v14371_v34  ;;  %v6791_v41 = vmul.f32 %v6787_v9, %v14382_v55  ;;  %v18130_v50 = vpop.f32.mrb[17].mxu1  ;;  %v13149_v62 = vpop.eup %13148 }
 0x305   :  { %v6803_v19 = vmul.f32 1.442695, %v6798_v11  ;;  %v6999_v47 = vsub.f32 0.0, %v6995_v30  ;;  %v6796_v8 = vadd.f32 %v6792_v53, %v14412_v61  ;;  %v6993_v37 = vmul.f32 %v6989_v0, %v14382_v55 }
 0x306   :  { %v13151_v29 = vpop.eup %13150  ;;  %v7005_v21 = vmul.f32 1.442695, %v7000_v33  ;;  %v6801_v58 = vmul.f32 1.442695, %v6797_v4  ;;  %v6998_v15 = vadd.f32 %v6994_v44, %v14412_v61  ;;  %v6795_v5 = vadd.f32 %v6791_v41, %v14424_v2  ;;  %v18136_v6 = vpop.f32.mrb[18].mxu0 }
 0x307   :  { %v13153_v1 = vpop.eup %13152  ;;  %13156 = vpow2.f32 %v6803_v19  ;;  %v7003_v28 = vmul.f32 1.442695, %v6999_v47  ;;  %v6800_v59 = vsub.f32 0.0, %v6796_v8  ;;  %v6997_v45 = vadd.f32 %v6993_v37, %v14424_v2  ;;  %v18139_v46 = vpop.f32.mrb[19].mxu0 }
 0x308   :  { %v18141_v49 = vpop.f32.mrb[18].mxu1  ;;  %v13155_v12 = vpop.eup %13154  ;;  %13158 = vpow2.f32 %v7005_v21  ;;  %v7002_v27 = vsub.f32 0.0, %v6998_v15  ;;  %v6799_v48 = vsub.f32 0.0, %v6795_v5  ;;  %v12568_v35 = vpack.c.bf16 %v13141_v39, %v13145_v22 }
 0x309   :  { %v18143_v38 = vpop.f32.mrb[19].mxu1  ;;  %13160 = vpow2.f32 %v6801_v58  ;;  %v6807_v63 = vmul.f32 1.442695, %v6800_v59  ;;  %v7001_v7 = vsub.f32 0.0, %v6997_v45  ;;  %v12572_v13 = vpack.c.bf16 %v13149_v62, %v13151_v29 }
 0x30a   :  { %13162 = vpow2.f32 %v7003_v28  ;;  %v7009_v42 = vmul.f32 1.442695, %v7002_v27  ;;  %v6805_v54 = vmul.f32 1.442695, %v6799_v48  ;;  %12569 = vmatprep.subr.bf16.mxu1 %v12568_v35  ;;  %v12576_v23 = vpack.c.bf16 %v18107_v31, %v13147_v32  ;;  %v18146_v36 = vpop.f32.mrb[20].mxu0  ;;  %v18874_v27 = vld [vmem:[#allocation7_spill] sm:$0xff] }
 0x30b   :  { %13164 = vpow2.f32 %v6807_v63  ;;  %v7007_v17 = vmul.f32 1.442695, %v7001_v7  ;;  %v18870_v25 = vpack.c.bf16 %v17866_v3, %v17885_v56  ;;  %v7182_v39 = vmax.f32 %v18117_v16, %v18146_v36  ;;  %v18153_v43 = vpop.f32.mrb[20].mxu1  ;;  %v18155_v60 = vpop.f32.mrb[21].mxu0  ;;  %v7447_v63 = vld [vmem:[%s18524_s4 + $0x80] sm:$0xff]  ;;  %v7465_v16 = vld [vmem:[%s18524_s4 + $0x110] sm:$0xff] }
 0x30c   :  { %v12580_v9 = vpack.c.bf16 %v13153_v1, %v13155_v12  ;;  %13166 = vpow2.f32 %v7009_v42  ;;  %v7384_v31 = vmax.f32 %v18126_v26, %v18153_v43  ;;  %v7181_v22 = vmax.f32 %v18124_v20, %v18155_v60  ;;  %v18161_v11 = vpop.f32.mrb[21].mxu1  ;;  %v18873_v12 = vld [vmem:[#allocation6_spill] sm:$0xff] }
 0x30d   :  { %12571 = vmatpush3.bf16.msra.mxu1 %v18870_v25  ;;  %13168 = vpow2.f32 %v6805_v54  ;;  %v7383_v3 = vmax.f32 %v18130_v50, %v18161_v11  ;;  %v18871_v30 = vpack.c.bf16 %v17908_v51, %v17912_v40  ;;  %v18872_v47 = vpack.c.bf16 %v17873_v52, %v17899_v14  ;;  %v7437_v52 = vld [vmem:[%s18524_s4 + $0x30] sm:$0xff] }
 0x30e   :  { %12573 = vmatprep.subr.bf16.mxu1 %v12572_v13  ;;  %13170 = vpow2.f32 %v7007_v17  ;;  %v18165_v56 = vpop.f32.mrb[22].mxu0  ;;  %v18875_v48 = vpack.c.bf16 %v18873_v12, %v18874_v27 }
 0x30f   :  { %v7184_v53 = vmax.f32 %v18136_v6, %v18165_v56  ;;  %v18172_v0 = vpop.f32.mrb[22].mxu1  ;;  %v18174_v32 = vpop.f32.mrb[23].mxu0 }
 0x310   :  { %v7386_v33 = vmax.f32 %v18141_v49, %v18172_v0  ;;  %v7183_v4 = vmax.f32 %v18139_v46, %v18174_v32  ;;  %v18180_v44 = vpop.f32.mrb[23].mxu1  ;;  %v7474_v49 = vld [vmem:[%s18524_s4 + $0x158] sm:$0xff] }
 0x311   :  { %12575 = vmatpush3.bf16.msra.mxu1 %v18871_v30  ;;  %v13157_v41 = vpop.eup %13156  ;;  %v7385_v51 = vmax.f32 %v18143_v38, %v18180_v44  ;;  %v7456_v30 = vld [vmem:[%s18524_s4 + $0xc8] sm:$0xff] }
 0x312   :  { %12577 = vmatprep.subr.bf16.mxu1 %v12576_v23  ;;  %v13159_v40 = vpop.eup %13158  ;;  %v6810_v21 = vadd.f32 1.0, %v13157_v41 }
 0x313   :  { %v12029_v62 = vpop.f32.mrb[24].mxu0  ;;  %v13161_v19 = vpop.eup %13160  ;;  %v7012_v5 = vadd.f32 1.0, %v13159_v40 }
 0x314   :  { %v7142_v8 = vpop.f32.mrb[25].mxu0  ;;  %v12063_v37 = vpop.f32.mrb[24].mxu1  ;;  %v6809_v28 = vadd.f32 1.0, %v13161_v19  ;;  %13172 = vrcp.f32 %v6810_v21 }
 0x315   :  { %12579 = vmatpush3.bf16.msra.mxu1 %v18872_v47  ;;  %v13163_v29 = vpop.eup %13162  ;;  %v7344_v58 = vpop.f32.mrb[25].mxu1  ;;  %13174 = vrcp.f32 %v7012_v5 }
 0x316   :  { %12581 = vmatprep.subr.bf16.mxu1 %v12580_v9  ;;  %v13165_v15 = vpop.eup %13164  ;;  %v7011_v45 = vadd.f32 1.0, %v13163_v29  ;;  %13176 = vrcp.f32 %v6809_v28  ;;  %v7446_v9 = vld [vmem:[%s18524_s4 + $0x78] sm:$0xff] }
 0x317   :  { %v13167_v1 = vpop.eup %13166  ;;  %v6812_v35 = vadd.f32 1.0, %v13165_v15 }
 0x318   :  { %v13169_v59 = vpop.eup %13168  ;;  %v7014_v17 = vadd.f32 1.0, %v13167_v1  ;;  %13178 = vrcp.f32 %v7011_v45 }
 0x319   :  { %12583 = vmatpush3.bf16.msra.mxu1 %v18875_v48  ;;  %v13171_v14 = vpop.eup %13170  ;;  %v6811_v42 = vadd.f32 1.0, %v13169_v59  ;;  %13180 = vrcp.f32 %v6812_v35 }
 0x31a   :  { %v12032_v7 = vpop.f32.mrb[26].mxu0  ;;  %v7013_v25 = vadd.f32 1.0, %v13171_v14 }
 0x31b   :  { %v12066_v13 = vpop.f32.mrb[26].mxu1  ;;  %v7152_v54 = vpop.f32.mrb[27].mxu0  ;;  %13182 = vrcp.f32 %v6811_v42 }
 0x31c   :  { %v7354_v23 = vpop.f32.mrb[27].mxu1  ;;  %8219 = vmatmul.mubr.f32.vlgmr.msra.gmra.mrb[64].mxu1 %v7437_v52  ;;  %13184 = vrcp.f32 %v7014_v17 }
 0x31d   :  { %8223 = vmatprep.mubr.f32.mxu1 %v7447_v63  ;;  %13186 = vrcp.f32 %v7013_v25 }
 0x31e   :  { %v12035_v41 = vpop.f32.mrb[28].mxu0  ;;  %v13173_v20 = vpop.eup %13172 }
 0x31f   :  { %v12069_v40 = vpop.f32.mrb[28].mxu1  ;;  %v7186_v19 = vmax.f32 %v12029_v62, %v12035_v41  ;;  %v7162_v29 = vpop.f32.mrb[29].mxu0  ;;  %v7455_v62 = vld [vmem:[%s18524_s4 + $0xc0] sm:$0xff] }
 0x320   :  { %v7388_v47 = vmax.f32 %v12063_v37, %v12069_v40  ;;  %v7364_v21 = vpop.f32.mrb[29].mxu1  ;;  %8224 = vmatmul.mubr.f32.gmra.mrb[66].mxu1 %v7446_v9  ;;  %v7185_v15 = vmax.f32 %v7142_v8, %v7162_v29 }
 0x321   :  { %v7387_v5 = vmax.f32 %v7344_v58, %v7364_v21  ;;  %8228 = vmatprep.mubr.f32.mxu1 %v7456_v30  ;;  %v7190_v1 = vmax.f32 %v7182_v39, %v7186_v19 }
 0x322   :  { %v7392_v28 = vmax.f32 %v7384_v31, %v7388_v47  ;;  %v7189_v37 = vmax.f32 %v7181_v22, %v7185_v15  ;;  %v12038_v36 = vpop.f32.mrb[30].mxu0 }
 0x323   :  { %v7391_v8 = vmax.f32 %v7383_v3, %v7387_v5  ;;  %v7194_v26 = vmul.f32 %v7190_v1, %v14354_v24  ;;  %v7188_v31 = vmax.f32 %v12032_v7, %v12038_v36  ;;  %v7172_v59 = vpop.f32.mrb[31].mxu0  ;;  %v13175_v3 = vpop.eup %13174  ;;  %v7492_v36 = vld [vmem:[%s18524_s4 + $0x1e8] sm:$0xff] }
 0x324   :  { %v12072_v39 = vpop.f32.mrb[30].mxu1  ;;  %v7396_v43 = vmul.f32 %v7392_v28, %v14354_v24  ;;  %8229 = vmatmul.mubr.f32.gmra.mrb[68].mxu1 %v7455_v62  ;;  %v7193_v60 = vmul.f32 %v7189_v37, %v14318_v10  ;;  %v7187_v22 = vmax.f32 %v7152_v54, %v7172_v59  ;;  %v13177_v52 = vpop.eup %13176 }
 0x325   :  { %v7390_v58 = vmax.f32 %v12066_v13, %v12072_v39  ;;  %v7374_v45 = vpop.f32.mrb[31].mxu1  ;;  %v7395_v50 = vmul.f32 %v7391_v8, %v14318_v10  ;;  %v7198_v12 = vadd.f32 %v7194_v26, %v14341_v18  ;;  %8233 = vmatprep.mubr.f32.mxu1 %v7465_v16  ;;  %v7192_v24 = vmax.f32 %v7184_v53, %v7188_v31  ;;  %v7464_v10 = vld [vmem:[%s18524_s4 + $0x108] sm:$0xff]  ;;  %v13179_v53 = vpop.eup %13178 }
 0x326   :  { %v7389_v11 = vmax.f32 %v7354_v23, %v7374_v45  ;;  %v7400_v27 = vadd.f32 %v7396_v43, %v14341_v18  ;;  %v7197_v14 = vadd.f32 %v7193_v60, %v14298_v57  ;;  %v7191_v18 = vmax.f32 %v7183_v4, %v7187_v22  ;;  %v13181_v13 = vpop.eup %13180  ;;  %v7491_v45 = vld [vmem:[%s18524_s4 + $0x1e0] sm:$0xff] }
 0x327   :  { %v7394_v48 = vmax.f32 %v7386_v33, %v7390_v58  ;;  %v7399_v35 = vadd.f32 %v7395_v50, %v14298_v57  ;;  %v7202_v0 = vsub.f32 0.0, %v7198_v12  ;;  %v7196_v63 = vmul.f32 %v7192_v24, %v14371_v34  ;;  %v13183_v44 = vpop.eup %13182  ;;  %v7500_v24 = vld [vmem:[%s18524_s4 + $0x228] sm:$0xff] }
 0x328   :  { %v7393_v6 = vmax.f32 %v7385_v51, %v7389_v11  ;;  %v10508_v56 = vpop.f32.mrb[32].mxu0  ;;  %v7404_v33 = vsub.f32 0.0, %v7400_v27  ;;  %v7201_v46 = vsub.f32 0.0, %v7197_v14  ;;  %8234 = vmatmul.mubr.f32.gmra.mrb[70].mxu1 %v7464_v10  ;;  %v7195_v38 = vmul.f32 %v7191_v18, %v14382_v55  ;;  %v13185_v17 = vpop.eup %13184 }
 0x329   :  { %v7398_v57 = vmul.f32 %v7394_v48, %v14371_v34  ;;  %v10509_v7 = vpop.f32.mrb[33].mxu0  ;;  %v7403_v32 = vsub.f32 0.0, %v7399_v35  ;;  %v7207_v51 = vmul.f32 1.442695, %v7202_v0  ;;  %v7200_v54 = vadd.f32 %v7196_v63, %v14412_v61  ;;  %8238 = vmatprep.mubr.f32.mxu1 %v7474_v49  ;;  %v7473_v34 = vld [vmem:[%s18524_s4 + $0x150] sm:$0xff]  ;;  %v13187_v19 = vpop.eup %13186 }
 0x32a   :  { %v7397_v4 = vmul.f32 %v7393_v6, %v14382_v55  ;;  %v7409_v42 = vmul.f32 1.442695, %v7404_v33  ;;  %v7205_v25 = vmul.f32 1.442695, %v7201_v46  ;;  %v7199_v30 = vadd.f32 %v7195_v38, %v14424_v2  ;;  %v7483_v55 = vld [vmem:[%s18524_s4 + $0x1a0] sm:$0xff] }
 0x32b   :  { %v7402_v23 = vadd.f32 %v7398_v57, %v14412_v61  ;;  %v7407_v9 = vmul.f32 1.442695, %v7403_v32  ;;  %13188 = vpow2.f32 %v7207_v51  ;;  %v7204_v61 = vsub.f32 0.0, %v7200_v54  ;;  %v7519_v38 = vld [vmem:[%s18524_s4 + $0x2c0] sm:$0xff] }
 0x32c   :  { %v7401_v41 = vadd.f32 %v7397_v4, %v14424_v2  ;;  %v10511_v40 = vpop.f32.mrb[34].mxu0  ;;  %v12584_v29 = vpack.c.bf16 %v13173_v20, %v13177_v52  ;;  %13190 = vpow2.f32 %v7409_v42  ;;  %v7203_v15 = vsub.f32 0.0, %v7199_v30  ;;  %8239 = vmatmul.mubr.f32.gmra.mrb[72].mxu1 %v7473_v34  ;;  %v7482_v2 = vld [vmem:[%s18524_s4 + $0x198] sm:$0xff]  ;;  %v7501_v20 = vld [vmem:[%s18524_s4 + $0x230] sm:$0xff] }
 0x32d   :  { %v7406_v47 = vsub.f32 0.0, %v7402_v23  ;;  %v10512_v21 = vpop.f32.mrb[35].mxu0  ;;  %v12588_v1 = vpack.c.bf16 %v13181_v13, %v13183_v44  ;;  %13192 = vpow2.f32 %v7205_v25  ;;  %v7211_v28 = vmul.f32 1.442695, %v7204_v61  ;;  %8243 = vmatprep.mubr.f32.mxu1 %v7483_v55  ;;  %v7510_v52 = vld [vmem:[%s18524_s4 + $0x278] sm:$0xff] }
 0x32e   :  { %v7405_v5 = vsub.f32 0.0, %v7401_v41  ;;  %12585 = vmatprep.subr.bf16.mxu0 %v12584_v29  ;;  %v12592_v37 = vpack.c.bf16 %v13175_v3, %v13179_v53  ;;  %13194 = vpow2.f32 %v7407_v9  ;;  %v7209_v8 = vmul.f32 1.442695, %v7203_v15  ;;  %v7518_v41 = vld [vmem:[%s18524_s4 + $0x2b8] sm:$0xff]  ;;  %v7527_v15 = vld [vmem:[%s18524_s4 + $0x300] sm:$0xff] }
 0x32f   :  { %v7413_v62 = vmul.f32 1.442695, %v7406_v47  ;;  %12587 = vmatpush3.bf16.msra.mxu0 %v12584_v29  ;;  %v12596_v39 = vpack.c.bf16 %v13185_v17, %v13187_v19  ;;  %13196 = vpow2.f32 %v7211_v28  ;;  %v10510_v43 = vadd.f32 %v10509_v7, %v10508_v56  ;;  %v10588_v50 = vpop.f32.mrb[32].mxu1  ;;  %v7509_v7 = vld [vmem:[%s18524_s4 + $0x270] sm:$0xff] }
 0x330   :  { %v7411_v16 = vmul.f32 1.442695, %v7405_v5  ;;  %v10514_v26 = vpop.f32.mrb[36].mxu0  ;;  %12589 = vmatprep.subr.bf16.mxu0 %v12588_v1  ;;  %v10513_v31 = vadd.f32 %v10512_v21, %v10511_v40  ;;  %8244 = vmatmul.mubr.f32.gmra.mrb[74].mxu1 %v7482_v2  ;;  %v10589_v11 = vpop.f32.mrb[33].mxu1  ;;  %v7528_v40 = vld [vmem:[%s18524_s4 + $0x308] sm:$0xff]  ;;  %v7537_v28 = vld [vmem:[%s18524_s4 + $0x350] sm:$0xff] }
 0x331   :  { %v10515_v58 = vpop.f32.mrb[37].mxu0  ;;  %13198 = vpow2.f32 %v7413_v62  ;;  %8248 = vmatprep.mubr.f32.mxu1 %v7492_v36  ;;  %v10590_v12 = vadd.f32 %v10589_v11, %v10588_v50 }
 0x332   :  { %v18266_v59 = vadd.f32 %v10515_v58, %v10514_v26  ;;  %13200 = vpow2.f32 %v7209_v8 }
 0x333   :  { %13202 = vpow2.f32 %v7411_v16  ;;  %12591 = vmatpush3.bf16.msra.mxu0 %v12588_v1  ;;  %v18282_v35 = vadd.f32 %v10590_v12, %v10510_v43  ;;  %v10591_v33 = vpop.f32.mrb[34].mxu1  ;;  %v7536_v43 = vld [vmem:[%s18524_s4 + $0x348] sm:$0xff] }
 0x334   :  { %v10517_v60 = vpop.f32.mrb[38].mxu0  ;;  %12593 = vmatprep.subr.bf16.mxu0 %v12592_v37  ;;  %8249 = vmatmul.mubr.f32.gmra.mrb[76].mxu1 %v7491_v45  ;;  %v10592_v13 = vpop.f32.mrb[35].mxu1 }
 0x335   :  { %v10518_v22 = vpop.f32.mrb[39].mxu0  ;;  %v13189_v27 = vpop.eup %13188  ;;  %8253 = vmatprep.mubr.f32.mxu1 %v7501_v20  ;;  %v10593_v44 = vadd.f32 %v10592_v13, %v10591_v33  ;;  %v7546_v20 = vld [vmem:[%s18524_s4 + $0x398] sm:$0xff] }
 0x336   :  { %v18274_v3 = vadd.f32 %v10518_v22, %v10517_v60  ;;  %v13191_v48 = vpop.eup %13190  ;;  %v7214_v10 = vadd.f32 1.0, %v13189_v27 }
 0x337   :  { %12595 = vmatpush3.bf16.msra.mxu0 %v12592_v37  ;;  %v13193_v18 = vpop.eup %13192  ;;  %v7416_v6 = vadd.f32 1.0, %v13191_v48  ;;  %v18294_v25 = vadd.f32 %v10593_v44, %v10513_v31  ;;  %v10594_v9 = vpop.f32.mrb[36].mxu1 }
 0x338   :  { %v10520_v14 = vpop.f32.mrb[40].mxu0  ;;  %12597 = vmatprep.subr.bf16.mxu0 %v12596_v39  ;;  %v13195_v56 = vpop.eup %13194  ;;  %13204 = vrcp.f32 %v7214_v10  ;;  %v7213_v53 = vadd.f32 1.0, %v13193_v18  ;;  %8254 = vmatmul.mubr.f32.gmra.mrb[78].mxu1 %v7500_v24 }
 0x339   :  { %v10521_v49 = vpop.f32.mrb[41].mxu0  ;;  %v13197_v63 = vpop.eup %13196  ;;  %13206 = vrcp.f32 %v7416_v6  ;;  %v7415_v57 = vadd.f32 1.0, %v13195_v56  ;;  %8258 = vmatprep.mubr.f32.mxu1 %v7510_v52  ;;  %v7555_v6 = vld [vmem:[%s18524_s4 + $0x3e0] sm:$0xff] }
 0x33a   :  { %v18284_v0 = vadd.f32 %v10521_v49, %v10520_v14  ;;  %13208 = vrcp.f32 %v7213_v53  ;;  %v7216_v32 = vadd.f32 1.0, %v13197_v63  ;;  %v10595_v55 = vpop.f32.mrb[37].mxu1 }
 0x33b   :  { %v13199_v46 = vpop.eup %13198  ;;  %12599 = vmatpush3.bf16.msra.mxu0 %v12596_v39  ;;  %13210 = vrcp.f32 %v7415_v57  ;;  %v10596_v61 = vadd.f32 %v10595_v55, %v10594_v9  ;;  %v10597_v5 = vpop.f32.mrb[38].mxu1  ;;  %v7448_v55 = vld [vmem:[%s18524_s4 + $0x88] sm:$0xff] }
 0x33c   :  { %v10523_v4 = vpop.f32.mrb[42].mxu0  ;;  %v13201_v51 = vpop.eup %13200  ;;  %v7418_v42 = vadd.f32 1.0, %v13199_v46  ;;  %13212 = vrcp.f32 %v7216_v32  ;;  %8259 = vmatmul.mubr.f32.gmra.mrb[80].mxu1 %v7509_v7  ;;  %v7564_v46 = vld [vmem:[%s18524_s4 + $0x428] sm:$0xff] }
 0x33d   :  { %v10524_v54 = vpop.f32.mrb[43].mxu0  ;;  %v13203_v23 = vpop.eup %13202  ;;  %v7215_v34 = vadd.f32 1.0, %v13201_v51  ;;  %8263 = vmatprep.mubr.f32.mxu1 %v7519_v38  ;;  %v18305_v21 = vadd.f32 %v10596_v61, %v18266_v59  ;;  %v7457_v61 = vld [vmem:[%s18524_s4 + $0xd0] sm:$0xff] }
 0x33e   :  { %v18292_v17 = vadd.f32 %v10524_v54, %v10523_v4  ;;  %13214 = vrcp.f32 %v7418_v42  ;;  %v7417_v30 = vadd.f32 1.0, %v13203_v23  ;;  %v10598_v2 = vpop.f32.mrb[39].mxu1  ;;  %v7563_v42 = vld [vmem:[%s18524_s4 + $0x420] sm:$0xff] }
 0x33f   :  { %13216 = vrcp.f32 %v7215_v34  ;;  %v10599_v16 = vadd.f32 %v10598_v2, %v10597_v5  ;;  %v10600_v59 = vpop.f32.mrb[40].mxu1  ;;  %v7573_v34 = vld [vmem:[%s18524_s4 + $0x470] sm:$0xff] }
 0x340   :  { %v10526_v19 = vpop.f32.mrb[44].mxu0  ;;  %13218 = vrcp.f32 %v7417_v30  ;;  %8264 = vmatmul.mubr.f32.gmra.mrb[82].mxu1 %v7518_v41  ;;  %v10601_v22 = vpop.f32.mrb[41].mxu1 }
 0x341   :  { %v10527_v47 = vpop.f32.mrb[45].mxu0  ;;  %8268 = vmatprep.mubr.f32.mxu1 %v7528_v40  ;;  %v18319_v58 = vadd.f32 %v10599_v16, %v18274_v3  ;;  %v10602_v27 = vadd.f32 %v10601_v22, %v10600_v59  ;;  %v7545_v3 = vld [vmem:[%s18524_s4 + $0x390] sm:$0xff] }
 0x342   :  { %v18302_v29 = vadd.f32 %v10527_v47, %v10526_v19  ;;  %v13205_v1 = vpop.eup %13204  ;;  %v7572_v19 = vld [vmem:[%s18524_s4 + $0x468] sm:$0xff] }
 0x343   :  { %v13207_v37 = vpop.eup %13206  ;;  %v18328_v14 = vadd.f32 %v10602_v27, %v18284_v0  ;;  %v10603_v18 = vpop.f32.mrb[42].mxu1  ;;  %v7554_v0 = vld [vmem:[%s18524_s4 + $0x3d8] sm:$0xff] }
 0x344   :  { %v10529_v62 = vpop.f32.mrb[46].mxu0  ;;  %v13209_v36 = vpop.eup %13208  ;;  %8269 = vmatmul.mubr.f32.gmra.mrb[84].mxu1 %v7527_v15  ;;  %v7502_v27 = vld [vmem:[%s18524_s4 + $0x238] sm:$0xff] }
 0x345   :  { %v10530_v8 = vpop.f32.mrb[47].mxu0  ;;  %v13211_v26 = vpop.eup %13210  ;;  %8273 = vmatprep.mubr.f32.mxu1 %v7537_v28  ;;  %v12600_v31 = vpack.c.bf16 %v13205_v1, %v13209_v36 }
 0x346   :  { %v18313_v39 = vadd.f32 %v10530_v8, %v10529_v62  ;;  %v13213_v45 = vpop.eup %13212  ;;  %v12608_v60 = vpack.c.bf16 %v13207_v37, %v13211_v26  ;;  %v10604_v53 = vpop.f32.mrb[43].mxu1  ;;  %v7466_v62 = vld [vmem:[%s18524_s4 + $0x118] sm:$0xff]  ;;  %v7475_v37 = vld [vmem:[%s18524_s4 + $0x160] sm:$0xff] }
 0x347   :  { %12601 = vmatprep.subr.bf16.mxu0 %v12600_v31  ;;  %v10605_v63 = vadd.f32 %v10604_v53, %v10603_v18 }
 0x348   :  { %v10532_v50 = vpop.f32.mrb[48].mxu0  ;;  %v13215_v11 = vpop.eup %13214  ;;  %8274 = vmatmul.mubr.f32.gmra.mrb[86].mxu1 %v7536_v43  ;;  %12603 = vmatpush3.bf16.msra.mxu0 %v12600_v31  ;;  %v7484_v31 = vld [vmem:[%s18524_s4 + $0x1a8] sm:$0xff] }
 0x349   :  { %v10533_v12 = vpop.f32.mrb[49].mxu0  ;;  %v13217_v24 = vpop.eup %13216  ;;  %8278 = vmatprep.mubr.f32.mxu1 %v7546_v20  ;;  %v18337_v7 = vadd.f32 %v10605_v63, %v18292_v17 }
 0x34a   :  { %v10534_v48 = vadd.f32 %v10533_v12, %v10532_v50  ;;  %v13219_v10 = vpop.eup %13218  ;;  %v12604_v52 = vpack.c.bf16 %v13213_v45, %v13217_v24  ;;  %v7493_v45 = vld [vmem:[%s18524_s4 + $0x1f0] sm:$0xff] }
 0x34b   :  { %v12612_v49 = vpack.c.bf16 %v13215_v11, %v13219_v10  ;;  %v10606_v13 = vpop.f32.mrb[44].mxu1 }
 0x34c   :  { %v10535_v56 = vpop.f32.mrb[50].mxu0  ;;  %12605 = vmatprep.subr.bf16.mxu0 %v12604_v52  ;;  %8279 = vmatmul.mubr.f32.gmra.mrb[88].mxu1 %v7545_v3  ;;  %v10607_v38 = vpop.f32.mrb[45].mxu1 }
 0x34d   :  { %v10536_v33 = vpop.f32.mrb[51].mxu0  ;;  %12607 = vmatpush3.bf16.msra.mxu0 %v12604_v52  ;;  %8283 = vmatprep.mubr.f32.mxu1 %v7555_v6  ;;  %v10608_v44 = vadd.f32 %v10607_v38, %v10606_v13 }
 0x34e   :  { %v10537_v57 = vadd.f32 %v10536_v33, %v10535_v56  ;;  %12609 = vmatprep.subr.bf16.mxu0 %v12608_v60  ;;  %v7520_v56 = vld [vmem:[%s18524_s4 + $0x2c8] sm:$0xff]  ;;  %v7529_v33 = vld [vmem:[%s18524_s4 + $0x310] sm:$0xff] }
 0x34f   :  { %v18346_v54 = vadd.f32 %v10608_v44, %v18302_v29  ;;  %v10609_v23 = vpop.f32.mrb[46].mxu1 }
 0x350   :  { %v10538_v32 = vpop.f32.mrb[52].mxu0  ;;  %8284 = vmatmul.mubr.f32.gmra.mrb[90].mxu1 %v7554_v0  ;;  %v10610_v9 = vpop.f32.mrb[47].mxu1 }
 0x351   :  { %v10539_v4 = vpop.f32.mrb[53].mxu0  ;;  %12611 = vmatpush3.bf16.msra.mxu0 %v12608_v60  ;;  %8288 = vmatprep.mubr.f32.mxu1 %v7564_v46  ;;  %v10611_v41 = vadd.f32 %v10610_v9, %v10609_v23  ;;  %v7538_v46 = vld [vmem:[%s18524_s4 + $0x358] sm:$0xff]  ;;  %v7565_v23 = vld [vmem:[%s18524_s4 + $0x430] sm:$0xff] }
 0x352   :  { %v10540_v51 = vadd.f32 %v10539_v4, %v10538_v32  ;;  %12613 = vmatprep.subr.bf16.mxu0 %v12612_v49  ;;  %v7547_v32 = vld [vmem:[%s18524_s4 + $0x3a0] sm:$0xff] }
 0x353   :  { %v18361_v47 = vadd.f32 %v10611_v41, %v18313_v39  ;;  %v10612_v29 = vpop.f32.mrb[48].mxu1 }
 0x354   :  { %v10541_v17 = vpop.f32.mrb[54].mxu0  ;;  %8289 = vmatmul.mubr.f32.gmra.mrb[92].mxu1 %v7563_v42  ;;  %v10613_v5 = vpop.f32.mrb[49].mxu1  ;;  %v7556_v42 = vld [vmem:[%s18524_s4 + $0x3e8] sm:$0xff] }
 0x355   :  { %v10542_v30 = vpop.f32.mrb[55].mxu0  ;;  %12615 = vmatpush3.bf16.msra.mxu0 %v12612_v49  ;;  %8293 = vmatprep.mubr.f32.mxu1 %v7573_v34  ;;  %v10614_v28 = vadd.f32 %v10613_v5, %v10612_v29 }
 0x356   :  { %v10543_v40 = vadd.f32 %v10542_v30, %v10541_v17 }
 0x357   :  { %v18369_v8 = vadd.f32 %v10614_v28, %v10534_v48  ;;  %v10615_v16 = vpop.f32.mrb[50].mxu1  ;;  %v7511_v48 = vld [vmem:[%s18524_s4 + $0x280] sm:$0xff] }
 0x358   :  { %v10544_v15 = vpop.f32.mrb[56].mxu0  ;;  %12106 = vmatmul.mubr.f32.vlgmr.msra.gmra.mrb[96].mxu0 %v7448_v55  ;;  %8294 = vmatmul.mubr.f32.gmra.mrb[94].mxu1 %v7572_v19  ;;  %v10616_v39 = vpop.f32.mrb[51].mxu1  ;;  %v7574_v55 = vld [vmem:[%s18524_s4 + $0x478] sm:$0xff] }
 0x359   :  { %v10545_v1 = vpop.f32.mrb[57].mxu0  ;;  %12108 = vmatprep.mubr.f32.mxu0 %v7457_v61  ;;  %v10617_v43 = vadd.f32 %v10616_v39, %v10615_v16 }
 0x35a   :  { %v10546_v2 = vadd.f32 %v10545_v1, %v10544_v15 }
 0x35b   :  { %v18377_v20 = vadd.f32 %v10617_v43, %v10537_v57  ;;  %v10618_v60 = vpop.f32.mrb[52].mxu1 }
 0x35c   :  { %v10547_v36 = vpop.f32.mrb[58].mxu0  ;;  %12109 = vmatmul.mubr.f32.gmra.mrb[98].mxu0 %v7466_v62  ;;  %v10619_v22 = vpop.f32.mrb[53].mxu1 }
 0x35d   :  { %v10548_v26 = vpop.f32.mrb[59].mxu0  ;;  %12111 = vmatprep.mubr.f32.mxu0 %v7475_v37  ;;  %v10620_v12 = vadd.f32 %v10619_v22, %v10618_v60 }
 0x35e   :  { %v10549_v59 = vadd.f32 %v10548_v26, %v10547_v36 }
 0x35f   :  { %v18385_v10 = vadd.f32 %v10620_v12, %v10540_v51  ;;  %v10621_v3 = vpop.f32.mrb[54].mxu1 }
 0x360   :  { %v10550_v50 = vpop.f32.mrb[60].mxu0  ;;  %12112 = vmatmul.mubr.f32.gmra.mrb[100].mxu0 %v7484_v31  ;;  %v10622_v18 = vpop.f32.mrb[55].mxu1 }
 0x361   :  { %v10551_v11 = vpop.f32.mrb[61].mxu0  ;;  %12114 = vmatprep.mubr.f32.mxu0 %v7493_v45  ;;  %v10623_v49 = vadd.f32 %v10622_v18, %v10621_v3 }
 0x362   :  { %v10552_v24 = vadd.f32 %v10551_v11, %v10550_v50 }
 0x363   :  { %v18393_v63 = vadd.f32 %v10623_v49, %v10543_v40  ;;  %v10624_v57 = vpop.f32.mrb[56].mxu1 }
 0x364   :  { %v10553_v52 = vpop.f32.mrb[62].mxu0  ;;  %12115 = vmatmul.mubr.f32.gmra.mrb[102].mxu0 %v7502_v27  ;;  %v10625_v0 = vpop.f32.mrb[57].mxu1 }
 0x365   :  { %v10554_v6 = vpop.f32.mrb[63].mxu0  ;;  %12117 = vmatprep.mubr.f32.mxu0 %v7511_v48  ;;  %v10626_v13 = vadd.f32 %v10625_v0, %v10624_v57 }
 0x366   :  { %v10555_v53 = vadd.f32 %v10554_v6, %v10553_v52 }
 0x367   :  { %v18401_v38 = vadd.f32 %v10626_v13, %v10546_v2  ;;  %v10627_v4 = vpop.f32.mrb[58].mxu1 }
 0x368   :  { %12118 = vmatmul.mubr.f32.gmra.mrb[104].mxu0 %v7520_v56  ;;  %v10628_v44 = vpop.f32.mrb[59].mxu1 }
 0x369   :  { %12120 = vmatprep.mubr.f32.mxu0 %v7529_v33  ;;  %v10629_v51 = vadd.f32 %v10628_v44, %v10627_v4 }
 0x36b   :  { %v18409_v34 = vadd.f32 %v10629_v51, %v10549_v59  ;;  %v10630_v17 = vpop.f32.mrb[60].mxu1 }
 0x36c   :  { %12121 = vmatmul.mubr.f32.gmra.mrb[106].mxu0 %v7538_v46  ;;  %v10631_v9 = vpop.f32.mrb[61].mxu1 }
 0x36d   :  { %12123 = vmatprep.mubr.f32.mxu0 %v7547_v32  ;;  %v10632_v41 = vadd.f32 %v10631_v9, %v10630_v17 }
 0x36f   :  { %v8001_v61 = vadd.f32 %v10632_v41, %v10552_v24  ;;  %v10633_v29 = vpop.f32.mrb[62].mxu1 }
 0x370   :  { %12124 = vmatmul.mubr.f32.gmra.mrb[108].mxu0 %v7556_v42  ;;  %v10668_v30 = vpop.f32.mrb[64].mxu0  ;;  %v10634_v15 = vpop.f32.mrb[63].mxu1 }
 0x371   :  { %12126 = vmatprep.mubr.f32.mxu0 %v7565_v23  ;;  %v10669_v40 = vpop.f32.mrb[65].mxu0  ;;  %v10635_v28 = vadd.f32 %v10634_v15, %v10633_v29 }
 0x372   :  { %v10670_v19 = vadd.f32 %v10669_v40, %v10668_v30 }
 0x373   :  { %v8006_v37 = vadd.f32 %v10635_v28, %v10555_v53 }
 0x374   :  { %12127 = vmatmul.mubr.f32.gmra.mrb[110].mxu0 %v7574_v55  ;;  %v18415_v5 = vadd.f32 %v10670_v19, %v18282_v35  ;;  %v10671_v1 = vpop.f32.mrb[66].mxu0 }
 0x375   :  { %v10672_v62 = vpop.f32.mrb[67].mxu0 }
 0x376   :  { %v10673_v2 = vadd.f32 %v10672_v62, %v10671_v1 }
 0x378   :  { %v18418_v16 = vadd.f32 %v10673_v2, %v18294_v25  ;;  %v10674_v36 = vpop.f32.mrb[68].mxu0 }
 0x379   :  { %v10675_v39 = vpop.f32.mrb[69].mxu0 }
 0x37a   :  { %v10676_v26 = vadd.f32 %v10675_v39, %v10674_v36  ;;  %v8536_v36 = vld [vmem:[%s18525_s7] sm:$0xff] }
 0x37b   :  { %12137 = vmatprep.mubr.msk.f32.mxu1 %vm8564_vm2, %v8536_v36 }
 0x37c   :  { %v18421_v43 = vadd.f32 %v10676_v26, %v18305_v21  ;;  %v10677_v31 = vpop.f32.mrb[70].mxu0 }
 0x37d   :  { %v10678_v59 = vpop.f32.mrb[71].mxu0 }
 0x37e   :  { %v10679_v45 = vadd.f32 %v10678_v59, %v10677_v31 }
 0x380   :  { %v18424_v35 = vadd.f32 %v10679_v45, %v18319_v58  ;;  %v10680_v60 = vpop.f32.mrb[72].mxu0 }
 0x381   :  { %v10681_v50 = vpop.f32.mrb[73].mxu0 }
 0x382   :  { %v10682_v22 = vadd.f32 %v10681_v50, %v10680_v60 }
 0x384   :  { %v18427_v11 = vadd.f32 %v10682_v22, %v18328_v14  ;;  %v10683_v25 = vpop.f32.mrb[74].mxu0 }
 0x385   :  { %v10684_v12 = vpop.f32.mrb[75].mxu0 }
 0x386   :  { %v10685_v27 = vadd.f32 %v10684_v12, %v10683_v25 }
 0x388   :  { %v18430_v24 = vadd.f32 %v10685_v27, %v18337_v7  ;;  %v10686_v21 = vpop.f32.mrb[76].mxu0 }
 0x389   :  { %v10687_v48 = vpop.f32.mrb[77].mxu0 }
 0x38a   :  { %v10688_v3 = vadd.f32 %v10687_v48, %v10686_v21 }
 0x38c   :  { %v18433_v52 = vadd.f32 %v10688_v3, %v18346_v54  ;;  %v10689_v58 = vpop.f32.mrb[78].mxu0 }
 0x38d   :  { %v10690_v18 = vpop.f32.mrb[79].mxu0 }
 0x38e   :  { %v10691_v6 = vadd.f32 %v10690_v18, %v10689_v58 }
 0x390   :  { %v18436_v49 = vadd.f32 %v10691_v6, %v18361_v47  ;;  %v10692_v14 = vpop.f32.mrb[80].mxu0 }
 0x391   :  { %v10693_v56 = vpop.f32.mrb[81].mxu0 }
 0x392   :  { %v10694_v53 = vadd.f32 %v10693_v56, %v10692_v14 }
 0x394   :  { %v18439_v33 = vadd.f32 %v10694_v53, %v18369_v8  ;;  %v10695_v7 = vpop.f32.mrb[82].mxu0 }
 0x395   :  { %v10696_v57 = vpop.f32.mrb[83].mxu0 }
 0x396   :  { %v10697_v0 = vadd.f32 %v10696_v57, %v10695_v7 }
 0x398   :  { %v18442_v13 = vadd.f32 %v10697_v0, %v18377_v20  ;;  %v10698_v54 = vpop.f32.mrb[84].mxu0 }
 0x399   :  { %v10699_v46 = vpop.f32.mrb[85].mxu0 }
 0x39a   :  { %v10700_v32 = vadd.f32 %v10699_v46, %v10698_v54 }
 0x39c   :  { %v18445_v4 = vadd.f32 %v10700_v32, %v18385_v10  ;;  %v10701_v47 = vpop.f32.mrb[86].mxu0 }
 0x39d   :  { %v10702_v44 = vpop.f32.mrb[87].mxu0 }
 0x39e   :  { %v10703_v51 = vadd.f32 %v10702_v44, %v10701_v47 }
 0x3a0   :  { %v18448_v42 = vadd.f32 %v10703_v51, %v18393_v63  ;;  %v10704_v8 = vpop.f32.mrb[88].mxu0 }
 0x3a1   :  { %v10705_v23 = vpop.f32.mrb[89].mxu0 }
 0x3a2   :  { %v10706_v17 = vadd.f32 %v10705_v23, %v10704_v8 }
 0x3a4   :  { %v18451_v9 = vadd.f32 %v10706_v17, %v18401_v38  ;;  %v10707_v20 = vpop.f32.mrb[90].mxu0 }
 0x3a5   :  { %v10708_v30 = vpop.f32.mrb[91].mxu0 }
 0x3a6   :  { %v10709_v41 = vadd.f32 %v10708_v30, %v10707_v20 }
 0x3a8   :  { %v18454_v55 = vadd.f32 %v10709_v41, %v18409_v34  ;;  %v10710_v10 = vpop.f32.mrb[92].mxu0 }
 0x3a9   :  { %v10711_v40 = vpop.f32.mrb[93].mxu0 }
 0x3aa   :  { %v10712_v19 = vadd.f32 %v10711_v40, %v10710_v10 }
 0x3ac   :  { %v18456_v29 = vadd.f32 %v10712_v19, %v8001_v61  ;;  %v10713_v15 = vpop.f32.mrb[94].mxu0 }
 0x3ad   :  { %v10714_v63 = vpop.f32.mrb[95].mxu0 }
 0x3ae   :  { %v10715_v1 = vadd.f32 %v10714_v63, %v10713_v15 }
 0x3b0   :  { %v18458_v28 = vadd.f32 %v10715_v1, %v8006_v37 }
 0x3ef   :  { %v10748_v62 = vpop.f32.mrb[64].mxu1 }
 0x3f0   :  { %v10749_v2 = vpop.f32.mrb[65].mxu1 }
 0x3f1   :  { %v10750_v38 = vadd.f32 %v10749_v2, %v10748_v62 }
 0x3f3   :  { %v10751_v34 = vpop.f32.mrb[66].mxu1  ;;  %v8221_v39 = vadd.f32 %v10750_v38, %v18415_v5 }
 0x3f4   :  { %v10752_v61 = vpop.f32.mrb[67].mxu1 }
 0x3f5   :  { %v10753_v26 = vadd.f32 %v10752_v61, %v10751_v34 }
 0x3f7   :  { %v10754_v31 = vpop.f32.mrb[68].mxu1  ;;  %v8226_v59 = vadd.f32 %v10753_v26, %v18418_v16 }
 0x3f8   :  { %v10755_v37 = vpop.f32.mrb[69].mxu1 }
 0x3f9   :  { %v10756_v45 = vadd.f32 %v10755_v37, %v10754_v31 }
 0x3fb   :  { %v10757_v60 = vpop.f32.mrb[70].mxu1  ;;  %v8231_v50 = vadd.f32 %v10756_v45, %v18421_v43 }
 0x3fc   :  { %v10758_v22 = vpop.f32.mrb[71].mxu1 }
 0x3fd   :  { %v10759_v25 = vadd.f32 %v10758_v22, %v10757_v60 }
 0x3ff   :  { %v10760_v12 = vpop.f32.mrb[72].mxu1  ;;  %v8236_v27 = vadd.f32 %v10759_v25, %v18424_v35 }
 0x400   :  { %v10761_v21 = vpop.f32.mrb[73].mxu1 }
 0x401   :  { %v10762_v48 = vadd.f32 %v10761_v21, %v10760_v12 }
 0x403   :  { %v10763_v5 = vpop.f32.mrb[74].mxu1  ;;  %v8241_v3 = vadd.f32 %v10762_v48, %v18427_v11 }
 0x404   :  { %v10764_v58 = vpop.f32.mrb[75].mxu1 }
 0x405   :  { %v10765_v18 = vadd.f32 %v10764_v58, %v10763_v5 }
 0x407   :  { %v10766_v6 = vpop.f32.mrb[76].mxu1  ;;  %v8246_v16 = vadd.f32 %v10765_v18, %v18430_v24 }
 0x408   :  { %v10767_v14 = vpop.f32.mrb[77].mxu1 }
 0x409   :  { %v10768_v56 = vadd.f32 %v10767_v14, %v10766_v6 }
 0x40b   :  { %v10769_v53 = vpop.f32.mrb[78].mxu1  ;;  %v8251_v43 = vadd.f32 %v10768_v56, %v18433_v52 }
 0x40c   :  { %v10770_v7 = vpop.f32.mrb[79].mxu1 }
 0x40d   :  { %v10771_v57 = vadd.f32 %v10770_v7, %v10769_v53 }
 0x40f   :  { %v10772_v0 = vpop.f32.mrb[80].mxu1  ;;  %v8256_v35 = vadd.f32 %v10771_v57, %v18436_v49  ;;  %v8463_v57 = vpop.permute.xlu0 %8462 }
 0x410   :  { %v10773_v54 = vpop.f32.mrb[81].mxu1 }
 0x411   :  { %v10774_v46 = vadd.f32 %v10773_v54, %v10772_v0 }
 0x413   :  { %v10775_v32 = vpop.f32.mrb[82].mxu1  ;;  %v8261_v11 = vadd.f32 %v10774_v46, %v18439_v33  ;;  %v8491_v46 = vpop.permute.xlu0 %8490 }
 0x414   :  { %v10776_v47 = vpop.f32.mrb[83].mxu1 }
 0x415   :  { %v10777_v44 = vadd.f32 %v10776_v47, %v10775_v32 }
 0x417   :  { %v10778_v51 = vpop.f32.mrb[84].mxu1  ;;  %v8266_v24 = vadd.f32 %v10777_v44, %v18442_v13 }
 0x418   :  { %v10779_v8 = vpop.f32.mrb[85].mxu1 }
 0x419   :  { %v10780_v23 = vadd.f32 %v10779_v8, %v10778_v51 }
 0x41b   :  { %v10781_v17 = vpop.f32.mrb[86].mxu1  ;;  %v8271_v52 = vadd.f32 %v10780_v23, %v18445_v4 }
 0x41c   :  { %v10782_v20 = vpop.f32.mrb[87].mxu1 }
 0x41d   :  { %v10783_v30 = vadd.f32 %v10782_v20, %v10781_v17 }
 0x41f   :  { %v10784_v41 = vpop.f32.mrb[88].mxu1  ;;  %v8276_v49 = vadd.f32 %v10783_v30, %v18448_v42  ;;  %v8473_v30 = vpop.permute.xlu0 %8472 }
 0x420   :  { %v10785_v10 = vpop.f32.mrb[89].mxu1 }
 0x421   :  { %v10786_v40 = vadd.f32 %v10785_v10, %v10784_v41 }
 0x423   :  { %v10787_v19 = vpop.f32.mrb[90].mxu1  ;;  %v8281_v33 = vadd.f32 %v10786_v40, %v18451_v9 }
 0x424   :  { %v10788_v15 = vpop.f32.mrb[91].mxu1 }
 0x425   :  { %v10789_v63 = vadd.f32 %v10788_v15, %v10787_v19 }
 0x427   :  { %v10790_v1 = vpop.f32.mrb[92].mxu1  ;;  %v8286_v13 = vadd.f32 %v10789_v63, %v18454_v55 }
 0x428   :  { %v10791_v62 = vpop.f32.mrb[93].mxu1 }
 0x429   :  { %v10792_v2 = vadd.f32 %v10791_v62, %v10790_v1 }
 0x42b   :  { %v12107_v38 = vpop.f32.mrb[96].mxu0  ;;  %v10793_v36 = vpop.f32.mrb[94].mxu1  ;;  %v8291_v61 = vadd.f32 %v10792_v2, %v18456_v29 }
 0x42c   :  { %v8371_v4 = vadd.f32 %v12107_v38, %v8226_v59  ;;  %v8365_v34 = vpop.f32.mrb[97].mxu0  ;;  %v10794_v26 = vpop.f32.mrb[95].mxu1 }
 0x42d   :  { %v8366_v42 = vadd.f32 %v8365_v34, %v8221_v39  ;;  %v10795_v31 = vadd.f32 %v10794_v26, %v10793_v36  ;;  %v8501_v38 = vpop.permute.xlu0 %8500 }
 0x42f   :  { %v12110_v37 = vpop.f32.mrb[98].mxu0  ;;  %v8296_v9 = vadd.f32 %v10795_v31, %v18458_v28 }
 0x430   :  { %v8381_v45 = vadd.f32 %v12110_v37, %v8236_v27  ;;  %v8375_v60 = vpop.f32.mrb[99].mxu0  ;;  %v8468_v27 = vpop.permute.xlu1 %8467 }
 0x431   :  { %v8376_v22 = vadd.f32 %v8375_v60, %v8231_v50 }
 0x433   :  { %v12113_v25 = vpop.f32.mrb[100].mxu0 }
 0x434   :  { %v8391_v12 = vadd.f32 %v12113_v25, %v8246_v16  ;;  %v8385_v55 = vpop.f32.mrb[101].mxu0  ;;  %v8496_v54 = vpop.permute.xlu1 %8495 }
 0x435   :  { %v8386_v21 = vadd.f32 %v8385_v55, %v8241_v3 }
 0x436   :  { %v8445_v48 = vmax.f32 %v8371_v4, %v8391_v12 }
 0x437   :  { %v8444_v5 = vmax.f32 %v8366_v42, %v8386_v21  ;;  %v12116_v58 = vpop.f32.mrb[102].mxu0 }
 0x438   :  { %v8401_v59 = vadd.f32 %v12116_v58, %v8256_v35  ;;  %v8395_v18 = vpop.f32.mrb[103].mxu0  ;;  %v8478_v17 = vpop.permute.xlu1 %8477 }
 0x439   :  { %v8396_v6 = vadd.f32 %v8395_v18, %v8251_v43 }
 0x43a   :  { %v8447_v29 = vmax.f32 %v8381_v45, %v8401_v59 }
 0x43b   :  { %v8446_v14 = vmax.f32 %v8376_v22, %v8396_v6  ;;  %v12119_v39 = vpop.f32.mrb[104].mxu0 }
 0x43c   :  { %v8411_v56 = vadd.f32 %v12119_v39, %v8266_v24  ;;  %v8405_v53 = vpop.f32.mrb[105].mxu0  ;;  %v8539_v39 = vld [vmem:[%s18525_s7 + $0x18] sm:$0xff] }
 0x43d   :  { %v8406_v7 = vadd.f32 %v8405_v53, %v8261_v11 }
 0x43f   :  { %v12122_v28 = vpop.f32.mrb[106].mxu0 }
 0x440   :  { %v8421_v50 = vadd.f32 %v12122_v28, %v8276_v49  ;;  %v8415_v0 = vpop.f32.mrb[107].mxu0 }
 0x441   :  { %v8416_v16 = vadd.f32 %v8415_v0, %v8271_v52 }
 0x443   :  { %v12125_v3 = vpop.f32.mrb[108].mxu0 }
 0x444   :  { %v8431_v32 = vadd.f32 %v12125_v3, %v8286_v13  ;;  %v8425_v47 = vpop.f32.mrb[109].mxu0  ;;  %v8506_v13 = vpop.permute.xlu1 %8505 }
 0x445   :  { %v8426_v35 = vadd.f32 %v8425_v47, %v8281_v33 }
 0x446   :  { %v8449_v44 = vmax.f32 %v8411_v56, %v8431_v32  ;;  %v8686_v56 = vld [vmem:[%s18526_s9] sm:$0xff] }
 0x447   :  { %v8448_v43 = vmax.f32 %v8406_v7, %v8426_v35  ;;  %v12128_v51 = vpop.f32.mrb[110].mxu0 }
 0x448   :  { %v8453_v8 = vmax.f32 %v8445_v48, %v8449_v44  ;;  %v8441_v23 = vadd.f32 %v12128_v51, %v8296_v9  ;;  %v8435_v24 = vpop.f32.mrb[111].mxu0  ;;  %v8552_v53 = vpop.permute.xlu1 %8551 }
 0x449   :  { %v8452_v20 = vmax.f32 %v8444_v5, %v8448_v43  ;;  %v8436_v11 = vadd.f32 %v8435_v24, %v8291_v61 }
 0x44a   :  { %v8481_v41 = vmul.f32 %v8468_v27, %v8453_v8  ;;  %v8451_v49 = vmax.f32 %v8421_v50, %v8441_v23  ;;  %v8547_v27 = vpop.permute.xlu0 %8546 }
 0x44b   :  { %v8480_v10 = vmul.f32 %v8463_v57, %v8452_v20  ;;  %v8450_v52 = vmax.f32 %v8416_v16, %v8436_v11 }
 0x44c   :  { %v8509_v40 = vadd.f32 %v8496_v54, %v8481_v41  ;;  %v8455_v19 = vmax.f32 %v8447_v29, %v8451_v49  ;;  %v8537_v29 = vld [vmem:[%s18525_s7 + $0x8] sm:$0xff]  ;;  %v8562_v16 = vpop.permute.xlu1 %8561 }
 0x44d   :  { %v8508_v15 = vadd.f32 %v8491_v46, %v8480_v10  ;;  %v8454_v63 = vmax.f32 %v8446_v14, %v8450_v52  ;;  %v8538_v14 = vld [vmem:[%s18525_s7 + $0x10] sm:$0xff] }
 0x44e   :  { %v8513_v1 = vsub.f32 0.0, %v8509_v40  ;;  %v8483_v33 = vmul.f32 %v8478_v17, %v8455_v19  ;;  %v8557_v46 = vpop.permute.xlu0 %8556 }
 0x44f   :  { %v8512_v62 = vsub.f32 0.0, %v8508_v15  ;;  %v8482_v2 = vmul.f32 %v8473_v30, %v8454_v63 }
 0x450   :  { %v8518_v36 = vmul.f32 1.442695, %v8513_v1  ;;  %v8511_v4 = vadd.f32 %v8506_v13, %v8483_v33  ;;  %v8687_v13 = vld [vmem:[%s18526_s9 + $0x8] sm:$0xff] }
 0x451   :  { %v8516_v34 = vmul.f32 1.442695, %v8512_v62  ;;  %v8510_v26 = vadd.f32 %v8501_v38, %v8482_v2  ;;  %v8688_v62 = vld [vmem:[%s18526_s9 + $0x10] sm:$0xff]  ;;  %v8689_v2 = vld [vmem:[%s18526_s9 + $0x18] sm:$0xff]  ;;  %v13333_v38 = vmov 0.0|0.0  }
 0x452   :  { %13220 = vpow2.f32 %v8518_v36  ;;  %v8515_v61 = vsub.f32 0.0, %v8511_v4  ;;  %v13335_v36 = vmov 0.0   ;;  %v8702_v4 = vpop.permute.xlu1 %8701 }
 0x453   :  { %13222 = vpow2.f32 %v8516_v34  ;;  %v8514_v42 = vsub.f32 0.0, %v8510_v26  ;;  %v8697_v34 = vpop.permute.xlu0 %8696 }
 0x454   :  { %v8522_v31 = vmul.f32 1.442695, %v8515_v61 }
 0x455   :  { %v8520_v37 = vmul.f32 1.442695, %v8514_v42 }
 0x456   :  { %13224 = vpow2.f32 %v8522_v31 }
 0x457   :  { %13226 = vpow2.f32 %v8520_v37 }
 0x45c   :  { %v13221_v45 = vpop.eup %13220 }
 0x45d   :  { %v13223_v60 = vpop.eup %13222  ;;  %v8525_v9 = vadd.f32 1.0, %v13221_v45  ;;  %v8712_v45 = vpop.permute.xlu1 %8711 }
 0x45e   :  { %v8524_v22 = vadd.f32 1.0, %v13223_v60 }
 0x45f   :  { %13228 = vrcp.f32 %v8525_v9 }
 0x460   :  { %v13225_v25 = vpop.eup %13224  ;;  %13230 = vrcp.f32 %v8524_v22  ;;  %v8707_v22 = vpop.permute.xlu0 %8706 }
 0x461   :  { %v13227_v12 = vpop.eup %13226  ;;  %v8527_v55 = vadd.f32 1.0, %v13225_v25 }
 0x462   :  { %v8526_v21 = vadd.f32 1.0, %v13227_v12 }
 0x463   :  { %13232 = vrcp.f32 %v8527_v55 }
 0x464   :  { %13234 = vrcp.f32 %v8526_v21 }
 0x469   :  { %v13229_v48 = vpop.eup %13228 }
 0x46a   :  { %v13231_v5 = vpop.eup %13230 }
 0x46b   :  { %v12616_v58 = vpack.c.bf16 %v13229_v48, %v13231_v5 }
 0x46d   :  { %v13233_v59 = vpop.eup %13232  ;;  %12617 = vmatprep.subr.bf16.mxu1 %v12616_v58 }
 0x46e   :  { %v13235_v18 = vpop.eup %13234  ;;  %12619 = vmatpush3.bf16.msra.mxu1 %v12616_v58 }
 0x46f   :  { %v12620_v6 = vpack.c.bf16 %v13233_v59, %v13235_v18 }
 0x471   :  { %12621 = vmatprep.subr.bf16.mxu1 %v12620_v6 }
 0x472   :  { %12623 = vmatpush3.bf16.msra.mxu1 %v12620_v6 }
 0x475   :  { %12138 = vmatmul.mubr.msk.f32.vlgmr.msra.gmra.mrb[96].mxu1 %vm8564_vm2, %v8537_v29 }
 0x476   :  { %12140 = vmatprep.mubr.msk.f32.mxu1 %vm8564_vm2, %v8538_v14 }
 0x479   :  { %12141 = vmatmul.mubr.msk.f32.gmra.mrb[98].mxu1 %vm8564_vm2, %v8539_v39 }
 0x47a   :  { %12151 = vmatprep.mubr.msk.f32.mxu1 %vm8564_vm2, %v8686_v56 }
 0x548   :  { %v12139_v7 = vpop.f32.mrb[96].mxu1 }
 0x549   :  { %v8649_v57 = vadd.f32 %v12139_v7, %v8552_v53  ;;  %v8643_v28 = vpop.f32.mrb[97].mxu1 }
 0x54a   :  { %v8644_v50 = vadd.f32 %v8643_v28, %v8547_v27 }
 0x54b   :  { %v8663_v0 = vsub.f32 0.0, %v8649_v57 }
 0x54c   :  { %v8662_v54 = vsub.f32 0.0, %v8644_v50  ;;  %v12142_v3 = vpop.f32.mrb[98].mxu1 }
 0x54d   :  { %v8668_v32 = vmul.f32 1.442695, %v8663_v0  ;;  %v8659_v47 = vadd.f32 %v12142_v3, %v8562_v16  ;;  %v8653_v35 = vpop.f32.mrb[99].mxu1  ;;  %v8835_v3 = vld [vmem:[%s18527_s11] sm:$0x1] }
 0x54e   :  { %v8666_v44 = vmul.f32 1.442695, %v8662_v54  ;;  %v8654_v43 = vadd.f32 %v8653_v35, %v8557_v46  ;;  %v8842_v46 = vlaneseq  ;;  %v8840_v35 = vpop.permute.xlu0 %8839 }
 0x54f   :  { %13236 = vpow2.f32 %v8668_v32  ;;  %v8665_v51 = vsub.f32 0.0, %v8659_v47 }
 0x550   :  { %13238 = vpow2.f32 %v8666_v44  ;;  %v8664_v8 = vsub.f32 0.0, %v8654_v43  ;;  %v8843_v32 = vshrl.u32 %v8842_v46, 7 }
 0x551   :  { %v8672_v23 = vmul.f32 1.442695, %v8665_v51 }
 0x552   :  { %v8670_v24 = vmul.f32 1.442695, %v8664_v8  ;;  %v8844_v47 = vsub.s32 0, %v8843_v32 }
 0x553   :  { %13240 = vpow2.f32 %v8672_v23 }
 0x554   :  { %13242 = vpow2.f32 %v8670_v24  ;;  %v8845_v44 = vrot.slane %v8840_v35, %v8844_v47 }
 0x559   :  { %v13237_v17 = vpop.eup %13236 }
 0x55a   :  { %v13239_v20 = vpop.eup %13238  ;;  %v8675_v11 = vadd.f32 1.0, %v13237_v17 }
 0x55b   :  { %v8674_v30 = vadd.f32 1.0, %v13239_v20 }
 0x55c   :  { %13244 = vrcp.f32 %v8675_v11 }
 0x55d   :  { %v13241_v41 = vpop.eup %13240  ;;  %13246 = vrcp.f32 %v8674_v30 }
 0x55e   :  { %v13243_v49 = vpop.eup %13242  ;;  %v8677_v10 = vadd.f32 1.0, %v13241_v41 }
 0x55f   :  { %v8676_v52 = vadd.f32 1.0, %v13243_v49 }
 0x560   :  { %13248 = vrcp.f32 %v8677_v10 }
 0x561   :  { %13250 = vrcp.f32 %v8676_v52 }
 0x566   :  { %v13245_v40 = vpop.eup %13244 }
 0x567   :  { %v13247_v19 = vpop.eup %13246 }
 0x568   :  { %v12624_v15 = vpack.c.bf16 %v13245_v40, %v13247_v19 }
 0x56a   :  { %v13249_v63 = vpop.eup %13248  ;;  %12625 = vmatprep.subr.bf16.mxu1 %v12624_v15 }
 0x56b   :  { %v13251_v1 = vpop.eup %13250  ;;  %12627 = vmatpush3.bf16.msra.mxu1 %v12624_v15 }
 0x56c   :  { %v12628_v33 = vpack.c.bf16 %v13249_v63, %v13251_v1 }
 0x56e   :  { %12629 = vmatprep.subr.bf16.mxu1 %v12628_v33 }
 0x56f   :  { %12631 = vmatpush3.bf16.msra.mxu1 %v12628_v33 }
 0x570   :  { %12632 = vmatprep.subr.bf16.mxu1 %v13333_v38 }
 0x572   :  { %12152 = vmatmul.mubr.msk.f32.vlgmr.msra.gmra.mrb[100].mxu1 %vm8564_vm2, %v8687_v13 }
 0x573   :  { %12154 = vmatprep.mubr.msk.f32.mxu1 %vm8564_vm2, %v8688_v62 }
 0x576   :  { %12155 = vmatmul.mubr.msk.f32.gmra.mrb[102].mxu1 %vm8564_vm2, %v8689_v2 }
 0x577   :  { %12165 = vmatprep.mubr.msk.f32.mxu1 %vm13334_vm3, %v13335_v36 }
 0x645   :  { %v12153_v26 = vpop.f32.mrb[100].mxu1 }
 0x646   :  { %v8798_v61 = vadd.f32 %v12153_v26, %v8702_v4  ;;  %v8792_v42 = vpop.f32.mrb[101].mxu1 }
 0x647   :  { %v8793_v31 = vadd.f32 %v8792_v42, %v8697_v34 }
 0x648   :  { %v8812_v37 = vsub.f32 0.0, %v8798_v61 }
 0x649   :  { %v8811_v60 = vsub.f32 0.0, %v8793_v31  ;;  %v12156_v9 = vpop.f32.mrb[102].mxu1 }
 0x64a   :  { %v8817_v25 = vmul.f32 1.442695, %v8812_v37  ;;  %v8808_v12 = vadd.f32 %v12156_v9, %v8712_v45  ;;  %v8802_v55 = vpop.f32.mrb[103].mxu1 }
 0x64b   :  { %v8815_v21 = vmul.f32 1.442695, %v8811_v60  ;;  %v8803_v48 = vadd.f32 %v8802_v55, %v8707_v22 }
 0x64c   :  { %13252 = vpow2.f32 %v8817_v25  ;;  %v8814_v5 = vsub.f32 0.0, %v8808_v12 }
 0x64d   :  { %13254 = vpow2.f32 %v8815_v21  ;;  %v8813_v58 = vsub.f32 0.0, %v8803_v48 }
 0x64e   :  { %v8821_v59 = vmul.f32 1.442695, %v8814_v5 }
 0x64f   :  { %v8819_v18 = vmul.f32 1.442695, %v8813_v58 }
 0x650   :  { %13256 = vpow2.f32 %v8821_v59 }
 0x651   :  { %13258 = vpow2.f32 %v8819_v18 }
 0x656   :  { %v13253_v6 = vpop.eup %13252 }
 0x657   :  { %v13255_v29 = vpop.eup %13254  ;;  %v8824_v14 = vadd.f32 1.0, %v13253_v6 }
 0x658   :  { %v8823_v39 = vadd.f32 1.0, %v13255_v29 }
 0x659   :  { %13260 = vrcp.f32 %v8824_v14 }
 0x65a   :  { %v13257_v56 = vpop.eup %13256  ;;  %13262 = vrcp.f32 %v8823_v39 }
 0x65b   :  { %v13259_v53 = vpop.eup %13258  ;;  %v8826_v27 = vadd.f32 1.0, %v13257_v56 }
 0x65c   :  { %v8825_v7 = vadd.f32 1.0, %v13259_v53 }
 0x65d   :  { %13264 = vrcp.f32 %v8826_v27 }
 0x65e   :  { %13266 = vrcp.f32 %v8825_v7 }
 0x663   :  { %v13261_v57 = vpop.eup %13260 }
 0x664   :  { %v13263_v28 = vpop.eup %13262 }
 0x665   :  { %v12633_v50 = vpack.c.bf16 %v13261_v57, %v13263_v28 }
 0x667   :  { %v13265_v0 = vpop.eup %13264  ;;  %12634 = vmatpush3.bf16.msra.mxu1 %v12633_v50 }
 0x668   :  { %v13267_v16 = vpop.eup %13266  ;;  %12635 = vmatprep.subr.bf16.mxu1 %v13333_v38 }
 0x669   :  { %v12636_v54 = vpack.c.bf16 %v13265_v0, %v13267_v16 }
 0x66b   :  { %12637 = vmatpush3.bf16.msra.mxu1 %v12636_v54 }
 0x66e   :  { %12166 = vmatmul.mubr.msk.f32.vlgmr.msra.gmra.mrb[104].mxu1 %vm8564_vm2, %v8835_v3 }
 0x741   :  { %v8915_v43 = vpop.f32.mrb[104].mxu1 }
 0x742   :  { %v8916_v51 = vadd.f32 %v8915_v43, %v8845_v44  ;;  %v12167_v8 = vpop.f32.mrb[105].mxu1 }
 0x744   :  { %8919 = vst [vmem:[%s18528_s13] sm:$0x1] %v8916_v51 }

</bundles_post_ra>
